<compile_context>
chip_gen: v7x
topology: tpu7x:2x2x1
jax: 0.10.0
libtpu: 0.0.40
codegen_flags: <defaults>
</compile_context>

<pallas_src>
import math
from functools import partial

import jax
import jax.numpy as jnp
from jax.experimental import pallas as pl
from jax.experimental.pallas import tpu as pltpu

# Feed the MXU with this dtype (accumulation is always f32).  On v6e/v7x set
# to jnp.bfloat16 for ~4x MXU throughput and half the weight DMA bytes; kept
# f32 here so the strict correctness check against the f32 reference passes.
MXU_INPUT_DTYPE = jnp.float32

# Tile caps: N tiles multiples of 128 (lane-dense stores / full MXU columns),
# M tiles 8-aligned, K tiles 128-aligned (256 chunks when long).  Small enough
# to leave headroom in v7x's 64 MiB VMEM even with double-buffering.
_TM_CAP = 256
_TN_CAP = 256
_TK_CAP = 256


def _round_up(n, m):
    return ((n + m - 1) // m) * m


def _pad_dim(n, cap, align):
    """Return (padded_size, tile): tile divides padded_size, tile % align == 0."""
    if n <= cap:
        p = _round_up(n, align)
        return p, p
    p = _round_up(n, cap)
    return p, cap


# --------------------------------------------------------------------------
# Generic fused linear:  y = act(x @ W^T + b [+ residual])
# --------------------------------------------------------------------------
def _apply_activation(y, activation):
    if activation is None:
        return y
    if activation == "relu":
        return jnp.maximum(y, 0.0)
    if activation == "leaky_relu":
        return jnp.where(y > 0, y, 0.2 * y)
    if activation == "gelu":
        # TODO(synk): torch nn.GELU defaults to exact erf; tanh approximation
        # used here (EUP friendly) and matched by the reference below.
        return jax.nn.gelu(y, approximate=True)
    raise ValueError(f"unknown activation: {activation}")


def _make_linear_kernel(activation, has_residual):
    def kernel(x_ref, w_ref, b_ref, *rest):
        if has_residual:
            r_ref, o_ref, acc_ref = rest
        else:
            o_ref, acc_ref = rest
        k = pl.program_id(2)

        @pl.when(k == 0)
        def _init():
            acc = jnp.zeros_like(acc_ref) + b_ref[...].astype(jnp.float32)
            if has_residual:
                acc = acc + r_ref[...].astype(jnp.float32)
            acc_ref[...] = acc

        # W kept in (N, K) layout: contract on K -- no transpose anywhere.
        acc_ref[...] += jax.lax.dot_general(
            x_ref[...].astype(MXU_INPUT_DTYPE),
            w_ref[...].astype(MXU_INPUT_DTYPE),
            dimension_numbers=(((1,), (1,)), ((), ())),
            preferred_element_type=jnp.float32,
        )

        @pl.when(k == pl.num_programs(2) - 1)
        def _store():
            o_ref[...] = _apply_activation(acc_ref[...], activation).astype(o_ref.dtype)

    return kernel


def pallas_linear(x, weight, bias=None, activation=None, residual=None):
    """act(x @ weight.T + bias) [+ residual], tiled (M, N, K) on the MXU.

    x: (..., K); weight: (N, K) (PyTorch nn.Linear layout); bias: (N,) or None;
    residual: (..., N) or None (added before the activation).
    """
    lead = x.shape[:-1]
    K = x.shape[-1]
    M = int(math.prod(lead))
    N = weight.shape[0]
    x2 = x.reshape(M, K)

    Mp, tm = _pad_dim(M, _TM_CAP, 8)
    Np, tn = _pad_dim(N, _TN_CAP, 128)
    Kp, tk = _pad_dim(K, _TK_CAP, 128)

    # NOTE: in production, store weights pre-padded so these pads are no-ops.
    xp = x2 if (Mp == M and Kp == K) else jnp.pad(x2, ((0, Mp - M), (0, Kp - K)))
    wp = weight if (Np == N and Kp == K) else jnp.pad(weight, ((0, Np - N), (0, Kp - K)))
    b = bias if bias is not None else jnp.zeros((N,), jnp.float32)
    b2 = b.reshape(1, N).astype(jnp.float32)
    bp = b2 if Np == N else jnp.pad(b2, ((0, 0), (0, Np - N)))

    inputs = [xp, wp, bp]
    in_specs = [
        pl.BlockSpec((tm, tk), lambda i, j, k: (i, k)),
        pl.BlockSpec((tn, tk), lambda i, j, k: (j, k)),
        pl.BlockSpec((1, tn), lambda i, j, k: (0, j)),
    ]
    if residual is not None:
        r2 = residual.reshape(M, N)
        rp = r2 if (Mp == M and Np == N) else jnp.pad(r2, ((0, Mp - M), (0, Np - N)))
        inputs.append(rp)
        in_specs.append(pl.BlockSpec((tm, tn), lambda i, j, k: (i, j)))

    out = pl.pallas_call(
        _make_linear_kernel(activation, residual is not None),
        out_shape=jax.ShapeDtypeStruct((Mp, Np), x.dtype),
        grid_spec=pltpu.PrefetchScalarGridSpec(
            num_scalar_prefetch=0,
            grid=(Mp // tm, Np // tn, Kp // tk),
            in_specs=in_specs,
            out_specs=pl.BlockSpec((tm, tn), lambda i, j, k: (i, j)),
            scratch_shapes=[pltpu.VMEM((tm, tn), jnp.float32)],
        ),
        compiler_params=pltpu.CompilerParams(
            dimension_semantics=("parallel", "parallel", "arbitrary")),
    )(*inputs)
    return out[:M, :N].reshape(*lead, N)


# --------------------------------------------------------------------------
# LayerNorm
# --------------------------------------------------------------------------
def _layernorm_kernel(x_ref, g_ref, b_ref, o_ref, *, eps):
    x = x_ref[...].astype(jnp.float32)
    mu = jnp.mean(x, axis=-1, keepdims=True)
    xc = x - mu
    var = jnp.mean(xc * xc, axis=-1, keepdims=True)
    y = xc * jax.lax.rsqrt(var + eps) * g_ref[...] + b_ref[...]
    o_ref[...] = y.astype(o_ref.dtype)


def pallas_layernorm(x, gamma, beta, eps=1e-5):
    lead = x.shape[:-1]
    E = x.shape[-1]
    M = int(math.prod(lead))
    x2 = x.reshape(M, E)
    Mp, tm = _pad_dim(M, _TM_CAP, 8)
    xp = x2 if Mp == M else jnp.pad(x2, ((0, Mp - M), (0, 0)))
    out = pl.pallas_call(
        partial(_layernorm_kernel, eps=eps),
        out_shape=jax.ShapeDtypeStruct((Mp, E), x.dtype),
        grid_spec=pltpu.PrefetchScalarGridSpec(
            num_scalar_prefetch=0,
            grid=(Mp // tm,),
            in_specs=[
                pl.BlockSpec((tm, E), lambda i: (i, 0)),
                pl.BlockSpec((1, E), lambda i: (0, 0)),
                pl.BlockSpec((1, E), lambda i: (0, 0)),
            ],
            out_specs=pl.BlockSpec((tm, E), lambda i: (i, 0)),
        ),
        compiler_params=pltpu.CompilerParams(dimension_semantics=("parallel",)),
    )(xp, gamma.reshape(1, E).astype(jnp.float32),
      beta.reshape(1, E).astype(jnp.float32))
    return out[:M].reshape(*lead, E)


# --------------------------------------------------------------------------
# Fused attention: one softmax(QK^T)V per (batch, head)
# --------------------------------------------------------------------------
def _attention_kernel(q_ref, k_ref, v_ref, o_ref, *, scale):
    q = q_ref[0].astype(jnp.float32)
    k = k_ref[0].astype(jnp.float32)
    v = v_ref[0].astype(jnp.float32)
    s = jax.lax.dot_general(q, k, (((1,), (1,)), ((), ())),
                            preferred_element_type=jnp.float32) * scale
    m = jnp.max(s, axis=-1, keepdims=True)
    p = jnp.exp(s - m)
    l = jnp.sum(p, axis=-1, keepdims=True)
    o = jax.lax.dot_general(p, v, (((1,), (0,)), ((), ())),
                            preferred_element_type=jnp.float32) / l
    o_ref[0] = o.astype(o_ref.dtype)


def pallas_attention(q, k, v, scale):
    """q, k, v: (B*H, S, Dh)."""
    BH, S, Dh = q.shape
    spec = pl.BlockSpec((1, S, Dh), lambda i: (i, 0, 0))
    return pl.pallas_call(
        partial(_attention_kernel, scale=scale),
        out_shape=jax.ShapeDtypeStruct((BH, S, Dh), q.dtype),
        grid_spec=pltpu.PrefetchScalarGridSpec(
            num_scalar_prefetch=0,
            grid=(BH,),
            in_specs=[spec, spec, spec],
            out_specs=spec,
        ),
        compiler_params=pltpu.CompilerParams(dimension_semantics=("parallel",)),
    )(q, k, v)


# --------------------------------------------------------------------------
# Fused VAE decoder (fc1+relu -> fc2+relu -> skip concat -> fc3) in ONE call.
# The skip-cat is expressed as two matmuls (w3 split) to avoid an in-kernel
# concatenate.
# --------------------------------------------------------------------------
def _vae_decode_kernel(z_ref, w1_ref, b1_ref, w2_ref, b2_ref,
                       w3h_ref, w3z_ref, b3_ref, o_ref):
    f32 = jnp.float32
    dn = (((1,), (1,)), ((), ()))
    z = z_ref[...].astype(f32)
    h1 = jnp.maximum(
        jax.lax.dot_general(z, w1_ref[...].astype(f32), dn,
                            preferred_element_type=f32) + b1_ref[...], 0.0)
    h2 = jnp.maximum(
        jax.lax.dot_general(h1, w2_ref[...].astype(f32), dn,
                            preferred_element_type=f32) + b2_ref[...], 0.0)
    o = (jax.lax.dot_general(h2, w3h_ref[...].astype(f32), dn,
                             preferred_element_type=f32)
         + jax.lax.dot_general(z, w3z_ref[...].astype(f32), dn,
                               preferred_element_type=f32)
         + b3_ref[...])
    o_ref[...] = o.astype(o_ref.dtype)


def pallas_vae_decode(z, vp):
    B, zn = z.shape
    w1, b1 = vp['fc1_w'], vp['fc1_b']
    w2, b2 = vp['fc2_w'], vp['fc2_b']
    w3, b3 = vp['fc3_w'], vp['fc3_b']
    h1n, h2n, outn = w1.shape[0], w2.shape[0], w3.shape[0]
    w3h, w3z = w3[:, :h2n], w3[:, h2n:]
    args = (z, w1, b1.reshape(1, h1n), w2, b2.reshape(1, h2n),
            w3h, w3z, b3.reshape(1, outn))

    def full(a):
        return pl.BlockSpec(a.shape, lambda i: (0, 0))

    return pl.pallas_call(
        _vae_decode_kernel,
        out_shape=jax.ShapeDtypeStruct((B, outn), z.dtype),
        grid_spec=pltpu.PrefetchScalarGridSpec(
            num_scalar_prefetch=0,
            grid=(1,),
            in_specs=[full(a) for a in args],
            out_specs=pl.BlockSpec((B, outn), lambda i: (0, 0)),
        ),
        compiler_params=pltpu.CompilerParams(dimension_semantics=("arbitrary",)),
    )(*args)


# --------------------------------------------------------------------------
# Conv1d (PyTorch semantics) lowered to im2col + the fused linear kernel.
# --------------------------------------------------------------------------
def _im2col_1d(x, k, stride, padding):
    """x: (B, C, L) -> (B, L_out, C*k); flattening order (C, k) matches a
    PyTorch Conv1d weight reshaped to (C_out, C_in*k)."""
    B, C, L = x.shape
    if padding:
        x = jnp.pad(x, ((0, 0), (0, 0), (padding, padding)))
    L_out = (L + 2 * padding - k) // stride + 1
    idx = jnp.arange(L_out)[:, None] * stride + jnp.arange(k)[None, :]
    patches = x[:, :, idx]                                    # (B, C, L_out, k)
    return jnp.transpose(patches, (0, 2, 1, 3)).reshape(B, L_out, C * k)


def conv1d_pallas(x, w, b, stride, padding, act=None):
    B, C_in, L = x.shape
    C_out, _, K = w.shape
    patches = _im2col_1d(x, K, stride, padding)
    L_out = patches.shape[1]
    y = pallas_linear(patches.reshape(B * L_out, C_in * K),
                      w.reshape(C_out, C_in * K), b, activation=act)
    return jnp.transpose(y.reshape(B, L_out, C_out), (0, 2, 1))


def fold_bn_into_conv(w, b, bn, eps=1e-5):
    """Fold eval-mode BatchNorm1d into the preceding Conv1d (fold once at
    load time in production)."""
    scale = bn['g'] / jnp.sqrt(bn['v'] + eps)
    w_f = w * scale[:, None, None]
    b0 = b if b is not None else 0.0
    b_f = (b0 - bn['m']) * scale + bn['b']
    return w_f, b_f


# TODO(synk): retinapy.nn.ResBlock1d internals are not in the spec; a standard
# (conv-BN-lrelu-conv-BN) + (1x1-conv-BN shortcut) block with stride-2
# downsampling is implemented here.
def resblock_pallas(x, p, downsample, ksize=7):
    stride = 2 if downsample else 1
    pad = (ksize - 1) // 2
    B, C_in, L = x.shape
    w1, b1 = fold_bn_into_conv(p['w1'], None, p['bn1'])
    w2, b2 = fold_bn_into_conv(p['w2'], None, p['bn2'])
    ws, bs = fold_bn_into_conv(p['ws'], None, p['bns'])
    mid, C_out = w1.shape[0], w2.shape[0]

    # shortcut (1x1 conv) kept channel-last so it can be folded into the main
    # path's matmul epilogue as the residual.
    sc_patches = _im2col_1d(x, 1, stride, 0)                  # (B, L1, C_in)
    L1 = sc_patches.shape[1]
    sc = pallas_linear(sc_patches.reshape(B * L1, C_in), ws.reshape(C_out, C_in), bs)

    h = conv1d_pallas(x, w1, b1, stride=stride, padding=pad, act='leaky_relu')
    h_patches = _im2col_1d(h, ksize, 1, pad).reshape(B * L1, mid * ksize)
    out = pallas_linear(h_patches, w2.reshape(C_out, mid * ksize), b2,
                        activation='leaky_relu', residual=sc)
    return jnp.transpose(out.reshape(B, L1, C_out), (0, 2, 1))


# --------------------------------------------------------------------------
# Transformer layer (pre-norm ViT-style encoder block).
# TODO(synk): retinapy.nn.Transformer internals are not in the spec; the
# standard PreNorm(Attention)+PreNorm(FeedForward) residual block is assumed.
# --------------------------------------------------------------------------
def transformer_layer_pallas(x, p, cfg):
    B, S, E = x.shape
    H, Dh = cfg['num_heads'], cfg['head_dim']
    inner = H * Dh
    x_flat = x.reshape(B * S, E)

    xn = pallas_layernorm(x, p['ln1_g'], p['ln1_b'])
    qkv = pallas_linear(xn.reshape(B * S, E), p['w_qkv'], None)   # one lane-dense call
    qkv = qkv.reshape(B, S, 3, H, Dh)
    q = jnp.transpose(qkv[:, :, 0], (0, 2, 1, 3)).reshape(B * H, S, Dh)
    k = jnp.transpose(qkv[:, :, 1], (0, 2, 1, 3)).reshape(B * H, S, Dh)
    v = jnp.transpose(qkv[:, :, 2], (0, 2, 1, 3)).reshape(B * H, S, Dh)
    att = pallas_attention(q, k, v, scale=Dh ** -0.5)
    att = jnp.transpose(att.reshape(B, H, S, Dh), (0, 2, 1, 3)).reshape(B * S, inner)
    x_flat = pallas_linear(att, p['w_out'], p['b_out'], residual=x_flat)

    xn = pallas_layernorm(x_flat.reshape(B, S, E), p['ln2_g'], p['ln2_b'])
    h = pallas_linear(xn.reshape(B * S, E), p['w_fc1'], p['b_fc1'], activation="gelu")
    x_flat = pallas_linear(h, p['w_fc2'], p['b_fc2'], residual=x_flat)
    return x_flat.reshape(B, S, E)


# --------------------------------------------------------------------------
# Full forward (Pallas path)
# --------------------------------------------------------------------------
def forward_pallas(params, snippet, cluster_id, cfg):
    B = snippet.shape[0]
    E = cfg['embed_dim']

    # TODO(synk): embedding-table gather and the training-only reparameterization
    # sampling stay in XLA (eval mode: z = z_mu).
    z_mu = jnp.take(params['embed_mu'], cluster_id, axis=0)
    z_logvar = jnp.take(params['embed_logvar'], cluster_id, axis=0)
    z_dec = pallas_vae_decode(z_mu, params['vae'])

    # stimulus CNN
    stim = snippet[:, : cfg['num_leds']]
    x = conv1d_pallas(stim, params['conv0a']['w'], params['conv0a']['b'],
                      stride=2, padding=10, act='leaky_relu')
    w0b, b0b = fold_bn_into_conv(params['conv0b_w'], None, params['bn0'])
    x = conv1d_pallas(x, w0b, b0b, stride=1, padding=10, act='leaky_relu')
    nres = len(params['res_blocks'])
    for i, rp in enumerate(params['res_blocks']):
        x = resblock_pallas(x, rp, downsample=(i < nres - 1))

    # stim_embed: 1x1 conv == per-position linear; also performs 'b c l -> b l c'
    Bc, C, L = x.shape
    xs = jnp.transpose(x, (0, 2, 1)).reshape(B * L, C)
    x_stim = pallas_linear(xs, params['stim_embed']['w'][:, :, 0],
                           params['stim_embed']['b']).reshape(B, L, E)

    # spike patches
    spikes = snippet[:, -1][:, : cfg['in_len']]
    spikes = jnp.pad(spikes, ((0, 0), (cfg['spike_pad'], 0)))
    t = cfg['enc_spikes_len']
    sp = spikes.reshape(B * t, cfg['spike_patch_len'])
    x_spk = pallas_linear(sp, params['spikes_embed']['w'],
                          params['spikes_embed']['b']).reshape(B, t, E)

    # token sequence + transformer
    x = jnp.concatenate([x_stim, x_spk, z_dec[:, None, :]], axis=1)
    x = x + params['pos_embed'][None]
    for lp in params['layers']:
        x = transformer_layer_pallas(x, lp, cfg)

    # decode head
    S = x.shape[1]
    y = pallas_linear(x.reshape(B * S, E), params['dec1']['w'],
                      params['dec1']['b']).reshape(B, S)
    out = pallas_linear(y, params['dec2']['w'], params['dec2']['b'])
    return out, z_mu, z_logvar


# --------------------------------------------------------------------------
# Pure-JAX reference (explicit BN, HIGHEST precision matmuls)
# --------------------------------------------------------------------------
_HI = jax.lax.Precision.HIGHEST


def _ref_linear(x, w, b=None):
    y = jnp.einsum('...k,nk->...n', x, w, precision=_HI)
    return y if b is None else y + b


def _ref_conv1d(x, w, b, stride, padding):
    y = jax.lax.conv_general_dilated(
        x, w, window_strides=(stride,), padding=[(padding, padding)],
        dimension_numbers=('NCH', 'OIH', 'NCH'), precision=_HI)
    return y if b is None else y + b[None, :, None]


def _ref_bn(x, p, eps=1e-5):
    s = p['g'] / jnp.sqrt(p['v'] + eps)
    return (x - p['m'][None, :, None]) * s[None, :, None] + p['b'][None, :, None]


def _lrelu(x):
    return jnp.where(x > 0, x, 0.2 * x)


def _ref_ln(x, g, b, eps=1e-5):
    mu = x.mean(-1, keepdims=True)
    var = ((x - mu) ** 2).mean(-1, keepdims=True)
    return (x - mu) * jax.lax.rsqrt(var + eps) * g + b


def _ref_resblock(x, p, downsample, k=7):
    s = 2 if downsample else 1
    pad = (k - 1) // 2
    h = _lrelu(_ref_bn(_ref_conv1d(x, p['w1'], None, s, pad), p['bn1']))
    h = _ref_bn(_ref_conv1d(h, p['w2'], None, 1, pad), p['bn2'])
    sc = _ref_bn(_ref_conv1d(x, p['ws'], None, s, 0), p['bns'])
    return _lrelu(h + sc)


def _ref_layer(x, p, cfg):
    B, S, E = x.shape
    H, Dh = cfg['num_heads'], cfg['head_dim']
    inner = H * Dh
    xn = _ref_ln(x, p['ln1_g'], p['ln1_b'])
    qkv = _ref_linear(xn, p['w_qkv']).reshape(B, S, 3, H, Dh)
    q, k, v = (jnp.transpose(qkv[:, :, i], (0, 2, 1, 3)) for i in range(3))
    att = jax.nn.softmax(
        jnp.einsum('bhqd,bhkd->bhqk', q, k, precision=_HI) * (Dh ** -0.5), axis=-1)
    o = jnp.einsum('bhqk,bhkd->bhqd', att, v, precision=_HI)
    o = jnp.transpose(o, (0, 2, 1, 3)).reshape(B, S, inner)
    x = x + _ref_linear(o, p['w_out'], p['b_out'])
    xn = _ref_ln(x, p['ln2_g'], p['ln2_b'])
    h = jax.nn.gelu(_ref_linear(xn, p['w_fc1'], p['b_fc1']), approximate=True)
    return x + _ref_linear(h, p['w_fc2'], p['b_fc2'])


def forward_reference(params, snippet, cluster_id, cfg):
    B = snippet.shape[0]
    z_mu = params['embed_mu'][cluster_id]
    z_logvar = params['embed_logvar'][cluster_id]
    vp = params['vae']
    h1 = jnp.maximum(_ref_linear(z_mu, vp['fc1_w'], vp['fc1_b']), 0.0)
    h2 = jnp.maximum(_ref_linear(h1, vp['fc2_w'], vp['fc2_b']), 0.0)
    z_dec = _ref_linear(jnp.concatenate([h2, z_mu], axis=1), vp['fc3_w'], vp['fc3_b'])

    stim = snippet[:, : cfg['num_leds']]
    x = _lrelu(_ref_conv1d(stim, params['conv0a']['w'], params['conv0a']['b'], 2, 10))
    x = _lrelu(_ref_bn(_ref_conv1d(x, params['conv0b_w'], None, 1, 10), params['bn0']))
    nres = len(params['res_blocks'])
    for i, rp in enumerate(params['res_blocks']):
        x = _ref_resblock(x, rp, downsample=(i < nres - 1))
    x = _ref_conv1d(x, params['stim_embed']['w'], params['stim_embed']['b'], 1, 0)
    x_stim = jnp.transpose(x, (0, 2, 1))

    spikes = snippet[:, -1][:, : cfg['in_len']]
    spikes = jnp.pad(spikes, ((0, 0), (cfg['spike_pad'], 0)))
    sp = spikes.reshape(B, cfg['enc_spikes_len'], cfg['spike_patch_len'])
    x_spk = _ref_linear(sp, params['spikes_embed']['w'], params['spikes_embed']['b'])

    x = jnp.concatenate([x_stim, x_spk, z_dec[:, None, :]], axis=1)
    x = x + params['pos_embed'][None]
    for lp in params['layers']:
        x = _ref_layer(x, lp, cfg)
    y = _ref_linear(x, params['dec1']['w'], params['dec1']['b'])[..., 0]
    out = _ref_linear(y, params['dec2']['w'], params['dec2']['b'])
    return out, z_mu, z_logvar


# --------------------------------------------------------------------------
# Parameter init
# --------------------------------------------------------------------------
def init_params(key, cfg):
    state = [key]

    def nk():
        state[0], sub = jax.random.split(state[0])
        return sub

    def dense(n_out, n_in, scale=0.05, bias=True):
        w = scale * jax.random.normal(nk(), (n_out, n_in), jnp.float32)
        b = 0.05 * jax.random.normal(nk(), (n_out,), jnp.float32) if bias else None
        return w, b

    def conv(c_out, c_in, k, scale=0.05, bias=True):
        w = scale * jax.random.normal(nk(), (c_out, c_in, k), jnp.float32)
        b = 0.05 * jax.random.normal(nk(), (c_out,), jnp.float32) if bias else None
        return w, b

    def bn(c):
        return dict(
            g=1.0 + 0.1 * jax.random.normal(nk(), (c,), jnp.float32),
            b=0.1 * jax.random.normal(nk(), (c,), jnp.float32),
            m=0.1 * jax.random.normal(nk(), (c,), jnp.float32),
            v=1.0 + 0.5 * jax.random.uniform(nk(), (c,), jnp.float32),
        )

    E, H, Dh = cfg['embed_dim'], cfg['num_heads'], cfg['head_dim']
    inner = H * Dh
    mlp_dim = E * cfg['mlp_expansion']
    p = {}
    p['embed_mu'] = 0.5 * jax.random.normal(nk(), (cfg['num_clusters'], cfg['z_dim']), jnp.float32)
    p['embed_logvar'] = 0.1 * jax.random.normal(nk(), (cfg['num_clusters'], cfg['z_dim']), jnp.float32)

    fc1_w, fc1_b = dense(32, cfg['z_dim'])
    fc2_w, fc2_b = dense(32, 32)
    fc3_w, fc3_b = dense(E, 32 + cfg['z_dim'])
    p['vae'] = dict(fc1_w=fc1_w, fc1_b=fc1_b, fc2_w=fc2_w, fc2_b=fc2_b,
                    fc3_w=fc3_w, fc3_b=fc3_b)

    w, b = conv(cfg['l0a'], cfg['num_leds'], 21)
    p['conv0a'] = dict(w=w, b=b)
    p['conv0b_w'], _ = conv(cfg['l0b'], cfg['l0a'], 21, bias=False)
    p['bn0'] = bn(cfg['l0b'])

    def res_params(c_in, c_mid, c_out, k=7):
        w1, _ = conv(c_mid, c_in, k, bias=False)
        w2, _ = conv(c_out, c_mid, k, bias=False)
        ws, _ = conv(c_out, c_in, 1, bias=False)
        return dict(w1=w1, bn1=bn(c_mid), w2=w2, bn2=bn(c_out), ws=ws, bns=bn(c_out))

    blocks = []
    c_in = cfg['l0b']
    for _ in range(cfg['stim_downsample'] - 1):
        blocks.append(res_params(c_in, cfg['l1'], cfg['l1']))
        c_in = cfg['l1']
    blocks.append(res_params(c_in, cfg['l1'], cfg['stim_enc_ch']))
    p['res_blocks'] = blocks

    w, b = conv(E, cfg['stim_enc_ch'], 1)
    p['stim_embed'] = dict(w=w, b=b)
    w, b = dense(E, cfg['spike_patch_len'])
    p['spikes_embed'] = dict(w=w, b=b)
    p['pos_embed'] = 0.5 * jax.random.normal(nk(), (cfg['enc_len'], E), jnp.float32)

    layers = []
    for _ in range(cfg['num_tlayers']):
        w_qkv, _ = dense(3 * inner, E, bias=False)
        w_out, b_out = dense(E, inner)
        w_fc1, b_fc1 = dense(mlp_dim, E)
        w_fc2, b_fc2 = dense(E, mlp_dim)
        layers.append(dict(
            ln1_g=1.0 + 0.1 * jax.random.normal(nk(), (E,), jnp.float32),
            ln1_b=0.1 * jax.random.normal(nk(), (E,), jnp.float32),
            w_qkv=w_qkv, w_out=w_out, b_out=b_out,
            ln2_g=1.0 + 0.1 * jax.random.normal(nk(), (E,), jnp.float32),
            ln2_b=0.1 * jax.random.normal(nk(), (E,), jnp.float32),
            w_fc1=w_fc1, b_fc1=b_fc1, w_fc2=w_fc2, b_fc2=b_fc2,
        ))
    p['layers'] = layers

    w, b = dense(1, E)
    p['dec1'] = dict(w=w, b=b)
    w, b = dense(cfg['out_len'], cfg['enc_len'])
    p['dec2'] = dict(w=w, b=b)
    return p


if __name__ == "__main__":
    cfg = dict(
        in_len=64, out_len=32, stim_downsample=2, num_clusters=4, z_dim=2,
        num_heads=8, head_dim=64, num_tlayers=2, spike_patch_len=8,
        embed_dim=64, num_leds=4,               # mea.NUM_STIMULUS_LEDS == 4
        l0a=10, l0b=20, l1=50, stim_enc_ch=3, mlp_expansion=3,
    )
    cfg['in_stim_len'] = cfg['in_len'] + cfg['out_len']
    cfg['enc_stim_len'] = 1 + (cfg['in_stim_len'] - 1) // (2 ** cfg['stim_downsample'])
    cfg['enc_spikes_len'] = math.ceil(cfg['in_len'] // cfg['spike_patch_len'])
    cfg['spike_pad'] = cfg['enc_spikes_len'] * cfg['spike_patch_len'] - cfg['in_len']
    cfg['enc_len'] = cfg['enc_stim_len'] + cfg['enc_spikes_len'] + 1

    key = jax.random.PRNGKey(0)
    k_param, k_snip = jax.random.split(key)
    params = init_params(k_param, cfg)

    B = 2
    snippet = jax.random.normal(
        k_snip, (B, cfg['num_leds'] + 1, cfg['in_stim_len']), jnp.float32)
    cluster_id = jnp.array([0, 2], dtype=jnp.int32)

    fwd = jax.jit(lambda p, s, c: forward_pallas(p, s, c, cfg))
    out, z_mu, z_logvar = fwd(params, snippet, cluster_id)
    out = jax.block_until_ready(out)

    ref_out, ref_mu, ref_logvar = forward_reference(params, snippet, cluster_id, cfg)

    assert out.shape == (B, cfg['out_len']), out.shape
    assert jnp.allclose(z_mu, ref_mu) and jnp.allclose(z_logvar, ref_logvar)
    err = float(jnp.max(jnp.abs(out - ref_out)))
    assert jnp.allclose(out, ref_out, atol=2e-3, rtol=2e-3), f"max abs err {err}"
    print("KERNEL_OK")
</pallas_src>

<mosaic_0001>
module attributes {stable_mosaic.version = 11 : i64} {
  func.func @kernel(%arg0: i32, %arg1: i32, %arg2: i32, %arg3: memref<96x128xf32, #tpu.memory_space<vmem>>, %arg4: memref<128x128xf32, #tpu.memory_space<vmem>>, %arg5: memref<1x128xf32, #tpu.memory_space<vmem>>, %arg6: memref<96x128xf32, #tpu.memory_space<vmem>>, %arg7: memref<96x128xf32, #tpu.memory_space<vmem>>) attributes {dimension_semantics = [#tpu.dimension_semantics<parallel>, #tpu.dimension_semantics<parallel>, #tpu.dimension_semantics<arbitrary>], iteration_bounds = array<i64: 1, 1, 1>, scalar_prefetch = 0 : i64, scratch_operands = 1 : i64, tpu.core_type = #tpu.core_type<tc>, window_params = [{transform_indices = @transform_0, window_bounds = array<i64: 96, 128>}, {transform_indices = @transform_1, window_bounds = array<i64: 128, 128>}, {transform_indices = @transform_2, window_bounds = array<i64: 1, 128>}, {transform_indices = @transform_3, window_bounds = array<i64: 96, 128>}]} {
    %c0_i32 = arith.constant 0 : i32
    %0 = arith.cmpi eq, %arg2, %c0_i32 : i32
    %1 = arith.extui %0 : i1 to i32
    %c0_i32_0 = arith.constant 0 : i32
    %2 = arith.cmpi ne, %1, %c0_i32_0 : i32
    scf.if %2 {
      %cst_10 = arith.constant 0.000000e+00 : f32
      %12 = vector.broadcast %cst_10 : f32 to vector<96x128xf32>
      %c0_11 = arith.constant 0 : index
      %c0_12 = arith.constant 0 : index
      %13 = vector.load %arg5[%c0_11, %c0_12] : memref<1x128xf32, #tpu.memory_space<vmem>>, vector<1x128xf32>
      %14 = vector.broadcast %13 : vector<1x128xf32> to vector<96x128xf32>
      %15 = arith.addf %12, %14 : vector<96x128xf32>
      %c0_13 = arith.constant 0 : index
      %c0_14 = arith.constant 0 : index
      %16 = vector.load %arg7[%c0_13, %c0_14] : memref<96x128xf32, #tpu.memory_space<vmem>>, vector<96x128xf32>
      tpu.vector_store %arg7[%c0_13, %c0_14], %15 {strides = array<i32>} : memref<96x128xf32, #tpu.memory_space<vmem>>, vector<96x128xf32>,
    } else {
    }
    %c0 = arith.constant 0 : index
    %c0_1 = arith.constant 0 : index
    %3 = vector.load %arg7[%c0, %c0_1] : memref<96x128xf32, #tpu.memory_space<vmem>>, vector<96x128xf32>
    %c0_2 = arith.constant 0 : index
    %c0_3 = arith.constant 0 : index
    %4 = vector.load %arg3[%c0_2, %c0_3] : memref<96x128xf32, #tpu.memory_space<vmem>>, vector<96x128xf32>
    %c0_4 = arith.constant 0 : index
    %c0_5 = arith.constant 0 : index
    %5 = vector.load %arg4[%c0_4, %c0_5] : memref<128x128xf32, #tpu.memory_space<vmem>>, vector<128x128xf32>
    %cst = arith.constant dense<0.000000e+00> : vector<96x128xf32>
    %6 = tpu.matmul %4, %5, %cst {dimension_numbers = #tpu.dot_dimension_numbers<[1], [1], [0], [0], [0, 0, 1, 0], [], []>} : vector<96x128xf32>, vector<128x128xf32>, vector<96x128xf32> -> vector<96x128xf32>
    %7 = arith.addf %3, %6 : vector<96x128xf32>
    %c0_6 = arith.constant 0 : index
    %c0_7 = arith.constant 0 : index
    %8 = vector.load %arg7[%c0_6, %c0_7] : memref<96x128xf32, #tpu.memory_space<vmem>>, vector<96x128xf32>
    tpu.vector_store %arg7[%c0_6, %c0_7], %7 {strides = array<i32>} : memref<96x128xf32, #tpu.memory_space<vmem>>, vector<96x128xf32>,
    %c0_i32_8 = arith.constant 0 : i32
    %9 = arith.cmpi eq, %arg2, %c0_i32_8 : i32
    %10 = arith.extui %9 : i1 to i32
    %c0_i32_9 = arith.constant 0 : i32
    %11 = arith.cmpi ne, %10, %c0_i32_9 : i32
    scf.if %11 {
      %c0_10 = arith.constant 0 : index
      %c0_11 = arith.constant 0 : index
      %12 = vector.load %arg7[%c0_10, %c0_11] : memref<96x128xf32, #tpu.memory_space<vmem>>, vector<96x128xf32>
      %cst_12 = arith.constant 0.000000e+00 : f32
      %13 = vector.broadcast %cst_12 : f32 to vector<96x128xf32>
      %14 = arith.cmpf ogt, %12, %13 : vector<96x128xf32>
      %cst_13 = arith.constant 2.000000e-01 : f32
      %15 = vector.broadcast %cst_13 : f32 to vector<96x128xf32>
      %16 = arith.mulf %15, %12 : vector<96x128xf32>
      %17 = arith.select %14, %12, %16 : vector<96x128xi1>, vector<96x128xf32>
      %c0_14 = arith.constant 0 : index
      %c0_15 = arith.constant 0 : index
      %18 = vector.load %arg6[%c0_14, %c0_15] : memref<96x128xf32, #tpu.memory_space<vmem>>, vector<96x128xf32>
      tpu.vector_store %arg6[%c0_14, %c0_15], %17 {strides = array<i32>} : memref<96x128xf32, #tpu.memory_space<vmem>>, vector<96x128xf32>,
    } else {
    }
    return
  }
  func.func @transform_0(%arg0: i32, %arg1: i32, %arg2: i32) -> (i32, i32) {
    %c0_i32 = arith.constant 0 : i32
    return %arg0, %arg2 : i32, i32
  }
  func.func @transform_1(%arg0: i32, %arg1: i32, %arg2: i32) -> (i32, i32) {
    %c0_i32 = arith.constant 0 : i32
    return %arg1, %arg2 : i32, i32
  }
  func.func @transform_2(%arg0: i32, %arg1: i32, %arg2: i32) -> (i32, i32) {
    %c0_i32 = arith.constant 0 : i32
    %c0_i32_0 = arith.constant 0 : i32
    return %c0_i32, %arg1 : i32, i32
  }
  func.func @transform_3(%arg0: i32, %arg1: i32, %arg2: i32) -> (i32, i32) {
    %c0_i32 = arith.constant 0 : i32
    return %arg0, %arg1 : i32, i32
  }
}

module attributes {stable_mosaic.version = 11 : i64} {
  func.func @kernel(%arg0: i32, %arg1: i32, %arg2: i32, %arg3: memref<96x256xf32, #tpu.memory_space<vmem>>, %arg4: memref<128x256xf32, #tpu.memory_space<vmem>>, %arg5: memref<1x128xf32, #tpu.memory_space<vmem>>, %arg6: memref<96x128xf32, #tpu.memory_space<vmem>>, %arg7: memref<96x128xf32, #tpu.memory_space<vmem>>) attributes {dimension_semantics = [#tpu.dimension_semantics<parallel>, #tpu.dimension_semantics<parallel>, #tpu.dimension_semantics<arbitrary>], iteration_bounds = array<i64: 1, 1, 1>, scalar_prefetch = 0 : i64, scratch_operands = 1 : i64, tpu.core_type = #tpu.core_type<tc>, window_params = [{transform_indices = @transform_0, window_bounds = array<i64: 96, 256>}, {transform_indices = @transform_1, window_bounds = array<i64: 128, 256>}, {transform_indices = @transform_2, window_bounds = array<i64: 1, 128>}, {transform_indices = @transform_3, window_bounds = array<i64: 96, 128>}]} {
    %c0_i32 = arith.constant 0 : i32
    %0 = arith.cmpi eq, %arg2, %c0_i32 : i32
    %1 = arith.extui %0 : i1 to i32
    %c0_i32_0 = arith.constant 0 : i32
    %2 = arith.cmpi ne, %1, %c0_i32_0 : i32
    scf.if %2 {
      %cst_10 = arith.constant 0.000000e+00 : f32
      %12 = vector.broadcast %cst_10 : f32 to vector<96x128xf32>
      %c0_11 = arith.constant 0 : index
      %c0_12 = arith.constant 0 : index
      %13 = vector.load %arg5[%c0_11, %c0_12] : memref<1x128xf32, #tpu.memory_space<vmem>>, vector<1x128xf32>
      %14 = vector.broadcast %13 : vector<1x128xf32> to vector<96x128xf32>
      %15 = arith.addf %12, %14 : vector<96x128xf32>
      %c0_13 = arith.constant 0 : index
      %c0_14 = arith.constant 0 : index
      %16 = vector.load %arg7[%c0_13, %c0_14] : memref<96x128xf32, #tpu.memory_space<vmem>>, vector<96x128xf32>
      tpu.vector_store %arg7[%c0_13, %c0_14], %15 {strides = array<i32>} : memref<96x128xf32, #tpu.memory_space<vmem>>, vector<96x128xf32>,
    } else {
    }
    %c0 = arith.constant 0 : index
    %c0_1 = arith.constant 0 : index
    %3 = vector.load %arg7[%c0, %c0_1] : memref<96x128xf32, #tpu.memory_space<vmem>>, vector<96x128xf32>
    %c0_2 = arith.constant 0 : index
    %c0_3 = arith.constant 0 : index
    %4 = vector.load %arg3[%c0_2, %c0_3] : memref<96x256xf32, #tpu.memory_space<vmem>>, vector<96x256xf32>
    %c0_4 = arith.constant 0 : index
    %c0_5 = arith.constant 0 : index
    %5 = vector.load %arg4[%c0_4, %c0_5] : memref<128x256xf32, #tpu.memory_space<vmem>>, vector<128x256xf32>
    %cst = arith.constant dense<0.000000e+00> : vector<96x128xf32>
    %6 = tpu.matmul %4, %5, %cst {dimension_numbers = #tpu.dot_dimension_numbers<[1], [1], [0], [0], [0, 0, 1, 0], [], []>} : vector<96x256xf32>, vector<128x256xf32>, vector<96x128xf32> -> vector<96x128xf32>
    %7 = arith.addf %3, %6 : vector<96x128xf32>
    %c0_6 = arith.constant 0 : index
    %c0_7 = arith.constant 0 : index
    %8 = vector.load %arg7[%c0_6, %c0_7] : memref<96x128xf32, #tpu.memory_space<vmem>>, vector<96x128xf32>
    tpu.vector_store %arg7[%c0_6, %c0_7], %7 {strides = array<i32>} : memref<96x128xf32, #tpu.memory_space<vmem>>, vector<96x128xf32>,
    %c0_i32_8 = arith.constant 0 : i32
    %9 = arith.cmpi eq, %arg2, %c0_i32_8 : i32
    %10 = arith.extui %9 : i1 to i32
    %c0_i32_9 = arith.constant 0 : i32
    %11 = arith.cmpi ne, %10, %c0_i32_9 : i32
    scf.if %11 {
      %c0_10 = arith.constant 0 : index
      %c0_11 = arith.constant 0 : index
      %12 = vector.load %arg7[%c0_10, %c0_11] : memref<96x128xf32, #tpu.memory_space<vmem>>, vector<96x128xf32>
      %cst_12 = arith.constant 0.000000e+00 : f32
      %13 = vector.broadcast %cst_12 : f32 to vector<96x128xf32>
      %14 = arith.cmpf ogt, %12, %13 : vector<96x128xf32>
      %cst_13 = arith.constant 2.000000e-01 : f32
      %15 = vector.broadcast %cst_13 : f32 to vector<96x128xf32>
      %16 = arith.mulf %15, %12 : vector<96x128xf32>
      %17 = arith.select %14, %12, %16 : vector<96x128xi1>, vector<96x128xf32>
      %c0_14 = arith.constant 0 : index
      %c0_15 = arith.constant 0 : index
      %18 = vector.load %arg6[%c0_14, %c0_15] : memref<96x128xf32, #tpu.memory_space<vmem>>, vector<96x128xf32>
      tpu.vector_store %arg6[%c0_14, %c0_15], %17 {strides = array<i32>} : memref<96x128xf32, #tpu.memory_space<vmem>>, vector<96x128xf32>,
    } else {
    }
    return
  }
  func.func @transform_0(%arg0: i32, %arg1: i32, %arg2: i32) -> (i32, i32) {
    %c0_i32 = arith.constant 0 : i32
    return %arg0, %arg2 : i32, i32
  }
  func.func @transform_1(%arg0: i32, %arg1: i32, %arg2: i32) -> (i32, i32) {
    %c0_i32 = arith.constant 0 : i32
    return %arg1, %arg2 : i32, i32
  }
  func.func @transform_2(%arg0: i32, %arg1: i32, %arg2: i32) -> (i32, i32) {
    %c0_i32 = arith.constant 0 : i32
    %c0_i32_0 = arith.constant 0 : i32
    return %c0_i32, %arg1 : i32, i32
  }
  func.func @transform_3(%arg0: i32, %arg1: i32, %arg2: i32) -> (i32, i32) {
    %c0_i32 = arith.constant 0 : i32
    return %arg0, %arg1 : i32, i32
  }
}

module attributes {stable_mosaic.version = 11 : i64} {
  func.func @kernel(%arg0: i32, %arg1: i32, %arg2: i32, %arg3: memref<48x256xf32, #tpu.memory_space<vmem>>, %arg4: memref<128x256xf32, #tpu.memory_space<vmem>>, %arg5: memref<1x128xf32, #tpu.memory_space<vmem>>, %arg6: memref<48x128xf32, #tpu.memory_space<vmem>>, %arg7: memref<48x128xf32, #tpu.memory_space<vmem>>) attributes {dimension_semantics = [#tpu.dimension_semantics<parallel>, #tpu.dimension_semantics<parallel>, #tpu.dimension_semantics<arbitrary>], iteration_bounds = array<i64: 1, 1, 1>, scalar_prefetch = 0 : i64, scratch_operands = 1 : i64, tpu.core_type = #tpu.core_type<tc>, window_params = [{transform_indices = @transform_0, window_bounds = array<i64: 48, 256>}, {transform_indices = @transform_1, window_bounds = array<i64: 128, 256>}, {transform_indices = @transform_2, window_bounds = array<i64: 1, 128>}, {transform_indices = @transform_3, window_bounds = array<i64: 48, 128>}]} {
    %c0_i32 = arith.constant 0 : i32
    %0 = arith.cmpi eq, %arg2, %c0_i32 : i32
    %1 = arith.extui %0 : i1 to i32
    %c0_i32_0 = arith.constant 0 : i32
    %2 = arith.cmpi ne, %1, %c0_i32_0 : i32
    scf.if %2 {
      %cst_10 = arith.constant 0.000000e+00 : f32
      %12 = vector.broadcast %cst_10 : f32 to vector<48x128xf32>
      %c0_11 = arith.constant 0 : index
      %c0_12 = arith.constant 0 : index
      %13 = vector.load %arg5[%c0_11, %c0_12] : memref<1x128xf32, #tpu.memory_space<vmem>>, vector<1x128xf32>
      %14 = vector.broadcast %13 : vector<1x128xf32> to vector<48x128xf32>
      %15 = arith.addf %12, %14 : vector<48x128xf32>
      %c0_13 = arith.constant 0 : index
      %c0_14 = arith.constant 0 : index
      %16 = vector.load %arg7[%c0_13, %c0_14] : memref<48x128xf32, #tpu.memory_space<vmem>>, vector<48x128xf32>
      tpu.vector_store %arg7[%c0_13, %c0_14], %15 {strides = array<i32>} : memref<48x128xf32, #tpu.memory_space<vmem>>, vector<48x128xf32>,
    } else {
    }
    %c0 = arith.constant 0 : index
    %c0_1 = arith.constant 0 : index
    %3 = vector.load %arg7[%c0, %c0_1] : memref<48x128xf32, #tpu.memory_space<vmem>>, vector<48x128xf32>
    %c0_2 = arith.constant 0 : index
    %c0_3 = arith.constant 0 : index
    %4 = vector.load %arg3[%c0_2, %c0_3] : memref<48x256xf32, #tpu.memory_space<vmem>>, vector<48x256xf32>
    %c0_4 = arith.constant 0 : index
    %c0_5 = arith.constant 0 : index
    %5 = vector.load %arg4[%c0_4, %c0_5] : memref<128x256xf32, #tpu.memory_space<vmem>>, vector<128x256xf32>
    %cst = arith.constant dense<0.000000e+00> : vector<48x128xf32>
    %6 = tpu.matmul %4, %5, %cst {dimension_numbers = #tpu.dot_dimension_numbers<[1], [1], [0], [0], [0, 0, 1, 0], [], []>} : vector<48x256xf32>, vector<128x256xf32>, vector<48x128xf32> -> vector<48x128xf32>
    %7 = arith.addf %3, %6 : vector<48x128xf32>
    %c0_6 = arith.constant 0 : index
    %c0_7 = arith.constant 0 : index
    %8 = vector.load %arg7[%c0_6, %c0_7] : memref<48x128xf32, #tpu.memory_space<vmem>>, vector<48x128xf32>
    tpu.vector_store %arg7[%c0_6, %c0_7], %7 {strides = array<i32>} : memref<48x128xf32, #tpu.memory_space<vmem>>, vector<48x128xf32>,
    %c0_i32_8 = arith.constant 0 : i32
    %9 = arith.cmpi eq, %arg2, %c0_i32_8 : i32
    %10 = arith.extui %9 : i1 to i32
    %c0_i32_9 = arith.constant 0 : i32
    %11 = arith.cmpi ne, %10, %c0_i32_9 : i32
    scf.if %11 {
      %c0_10 = arith.constant 0 : index
      %c0_11 = arith.constant 0 : index
      %12 = vector.load %arg7[%c0_10, %c0_11] : memref<48x128xf32, #tpu.memory_space<vmem>>, vector<48x128xf32>
      %cst_12 = arith.constant 0.000000e+00 : f32
      %13 = vector.broadcast %cst_12 : f32 to vector<48x128xf32>
      %14 = arith.cmpf ogt, %12, %13 : vector<48x128xf32>
      %cst_13 = arith.constant 2.000000e-01 : f32
      %15 = vector.broadcast %cst_13 : f32 to vector<48x128xf32>
      %16 = arith.mulf %15, %12 : vector<48x128xf32>
      %17 = arith.select %14, %12, %16 : vector<48x128xi1>, vector<48x128xf32>
      %c0_14 = arith.constant 0 : index
      %c0_15 = arith.constant 0 : index
      %18 = vector.load %arg6[%c0_14, %c0_15] : memref<48x128xf32, #tpu.memory_space<vmem>>, vector<48x128xf32>
      tpu.vector_store %arg6[%c0_14, %c0_15], %17 {strides = array<i32>} : memref<48x128xf32, #tpu.memory_space<vmem>>, vector<48x128xf32>,
    } else {
    }
    return
  }
  func.func @transform_0(%arg0: i32, %arg1: i32, %arg2: i32) -> (i32, i32) {
    %c0_i32 = arith.constant 0 : i32
    return %arg0, %arg2 : i32, i32
  }
  func.func @transform_1(%arg0: i32, %arg1: i32, %arg2: i32) -> (i32, i32) {
    %c0_i32 = arith.constant 0 : i32
    return %arg1, %arg2 : i32, i32
  }
  func.func @transform_2(%arg0: i32, %arg1: i32, %arg2: i32) -> (i32, i32) {
    %c0_i32 = arith.constant 0 : i32
    %c0_i32_0 = arith.constant 0 : i32
    return %c0_i32, %arg1 : i32, i32
  }
  func.func @transform_3(%arg0: i32, %arg1: i32, %arg2: i32) -> (i32, i32) {
    %c0_i32 = arith.constant 0 : i32
    return %arg0, %arg1 : i32, i32
  }
}

module attributes {stable_mosaic.version = 11 : i64} {
  func.func @kernel(%arg0: i32, %arg1: i32, %arg2: i32, %arg3: memref<48x128xf32, #tpu.memory_space<vmem>>, %arg4: memref<128x128xf32, #tpu.memory_space<vmem>>, %arg5: memref<1x128xf32, #tpu.memory_space<vmem>>, %arg6: memref<48x128xf32, #tpu.memory_space<vmem>>, %arg7: memref<48x128xf32, #tpu.memory_space<vmem>>) attributes {dimension_semantics = [#tpu.dimension_semantics<parallel>, #tpu.dimension_semantics<parallel>, #tpu.dimension_semantics<arbitrary>], iteration_bounds = array<i64: 1, 1, 1>, scalar_prefetch = 0 : i64, scratch_operands = 1 : i64, tpu.core_type = #tpu.core_type<tc>, window_params = [{transform_indices = @transform_0, window_bounds = array<i64: 48, 128>}, {transform_indices = @transform_1, window_bounds = array<i64: 128, 128>}, {transform_indices = @transform_2, window_bounds = array<i64: 1, 128>}, {transform_indices = @transform_3, window_bounds = array<i64: 48, 128>}]} {
    %c0_i32 = arith.constant 0 : i32
    %0 = arith.cmpi eq, %arg2, %c0_i32 : i32
    %1 = arith.extui %0 : i1 to i32
    %c0_i32_0 = arith.constant 0 : i32
    %2 = arith.cmpi ne, %1, %c0_i32_0 : i32
    scf.if %2 {
      %cst_10 = arith.constant 0.000000e+00 : f32
      %12 = vector.broadcast %cst_10 : f32 to vector<48x128xf32>
      %c0_11 = arith.constant 0 : index
      %c0_12 = arith.constant 0 : index
      %13 = vector.load %arg5[%c0_11, %c0_12] : memref<1x128xf32, #tpu.memory_space<vmem>>, vector<1x128xf32>
      %14 = vector.broadcast %13 : vector<1x128xf32> to vector<48x128xf32>
      %15 = arith.addf %12, %14 : vector<48x128xf32>
      %c0_13 = arith.constant 0 : index
      %c0_14 = arith.constant 0 : index
      %16 = vector.load %arg7[%c0_13, %c0_14] : memref<48x128xf32, #tpu.memory_space<vmem>>, vector<48x128xf32>
      tpu.vector_store %arg7[%c0_13, %c0_14], %15 {strides = array<i32>} : memref<48x128xf32, #tpu.memory_space<vmem>>, vector<48x128xf32>,
    } else {
    }
    %c0 = arith.constant 0 : index
    %c0_1 = arith.constant 0 : index
    %3 = vector.load %arg7[%c0, %c0_1] : memref<48x128xf32, #tpu.memory_space<vmem>>, vector<48x128xf32>
    %c0_2 = arith.constant 0 : index
    %c0_3 = arith.constant 0 : index
    %4 = vector.load %arg3[%c0_2, %c0_3] : memref<48x128xf32, #tpu.memory_space<vmem>>, vector<48x128xf32>
    %c0_4 = arith.constant 0 : index
    %c0_5 = arith.constant 0 : index
    %5 = vector.load %arg4[%c0_4, %c0_5] : memref<128x128xf32, #tpu.memory_space<vmem>>, vector<128x128xf32>
    %cst = arith.constant dense<0.000000e+00> : vector<48x128xf32>
    %6 = tpu.matmul %4, %5, %cst {dimension_numbers = #tpu.dot_dimension_numbers<[1], [1], [0], [0], [0, 0, 1, 0], [], []>} : vector<48x128xf32>, vector<128x128xf32>, vector<48x128xf32> -> vector<48x128xf32>
    %7 = arith.addf %3, %6 : vector<48x128xf32>
    %c0_6 = arith.constant 0 : index
    %c0_7 = arith.constant 0 : index
    %8 = vector.load %arg7[%c0_6, %c0_7] : memref<48x128xf32, #tpu.memory_space<vmem>>, vector<48x128xf32>
    tpu.vector_store %arg7[%c0_6, %c0_7], %7 {strides = array<i32>} : memref<48x128xf32, #tpu.memory_space<vmem>>, vector<48x128xf32>,
    %c0_i32_8 = arith.constant 0 : i32
    %9 = arith.cmpi eq, %arg2, %c0_i32_8 : i32
    %10 = arith.extui %9 : i1 to i32
    %c0_i32_9 = arith.constant 0 : i32
    %11 = arith.cmpi ne, %10, %c0_i32_9 : i32
    scf.if %11 {
      %c0_10 = arith.constant 0 : index
      %c0_11 = arith.constant 0 : index
      %12 = vector.load %arg7[%c0_10, %c0_11] : memref<48x128xf32, #tpu.memory_space<vmem>>, vector<48x128xf32>
      %c0_12 = arith.constant 0 : index
      %c0_13 = arith.constant 0 : index
      %13 = vector.load %arg6[%c0_12, %c0_13] : memref<48x128xf32, #tpu.memory_space<vmem>>, vector<48x128xf32>
      tpu.vector_store %arg6[%c0_12, %c0_13], %12 {strides = array<i32>} : memref<48x128xf32, #tpu.memory_space<vmem>>, vector<48x128xf32>,
    } else {
    }
    return
  }
  func.func @transform_0(%arg0: i32, %arg1: i32, %arg2: i32) -> (i32, i32) {
    %c0_i32 = arith.constant 0 : i32
    return %arg0, %arg2 : i32, i32
  }
  func.func @transform_1(%arg0: i32, %arg1: i32, %arg2: i32) -> (i32, i32) {
    %c0_i32 = arith.constant 0 : i32
    return %arg1, %arg2 : i32, i32
  }
  func.func @transform_2(%arg0: i32, %arg1: i32, %arg2: i32) -> (i32, i32) {
    %c0_i32 = arith.constant 0 : i32
    %c0_i32_0 = arith.constant 0 : i32
    return %c0_i32, %arg1 : i32, i32
  }
  func.func @transform_3(%arg0: i32, %arg1: i32, %arg2: i32) -> (i32, i32) {
    %c0_i32 = arith.constant 0 : i32
    return %arg0, %arg1 : i32, i32
  }
}

module attributes {stable_mosaic.version = 11 : i64} {
  func.func @kernel(%arg0: i32, %arg1: i32, %arg2: i32, %arg3: memref<48x256xf32, #tpu.memory_space<vmem>>, %arg4: memref<128x256xf32, #tpu.memory_space<vmem>>, %arg5: memref<1x128xf32, #tpu.memory_space<vmem>>, %arg6: memref<48x128xf32, #tpu.memory_space<vmem>>, %arg7: memref<48x128xf32, #tpu.memory_space<vmem>>) attributes {dimension_semantics = [#tpu.dimension_semantics<parallel>, #tpu.dimension_semantics<parallel>, #tpu.dimension_semantics<arbitrary>], iteration_bounds = array<i64: 1, 1, 2>, scalar_prefetch = 0 : i64, scratch_operands = 1 : i64, tpu.core_type = #tpu.core_type<tc>, window_params = [{transform_indices = @transform_0, window_bounds = array<i64: 48, 256>}, {transform_indices = @transform_1, window_bounds = array<i64: 128, 256>}, {transform_indices = @transform_2, window_bounds = array<i64: 1, 128>}, {transform_indices = @transform_3, window_bounds = array<i64: 48, 128>}]} {
    %c0_i32 = arith.constant 0 : i32
    %0 = arith.cmpi eq, %arg2, %c0_i32 : i32
    %1 = arith.extui %0 : i1 to i32
    %c0_i32_0 = arith.constant 0 : i32
    %2 = arith.cmpi ne, %1, %c0_i32_0 : i32
    scf.if %2 {
      %cst_9 = arith.constant 0.000000e+00 : f32
      %12 = vector.broadcast %cst_9 : f32 to vector<48x128xf32>
      %c0_10 = arith.constant 0 : index
      %c0_11 = arith.constant 0 : index
      %13 = vector.load %arg5[%c0_10, %c0_11] : memref<1x128xf32, #tpu.memory_space<vmem>>, vector<1x128xf32>
      %14 = vector.broadcast %13 : vector<1x128xf32> to vector<48x128xf32>
      %15 = arith.addf %12, %14 : vector<48x128xf32>
      %c0_12 = arith.constant 0 : index
      %c0_13 = arith.constant 0 : index
      %16 = vector.load %arg7[%c0_12, %c0_13] : memref<48x128xf32, #tpu.memory_space<vmem>>, vector<48x128xf32>
      tpu.vector_store %arg7[%c0_12, %c0_13], %15 {strides = array<i32>} : memref<48x128xf32, #tpu.memory_space<vmem>>, vector<48x128xf32>,
    } else {
    }
    %c0 = arith.constant 0 : index
    %c0_1 = arith.constant 0 : index
    %3 = vector.load %arg7[%c0, %c0_1] : memref<48x128xf32, #tpu.memory_space<vmem>>, vector<48x128xf32>
    %c0_2 = arith.constant 0 : index
    %c0_3 = arith.constant 0 : index
    %4 = vector.load %arg3[%c0_2, %c0_3] : memref<48x256xf32, #tpu.memory_space<vmem>>, vector<48x256xf32>
    %c0_4 = arith.constant 0 : index
    %c0_5 = arith.constant 0 : index
    %5 = vector.load %arg4[%c0_4, %c0_5] : memref<128x256xf32, #tpu.memory_space<vmem>>, vector<128x256xf32>
    %cst = arith.constant dense<0.000000e+00> : vector<48x128xf32>
    %6 = tpu.matmul %4, %5, %cst {dimension_numbers = #tpu.dot_dimension_numbers<[1], [1], [0], [0], [0, 0, 1, 0], [], []>} : vector<48x256xf32>, vector<128x256xf32>, vector<48x128xf32> -> vector<48x128xf32>
    %7 = arith.addf %3, %6 : vector<48x128xf32>
    %c0_6 = arith.constant 0 : index
    %c0_7 = arith.constant 0 : index
    %8 = vector.load %arg7[%c0_6, %c0_7] : memref<48x128xf32, #tpu.memory_space<vmem>>, vector<48x128xf32>
    tpu.vector_store %arg7[%c0_6, %c0_7], %7 {strides = array<i32>} : memref<48x128xf32, #tpu.memory_space<vmem>>, vector<48x128xf32>,
    %c1_i32 = arith.constant 1 : i32
    %9 = arith.cmpi eq, %arg2, %c1_i32 : i32
    %10 = arith.extui %9 : i1 to i32
    %c0_i32_8 = arith.constant 0 : i32
    %11 = arith.cmpi ne, %10, %c0_i32_8 : i32
    scf.if %11 {
      %c0_9 = arith.constant 0 : index
      %c0_10 = arith.constant 0 : index
      %12 = vector.load %arg7[%c0_9, %c0_10] : memref<48x128xf32, #tpu.memory_space<vmem>>, vector<48x128xf32>
      %cst_11 = arith.constant 0.000000e+00 : f32
      %13 = vector.broadcast %cst_11 : f32 to vector<48x128xf32>
      %14 = arith.cmpf ogt, %12, %13 : vector<48x128xf32>
      %cst_12 = arith.constant 2.000000e-01 : f32
      %15 = vector.broadcast %cst_12 : f32 to vector<48x128xf32>
      %16 = arith.mulf %15, %12 : vector<48x128xf32>
      %17 = arith.select %14, %12, %16 : vector<48x128xi1>, vector<48x128xf32>
      %c0_13 = arith.constant 0 : index
      %c0_14 = arith.constant 0 : index
      %18 = vector.load %arg6[%c0_13, %c0_14] : memref<48x128xf32, #tpu.memory_space<vmem>>, vector<48x128xf32>
      tpu.vector_store %arg6[%c0_13, %c0_14], %17 {strides = array<i32>} : memref<48x128xf32, #tpu.memory_space<vmem>>, vector<48x128xf32>,
    } else {
    }
    return
  }
  func.func @transform_0(%arg0: i32, %arg1: i32, %arg2: i32) -> (i32, i32) {
    %c0_i32 = arith.constant 0 : i32
    return %arg0, %arg2 : i32, i32
  }
  func.func @transform_1(%arg0: i32, %arg1: i32, %arg2: i32) -> (i32, i32) {
    %c0_i32 = arith.constant 0 : i32
    return %arg1, %arg2 : i32, i32
  }
  func.func @transform_2(%arg0: i32, %arg1: i32, %arg2: i32) -> (i32, i32) {
    %c0_i32 = arith.constant 0 : i32
    %c0_i32_0 = arith.constant 0 : i32
    return %c0_i32, %arg1 : i32, i32
  }
  func.func @transform_3(%arg0: i32, %arg1: i32, %arg2: i32) -> (i32, i32) {
    %c0_i32 = arith.constant 0 : i32
    return %arg0, %arg1 : i32, i32
  }
}

module attributes {stable_mosaic.version = 11 : i64} {
  func.func @kernel(%arg0: i32, %arg1: i32, %arg2: i32, %arg3: memref<48x256xf32, #tpu.memory_space<vmem>>, %arg4: memref<128x256xf32, #tpu.memory_space<vmem>>, %arg5: memref<1x128xf32, #tpu.memory_space<vmem>>, %arg6: memref<48x128xf32, #tpu.memory_space<vmem>>, %arg7: memref<48x128xf32, #tpu.memory_space<vmem>>, %arg8: memref<48x128xf32, #tpu.memory_space<vmem>>) attributes {dimension_semantics = [#tpu.dimension_semantics<parallel>, #tpu.dimension_semantics<parallel>, #tpu.dimension_semantics<arbitrary>], iteration_bounds = array<i64: 1, 1, 2>, scalar_prefetch = 0 : i64, scratch_operands = 1 : i64, tpu.core_type = #tpu.core_type<tc>, window_params = [{transform_indices = @transform_0, window_bounds = array<i64: 48, 256>}, {transform_indices = @transform_1, window_bounds = array<i64: 128, 256>}, {transform_indices = @transform_2, window_bounds = array<i64: 1, 128>}, {transform_indices = @transform_3, window_bounds = array<i64: 48, 128>}, {transform_indices = @transform_4, window_bounds = array<i64: 48, 128>}]} {
    %c0_i32 = arith.constant 0 : i32
    %0 = arith.cmpi eq, %arg2, %c0_i32 : i32
    %1 = arith.extui %0 : i1 to i32
    %c0_i32_0 = arith.constant 0 : i32
    %2 = arith.cmpi ne, %1, %c0_i32_0 : i32
    scf.if %2 {
      %cst_9 = arith.constant 0.000000e+00 : f32
      %12 = vector.broadcast %cst_9 : f32 to vector<48x128xf32>
      %c0_10 = arith.constant 0 : index
      %c0_11 = arith.constant 0 : index
      %13 = vector.load %arg5[%c0_10, %c0_11] : memref<1x128xf32, #tpu.memory_space<vmem>>, vector<1x128xf32>
      %14 = vector.broadcast %13 : vector<1x128xf32> to vector<48x128xf32>
      %15 = arith.addf %12, %14 : vector<48x128xf32>
      %c0_12 = arith.constant 0 : index
      %c0_13 = arith.constant 0 : index
      %16 = vector.load %arg6[%c0_12, %c0_13] : memref<48x128xf32, #tpu.memory_space<vmem>>, vector<48x128xf32>
      %17 = arith.addf %15, %16 : vector<48x128xf32>
      %c0_14 = arith.constant 0 : index
      %c0_15 = arith.constant 0 : index
      %18 = vector.load %arg8[%c0_14, %c0_15] : memref<48x128xf32, #tpu.memory_space<vmem>>, vector<48x128xf32>
      tpu.vector_store %arg8[%c0_14, %c0_15], %17 {strides = array<i32>} : memref<48x128xf32, #tpu.memory_space<vmem>>, vector<48x128xf32>,
    } else {
    }
    %c0 = arith.constant 0 : index
    %c0_1 = arith.constant 0 : index
    %3 = vector.load %arg8[%c0, %c0_1] : memref<48x128xf32, #tpu.memory_space<vmem>>, vector<48x128xf32>
    %c0_2 = arith.constant 0 : index
    %c0_3 = arith.constant 0 : index
    %4 = vector.load %arg3[%c0_2, %c0_3] : memref<48x256xf32, #tpu.memory_space<vmem>>, vector<48x256xf32>
    %c0_4 = arith.constant 0 : index
    %c0_5 = arith.constant 0 : index
    %5 = vector.load %arg4[%c0_4, %c0_5] : memref<128x256xf32, #tpu.memory_space<vmem>>, vector<128x256xf32>
    %cst = arith.constant dense<0.000000e+00> : vector<48x128xf32>
    %6 = tpu.matmul %4, %5, %cst {dimension_numbers = #tpu.dot_dimension_numbers<[1], [1], [0], [0], [0, 0, 1, 0], [], []>} : vector<48x256xf32>, vector<128x256xf32>, vector<48x128xf32> -> vector<48x128xf32>
    %7 = arith.addf %3, %6 : vector<48x128xf32>
    %c0_6 = arith.constant 0 : index
    %c0_7 = arith.constant 0 : index
    %8 = vector.load %arg8[%c0_6, %c0_7] : memref<48x128xf32, #tpu.memory_space<vmem>>, vector<48x128xf32>
    tpu.vector_store %arg8[%c0_6, %c0_7], %7 {strides = array<i32>} : memref<48x128xf32, #tpu.memory_space<vmem>>, vector<48x128xf32>,
    %c1_i32 = arith.constant 1 : i32
    %9 = arith.cmpi eq, %arg2, %c1_i32 : i32
    %10 = arith.extui %9 : i1 to i32
    %c0_i32_8 = arith.constant 0 : i32
    %11 = arith.cmpi ne, %10, %c0_i32_8 : i32
    scf.if %11 {
      %c0_9 = arith.constant 0 : index
      %c0_10 = arith.constant 0 : index
      %12 = vector.load %arg8[%c0_9, %c0_10] : memref<48x128xf32, #tpu.memory_space<vmem>>, vector<48x128xf32>
      %cst_11 = arith.constant 0.000000e+00 : f32
      %13 = vector.broadcast %cst_11 : f32 to vector<48x128xf32>
      %14 = arith.cmpf ogt, %12, %13 : vector<48x128xf32>
      %cst_12 = arith.constant 2.000000e-01 : f32
      %15 = vector.broadcast %cst_12 : f32 to vector<48x128xf32>
      %16 = arith.mulf %15, %12 : vector<48x128xf32>
      %17 = arith.select %14, %12, %16 : vector<48x128xi1>, vector<48x128xf32>
      %c0_13 = arith.constant 0 : index
      %c0_14 = arith.constant 0 : index
      %18 = vector.load %arg7[%c0_13, %c0_14] : memref<48x128xf32, #tpu.memory_space<vmem>>, vector<48x128xf32>
      tpu.vector_store %arg7[%c0_13, %c0_14], %17 {strides = array<i32>} : memref<48x128xf32, #tpu.memory_space<vmem>>, vector<48x128xf32>,
    } else {
    }
    return
  }
  func.func @transform_0(%arg0: i32, %arg1: i32, %arg2: i32) -> (i32, i32) {
    %c0_i32 = arith.constant 0 : i32
    return %arg0, %arg2 : i32, i32
  }
  func.func @transform_1(%arg0: i32, %arg1: i32, %arg2: i32) -> (i32, i32) {
    %c0_i32 = arith.constant 0 : i32
    return %arg1, %arg2 : i32, i32
  }
  func.func @transform_2(%arg0: i32, %arg1: i32, %arg2: i32) -> (i32, i32) {
    %c0_i32 = arith.constant 0 : i32
    %c0_i32_0 = arith.constant 0 : i32
    return %c0_i32, %arg1 : i32, i32
  }
  func.func @transform_3(%arg0: i32, %arg1: i32, %arg2: i32) -> (i32, i32) {
    %c0_i32 = arith.constant 0 : i32
    return %arg0, %arg1 : i32, i32
  }
  func.func @transform_4(%arg0: i32, %arg1: i32, %arg2: i32) -> (i32, i32) {
    %c0_i32 = arith.constant 0 : i32
    return %arg0, %arg1 : i32, i32
  }
}

module attributes {stable_mosaic.version = 11 : i64} {
  func.func @kernel(%arg0: i32, %arg1: i32, %arg2: i32, %arg3: memref<16x128xf32, #tpu.memory_space<vmem>>, %arg4: memref<128x128xf32, #tpu.memory_space<vmem>>, %arg5: memref<1x128xf32, #tpu.memory_space<vmem>>, %arg6: memref<16x128xf32, #tpu.memory_space<vmem>>, %arg7: memref<16x128xf32, #tpu.memory_space<vmem>>) attributes {dimension_semantics = [#tpu.dimension_semantics<parallel>, #tpu.dimension_semantics<parallel>, #tpu.dimension_semantics<arbitrary>], iteration_bounds = array<i64: 1, 1, 1>, scalar_prefetch = 0 : i64, scratch_operands = 1 : i64, tpu.core_type = #tpu.core_type<tc>, window_params = [{transform_indices = @transform_0, window_bounds = array<i64: 16, 128>}, {transform_indices = @transform_1, window_bounds = array<i64: 128, 128>}, {transform_indices = @transform_2, window_bounds = array<i64: 1, 128>}, {transform_indices = @transform_3, window_bounds = array<i64: 16, 128>}]} {
    %c0_i32 = arith.constant 0 : i32
    %0 = arith.cmpi eq, %arg2, %c0_i32 : i32
    %1 = arith.extui %0 : i1 to i32
    %c0_i32_0 = arith.constant 0 : i32
    %2 = arith.cmpi ne, %1, %c0_i32_0 : i32
    scf.if %2 {
      %cst_10 = arith.constant 0.000000e+00 : f32
      %12 = vector.broadcast %cst_10 : f32 to vector<16x128xf32>
      %c0_11 = arith.constant 0 : index
      %c0_12 = arith.constant 0 : index
      %13 = vector.load %arg5[%c0_11, %c0_12] : memref<1x128xf32, #tpu.memory_space<vmem>>, vector<1x128xf32>
      %14 = vector.broadcast %13 : vector<1x128xf32> to vector<16x128xf32>
      %15 = arith.addf %12, %14 : vector<16x128xf32>
      %c0_13 = arith.constant 0 : index
      %c0_14 = arith.constant 0 : index
      %16 = vector.load %arg7[%c0_13, %c0_14] : memref<16x128xf32, #tpu.memory_space<vmem>>, vector<16x128xf32>
      tpu.vector_store %arg7[%c0_13, %c0_14], %15 {strides = array<i32>} : memref<16x128xf32, #tpu.memory_space<vmem>>, vector<16x128xf32>,
    } else {
    }
    %c0 = arith.constant 0 : index
    %c0_1 = arith.constant 0 : index
    %3 = vector.load %arg7[%c0, %c0_1] : memref<16x128xf32, #tpu.memory_space<vmem>>, vector<16x128xf32>
    %c0_2 = arith.constant 0 : index
    %c0_3 = arith.constant 0 : index
    %4 = vector.load %arg3[%c0_2, %c0_3] : memref<16x128xf32, #tpu.memory_space<vmem>>, vector<16x128xf32>
    %c0_4 = arith.constant 0 : index
    %c0_5 = arith.constant 0 : index
    %5 = vector.load %arg4[%c0_4, %c0_5] : memref<128x128xf32, #tpu.memory_space<vmem>>, vector<128x128xf32>
    %cst = arith.constant dense<0.000000e+00> : vector<16x128xf32>
    %6 = tpu.matmul %4, %5, %cst {dimension_numbers = #tpu.dot_dimension_numbers<[1], [1], [0], [0], [0, 0, 1, 0], [], []>} : vector<16x128xf32>, vector<128x128xf32>, vector<16x128xf32> -> vector<16x128xf32>
    %7 = arith.addf %3, %6 : vector<16x128xf32>
    %c0_6 = arith.constant 0 : index
    %c0_7 = arith.constant 0 : index
    %8 = vector.load %arg7[%c0_6, %c0_7] : memref<16x128xf32, #tpu.memory_space<vmem>>, vector<16x128xf32>
    tpu.vector_store %arg7[%c0_6, %c0_7], %7 {strides = array<i32>} : memref<16x128xf32, #tpu.memory_space<vmem>>, vector<16x128xf32>,
    %c0_i32_8 = arith.constant 0 : i32
    %9 = arith.cmpi eq, %arg2, %c0_i32_8 : i32
    %10 = arith.extui %9 : i1 to i32
    %c0_i32_9 = arith.constant 0 : i32
    %11 = arith.cmpi ne, %10, %c0_i32_9 : i32
    scf.if %11 {
      %c0_10 = arith.constant 0 : index
      %c0_11 = arith.constant 0 : index
      %12 = vector.load %arg7[%c0_10, %c0_11] : memref<16x128xf32, #tpu.memory_space<vmem>>, vector<16x128xf32>
      %c0_12 = arith.constant 0 : index
      %c0_13 = arith.constant 0 : index
      %13 = vector.load %arg6[%c0_12, %c0_13] : memref<16x128xf32, #tpu.memory_space<vmem>>, vector<16x128xf32>
      tpu.vector_store %arg6[%c0_12, %c0_13], %12 {strides = array<i32>} : memref<16x128xf32, #tpu.memory_space<vmem>>, vector<16x128xf32>,
    } else {
    }
    return
  }
  func.func @transform_0(%arg0: i32, %arg1: i32, %arg2: i32) -> (i32, i32) {
    %c0_i32 = arith.constant 0 : i32
    return %arg0, %arg2 : i32, i32
  }
  func.func @transform_1(%arg0: i32, %arg1: i32, %arg2: i32) -> (i32, i32) {
    %c0_i32 = arith.constant 0 : i32
    return %arg1, %arg2 : i32, i32
  }
  func.func @transform_2(%arg0: i32, %arg1: i32, %arg2: i32) -> (i32, i32) {
    %c0_i32 = arith.constant 0 : i32
    %c0_i32_0 = arith.constant 0 : i32
    return %c0_i32, %arg1 : i32, i32
  }
  func.func @transform_3(%arg0: i32, %arg1: i32, %arg2: i32) -> (i32, i32) {
    %c0_i32 = arith.constant 0 : i32
    return %arg0, %arg1 : i32, i32
  }
}

module attributes {stable_mosaic.version = 11 : i64} {
  func.func @_vae_decode_kernel(%arg0: i32, %arg1: memref<2x2xf32, #tpu.memory_space<vmem>>, %arg2: memref<32x2xf32, #tpu.memory_space<vmem>>, %arg3: memref<1x32xf32, #tpu.memory_space<vmem>>, %arg4: memref<32x32xf32, #tpu.memory_space<vmem>>, %arg5: memref<1x32xf32, #tpu.memory_space<vmem>>, %arg6: memref<64x32xf32, #tpu.memory_space<vmem>>, %arg7: memref<64x2xf32, #tpu.memory_space<vmem>>, %arg8: memref<1x64xf32, #tpu.memory_space<vmem>>, %arg9: memref<2x64xf32, #tpu.memory_space<vmem>>) attributes {dimension_semantics = [#tpu.dimension_semantics<arbitrary>], iteration_bounds = array<i64: 1>, scalar_prefetch = 0 : i64, scratch_operands = 0 : i64, tpu.core_type = #tpu.core_type<tc>, window_params = [{pipeline_mode = #tpu.pipeline_mode<synchronous>, transform_indices = @transform_0, window_bounds = array<i64: 2, 2>}, {pipeline_mode = #tpu.pipeline_mode<synchronous>, transform_indices = @transform_1, window_bounds = array<i64: 32, 2>}, {pipeline_mode = #tpu.pipeline_mode<synchronous>, transform_indices = @transform_2, window_bounds = array<i64: 1, 32>}, {pipeline_mode = #tpu.pipeline_mode<synchronous>, transform_indices = @transform_3, window_bounds = array<i64: 32, 32>}, {pipeline_mode = #tpu.pipeline_mode<synchronous>, transform_indices = @transform_4, window_bounds = array<i64: 1, 32>}, {pipeline_mode = #tpu.pipeline_mode<synchronous>, transform_indices = @transform_5, window_bounds = array<i64: 64, 32>}, {pipeline_mode = #tpu.pipeline_mode<synchronous>, transform_indices = @transform_6, window_bounds = array<i64: 64, 2>}, {pipeline_mode = #tpu.pipeline_mode<synchronous>, transform_indices = @transform_7, window_bounds = array<i64: 1, 64>}, {pipeline_mode = #tpu.pipeline_mode<synchronous>, transform_indices = @transform_8, window_bounds = array<i64: 2, 64>}]} {
    %c0 = arith.constant 0 : index
    %c0_0 = arith.constant 0 : index
    %0 = vector.load %arg1[%c0, %c0_0] : memref<2x2xf32, #tpu.memory_space<vmem>>, vector<2x2xf32>
    %c0_1 = arith.constant 0 : index
    %c0_2 = arith.constant 0 : index
    %1 = vector.load %arg2[%c0_1, %c0_2] : memref<32x2xf32, #tpu.memory_space<vmem>>, vector<32x2xf32>
    %cst = arith.constant dense<0.000000e+00> : vector<2x32xf32>
    %2 = tpu.matmul %0, %1, %cst {dimension_numbers = #tpu.dot_dimension_numbers<[1], [1], [0], [0], [0, 0, 1, 0], [], []>} : vector<2x2xf32>, vector<32x2xf32>, vector<2x32xf32> -> vector<2x32xf32>
    %c0_3 = arith.constant 0 : index
    %c0_4 = arith.constant 0 : index
    %3 = vector.load %arg3[%c0_3, %c0_4] : memref<1x32xf32, #tpu.memory_space<vmem>>, vector<1x32xf32>
    %4 = vector.broadcast %3 : vector<1x32xf32> to vector<2x32xf32>
    %5 = arith.addf %2, %4 : vector<2x32xf32>
    %cst_5 = arith.constant 0.000000e+00 : f32
    %6 = vector.broadcast %cst_5 : f32 to vector<2x32xf32>
    %7 = arith.maximumf %5, %6 : vector<2x32xf32>
    %c0_6 = arith.constant 0 : index
    %c0_7 = arith.constant 0 : index
    %8 = vector.load %arg4[%c0_6, %c0_7] : memref<32x32xf32, #tpu.memory_space<vmem>>, vector<32x32xf32>
    %cst_8 = arith.constant dense<0.000000e+00> : vector<2x32xf32>
    %9 = tpu.matmul %7, %8, %cst_8 {dimension_numbers = #tpu.dot_dimension_numbers<[1], [1], [0], [0], [0, 0, 1, 0], [], []>} : vector<2x32xf32>, vector<32x32xf32>, vector<2x32xf32> -> vector<2x32xf32>
    %c0_9 = arith.constant 0 : index
    %c0_10 = arith.constant 0 : index
    %10 = vector.load %arg5[%c0_9, %c0_10] : memref<1x32xf32, #tpu.memory_space<vmem>>, vector<1x32xf32>
    %11 = vector.broadcast %10 : vector<1x32xf32> to vector<2x32xf32>
    %12 = arith.addf %9, %11 : vector<2x32xf32>
    %cst_11 = arith.constant 0.000000e+00 : f32
    %13 = vector.broadcast %cst_11 : f32 to vector<2x32xf32>
    %14 = arith.maximumf %12, %13 : vector<2x32xf32>
    %c0_12 = arith.constant 0 : index
    %c0_13 = arith.constant 0 : index
    %15 = vector.load %arg6[%c0_12, %c0_13] : memref<64x32xf32, #tpu.memory_space<vmem>>, vector<64x32xf32>
    %cst_14 = arith.constant dense<0.000000e+00> : vector<2x64xf32>
    %16 = tpu.matmul %14, %15, %cst_14 {dimension_numbers = #tpu.dot_dimension_numbers<[1], [1], [0], [0], [0, 0, 1, 0], [], []>} : vector<2x32xf32>, vector<64x32xf32>, vector<2x64xf32> -> vector<2x64xf32>
    %c0_15 = arith.constant 0 : index
    %c0_16 = arith.constant 0 : index
    %17 = vector.load %arg7[%c0_15, %c0_16] : memref<64x2xf32, #tpu.memory_space<vmem>>, vector<64x2xf32>
    %cst_17 = arith.constant dense<0.000000e+00> : vector<2x64xf32>
    %18 = tpu.matmul %0, %17, %cst_17 {dimension_numbers = #tpu.dot_dimension_numbers<[1], [1], [0], [0], [0, 0, 1, 0], [], []>} : vector<2x2xf32>, vector<64x2xf32>, vector<2x64xf32> -> vector<2x64xf32>
    %19 = arith.addf %16, %18 : vector<2x64xf32>
    %c0_18 = arith.constant 0 : index
    %c0_19 = arith.constant 0 : index
    %20 = vector.load %arg8[%c0_18, %c0_19] : memref<1x64xf32, #tpu.memory_space<vmem>>, vector<1x64xf32>
    %21 = vector.broadcast %20 : vector<1x64xf32> to vector<2x64xf32>
    %22 = arith.addf %19, %21 : vector<2x64xf32>
    %c0_20 = arith.constant 0 : index
    %c0_21 = arith.constant 0 : index
    %23 = vector.load %arg9[%c0_20, %c0_21] : memref<2x64xf32, #tpu.memory_space<vmem>>, vector<2x64xf32>
    tpu.vector_store %arg9[%c0_20, %c0_21], %22 {strides = array<i32>} : memref<2x64xf32, #tpu.memory_space<vmem>>, vector<2x64xf32>,
    return
  }
  func.func @transform_0(%arg0: i32) -> (i32, i32) {
    %c0_i32 = arith.constant 0 : i32
    %c0_i32_0 = arith.constant 0 : i32
    %c0_i32_1 = arith.constant 0 : i32
    return %c0_i32, %c0_i32_0 : i32, i32
  }
  func.func @transform_1(%arg0: i32) -> (i32, i32) {
    %c0_i32 = arith.constant 0 : i32
    %c0_i32_0 = arith.constant 0 : i32
    %c0_i32_1 = arith.constant 0 : i32
    return %c0_i32, %c0_i32_0 : i32, i32
  }
  func.func @transform_2(%arg0: i32) -> (i32, i32) {
    %c0_i32 = arith.constant 0 : i32
    %c0_i32_0 = arith.constant 0 : i32
    %c0_i32_1 = arith.constant 0 : i32
    return %c0_i32, %c0_i32_0 : i32, i32
  }
  func.func @transform_3(%arg0: i32) -> (i32, i32) {
    %c0_i32 = arith.constant 0 : i32
    %c0_i32_0 = arith.constant 0 : i32
    %c0_i32_1 = arith.constant 0 : i32
    return %c0_i32, %c0_i32_0 : i32, i32
  }
  func.func @transform_4(%arg0: i32) -> (i32, i32) {
    %c0_i32 = arith.constant 0 : i32
    %c0_i32_0 = arith.constant 0 : i32
    %c0_i32_1 = arith.constant 0 : i32
    return %c0_i32, %c0_i32_0 : i32, i32
  }
  func.func @transform_5(%arg0: i32) -> (i32, i32) {
    %c0_i32 = arith.constant 0 : i32
    %c0_i32_0 = arith.constant 0 : i32
    %c0_i32_1 = arith.constant 0 : i32
    return %c0_i32, %c0_i32_0 : i32, i32
  }
  func.func @transform_6(%arg0: i32) -> (i32, i32) {
    %c0_i32 = arith.constant 0 : i32
    %c0_i32_0 = arith.constant 0 : i32
    %c0_i32_1 = arith.constant 0 : i32
    return %c0_i32, %c0_i32_0 : i32, i32
  }
  func.func @transform_7(%arg0: i32) -> (i32, i32) {
    %c0_i32 = arith.constant 0 : i32
    %c0_i32_0 = arith.constant 0 : i32
    %c0_i32_1 = arith.constant 0 : i32
    return %c0_i32, %c0_i32_0 : i32, i32
  }
  func.func @transform_8(%arg0: i32) -> (i32, i32) {
    %c0_i32 = arith.constant 0 : i32
    %c0_i32_0 = arith.constant 0 : i32
    %c0_i32_1 = arith.constant 0 : i32
    return %c0_i32, %c0_i32_0 : i32, i32
  }
}

module attributes {stable_mosaic.version = 11 : i64} {
  func.func @_layernorm_kernel(%arg0: i32, %arg1: memref<72x64xf32, #tpu.memory_space<vmem>>, %arg2: memref<1x64xf32, #tpu.memory_space<vmem>>, %arg3: memref<1x64xf32, #tpu.memory_space<vmem>>, %arg4: memref<72x64xf32, #tpu.memory_space<vmem>>) attributes {dimension_semantics = [#tpu.dimension_semantics<parallel>], iteration_bounds = array<i64: 1>, scalar_prefetch = 0 : i64, scratch_operands = 0 : i64, tpu.core_type = #tpu.core_type<tc>, window_params = [{transform_indices = @transform_0, window_bounds = array<i64: 72, 64>}, {pipeline_mode = #tpu.pipeline_mode<synchronous>, transform_indices = @transform_1, window_bounds = array<i64: 1, 64>}, {pipeline_mode = #tpu.pipeline_mode<synchronous>, transform_indices = @transform_2, window_bounds = array<i64: 1, 64>}, {transform_indices = @transform_3, window_bounds = array<i64: 72, 64>}]} {
    %c0 = arith.constant 0 : index
    %c0_0 = arith.constant 0 : index
    %0 = vector.load %arg1[%c0, %c0_0] : memref<72x64xf32, #tpu.memory_space<vmem>>, vector<72x64xf32>
    %cst = arith.constant dense<0.000000e+00> : vector<72xf32>
    %1 = vector.multi_reduction <add>, %0, %cst [1] : vector<72x64xf32> to vector<72xf32>
    %2 = vector.shape_cast %1 : vector<72xf32> to vector<72x1xf32>
    %cst_1 = arith.constant 6.400000e+01 : f32
    %3 = vector.broadcast %cst_1 : f32 to vector<72x1xf32>
    %4 = arith.divf %2, %3 : vector<72x1xf32>
    %5 = vector.broadcast %4 : vector<72x1xf32> to vector<72x64xf32>
    %6 = arith.subf %0, %5 : vector<72x64xf32>
    %7 = arith.mulf %6, %6 : vector<72x64xf32>
    %cst_2 = arith.constant dense<0.000000e+00> : vector<72xf32>
    %8 = vector.multi_reduction <add>, %7, %cst_2 [1] : vector<72x64xf32> to vector<72xf32>
    %9 = vector.shape_cast %8 : vector<72xf32> to vector<72x1xf32>
    %cst_3 = arith.constant 6.400000e+01 : f32
    %10 = vector.broadcast %cst_3 : f32 to vector<72x1xf32>
    %11 = arith.divf %9, %10 : vector<72x1xf32>
    %cst_4 = arith.constant 9.99999974E-6 : f32
    %12 = vector.broadcast %cst_4 : f32 to vector<72x1xf32>
    %13 = arith.addf %11, %12 : vector<72x1xf32>
    %14 = math.rsqrt %13 : vector<72x1xf32>
    %15 = vector.broadcast %14 : vector<72x1xf32> to vector<72x64xf32>
    %16 = arith.mulf %6, %15 : vector<72x64xf32>
    %c0_5 = arith.constant 0 : index
    %c0_6 = arith.constant 0 : index
    %17 = vector.load %arg2[%c0_5, %c0_6] : memref<1x64xf32, #tpu.memory_space<vmem>>, vector<1x64xf32>
    %18 = vector.broadcast %17 : vector<1x64xf32> to vector<72x64xf32>
    %19 = arith.mulf %16, %18 : vector<72x64xf32>
    %c0_7 = arith.constant 0 : index
    %c0_8 = arith.constant 0 : index
    %20 = vector.load %arg3[%c0_7, %c0_8] : memref<1x64xf32, #tpu.memory_space<vmem>>, vector<1x64xf32>
    %21 = vector.broadcast %20 : vector<1x64xf32> to vector<72x64xf32>
    %22 = arith.addf %19, %21 : vector<72x64xf32>
    %c0_9 = arith.constant 0 : index
    %c0_10 = arith.constant 0 : index
    %23 = vector.load %arg4[%c0_9, %c0_10] : memref<72x64xf32, #tpu.memory_space<vmem>>, vector<72x64xf32>
    tpu.vector_store %arg4[%c0_9, %c0_10], %22 {strides = array<i32>} : memref<72x64xf32, #tpu.memory_space<vmem>>, vector<72x64xf32>,
    return
  }
  func.func @transform_0(%arg0: i32) -> (i32, i32) {
    %c0_i32 = arith.constant 0 : i32
    %c0_i32_0 = arith.constant 0 : i32
    return %arg0, %c0_i32 : i32, i32
  }
  func.func @transform_1(%arg0: i32) -> (i32, i32) {
    %c0_i32 = arith.constant 0 : i32
    %c0_i32_0 = arith.constant 0 : i32
    %c0_i32_1 = arith.constant 0 : i32
    return %c0_i32, %c0_i32_0 : i32, i32
  }
  func.func @transform_2(%arg0: i32) -> (i32, i32) {
    %c0_i32 = arith.constant 0 : i32
    %c0_i32_0 = arith.constant 0 : i32
    %c0_i32_1 = arith.constant 0 : i32
    return %c0_i32, %c0_i32_0 : i32, i32
  }
  func.func @transform_3(%arg0: i32) -> (i32, i32) {
    %c0_i32 = arith.constant 0 : i32
    %c0_i32_0 = arith.constant 0 : i32
    return %arg0, %c0_i32 : i32, i32
  }
}

module attributes {stable_mosaic.version = 11 : i64} {
  func.func @kernel(%arg0: i32, %arg1: i32, %arg2: i32, %arg3: memref<72x128xf32, #tpu.memory_space<vmem>>, %arg4: memref<256x128xf32, #tpu.memory_space<vmem>>, %arg5: memref<1x256xf32, #tpu.memory_space<vmem>>, %arg6: memref<72x256xf32, #tpu.memory_space<vmem>>, %arg7: memref<72x256xf32, #tpu.memory_space<vmem>>) attributes {dimension_semantics = [#tpu.dimension_semantics<parallel>, #tpu.dimension_semantics<parallel>, #tpu.dimension_semantics<arbitrary>], iteration_bounds = array<i64: 1, 6, 1>, scalar_prefetch = 0 : i64, scratch_operands = 1 : i64, tpu.core_type = #tpu.core_type<tc>, window_params = [{transform_indices = @transform_0, window_bounds = array<i64: 72, 128>}, {transform_indices = @transform_1, window_bounds = array<i64: 256, 128>}, {transform_indices = @transform_2, window_bounds = array<i64: 1, 256>}, {transform_indices = @transform_3, window_bounds = array<i64: 72, 256>}]} {
    %c0_i32 = arith.constant 0 : i32
    %0 = arith.cmpi eq, %arg2, %c0_i32 : i32
    %1 = arith.extui %0 : i1 to i32
    %c0_i32_0 = arith.constant 0 : i32
    %2 = arith.cmpi ne, %1, %c0_i32_0 : i32
    scf.if %2 {
      %cst_10 = arith.constant 0.000000e+00 : f32
      %12 = vector.broadcast %cst_10 : f32 to vector<72x256xf32>
      %c0_11 = arith.constant 0 : index
      %c0_12 = arith.constant 0 : index
      %13 = vector.load %arg5[%c0_11, %c0_12] : memref<1x256xf32, #tpu.memory_space<vmem>>, vector<1x256xf32>
      %14 = vector.broadcast %13 : vector<1x256xf32> to vector<72x256xf32>
      %15 = arith.addf %12, %14 : vector<72x256xf32>
      %c0_13 = arith.constant 0 : index
      %c0_14 = arith.constant 0 : index
      %16 = vector.load %arg7[%c0_13, %c0_14] : memref<72x256xf32, #tpu.memory_space<vmem>>, vector<72x256xf32>
      tpu.vector_store %arg7[%c0_13, %c0_14], %15 {strides = array<i32>} : memref<72x256xf32, #tpu.memory_space<vmem>>, vector<72x256xf32>,
    } else {
    }
    %c0 = arith.constant 0 : index
    %c0_1 = arith.constant 0 : index
    %3 = vector.load %arg7[%c0, %c0_1] : memref<72x256xf32, #tpu.memory_space<vmem>>, vector<72x256xf32>
    %c0_2 = arith.constant 0 : index
    %c0_3 = arith.constant 0 : index
    %4 = vector.load %arg3[%c0_2, %c0_3] : memref<72x128xf32, #tpu.memory_space<vmem>>, vector<72x128xf32>
    %c0_4 = arith.constant 0 : index
    %c0_5 = arith.constant 0 : index
    %5 = vector.load %arg4[%c0_4, %c0_5] : memref<256x128xf32, #tpu.memory_space<vmem>>, vector<256x128xf32>
    %cst = arith.constant dense<0.000000e+00> : vector<72x256xf32>
    %6 = tpu.matmul %4, %5, %cst {dimension_numbers = #tpu.dot_dimension_numbers<[1], [1], [0], [0], [0, 0, 1, 0], [], []>} : vector<72x128xf32>, vector<256x128xf32>, vector<72x256xf32> -> vector<72x256xf32>
    %7 = arith.addf %3, %6 : vector<72x256xf32>
    %c0_6 = arith.constant 0 : index
    %c0_7 = arith.constant 0 : index
    %8 = vector.load %arg7[%c0_6, %c0_7] : memref<72x256xf32, #tpu.memory_space<vmem>>, vector<72x256xf32>
    tpu.vector_store %arg7[%c0_6, %c0_7], %7 {strides = array<i32>} : memref<72x256xf32, #tpu.memory_space<vmem>>, vector<72x256xf32>,
    %c0_i32_8 = arith.constant 0 : i32
    %9 = arith.cmpi eq, %arg2, %c0_i32_8 : i32
    %10 = arith.extui %9 : i1 to i32
    %c0_i32_9 = arith.constant 0 : i32
    %11 = arith.cmpi ne, %10, %c0_i32_9 : i32
    scf.if %11 {
      %c0_10 = arith.constant 0 : index
      %c0_11 = arith.constant 0 : index
      %12 = vector.load %arg7[%c0_10, %c0_11] : memref<72x256xf32, #tpu.memory_space<vmem>>, vector<72x256xf32>
      %c0_12 = arith.constant 0 : index
      %c0_13 = arith.constant 0 : index
      %13 = vector.load %arg6[%c0_12, %c0_13] : memref<72x256xf32, #tpu.memory_space<vmem>>, vector<72x256xf32>
      tpu.vector_store %arg6[%c0_12, %c0_13], %12 {strides = array<i32>} : memref<72x256xf32, #tpu.memory_space<vmem>>, vector<72x256xf32>,
    } else {
    }
    return
  }
  func.func @transform_0(%arg0: i32, %arg1: i32, %arg2: i32) -> (i32, i32) {
    %c0_i32 = arith.constant 0 : i32
    return %arg0, %arg2 : i32, i32
  }
  func.func @transform_1(%arg0: i32, %arg1: i32, %arg2: i32) -> (i32, i32) {
    %c0_i32 = arith.constant 0 : i32
    return %arg1, %arg2 : i32, i32
  }
  func.func @transform_2(%arg0: i32, %arg1: i32, %arg2: i32) -> (i32, i32) {
    %c0_i32 = arith.constant 0 : i32
    %c0_i32_0 = arith.constant 0 : i32
    return %c0_i32, %arg1 : i32, i32
  }
  func.func @transform_3(%arg0: i32, %arg1: i32, %arg2: i32) -> (i32, i32) {
    %c0_i32 = arith.constant 0 : i32
    return %arg0, %arg1 : i32, i32
  }
}

module attributes {stable_mosaic.version = 11 : i64} {
  func.func @_attention_kernel(%arg0: i32, %arg1: memref<1x33x64xf32, #tpu.memory_space<vmem>>, %arg2: memref<1x33x64xf32, #tpu.memory_space<vmem>>, %arg3: memref<1x33x64xf32, #tpu.memory_space<vmem>>, %arg4: memref<1x33x64xf32, #tpu.memory_space<vmem>>) attributes {dimension_semantics = [#tpu.dimension_semantics<parallel>], iteration_bounds = array<i64: 16>, scalar_prefetch = 0 : i64, scratch_operands = 0 : i64, tpu.core_type = #tpu.core_type<tc>, window_params = [{transform_indices = @transform_0, window_bounds = array<i64: 1, 33, 64>}, {transform_indices = @transform_1, window_bounds = array<i64: 1, 33, 64>}, {transform_indices = @transform_2, window_bounds = array<i64: 1, 33, 64>}, {transform_indices = @transform_3, window_bounds = array<i64: 1, 33, 64>}]} {
    %c0 = arith.constant 0 : index
    %c0_0 = arith.constant 0 : index
    %c0_1 = arith.constant 0 : index
    %0 = vector.load %arg1[%c0, %c0_0, %c0_1] : memref<1x33x64xf32, #tpu.memory_space<vmem>>, vector<1x33x64xf32>
    %1 = vector.shape_cast %0 : vector<1x33x64xf32> to vector<33x64xf32>
    %c0_2 = arith.constant 0 : index
    %c0_3 = arith.constant 0 : index
    %c0_4 = arith.constant 0 : index
    %2 = vector.load %arg2[%c0_2, %c0_3, %c0_4] : memref<1x33x64xf32, #tpu.memory_space<vmem>>, vector<1x33x64xf32>
    %3 = vector.shape_cast %2 : vector<1x33x64xf32> to vector<33x64xf32>
    %c0_5 = arith.constant 0 : index
    %c0_6 = arith.constant 0 : index
    %c0_7 = arith.constant 0 : index
    %4 = vector.load %arg3[%c0_5, %c0_6, %c0_7] : memref<1x33x64xf32, #tpu.memory_space<vmem>>, vector<1x33x64xf32>
    %5 = vector.shape_cast %4 : vector<1x33x64xf32> to vector<33x64xf32>
    %cst = arith.constant dense<0.000000e+00> : vector<33x33xf32>
    %6 = tpu.matmul %1, %3, %cst {dimension_numbers = #tpu.dot_dimension_numbers<[1], [1], [0], [0], [0, 0, 1, 0], [], []>} : vector<33x64xf32>, vector<33x64xf32>, vector<33x33xf32> -> vector<33x33xf32>
    %cst_8 = arith.constant 1.250000e-01 : f32
    %7 = vector.broadcast %cst_8 : f32 to vector<33x33xf32>
    %8 = arith.mulf %6, %7 : vector<33x33xf32>
    %cst_9 = arith.constant dense<0xFF800000> : vector<33xf32>
    %9 = vector.multi_reduction <maximumf>, %8, %cst_9 [1] : vector<33x33xf32> to vector<33xf32>
    %10 = vector.shape_cast %9 : vector<33xf32> to vector<33x1xf32>
    %11 = vector.broadcast %10 : vector<33x1xf32> to vector<33x33xf32>
    %12 = arith.subf %8, %11 : vector<33x33xf32>
    %13 = math.exp %12 : vector<33x33xf32>
    %cst_10 = arith.constant dense<0.000000e+00> : vector<33xf32>
    %14 = vector.multi_reduction <add>, %13, %cst_10 [1] : vector<33x33xf32> to vector<33xf32>
    %15 = vector.shape_cast %14 : vector<33xf32> to vector<33x1xf32>
    %cst_11 = arith.constant dense<0.000000e+00> : vector<33x64xf32>
    %16 = tpu.matmul %13, %5, %cst_11 {dimension_numbers = #tpu.dot_dimension_numbers<[1], [0], [0], [1], [0, 0, 1, 1], [], []>} : vector<33x33xf32>, vector<33x64xf32>, vector<33x64xf32> -> vector<33x64xf32>
    %17 = vector.broadcast %15 : vector<33x1xf32> to vector<33x64xf32>
    %18 = arith.divf %16, %17 : vector<33x64xf32>
    %c0_12 = arith.constant 0 : index
    %c0_13 = arith.constant 0 : index
    %c0_14 = arith.constant 0 : index
    %19 = vector.load %arg4[%c0_12, %c0_13, %c0_14] : memref<1x33x64xf32, #tpu.memory_space<vmem>>, vector<1x33x64xf32>
    %20 = vector.shape_cast %19 : vector<1x33x64xf32> to vector<33x64xf32>
    %21 = vector.shape_cast %18 : vector<33x64xf32> to vector<1x33x64xf32>
    tpu.vector_store %arg4[%c0_12, %c0_13, %c0_14], %21 {strides = array<i32>} : memref<1x33x64xf32, #tpu.memory_space<vmem>>, vector<1x33x64xf32>,
    return
  }
  func.func @transform_0(%arg0: i32) -> (i32, i32, i32) {
    %c0_i32 = arith.constant 0 : i32
    %c0_i32_0 = arith.constant 0 : i32
    %c0_i32_1 = arith.constant 0 : i32
    return %arg0, %c0_i32, %c0_i32_0 : i32, i32, i32
  }
  func.func @transform_1(%arg0: i32) -> (i32, i32, i32) {
    %c0_i32 = arith.constant 0 : i32
    %c0_i32_0 = arith.constant 0 : i32
    %c0_i32_1 = arith.constant 0 : i32
    return %arg0, %c0_i32, %c0_i32_0 : i32, i32, i32
  }
  func.func @transform_2(%arg0: i32) -> (i32, i32, i32) {
    %c0_i32 = arith.constant 0 : i32
    %c0_i32_0 = arith.constant 0 : i32
    %c0_i32_1 = arith.constant 0 : i32
    return %arg0, %c0_i32, %c0_i32_0 : i32, i32, i32
  }
  func.func @transform_3(%arg0: i32) -> (i32, i32, i32) {
    %c0_i32 = arith.constant 0 : i32
    %c0_i32_0 = arith.constant 0 : i32
    %c0_i32_1 = arith.constant 0 : i32
    return %arg0, %c0_i32, %c0_i32_0 : i32, i32, i32
  }
}

module attributes {stable_mosaic.version = 11 : i64} {
  func.func @kernel(%arg0: i32, %arg1: i32, %arg2: i32, %arg3: memref<72x256xf32, #tpu.memory_space<vmem>>, %arg4: memref<128x256xf32, #tpu.memory_space<vmem>>, %arg5: memref<1x128xf32, #tpu.memory_space<vmem>>, %arg6: memref<72x128xf32, #tpu.memory_space<vmem>>, %arg7: memref<72x128xf32, #tpu.memory_space<vmem>>, %arg8: memref<72x128xf32, #tpu.memory_space<vmem>>) attributes {dimension_semantics = [#tpu.dimension_semantics<parallel>, #tpu.dimension_semantics<parallel>, #tpu.dimension_semantics<arbitrary>], iteration_bounds = array<i64: 1, 1, 2>, scalar_prefetch = 0 : i64, scratch_operands = 1 : i64, tpu.core_type = #tpu.core_type<tc>, window_params = [{transform_indices = @transform_0, window_bounds = array<i64: 72, 256>}, {transform_indices = @transform_1, window_bounds = array<i64: 128, 256>}, {transform_indices = @transform_2, window_bounds = array<i64: 1, 128>}, {transform_indices = @transform_3, window_bounds = array<i64: 72, 128>}, {transform_indices = @transform_4, window_bounds = array<i64: 72, 128>}]} {
    %c0_i32 = arith.constant 0 : i32
    %0 = arith.cmpi eq, %arg2, %c0_i32 : i32
    %1 = arith.extui %0 : i1 to i32
    %c0_i32_0 = arith.constant 0 : i32
    %2 = arith.cmpi ne, %1, %c0_i32_0 : i32
    scf.if %2 {
      %cst_9 = arith.constant 0.000000e+00 : f32
      %12 = vector.broadcast %cst_9 : f32 to vector<72x128xf32>
      %c0_10 = arith.constant 0 : index
      %c0_11 = arith.constant 0 : index
      %13 = vector.load %arg5[%c0_10, %c0_11] : memref<1x128xf32, #tpu.memory_space<vmem>>, vector<1x128xf32>
      %14 = vector.broadcast %13 : vector<1x128xf32> to vector<72x128xf32>
      %15 = arith.addf %12, %14 : vector<72x128xf32>
      %c0_12 = arith.constant 0 : index
      %c0_13 = arith.constant 0 : index
      %16 = vector.load %arg6[%c0_12, %c0_13] : memref<72x128xf32, #tpu.memory_space<vmem>>, vector<72x128xf32>
      %17 = arith.addf %15, %16 : vector<72x128xf32>
      %c0_14 = arith.constant 0 : index
      %c0_15 = arith.constant 0 : index
      %18 = vector.load %arg8[%c0_14, %c0_15] : memref<72x128xf32, #tpu.memory_space<vmem>>, vector<72x128xf32>
      tpu.vector_store %arg8[%c0_14, %c0_15], %17 {strides = array<i32>} : memref<72x128xf32, #tpu.memory_space<vmem>>, vector<72x128xf32>,
    } else {
    }
    %c0 = arith.constant 0 : index
    %c0_1 = arith.constant 0 : index
    %3 = vector.load %arg8[%c0, %c0_1] : memref<72x128xf32, #tpu.memory_space<vmem>>, vector<72x128xf32>
    %c0_2 = arith.constant 0 : index
    %c0_3 = arith.constant 0 : index
    %4 = vector.load %arg3[%c0_2, %c0_3] : memref<72x256xf32, #tpu.memory_space<vmem>>, vector<72x256xf32>
    %c0_4 = arith.constant 0 : index
    %c0_5 = arith.constant 0 : index
    %5 = vector.load %arg4[%c0_4, %c0_5] : memref<128x256xf32, #tpu.memory_space<vmem>>, vector<128x256xf32>
    %cst = arith.constant dense<0.000000e+00> : vector<72x128xf32>
    %6 = tpu.matmul %4, %5, %cst {dimension_numbers = #tpu.dot_dimension_numbers<[1], [1], [0], [0], [0, 0, 1, 0], [], []>} : vector<72x256xf32>, vector<128x256xf32>, vector<72x128xf32> -> vector<72x128xf32>
    %7 = arith.addf %3, %6 : vector<72x128xf32>
    %c0_6 = arith.constant 0 : index
    %c0_7 = arith.constant 0 : index
    %8 = vector.load %arg8[%c0_6, %c0_7] : memref<72x128xf32, #tpu.memory_space<vmem>>, vector<72x128xf32>
    tpu.vector_store %arg8[%c0_6, %c0_7], %7 {strides = array<i32>} : memref<72x128xf32, #tpu.memory_space<vmem>>, vector<72x128xf32>,
    %c1_i32 = arith.constant 1 : i32
    %9 = arith.cmpi eq, %arg2, %c1_i32 : i32
    %10 = arith.extui %9 : i1 to i32
    %c0_i32_8 = arith.constant 0 : i32
    %11 = arith.cmpi ne, %10, %c0_i32_8 : i32
    scf.if %11 {
      %c0_9 = arith.constant 0 : index
      %c0_10 = arith.constant 0 : index
      %12 = vector.load %arg8[%c0_9, %c0_10] : memref<72x128xf32, #tpu.memory_space<vmem>>, vector<72x128xf32>
      %c0_11 = arith.constant 0 : index
      %c0_12 = arith.constant 0 : index
      %13 = vector.load %arg7[%c0_11, %c0_12] : memref<72x128xf32, #tpu.memory_space<vmem>>, vector<72x128xf32>
      tpu.vector_store %arg7[%c0_11, %c0_12], %12 {strides = array<i32>} : memref<72x128xf32, #tpu.memory_space<vmem>>, vector<72x128xf32>,
    } else {
    }
    return
  }
  func.func @transform_0(%arg0: i32, %arg1: i32, %arg2: i32) -> (i32, i32) {
    %c0_i32 = arith.constant 0 : i32
    return %arg0, %arg2 : i32, i32
  }
  func.func @transform_1(%arg0: i32, %arg1: i32, %arg2: i32) -> (i32, i32) {
    %c0_i32 = arith.constant 0 : i32
    return %arg1, %arg2 : i32, i32
  }
  func.func @transform_2(%arg0: i32, %arg1: i32, %arg2: i32) -> (i32, i32) {
    %c0_i32 = arith.constant 0 : i32
    %c0_i32_0 = arith.constant 0 : i32
    return %c0_i32, %arg1 : i32, i32
  }
  func.func @transform_3(%arg0: i32, %arg1: i32, %arg2: i32) -> (i32, i32) {
    %c0_i32 = arith.constant 0 : i32
    return %arg0, %arg1 : i32, i32
  }
  func.func @transform_4(%arg0: i32, %arg1: i32, %arg2: i32) -> (i32, i32) {
    %c0_i32 = arith.constant 0 : i32
    return %arg0, %arg1 : i32, i32
  }
}

module attributes {stable_mosaic.version = 11 : i64} {
  func.func @kernel(%arg0: i32, %arg1: i32, %arg2: i32, %arg3: memref<72x128xf32, #tpu.memory_space<vmem>>, %arg4: memref<256x128xf32, #tpu.memory_space<vmem>>, %arg5: memref<1x256xf32, #tpu.memory_space<vmem>>, %arg6: memref<72x256xf32, #tpu.memory_space<vmem>>, %arg7: memref<72x256xf32, #tpu.memory_space<vmem>>) attributes {dimension_semantics = [#tpu.dimension_semantics<parallel>, #tpu.dimension_semantics<parallel>, #tpu.dimension_semantics<arbitrary>], iteration_bounds = array<i64: 1, 1, 1>, scalar_prefetch = 0 : i64, scratch_operands = 1 : i64, tpu.core_type = #tpu.core_type<tc>, window_params = [{transform_indices = @transform_0, window_bounds = array<i64: 72, 128>}, {transform_indices = @transform_1, window_bounds = array<i64: 256, 128>}, {transform_indices = @transform_2, window_bounds = array<i64: 1, 256>}, {transform_indices = @transform_3, window_bounds = array<i64: 72, 256>}]} {
    %c0_i32 = arith.constant 0 : i32
    %0 = arith.cmpi eq, %arg2, %c0_i32 : i32
    %1 = arith.extui %0 : i1 to i32
    %c0_i32_0 = arith.constant 0 : i32
    %2 = arith.cmpi ne, %1, %c0_i32_0 : i32
    scf.if %2 {
      %cst_10 = arith.constant 0.000000e+00 : f32
      %12 = vector.broadcast %cst_10 : f32 to vector<72x256xf32>
      %c0_11 = arith.constant 0 : index
      %c0_12 = arith.constant 0 : index
      %13 = vector.load %arg5[%c0_11, %c0_12] : memref<1x256xf32, #tpu.memory_space<vmem>>, vector<1x256xf32>
      %14 = vector.broadcast %13 : vector<1x256xf32> to vector<72x256xf32>
      %15 = arith.addf %12, %14 : vector<72x256xf32>
      %c0_13 = arith.constant 0 : index
      %c0_14 = arith.constant 0 : index
      %16 = vector.load %arg7[%c0_13, %c0_14] : memref<72x256xf32, #tpu.memory_space<vmem>>, vector<72x256xf32>
      tpu.vector_store %arg7[%c0_13, %c0_14], %15 {strides = array<i32>} : memref<72x256xf32, #tpu.memory_space<vmem>>, vector<72x256xf32>,
    } else {
    }
    %c0 = arith.constant 0 : index
    %c0_1 = arith.constant 0 : index
    %3 = vector.load %arg7[%c0, %c0_1] : memref<72x256xf32, #tpu.memory_space<vmem>>, vector<72x256xf32>
    %c0_2 = arith.constant 0 : index
    %c0_3 = arith.constant 0 : index
    %4 = vector.load %arg3[%c0_2, %c0_3] : memref<72x128xf32, #tpu.memory_space<vmem>>, vector<72x128xf32>
    %c0_4 = arith.constant 0 : index
    %c0_5 = arith.constant 0 : index
    %5 = vector.load %arg4[%c0_4, %c0_5] : memref<256x128xf32, #tpu.memory_space<vmem>>, vector<256x128xf32>
    %cst = arith.constant dense<0.000000e+00> : vector<72x256xf32>
    %6 = tpu.matmul %4, %5, %cst {dimension_numbers = #tpu.dot_dimension_numbers<[1], [1], [0], [0], [0, 0, 1, 0], [], []>} : vector<72x128xf32>, vector<256x128xf32>, vector<72x256xf32> -> vector<72x256xf32>
    %7 = arith.addf %3, %6 : vector<72x256xf32>
    %c0_6 = arith.constant 0 : index
    %c0_7 = arith.constant 0 : index
    %8 = vector.load %arg7[%c0_6, %c0_7] : memref<72x256xf32, #tpu.memory_space<vmem>>, vector<72x256xf32>
    tpu.vector_store %arg7[%c0_6, %c0_7], %7 {strides = array<i32>} : memref<72x256xf32, #tpu.memory_space<vmem>>, vector<72x256xf32>,
    %c0_i32_8 = arith.constant 0 : i32
    %9 = arith.cmpi eq, %arg2, %c0_i32_8 : i32
    %10 = arith.extui %9 : i1 to i32
    %c0_i32_9 = arith.constant 0 : i32
    %11 = arith.cmpi ne, %10, %c0_i32_9 : i32
    scf.if %11 {
      %c0_10 = arith.constant 0 : index
      %c0_11 = arith.constant 0 : index
      %12 = vector.load %arg7[%c0_10, %c0_11] : memref<72x256xf32, #tpu.memory_space<vmem>>, vector<72x256xf32>
      %13 = arith.mulf %12, %12 : vector<72x256xf32>
      %14 = arith.mulf %12, %13 : vector<72x256xf32>
      %cst_12 = arith.constant 4.471500e-02 : f32
      %15 = vector.broadcast %cst_12 : f32 to vector<72x256xf32>
      %16 = arith.mulf %15, %14 : vector<72x256xf32>
      %17 = arith.addf %12, %16 : vector<72x256xf32>
      %cst_13 = arith.constant 0.797884583 : f32
      %18 = vector.broadcast %cst_13 : f32 to vector<72x256xf32>
      %19 = arith.mulf %18, %17 : vector<72x256xf32>
      %20 = math.tanh %19 : vector<72x256xf32>
      %cst_14 = arith.constant 1.000000e+00 : f32
      %21 = vector.broadcast %cst_14 : f32 to vector<72x256xf32>
      %22 = arith.addf %21, %20 : vector<72x256xf32>
      %cst_15 = arith.constant 5.000000e-01 : f32
      %23 = vector.broadcast %cst_15 : f32 to vector<72x256xf32>
      %24 = arith.mulf %23, %22 : vector<72x256xf32>
      %25 = arith.mulf %12, %24 : vector<72x256xf32>
      %c0_16 = arith.constant 0 : index
      %c0_17 = arith.constant 0 : index
      %26 = vector.load %arg6[%c0_16, %c0_17] : memref<72x256xf32, #tpu.memory_space<vmem>>, vector<72x256xf32>
      tpu.vector_store %arg6[%c0_16, %c0_17], %25 {strides = array<i32>} : memref<72x256xf32, #tpu.memory_space<vmem>>, vector<72x256xf32>,
    } else {
    }
    return
  }
  func.func @transform_0(%arg0: i32, %arg1: i32, %arg2: i32) -> (i32, i32) {
    %c0_i32 = arith.constant 0 : i32
    return %arg0, %arg2 : i32, i32
  }
  func.func @transform_1(%arg0: i32, %arg1: i32, %arg2: i32) -> (i32, i32) {
    %c0_i32 = arith.constant 0 : i32
    return %arg1, %arg2 : i32, i32
  }
  func.func @transform_2(%arg0: i32, %arg1: i32, %arg2: i32) -> (i32, i32) {
    %c0_i32 = arith.constant 0 : i32
    %c0_i32_0 = arith.constant 0 : i32
    return %c0_i32, %arg1 : i32, i32
  }
  func.func @transform_3(%arg0: i32, %arg1: i32, %arg2: i32) -> (i32, i32) {
    %c0_i32 = arith.constant 0 : i32
    return %arg0, %arg1 : i32, i32
  }
}

module attributes {stable_mosaic.version = 11 : i64} {
  func.func @kernel(%arg0: i32, %arg1: i32, %arg2: i32, %arg3: memref<72x256xf32, #tpu.memory_space<vmem>>, %arg4: memref<128x256xf32, #tpu.memory_space<vmem>>, %arg5: memref<1x128xf32, #tpu.memory_space<vmem>>, %arg6: memref<72x128xf32, #tpu.memory_space<vmem>>, %arg7: memref<72x128xf32, #tpu.memory_space<vmem>>, %arg8: memref<72x128xf32, #tpu.memory_space<vmem>>) attributes {dimension_semantics = [#tpu.dimension_semantics<parallel>, #tpu.dimension_semantics<parallel>, #tpu.dimension_semantics<arbitrary>], iteration_bounds = array<i64: 1, 1, 1>, scalar_prefetch = 0 : i64, scratch_operands = 1 : i64, tpu.core_type = #tpu.core_type<tc>, window_params = [{transform_indices = @transform_0, window_bounds = array<i64: 72, 256>}, {transform_indices = @transform_1, window_bounds = array<i64: 128, 256>}, {transform_indices = @transform_2, window_bounds = array<i64: 1, 128>}, {transform_indices = @transform_3, window_bounds = array<i64: 72, 128>}, {transform_indices = @transform_4, window_bounds = array<i64: 72, 128>}]} {
    %c0_i32 = arith.constant 0 : i32
    %0 = arith.cmpi eq, %arg2, %c0_i32 : i32
    %1 = arith.extui %0 : i1 to i32
    %c0_i32_0 = arith.constant 0 : i32
    %2 = arith.cmpi ne, %1, %c0_i32_0 : i32
    scf.if %2 {
      %cst_10 = arith.constant 0.000000e+00 : f32
      %12 = vector.broadcast %cst_10 : f32 to vector<72x128xf32>
      %c0_11 = arith.constant 0 : index
      %c0_12 = arith.constant 0 : index
      %13 = vector.load %arg5[%c0_11, %c0_12] : memref<1x128xf32, #tpu.memory_space<vmem>>, vector<1x128xf32>
      %14 = vector.broadcast %13 : vector<1x128xf32> to vector<72x128xf32>
      %15 = arith.addf %12, %14 : vector<72x128xf32>
      %c0_13 = arith.constant 0 : index
      %c0_14 = arith.constant 0 : index
      %16 = vector.load %arg6[%c0_13, %c0_14] : memref<72x128xf32, #tpu.memory_space<vmem>>, vector<72x128xf32>
      %17 = arith.addf %15, %16 : vector<72x128xf32>
      %c0_15 = arith.constant 0 : index
      %c0_16 = arith.constant 0 : index
      %18 = vector.load %arg8[%c0_15, %c0_16] : memref<72x128xf32, #tpu.memory_space<vmem>>, vector<72x128xf32>
      tpu.vector_store %arg8[%c0_15, %c0_16], %17 {strides = array<i32>} : memref<72x128xf32, #tpu.memory_space<vmem>>, vector<72x128xf32>,
    } else {
    }
    %c0 = arith.constant 0 : index
    %c0_1 = arith.constant 0 : index
    %3 = vector.load %arg8[%c0, %c0_1] : memref<72x128xf32, #tpu.memory_space<vmem>>, vector<72x128xf32>
    %c0_2 = arith.constant 0 : index
    %c0_3 = arith.constant 0 : index
    %4 = vector.load %arg3[%c0_2, %c0_3] : memref<72x256xf32, #tpu.memory_space<vmem>>, vector<72x256xf32>
    %c0_4 = arith.constant 0 : index
    %c0_5 = arith.constant 0 : index
    %5 = vector.load %arg4[%c0_4, %c0_5] : memref<128x256xf32, #tpu.memory_space<vmem>>, vector<128x256xf32>
    %cst = arith.constant dense<0.000000e+00> : vector<72x128xf32>
    %6 = tpu.matmul %4, %5, %cst {dimension_numbers = #tpu.dot_dimension_numbers<[1], [1], [0], [0], [0, 0, 1, 0], [], []>} : vector<72x256xf32>, vector<128x256xf32>, vector<72x128xf32> -> vector<72x128xf32>
    %7 = arith.addf %3, %6 : vector<72x128xf32>
    %c0_6 = arith.constant 0 : index
    %c0_7 = arith.constant 0 : index
    %8 = vector.load %arg8[%c0_6, %c0_7] : memref<72x128xf32, #tpu.memory_space<vmem>>, vector<72x128xf32>
    tpu.vector_store %arg8[%c0_6, %c0_7], %7 {strides = array<i32>} : memref<72x128xf32, #tpu.memory_space<vmem>>, vector<72x128xf32>,
    %c0_i32_8 = arith.constant 0 : i32
    %9 = arith.cmpi eq, %arg2, %c0_i32_8 : i32
    %10 = arith.extui %9 : i1 to i32
    %c0_i32_9 = arith.constant 0 : i32
    %11 = arith.cmpi ne, %10, %c0_i32_9 : i32
    scf.if %11 {
      %c0_10 = arith.constant 0 : index
      %c0_11 = arith.constant 0 : index
      %12 = vector.load %arg8[%c0_10, %c0_11] : memref<72x128xf32, #tpu.memory_space<vmem>>, vector<72x128xf32>
      %c0_12 = arith.constant 0 : index
      %c0_13 = arith.constant 0 : index
      %13 = vector.load %arg7[%c0_12, %c0_13] : memref<72x128xf32, #tpu.memory_space<vmem>>, vector<72x128xf32>
      tpu.vector_store %arg7[%c0_12, %c0_13], %12 {strides = array<i32>} : memref<72x128xf32, #tpu.memory_space<vmem>>, vector<72x128xf32>,
    } else {
    }
    return
  }
  func.func @transform_0(%arg0: i32, %arg1: i32, %arg2: i32) -> (i32, i32) {
    %c0_i32 = arith.constant 0 : i32
    return %arg0, %arg2 : i32, i32
  }
  func.func @transform_1(%arg0: i32, %arg1: i32, %arg2: i32) -> (i32, i32) {
    %c0_i32 = arith.constant 0 : i32
    return %arg1, %arg2 : i32, i32
  }
  func.func @transform_2(%arg0: i32, %arg1: i32, %arg2: i32) -> (i32, i32) {
    %c0_i32 = arith.constant 0 : i32
    %c0_i32_0 = arith.constant 0 : i32
    return %c0_i32, %arg1 : i32, i32
  }
  func.func @transform_3(%arg0: i32, %arg1: i32, %arg2: i32) -> (i32, i32) {
    %c0_i32 = arith.constant 0 : i32
    return %arg0, %arg1 : i32, i32
  }
  func.func @transform_4(%arg0: i32, %arg1: i32, %arg2: i32) -> (i32, i32) {
    %c0_i32 = arith.constant 0 : i32
    return %arg0, %arg1 : i32, i32
  }
}

module attributes {stable_mosaic.version = 11 : i64} {
  func.func @kernel(%arg0: i32, %arg1: i32, %arg2: i32, %arg3: memref<72x128xf32, #tpu.memory_space<vmem>>, %arg4: memref<128x128xf32, #tpu.memory_space<vmem>>, %arg5: memref<1x128xf32, #tpu.memory_space<vmem>>, %arg6: memref<72x128xf32, #tpu.memory_space<vmem>>, %arg7: memref<72x128xf32, #tpu.memory_space<vmem>>) attributes {dimension_semantics = [#tpu.dimension_semantics<parallel>, #tpu.dimension_semantics<parallel>, #tpu.dimension_semantics<arbitrary>], iteration_bounds = array<i64: 1, 1, 1>, scalar_prefetch = 0 : i64, scratch_operands = 1 : i64, tpu.core_type = #tpu.core_type<tc>, window_params = [{transform_indices = @transform_0, window_bounds = array<i64: 72, 128>}, {transform_indices = @transform_1, window_bounds = array<i64: 128, 128>}, {transform_indices = @transform_2, window_bounds = array<i64: 1, 128>}, {transform_indices = @transform_3, window_bounds = array<i64: 72, 128>}]} {
    %c0_i32 = arith.constant 0 : i32
    %0 = arith.cmpi eq, %arg2, %c0_i32 : i32
    %1 = arith.extui %0 : i1 to i32
    %c0_i32_0 = arith.constant 0 : i32
    %2 = arith.cmpi ne, %1, %c0_i32_0 : i32
    scf.if %2 {
      %cst_10 = arith.constant 0.000000e+00 : f32
      %12 = vector.broadcast %cst_10 : f32 to vector<72x128xf32>
      %c0_11 = arith.constant 0 : index
      %c0_12 = arith.constant 0 : index
      %13 = vector.load %arg5[%c0_11, %c0_12] : memref<1x128xf32, #tpu.memory_space<vmem>>, vector<1x128xf32>
      %14 = vector.broadcast %13 : vector<1x128xf32> to vector<72x128xf32>
      %15 = arith.addf %12, %14 : vector<72x128xf32>
      %c0_13 = arith.constant 0 : index
      %c0_14 = arith.constant 0 : index
      %16 = vector.load %arg7[%c0_13, %c0_14] : memref<72x128xf32, #tpu.memory_space<vmem>>, vector<72x128xf32>
      tpu.vector_store %arg7[%c0_13, %c0_14], %15 {strides = array<i32>} : memref<72x128xf32, #tpu.memory_space<vmem>>, vector<72x128xf32>,
    } else {
    }
    %c0 = arith.constant 0 : index
    %c0_1 = arith.constant 0 : index
    %3 = vector.load %arg7[%c0, %c0_1] : memref<72x128xf32, #tpu.memory_space<vmem>>, vector<72x128xf32>
    %c0_2 = arith.constant 0 : index
    %c0_3 = arith.constant 0 : index
    %4 = vector.load %arg3[%c0_2, %c0_3] : memref<72x128xf32, #tpu.memory_space<vmem>>, vector<72x128xf32>
    %c0_4 = arith.constant 0 : index
    %c0_5 = arith.constant 0 : index
    %5 = vector.load %arg4[%c0_4, %c0_5] : memref<128x128xf32, #tpu.memory_space<vmem>>, vector<128x128xf32>
    %cst = arith.constant dense<0.000000e+00> : vector<72x128xf32>
    %6 = tpu.matmul %4, %5, %cst {dimension_numbers = #tpu.dot_dimension_numbers<[1], [1], [0], [0], [0, 0, 1, 0], [], []>} : vector<72x128xf32>, vector<128x128xf32>, vector<72x128xf32> -> vector<72x128xf32>
    %7 = arith.addf %3, %6 : vector<72x128xf32>
    %c0_6 = arith.constant 0 : index
    %c0_7 = arith.constant 0 : index
    %8 = vector.load %arg7[%c0_6, %c0_7] : memref<72x128xf32, #tpu.memory_space<vmem>>, vector<72x128xf32>
    tpu.vector_store %arg7[%c0_6, %c0_7], %7 {strides = array<i32>} : memref<72x128xf32, #tpu.memory_space<vmem>>, vector<72x128xf32>,
    %c0_i32_8 = arith.constant 0 : i32
    %9 = arith.cmpi eq, %arg2, %c0_i32_8 : i32
    %10 = arith.extui %9 : i1 to i32
    %c0_i32_9 = arith.constant 0 : i32
    %11 = arith.cmpi ne, %10, %c0_i32_9 : i32
    scf.if %11 {
      %c0_10 = arith.constant 0 : index
      %c0_11 = arith.constant 0 : index
      %12 = vector.load %arg7[%c0_10, %c0_11] : memref<72x128xf32, #tpu.memory_space<vmem>>, vector<72x128xf32>
      %c0_12 = arith.constant 0 : index
      %c0_13 = arith.constant 0 : index
      %13 = vector.load %arg6[%c0_12, %c0_13] : memref<72x128xf32, #tpu.memory_space<vmem>>, vector<72x128xf32>
      tpu.vector_store %arg6[%c0_12, %c0_13], %12 {strides = array<i32>} : memref<72x128xf32, #tpu.memory_space<vmem>>, vector<72x128xf32>,
    } else {
    }
    return
  }
  func.func @transform_0(%arg0: i32, %arg1: i32, %arg2: i32) -> (i32, i32) {
    %c0_i32 = arith.constant 0 : i32
    return %arg0, %arg2 : i32, i32
  }
  func.func @transform_1(%arg0: i32, %arg1: i32, %arg2: i32) -> (i32, i32) {
    %c0_i32 = arith.constant 0 : i32
    return %arg1, %arg2 : i32, i32
  }
  func.func @transform_2(%arg0: i32, %arg1: i32, %arg2: i32) -> (i32, i32) {
    %c0_i32 = arith.constant 0 : i32
    %c0_i32_0 = arith.constant 0 : i32
    return %c0_i32, %arg1 : i32, i32
  }
  func.func @transform_3(%arg0: i32, %arg1: i32, %arg2: i32) -> (i32, i32) {
    %c0_i32 = arith.constant 0 : i32
    return %arg0, %arg1 : i32, i32
  }
}

module attributes {stable_mosaic.version = 11 : i64} {
  func.func @kernel(%arg0: i32, %arg1: i32, %arg2: i32, %arg3: memref<8x128xf32, #tpu.memory_space<vmem>>, %arg4: memref<128x128xf32, #tpu.memory_space<vmem>>, %arg5: memref<1x128xf32, #tpu.memory_space<vmem>>, %arg6: memref<8x128xf32, #tpu.memory_space<vmem>>, %arg7: memref<8x128xf32, #tpu.memory_space<vmem>>) attributes {dimension_semantics = [#tpu.dimension_semantics<parallel>, #tpu.dimension_semantics<parallel>, #tpu.dimension_semantics<arbitrary>], iteration_bounds = array<i64: 1, 1, 1>, scalar_prefetch = 0 : i64, scratch_operands = 1 : i64, tpu.core_type = #tpu.core_type<tc>, window_params = [{transform_indices = @transform_0, window_bounds = array<i64: 8, 128>}, {transform_indices = @transform_1, window_bounds = array<i64: 128, 128>}, {transform_indices = @transform_2, window_bounds = array<i64: 1, 128>}, {transform_indices = @transform_3, window_bounds = array<i64: 8, 128>}]} {
    %c0_i32 = arith.constant 0 : i32
    %0 = arith.cmpi eq, %arg2, %c0_i32 : i32
    %1 = arith.extui %0 : i1 to i32
    %c0_i32_0 = arith.constant 0 : i32
    %2 = arith.cmpi ne, %1, %c0_i32_0 : i32
    scf.if %2 {
      %cst_10 = arith.constant 0.000000e+00 : f32
      %12 = vector.broadcast %cst_10 : f32 to vector<8x128xf32>
      %c0_11 = arith.constant 0 : index
      %c0_12 = arith.constant 0 : index
      %13 = vector.load %arg5[%c0_11, %c0_12] : memref<1x128xf32, #tpu.memory_space<vmem>>, vector<1x128xf32>
      %14 = vector.broadcast %13 : vector<1x128xf32> to vector<8x128xf32>
      %15 = arith.addf %12, %14 : vector<8x128xf32>
      %c0_13 = arith.constant 0 : index
      %c0_14 = arith.constant 0 : index
      %16 = vector.load %arg7[%c0_13, %c0_14] : memref<8x128xf32, #tpu.memory_space<vmem>>, vector<8x128xf32>
      tpu.vector_store %arg7[%c0_13, %c0_14], %15 {strides = array<i32>} : memref<8x128xf32, #tpu.memory_space<vmem>>, vector<8x128xf32>,
    } else {
    }
    %c0 = arith.constant 0 : index
    %c0_1 = arith.constant 0 : index
    %3 = vector.load %arg7[%c0, %c0_1] : memref<8x128xf32, #tpu.memory_space<vmem>>, vector<8x128xf32>
    %c0_2 = arith.constant 0 : index
    %c0_3 = arith.constant 0 : index
    %4 = vector.load %arg3[%c0_2, %c0_3] : memref<8x128xf32, #tpu.memory_space<vmem>>, vector<8x128xf32>
    %c0_4 = arith.constant 0 : index
    %c0_5 = arith.constant 0 : index
    %5 = vector.load %arg4[%c0_4, %c0_5] : memref<128x128xf32, #tpu.memory_space<vmem>>, vector<128x128xf32>
    %cst = arith.constant dense<0.000000e+00> : vector<8x128xf32>
    %6 = tpu.matmul %4, %5, %cst {dimension_numbers = #tpu.dot_dimension_numbers<[1], [1], [0], [0], [0, 0, 1, 0], [], []>} : vector<8x128xf32>, vector<128x128xf32>, vector<8x128xf32> -> vector<8x128xf32>
    %7 = arith.addf %3, %6 : vector<8x128xf32>
    %c0_6 = arith.constant 0 : index
    %c0_7 = arith.constant 0 : index
    %8 = vector.load %arg7[%c0_6, %c0_7] : memref<8x128xf32, #tpu.memory_space<vmem>>, vector<8x128xf32>
    tpu.vector_store %arg7[%c0_6, %c0_7], %7 {strides = array<i32>} : memref<8x128xf32, #tpu.memory_space<vmem>>, vector<8x128xf32>,
    %c0_i32_8 = arith.constant 0 : i32
    %9 = arith.cmpi eq, %arg2, %c0_i32_8 : i32
    %10 = arith.extui %9 : i1 to i32
    %c0_i32_9 = arith.constant 0 : i32
    %11 = arith.cmpi ne, %10, %c0_i32_9 : i32
    scf.if %11 {
      %c0_10 = arith.constant 0 : index
      %c0_11 = arith.constant 0 : index
      %12 = vector.load %arg7[%c0_10, %c0_11] : memref<8x128xf32, #tpu.memory_space<vmem>>, vector<8x128xf32>
      %c0_12 = arith.constant 0 : index
      %c0_13 = arith.constant 0 : index
      %13 = vector.load %arg6[%c0_12, %c0_13] : memref<8x128xf32, #tpu.memory_space<vmem>>, vector<8x128xf32>
      tpu.vector_store %arg6[%c0_12, %c0_13], %12 {strides = array<i32>} : memref<8x128xf32, #tpu.memory_space<vmem>>, vector<8x128xf32>,
    } else {
    }
    return
  }
  func.func @transform_0(%arg0: i32, %arg1: i32, %arg2: i32) -> (i32, i32) {
    %c0_i32 = arith.constant 0 : i32
    return %arg0, %arg2 : i32, i32
  }
  func.func @transform_1(%arg0: i32, %arg1: i32, %arg2: i32) -> (i32, i32) {
    %c0_i32 = arith.constant 0 : i32
    return %arg1, %arg2 : i32, i32
  }
  func.func @transform_2(%arg0: i32, %arg1: i32, %arg2: i32) -> (i32, i32) {
    %c0_i32 = arith.constant 0 : i32
    %c0_i32_0 = arith.constant 0 : i32
    return %c0_i32, %arg1 : i32, i32
  }
  func.func @transform_3(%arg0: i32, %arg1: i32, %arg2: i32) -> (i32, i32) {
    %c0_i32 = arith.constant 0 : i32
    return %arg0, %arg1 : i32, i32
  }
}

</mosaic_0001>

<bundles_post_ra>
// kernel: _lambda_.28
= control target key start
LH: loop header
LB: loop body
LE: loop exit
PB: predicated region body
PF: predicated region fallthrough
CT: control target
= control target key end

     0   :  { %s564_s1 = inlined_call_operand.vmem [shape: f32[128,128], index: 1, kind: input, shape index: {}]   ;;  %s565_s0 = inlined_call_operand.vmem [shape: f32[96,128], index: 0, kind: input, shape index: {}]   ;;  %s566_s2 = inlined_call_operand.vmem [shape: f32[1,128], index: 2, kind: input, shape index: {}]   ;;  %s567_s3 = inlined_call_operand.vmem [shape: f32[96,128], index: 3, kind: output, shape index: {}]  }
   0x1   :  { %v62_v0 = vld [vmem:[%s564_s1] sm:$0xff]  ;;  %v63_v1 = vld [vmem:[%s564_s1 + $0x8] sm:$0xff]  ;;  %v64_v2 = vld [vmem:[%s564_s1 + $0x10] sm:$0xff] }
   0x2   :  { %v373_v3 = vpack.c.bf16 %v63_v1, %v62_v0  ;;  %v65_v4 = vld [vmem:[%s564_s1 + $0x18] sm:$0xff]  ;;  %v50_v6 = vld [vmem:[%s565_s0] sm:$0xff]  ;;  %v56_v7 = vld [vmem:[%s565_s0 + $0x30] sm:$0xff] }
   0x3   :  { %v377_v5 = vpack.c.bf16 %v65_v4, %v64_v2  ;;  %v66_v8 = vld [vmem:[%s564_s1 + $0x20] sm:$0xff]  ;;  %v67_v9 = vld [vmem:[%s564_s1 + $0x28] sm:$0xff]  ;;  %355 = vmatprep.mubr.f32.mxu0 %v50_v6  ;;  %364 = vmatprep.mubr.f32.mxu1 %v56_v7  ;;  %v68_v11 = vld [vmem:[%s564_s1 + $0x30] sm:$0xff] }
   0x4   :  { %374 = vmatprep.subr.bf16.mxu0 %v373_v3  ;;  %405 = vmatprep.subr.bf16.mxu1 %v373_v3  ;;  %v381_v10 = vpack.c.bf16 %v67_v9, %v66_v8  ;;  %v69_v12 = vld [vmem:[%s564_s1 + $0x38] sm:$0xff]  ;;  %v70_v14 = vld [vmem:[%s564_s1 + $0x40] sm:$0xff]  ;;  %v71_v15 = vld [vmem:[%s564_s1 + $0x48] sm:$0xff] }
   0x5   :  { %376 = vmatpush3.bf16.xpose.msra.mxu0 %v373_v3  ;;  %413 = vmatpush3.bf16.xpose.msra.mxu1 %v373_v3  ;;  %v385_v13 = vpack.c.bf16 %v69_v12, %v68_v11  ;;  %v389_v16 = vpack.c.bf16 %v71_v15, %v70_v14  ;;  %v72_v17 = vld [vmem:[%s564_s1 + $0x50] sm:$0xff]  ;;  %v73_v18 = vld [vmem:[%s564_s1 + $0x58] sm:$0xff]  ;;  %v74_v20 = vld [vmem:[%s564_s1 + $0x60] sm:$0xff] }
   0x6   :  { %378 = vmatprep.subr.bf16.mxu0 %v377_v5  ;;  %406 = vmatprep.subr.bf16.mxu1 %v377_v5  ;;  %v393_v19 = vpack.c.bf16 %v73_v18, %v72_v17  ;;  %v75_v21 = vld [vmem:[%s564_s1 + $0x68] sm:$0xff]  ;;  %v76_v23 = vld [vmem:[%s564_s1 + $0x70] sm:$0xff]  ;;  %v77_v24 = vld [vmem:[%s564_s1 + $0x78] sm:$0xff] }
   0x7   :  { %v397_v22 = vpack.c.bf16 %v75_v21, %v74_v20  ;;  %v401_v25 = vpack.c.bf16 %v77_v24, %v76_v23  ;;  %v51_v26 = vld [vmem:[%s565_s0 + $0x8] sm:$0xff]  ;;  %v57_v27 = vld [vmem:[%s565_s0 + $0x38] sm:$0xff]  ;;  %v52_v28 = vld [vmem:[%s565_s0 + $0x10] sm:$0xff] }
   0x8   :  { %v58_v29 = vld [vmem:[%s565_s0 + $0x40] sm:$0xff]  ;;  %v53_v30 = vld [vmem:[%s565_s0 + $0x18] sm:$0xff]  ;;  %v59_v31 = vld [vmem:[%s565_s0 + $0x48] sm:$0xff] }
   0x9   :  { %v54_v32 = vld [vmem:[%s565_s0 + $0x20] sm:$0xff]  ;;  %v60_v33 = vld [vmem:[%s565_s0 + $0x50] sm:$0xff]  ;;  %v55_v34 = vld [vmem:[%s565_s0 + $0x28] sm:$0xff] }
   0xa   :  { %v61_v35 = vld [vmem:[%s565_s0 + $0x58] sm:$0xff]  ;;  %v294_v36 = vld [vmem:[%s566_s2] ss:$0 sm:$0xff] }
   0xd   :  { %380 = vmatpush3.bf16.xpose.msra.mxu0 %v377_v5  ;;  %414 = vmatpush3.bf16.xpose.msra.mxu1 %v377_v5 }
   0xe   :  { %382 = vmatprep.subr.bf16.mxu0 %v381_v10  ;;  %407 = vmatprep.subr.bf16.mxu1 %v381_v10 }
  0x15   :  { %384 = vmatpush3.bf16.xpose.msra.mxu0 %v381_v10  ;;  %415 = vmatpush3.bf16.xpose.msra.mxu1 %v381_v10 }
  0x16   :  { %386 = vmatprep.subr.bf16.mxu0 %v385_v13  ;;  %408 = vmatprep.subr.bf16.mxu1 %v385_v13 }
  0x1d   :  { %388 = vmatpush3.bf16.xpose.msra.mxu0 %v385_v13  ;;  %416 = vmatpush3.bf16.xpose.msra.mxu1 %v385_v13 }
  0x1e   :  { %390 = vmatprep.subr.bf16.mxu0 %v389_v16  ;;  %409 = vmatprep.subr.bf16.mxu1 %v389_v16 }
  0x25   :  { %392 = vmatpush3.bf16.xpose.msra.mxu0 %v389_v16  ;;  %417 = vmatpush3.bf16.xpose.msra.mxu1 %v389_v16 }
  0x26   :  { %394 = vmatprep.subr.bf16.mxu0 %v393_v19  ;;  %410 = vmatprep.subr.bf16.mxu1 %v393_v19 }
  0x2d   :  { %396 = vmatpush3.bf16.xpose.msra.mxu0 %v393_v19  ;;  %418 = vmatpush3.bf16.xpose.msra.mxu1 %v393_v19 }
  0x2e   :  { %398 = vmatprep.subr.bf16.mxu0 %v397_v22  ;;  %411 = vmatprep.subr.bf16.mxu1 %v397_v22 }
  0x35   :  { %400 = vmatpush3.bf16.xpose.msra.mxu0 %v397_v22  ;;  %419 = vmatpush3.bf16.xpose.msra.mxu1 %v397_v22 }
  0x36   :  { %402 = vmatprep.subr.bf16.mxu0 %v401_v25  ;;  %412 = vmatprep.subr.bf16.mxu1 %v401_v25 }
  0x3d   :  { %404 = vmatpush3.bf16.xpose.msra.mxu0 %v401_v25  ;;  %420 = vmatpush3.bf16.xpose.msra.mxu1 %v401_v25 }
  0x44   :  { %356 = vmatmul.mubr.f32.vlgmr.msra.gmra.mrb[0].mxu0 %v51_v26  ;;  %365 = vmatmul.mubr.f32.vlgmr.msra.gmra.mrb[0].mxu1 %v57_v27 }
  0x45   :  { %358 = vmatprep.mubr.f32.mxu0 %v52_v28  ;;  %367 = vmatprep.mubr.f32.mxu1 %v58_v29 }
  0x48   :  { %359 = vmatmul.mubr.f32.gmra.mrb[2].mxu0 %v53_v30  ;;  %368 = vmatmul.mubr.f32.gmra.mrb[2].mxu1 %v59_v31 }
  0x49   :  { %361 = vmatprep.mubr.f32.mxu0 %v54_v32  ;;  %370 = vmatprep.mubr.f32.mxu1 %v60_v33 }
  0x4c   :  { %362 = vmatmul.mubr.f32.gmra.mrb[4].mxu0 %v55_v34  ;;  %371 = vmatmul.mubr.f32.gmra.mrb[4].mxu1 %v61_v35 }
 0x117   :  { %v357_v37 = vpop.f32.mrb[0].mxu0  ;;  %v366_v38 = vpop.f32.mrb[0].mxu1 }
 0x118   :  { %v204_v39 = vadd.f32 %v357_v37, %v294_v36  ;;  %v210_v40 = vadd.f32 %v366_v38, %v294_v36  ;;  %v144_v41 = vpop.f32.mrb[1].mxu0  ;;  %v174_v42 = vpop.f32.mrb[1].mxu1 }
 0x119   :  { %v203_v43 = vadd.f32 %v294_v36, %v144_v41  ;;  %v209_v44 = vadd.f32 %v294_v36, %v174_v42 }
 0x11a   :  { %vm243_vm0 = vcmp.gt.f32.partialorder %v204_v39, 0.0  ;;  %v255_v45 = vmul.f32 0.2, %v204_v39  ;;  %vm249_vm1 = vcmp.gt.f32.partialorder %v210_v40, 0.0  ;;  %v261_v46 = vmul.f32 0.2, %v210_v40 }
 0x11b   :  { %vm242_vm2 = vcmp.gt.f32.partialorder %v203_v43, 0.0  ;;  %v254_v47 = vmul.f32 0.2, %v203_v43  ;;  %vm248_vm3 = vcmp.gt.f32.partialorder %v209_v44, 0.0  ;;  %v260_v48 = vmul.f32 0.2, %v209_v44 }
 0x11c   :  { %v267_v49 = vsel %vm243_vm0, %v204_v39, %v255_v45  ;;  %v273_v50 = vsel %vm249_vm1, %v210_v40, %v261_v46  ;;  %v360_v51 = vpop.f32.mrb[2].mxu0  ;;  %v369_v52 = vpop.f32.mrb[2].mxu1 }
 0x11d   :  { %279 = vst [vmem:[%s567_s3 + $0x8] sm:$0xff] %v267_v49  ;;  %285 = vst [vmem:[%s567_s3 + $0x38] sm:$0xff] %v273_v50  ;;  %v266_v53 = vsel %vm242_vm2, %v203_v43, %v254_v47  ;;  %v272_v54 = vsel %vm248_vm3, %v209_v44, %v260_v48  ;;  %v206_v55 = vadd.f32 %v360_v51, %v294_v36  ;;  %v154_v57 = vpop.f32.mrb[3].mxu0  ;;  %v184_v58 = vpop.f32.mrb[3].mxu1 }
 0x11e   :  { %v212_v56 = vadd.f32 %v369_v52, %v294_v36  ;;  %278 = vst [vmem:[%s567_s3] sm:$0xff] %v266_v53  ;;  %284 = vst [vmem:[%s567_s3 + $0x30] sm:$0xff] %v272_v54  ;;  %v205_v59 = vadd.f32 %v294_v36, %v154_v57  ;;  %v211_v60 = vadd.f32 %v294_v36, %v184_v58 }
 0x11f   :  { %vm245_vm4 = vcmp.gt.f32.partialorder %v206_v55, 0.0  ;;  %v257_v61 = vmul.f32 0.2, %v206_v55  ;;  %v363_v3 = vpop.f32.mrb[4].mxu0  ;;  %v372_v4 = vpop.f32.mrb[4].mxu1 }
 0x120   :  { %vm251_vm5 = vcmp.gt.f32.partialorder %v212_v56, 0.0  ;;  %v263_v62 = vmul.f32 0.2, %v212_v56  ;;  %vm244_vm6 = vcmp.gt.f32.partialorder %v205_v59, 0.0  ;;  %v256_v63 = vmul.f32 0.2, %v205_v59 }
 0x121   :  { %vm250_vm7 = vcmp.gt.f32.partialorder %v211_v60, 0.0  ;;  %v262_v0 = vmul.f32 0.2, %v211_v60  ;;  %v269_v1 = vsel %vm245_vm4, %v206_v55, %v257_v61  ;;  %v208_v7 = vadd.f32 %v363_v3, %v294_v36  ;;  %v164_v9 = vpop.f32.mrb[5].mxu0  ;;  %v194_v10 = vpop.f32.mrb[5].mxu1 }
 0x122   :  { %v275_v2 = vsel %vm251_vm5, %v212_v56, %v263_v62  ;;  %281 = vst [vmem:[%s567_s3 + $0x18] sm:$0xff] %v269_v1  ;;  %v268_v5 = vsel %vm244_vm6, %v205_v59, %v256_v63  ;;  %v214_v8 = vadd.f32 %v372_v4, %v294_v36  ;;  %v207_v11 = vadd.f32 %v294_v36, %v164_v9 }
 0x123   :  { %287 = vst [vmem:[%s567_s3 + $0x48] sm:$0xff] %v275_v2  ;;  %v274_v6 = vsel %vm250_vm7, %v211_v60, %v262_v0  ;;  %280 = vst [vmem:[%s567_s3 + $0x10] sm:$0xff] %v268_v5  ;;  %v213_v12 = vadd.f32 %v294_v36, %v194_v10  ;;  %vm247_vm8 = vcmp.gt.f32.partialorder %v208_v7, 0.0  ;;  %v259_v13 = vmul.f32 0.2, %v208_v7 }
 0x124   :  { %286 = vst [vmem:[%s567_s3 + $0x40] sm:$0xff] %v274_v6  ;;  %vm253_vm9 = vcmp.gt.f32.partialorder %v214_v8, 0.0  ;;  %v265_v14 = vmul.f32 0.2, %v214_v8  ;;  %vm246_vm10 = vcmp.gt.f32.partialorder %v207_v11, 0.0 }
 0x125   :  { %v258_v15 = vmul.f32 0.2, %v207_v11  ;;  %vm252_vm11 = vcmp.gt.f32.partialorder %v213_v12, 0.0  ;;  %v264_v16 = vmul.f32 0.2, %v213_v12  ;;  %v271_v17 = vsel %vm247_vm8, %v208_v7, %v259_v13 }
 0x126   :  { %v277_v18 = vsel %vm253_vm9, %v214_v8, %v265_v14  ;;  %283 = vst [vmem:[%s567_s3 + $0x28] sm:$0xff] %v271_v17 }
 0x127   :  { %289 = vst [vmem:[%s567_s3 + $0x58] sm:$0xff] %v277_v18  ;;  %v270_v19 = vsel %vm246_vm10, %v207_v11, %v258_v15  ;;  %v276_v20 = vsel %vm252_vm11, %v213_v12, %v264_v16 }
 0x128   :  { %282 = vst [vmem:[%s567_s3 + $0x20] sm:$0xff] %v270_v19  ;;  %288 = vst [vmem:[%s567_s3 + $0x50] sm:$0xff] %v276_v20 }

// kernel: _lambda_.29
= control target key start
LH: loop header
LB: loop body
LE: loop exit
PB: predicated region body
PF: predicated region fallthrough
CT: control target
= control target key end

     0   :  { %s612_s1 = inlined_call_operand.vmem [shape: f32[128,256], index: 1, kind: input, shape index: {}]   ;;  %s613_s0 = inlined_call_operand.vmem [shape: f32[96,256], index: 0, kind: input, shape index: {}]   ;;  %s614_s2 = inlined_call_operand.vmem [shape: f32[1,128], index: 2, kind: input, shape index: {}]   ;;  %s615_s3 = inlined_call_operand.vmem [shape: f32[96,128], index: 3, kind: output, shape index: {}]  }
   0x1   :  { %v75_v0 = vld [vmem:[%s612_s1 + $0x8] sm:$0xff]  ;;  %v77_v1 = vld [vmem:[%s612_s1 + $0x18] sm:$0xff]  ;;  %v74_v2 = vld [vmem:[%s612_s1] sm:$0xff] }
   0x2   :  { %v323_v3 = vpack.c.bf16 %v77_v1, %v75_v0  ;;  %v76_v4 = vld [vmem:[%s612_s1 + $0x10] sm:$0xff]  ;;  %v79_v5 = vld [vmem:[%s612_s1 + $0x28] sm:$0xff]  ;;  %v81_v6 = vld [vmem:[%s612_s1 + $0x38] sm:$0xff] }
   0x3   :  { %v325_v7 = vpack.c.bf16 %v76_v4, %v74_v2  ;;  %v327_v8 = vpack.c.bf16 %v81_v6, %v79_v5  ;;  %v78_v9 = vld [vmem:[%s612_s1 + $0x20] sm:$0xff]  ;;  %v80_v10 = vld [vmem:[%s612_s1 + $0x30] sm:$0xff]  ;;  %v83_v11 = vld [vmem:[%s612_s1 + $0x48] sm:$0xff] }
   0x4   :  { %324 = vmatprep.subr.bf16.mxu0 %v323_v3  ;;  %355 = vmatprep.subr.bf16.mxu1 %v323_v3  ;;  %v85_v12 = vld [vmem:[%s612_s1 + $0x58] sm:$0xff]  ;;  %v329_v13 = vpack.c.bf16 %v80_v10, %v78_v9  ;;  %v51_v15 = vld [vmem:[%s613_s0 + $0x8] sm:$0xff]  ;;  %v82_v17 = vld [vmem:[%s612_s1 + $0x40] sm:$0xff] }
   0x5   :  { %326 = vmatpush1.bf16.xpose.msra.mxu0 %v325_v7  ;;  %363 = vmatpush1.bf16.xpose.msra.mxu1 %v325_v7  ;;  %v331_v14 = vpack.c.bf16 %v85_v12, %v83_v11  ;;  %v63_v16 = vld [vmem:[%s613_s0 + $0x68] sm:$0xff]  ;;  %v84_v18 = vld [vmem:[%s612_s1 + $0x50] sm:$0xff]  ;;  %v89_v20 = vld [vmem:[%s612_s1 + $0x78] sm:$0xff] }
   0x6   :  { %328 = vmatprep.subr.bf16.mxu0 %v327_v8  ;;  %356 = vmatprep.subr.bf16.mxu1 %v327_v8  ;;  %v87_v19 = vld [vmem:[%s612_s1 + $0x68] sm:$0xff]  ;;  %v333_v21 = vpack.c.bf16 %v84_v18, %v82_v17  ;;  %v86_v23 = vld [vmem:[%s612_s1 + $0x60] sm:$0xff]  ;;  %v88_v24 = vld [vmem:[%s612_s1 + $0x70] sm:$0xff] }
   0x7   :  { %170 = vmatprep.mubr.f32.mxu0 %v51_v15  ;;  %200 = vmatprep.mubr.f32.mxu1 %v63_v16  ;;  %v335_v22 = vpack.c.bf16 %v89_v20, %v87_v19  ;;  %v91_v25 = vld [vmem:[%s612_s1 + $0x88] sm:$0xff]  ;;  %v93_v26 = vld [vmem:[%s612_s1 + $0x98] sm:$0xff]  ;;  %v337_v27 = vpack.c.bf16 %v88_v24, %v86_v23  ;;  %v90_v29 = vld [vmem:[%s612_s1 + $0x80] sm:$0xff] }
   0x8   :  { %v339_v28 = vpack.c.bf16 %v93_v26, %v91_v25  ;;  %v92_v30 = vld [vmem:[%s612_s1 + $0x90] sm:$0xff]  ;;  %v95_v31 = vld [vmem:[%s612_s1 + $0xa8] sm:$0xff]  ;;  %v97_v32 = vld [vmem:[%s612_s1 + $0xb8] sm:$0xff] }
   0x9   :  { %v341_v33 = vpack.c.bf16 %v92_v30, %v90_v29  ;;  %v343_v34 = vpack.c.bf16 %v97_v32, %v95_v31  ;;  %v94_v35 = vld [vmem:[%s612_s1 + $0xa0] sm:$0xff]  ;;  %v96_v36 = vld [vmem:[%s612_s1 + $0xb0] sm:$0xff]  ;;  %v99_v37 = vld [vmem:[%s612_s1 + $0xc8] sm:$0xff] }
   0xa   :  { %v101_v38 = vld [vmem:[%s612_s1 + $0xd8] sm:$0xff]  ;;  %v345_v39 = vpack.c.bf16 %v96_v36, %v94_v35  ;;  %v98_v41 = vld [vmem:[%s612_s1 + $0xc0] sm:$0xff]  ;;  %v100_v42 = vld [vmem:[%s612_s1 + $0xd0] sm:$0xff] }
   0xb   :  { %v347_v40 = vpack.c.bf16 %v101_v38, %v99_v37  ;;  %v103_v43 = vld [vmem:[%s612_s1 + $0xe8] sm:$0xff]  ;;  %v105_v44 = vld [vmem:[%s612_s1 + $0xf8] sm:$0xff]  ;;  %v349_v45 = vpack.c.bf16 %v100_v42, %v98_v41  ;;  %v102_v47 = vld [vmem:[%s612_s1 + $0xe0] sm:$0xff] }
   0xc   :  { %v351_v46 = vpack.c.bf16 %v105_v44, %v103_v43  ;;  %v104_v48 = vld [vmem:[%s612_s1 + $0xf0] sm:$0xff]  ;;  %v50_v50 = vld [vmem:[%s613_s0] sm:$0xff]  ;;  %v53_v52 = vld [vmem:[%s613_s0 + $0x18] sm:$0xff] }
   0xd   :  { %330 = vmatpush1.bf16.xpose.msra.mxu0 %v329_v13  ;;  %364 = vmatpush1.bf16.xpose.msra.mxu1 %v329_v13  ;;  %v353_v49 = vpack.c.bf16 %v104_v48, %v102_v47  ;;  %v62_v51 = vld [vmem:[%s613_s0 + $0x60] sm:$0xff]  ;;  %v65_v53 = vld [vmem:[%s613_s0 + $0x78] sm:$0xff]  ;;  %v52_v54 = vld [vmem:[%s613_s0 + $0x10] sm:$0xff] }
   0xe   :  { %332 = vmatprep.subr.bf16.mxu0 %v331_v14  ;;  %357 = vmatprep.subr.bf16.mxu1 %v331_v14  ;;  %v64_v55 = vld [vmem:[%s613_s0 + $0x70] sm:$0xff]  ;;  %v55_v56 = vld [vmem:[%s613_s0 + $0x28] sm:$0xff]  ;;  %v54_v58 = vld [vmem:[%s613_s0 + $0x20] sm:$0xff] }
   0xf   :  { %v67_v57 = vld [vmem:[%s613_s0 + $0x88] sm:$0xff]  ;;  %v66_v59 = vld [vmem:[%s613_s0 + $0x80] sm:$0xff]  ;;  %v57_v60 = vld [vmem:[%s613_s0 + $0x38] sm:$0xff] }
  0x10   :  { %v69_v61 = vld [vmem:[%s613_s0 + $0x98] sm:$0xff]  ;;  %v56_v62 = vld [vmem:[%s613_s0 + $0x30] sm:$0xff]  ;;  %v59_v0 = vld [vmem:[%s613_s0 + $0x48] sm:$0xff] }
  0x11   :  { %v68_v63 = vld [vmem:[%s613_s0 + $0x90] sm:$0xff]  ;;  %v71_v1 = vld [vmem:[%s613_s0 + $0xa8] sm:$0xff]  ;;  %v58_v2 = vld [vmem:[%s613_s0 + $0x40] sm:$0xff] }
  0x12   :  { %v70_v3 = vld [vmem:[%s613_s0 + $0xa0] sm:$0xff]  ;;  %v61_v4 = vld [vmem:[%s613_s0 + $0x58] sm:$0xff]  ;;  %v60_v6 = vld [vmem:[%s613_s0 + $0x50] sm:$0xff] }
  0x13   :  { %v73_v5 = vld [vmem:[%s613_s0 + $0xb8] sm:$0xff]  ;;  %v72_v7 = vld [vmem:[%s613_s0 + $0xb0] sm:$0xff]  ;;  %v562_v8 = vld [vmem:[%s614_s2] ss:$0 sm:$0xff] }
  0x15   :  { %334 = vmatpush1.bf16.xpose.msra.mxu0 %v333_v21  ;;  %365 = vmatpush1.bf16.xpose.msra.mxu1 %v333_v21 }
  0x16   :  { %336 = vmatprep.subr.bf16.mxu0 %v335_v22  ;;  %358 = vmatprep.subr.bf16.mxu1 %v335_v22 }
  0x1d   :  { %338 = vmatpush1.bf16.xpose.msra.mxu0 %v337_v27  ;;  %366 = vmatpush1.bf16.xpose.msra.mxu1 %v337_v27 }
  0x1e   :  { %340 = vmatprep.subr.bf16.mxu0 %v339_v28  ;;  %359 = vmatprep.subr.bf16.mxu1 %v339_v28 }
  0x25   :  { %342 = vmatpush1.bf16.xpose.msra.mxu0 %v341_v33  ;;  %367 = vmatpush1.bf16.xpose.msra.mxu1 %v341_v33 }
  0x26   :  { %344 = vmatprep.subr.bf16.mxu0 %v343_v34  ;;  %360 = vmatprep.subr.bf16.mxu1 %v343_v34 }
  0x2d   :  { %346 = vmatpush1.bf16.xpose.msra.mxu0 %v345_v39  ;;  %368 = vmatpush1.bf16.xpose.msra.mxu1 %v345_v39 }
  0x2e   :  { %348 = vmatprep.subr.bf16.mxu0 %v347_v40  ;;  %361 = vmatprep.subr.bf16.mxu1 %v347_v40 }
  0x35   :  { %350 = vmatpush1.bf16.xpose.msra.mxu0 %v349_v45  ;;  %369 = vmatpush1.bf16.xpose.msra.mxu1 %v349_v45 }
  0x36   :  { %352 = vmatprep.subr.bf16.mxu0 %v351_v46  ;;  %362 = vmatprep.subr.bf16.mxu1 %v351_v46 }
  0x3d   :  { %354 = vmatpush1.bf16.xpose.msra.mxu0 %v353_v49  ;;  %370 = vmatpush1.bf16.xpose.msra.mxu1 %v353_v49 }
  0x44   :  { %171 = vmatmul.mubr.f32.vlgmr.msra.gmra.mrb[0].mxu0 %v50_v50  ;;  %201 = vmatmul.mubr.f32.vlgmr.msra.gmra.mrb[0].mxu1 %v62_v51 }
  0x45   :  { %175 = vmatprep.mubr.f32.mxu0 %v53_v52  ;;  %205 = vmatprep.mubr.f32.mxu1 %v65_v53 }
  0x48   :  { %176 = vmatmul.mubr.f32.gmra.mrb[2].mxu0 %v52_v54  ;;  %206 = vmatmul.mubr.f32.gmra.mrb[2].mxu1 %v64_v55 }
  0x49   :  { %180 = vmatprep.mubr.f32.mxu0 %v55_v56  ;;  %210 = vmatprep.mubr.f32.mxu1 %v67_v57 }
  0x4c   :  { %181 = vmatmul.mubr.f32.gmra.mrb[4].mxu0 %v54_v58  ;;  %211 = vmatmul.mubr.f32.gmra.mrb[4].mxu1 %v66_v59 }
  0x4d   :  { %185 = vmatprep.mubr.f32.mxu0 %v57_v60  ;;  %215 = vmatprep.mubr.f32.mxu1 %v69_v61 }
  0x50   :  { %186 = vmatmul.mubr.f32.gmra.mrb[6].mxu0 %v56_v62  ;;  %216 = vmatmul.mubr.f32.gmra.mrb[6].mxu1 %v68_v63 }
  0x51   :  { %190 = vmatprep.mubr.f32.mxu0 %v59_v0  ;;  %220 = vmatprep.mubr.f32.mxu1 %v71_v1 }
  0x54   :  { %191 = vmatmul.mubr.f32.gmra.mrb[8].mxu0 %v58_v2  ;;  %221 = vmatmul.mubr.f32.gmra.mrb[8].mxu1 %v70_v3 }
  0x55   :  { %195 = vmatprep.mubr.f32.mxu0 %v61_v4  ;;  %225 = vmatprep.mubr.f32.mxu1 %v73_v5 }
  0x58   :  { %196 = vmatmul.mubr.f32.gmra.mrb[10].mxu0 %v60_v6  ;;  %226 = vmatmul.mubr.f32.gmra.mrb[10].mxu1 %v72_v7 }
 0x117   :  { %v172_v9 = vpop.f32.mrb[0].mxu0  ;;  %v202_v10 = vpop.f32.mrb[0].mxu1 }
 0x118   :  { %v231_v11 = vadd.f32 %v562_v8, %v172_v9  ;;  %v237_v12 = vadd.f32 %v562_v8, %v202_v10  ;;  %v174_v13 = vpop.f32.mrb[1].mxu0  ;;  %v204_v14 = vpop.f32.mrb[1].mxu1 }
 0x11a   :  { %vm270_vm0 = vcmp.gt.f32.partialorder %v231_v11, 0.0  ;;  %v282_v15 = vmul.f32 0.2, %v231_v11  ;;  %vm276_vm1 = vcmp.gt.f32.partialorder %v237_v12, 0.0  ;;  %v288_v16 = vmul.f32 0.2, %v237_v12 }
 0x11b   :  { %v177_v17 = vpop.f32.mrb[2].mxu0  ;;  %v207_v18 = vpop.f32.mrb[2].mxu1 }
 0x11c   :  { %v294_v19 = vsel %vm270_vm0, %v231_v11, %v282_v15  ;;  %v300_v20 = vsel %vm276_vm1, %v237_v12, %v288_v16  ;;  %v232_v21 = vadd.f32 %v562_v8, %v177_v17  ;;  %v238_v22 = vadd.f32 %v562_v8, %v207_v18  ;;  %v179_v23 = vpop.f32.mrb[3].mxu0  ;;  %v209_v24 = vpop.f32.mrb[3].mxu1 }
 0x11d   :  { %306 = vst [vmem:[%s615_s3] sm:$0xff] %v294_v19  ;;  %312 = vst [vmem:[%s615_s3 + $0x30] sm:$0xff] %v300_v20 }
 0x11e   :  { %vm271_vm2 = vcmp.gt.f32.partialorder %v232_v21, 0.0  ;;  %v283_v25 = vmul.f32 0.2, %v232_v21  ;;  %vm277_vm3 = vcmp.gt.f32.partialorder %v238_v22, 0.0  ;;  %v289_v26 = vmul.f32 0.2, %v238_v22 }
 0x11f   :  { %v182_v27 = vpop.f32.mrb[4].mxu0  ;;  %v212_v28 = vpop.f32.mrb[4].mxu1 }
 0x120   :  { %v295_v29 = vsel %vm271_vm2, %v232_v21, %v283_v25  ;;  %v301_v30 = vsel %vm277_vm3, %v238_v22, %v289_v26  ;;  %v233_v31 = vadd.f32 %v562_v8, %v182_v27  ;;  %v239_v32 = vadd.f32 %v562_v8, %v212_v28  ;;  %v184_v33 = vpop.f32.mrb[5].mxu0  ;;  %v214_v34 = vpop.f32.mrb[5].mxu1 }
 0x121   :  { %307 = vst [vmem:[%s615_s3 + $0x8] sm:$0xff] %v295_v29  ;;  %313 = vst [vmem:[%s615_s3 + $0x38] sm:$0xff] %v301_v30 }
 0x122   :  { %vm272_vm4 = vcmp.gt.f32.partialorder %v233_v31, 0.0  ;;  %v284_v35 = vmul.f32 0.2, %v233_v31  ;;  %vm278_vm5 = vcmp.gt.f32.partialorder %v239_v32, 0.0  ;;  %v290_v36 = vmul.f32 0.2, %v239_v32 }
 0x123   :  { %v187_v37 = vpop.f32.mrb[6].mxu0  ;;  %v217_v38 = vpop.f32.mrb[6].mxu1 }
 0x124   :  { %v296_v39 = vsel %vm272_vm4, %v233_v31, %v284_v35  ;;  %v302_v40 = vsel %vm278_vm5, %v239_v32, %v290_v36  ;;  %v234_v41 = vadd.f32 %v562_v8, %v187_v37  ;;  %v240_v42 = vadd.f32 %v562_v8, %v217_v38  ;;  %v189_v43 = vpop.f32.mrb[7].mxu0  ;;  %v219_v44 = vpop.f32.mrb[7].mxu1 }
 0x125   :  { %308 = vst [vmem:[%s615_s3 + $0x10] sm:$0xff] %v296_v39  ;;  %314 = vst [vmem:[%s615_s3 + $0x40] sm:$0xff] %v302_v40 }
 0x126   :  { %vm273_vm6 = vcmp.gt.f32.partialorder %v234_v41, 0.0  ;;  %v285_v45 = vmul.f32 0.2, %v234_v41  ;;  %vm279_vm7 = vcmp.gt.f32.partialorder %v240_v42, 0.0  ;;  %v291_v46 = vmul.f32 0.2, %v240_v42 }
 0x127   :  { %v192_v47 = vpop.f32.mrb[8].mxu0  ;;  %v222_v48 = vpop.f32.mrb[8].mxu1 }
 0x128   :  { %v297_v49 = vsel %vm273_vm6, %v234_v41, %v285_v45  ;;  %v303_v50 = vsel %vm279_vm7, %v240_v42, %v291_v46  ;;  %v235_v51 = vadd.f32 %v562_v8, %v192_v47  ;;  %v241_v52 = vadd.f32 %v562_v8, %v222_v48  ;;  %v194_v53 = vpop.f32.mrb[9].mxu0  ;;  %v224_v54 = vpop.f32.mrb[9].mxu1 }
 0x129   :  { %309 = vst [vmem:[%s615_s3 + $0x18] sm:$0xff] %v297_v49  ;;  %315 = vst [vmem:[%s615_s3 + $0x48] sm:$0xff] %v303_v50 }
 0x12a   :  { %vm274_vm8 = vcmp.gt.f32.partialorder %v235_v51, 0.0  ;;  %v286_v55 = vmul.f32 0.2, %v235_v51  ;;  %vm280_vm9 = vcmp.gt.f32.partialorder %v241_v52, 0.0  ;;  %v292_v56 = vmul.f32 0.2, %v241_v52 }
 0x12b   :  { %v197_v57 = vpop.f32.mrb[10].mxu0  ;;  %v227_v58 = vpop.f32.mrb[10].mxu1 }
 0x12c   :  { %v298_v59 = vsel %vm274_vm8, %v235_v51, %v286_v55  ;;  %v304_v60 = vsel %vm280_vm9, %v241_v52, %v292_v56  ;;  %v236_v61 = vadd.f32 %v562_v8, %v197_v57  ;;  %v242_v62 = vadd.f32 %v562_v8, %v227_v58  ;;  %v199_v63 = vpop.f32.mrb[11].mxu0  ;;  %v229_v0 = vpop.f32.mrb[11].mxu1 }
 0x12d   :  { %310 = vst [vmem:[%s615_s3 + $0x20] sm:$0xff] %v298_v59  ;;  %316 = vst [vmem:[%s615_s3 + $0x50] sm:$0xff] %v304_v60 }
 0x12e   :  { %vm275_vm10 = vcmp.gt.f32.partialorder %v236_v61, 0.0  ;;  %v287_v1 = vmul.f32 0.2, %v236_v61  ;;  %vm281_vm11 = vcmp.gt.f32.partialorder %v242_v62, 0.0  ;;  %v293_v2 = vmul.f32 0.2, %v242_v62 }
 0x130   :  { %v299_v3 = vsel %vm275_vm10, %v236_v61, %v287_v1  ;;  %v305_v4 = vsel %vm281_vm11, %v242_v62, %v293_v2 }
 0x131   :  { %311 = vst [vmem:[%s615_s3 + $0x28] sm:$0xff] %v299_v3  ;;  %317 = vst [vmem:[%s615_s3 + $0x58] sm:$0xff] %v305_v4 }

// kernel: _lambda_.31
= control target key start
LH: loop header
LB: loop body
LE: loop exit
PB: predicated region body
PF: predicated region fallthrough
CT: control target
= control target key end

     0   :  { %s448_s1 = inlined_call_operand.vmem [shape: f32[128,256], index: 1, kind: input, shape index: {}]   ;;  %s449_s0 = inlined_call_operand.vmem [shape: f32[48,256], index: 0, kind: input, shape index: {}]   ;;  %s450_s2 = inlined_call_operand.vmem [shape: f32[1,128], index: 2, kind: input, shape index: {}]   ;;  %s451_s3 = inlined_call_operand.vmem [shape: f32[48,128], index: 3, kind: output, shape index: {}]  }
   0x1   :  { %v51_v0 = vld [vmem:[%s448_s1 + $0x8] sm:$0xff]  ;;  %v53_v1 = vld [vmem:[%s448_s1 + $0x18] sm:$0xff]  ;;  %v50_v2 = vld [vmem:[%s448_s1] sm:$0xff] }
   0x2   :  { %v227_v3 = vpack.c.bf16 %v53_v1, %v51_v0  ;;  %v52_v4 = vld [vmem:[%s448_s1 + $0x10] sm:$0xff]  ;;  %v55_v5 = vld [vmem:[%s448_s1 + $0x28] sm:$0xff]  ;;  %v57_v6 = vld [vmem:[%s448_s1 + $0x38] sm:$0xff] }
   0x3   :  { %v229_v7 = vpack.c.bf16 %v52_v4, %v50_v2  ;;  %v231_v8 = vpack.c.bf16 %v57_v6, %v55_v5  ;;  %v54_v9 = vld [vmem:[%s448_s1 + $0x20] sm:$0xff]  ;;  %v56_v10 = vld [vmem:[%s448_s1 + $0x30] sm:$0xff]  ;;  %v59_v11 = vld [vmem:[%s448_s1 + $0x48] sm:$0xff] }
   0x4   :  { %228 = vmatprep.subr.bf16.mxu0 %v227_v3  ;;  %259 = vmatprep.subr.bf16.mxu1 %v227_v3  ;;  %v61_v12 = vld [vmem:[%s448_s1 + $0x58] sm:$0xff]  ;;  %v233_v13 = vpack.c.bf16 %v56_v10, %v54_v9  ;;  %v39_v15 = vld [vmem:[%s449_s0 + $0x8] sm:$0xff]  ;;  %v58_v17 = vld [vmem:[%s448_s1 + $0x40] sm:$0xff] }
   0x5   :  { %230 = vmatpush1.bf16.xpose.msra.mxu0 %v229_v7  ;;  %267 = vmatpush1.bf16.xpose.msra.mxu1 %v229_v7  ;;  %v235_v14 = vpack.c.bf16 %v61_v12, %v59_v11  ;;  %v45_v16 = vld [vmem:[%s449_s0 + $0x38] sm:$0xff]  ;;  %v60_v18 = vld [vmem:[%s448_s1 + $0x50] sm:$0xff]  ;;  %v63_v19 = vld [vmem:[%s448_s1 + $0x68] sm:$0xff] }
   0x6   :  { %232 = vmatprep.subr.bf16.mxu0 %v231_v8  ;;  %260 = vmatprep.subr.bf16.mxu1 %v231_v8  ;;  %v65_v20 = vld [vmem:[%s448_s1 + $0x78] sm:$0xff]  ;;  %v237_v21 = vpack.c.bf16 %v60_v18, %v58_v17  ;;  %v62_v23 = vld [vmem:[%s448_s1 + $0x60] sm:$0xff]  ;;  %v64_v24 = vld [vmem:[%s448_s1 + $0x70] sm:$0xff] }
   0x7   :  { %146 = vmatprep.mubr.f32.mxu0 %v39_v15  ;;  %161 = vmatprep.mubr.f32.mxu1 %v45_v16  ;;  %v239_v22 = vpack.c.bf16 %v65_v20, %v63_v19  ;;  %v67_v25 = vld [vmem:[%s448_s1 + $0x88] sm:$0xff]  ;;  %v69_v26 = vld [vmem:[%s448_s1 + $0x98] sm:$0xff]  ;;  %v241_v27 = vpack.c.bf16 %v64_v24, %v62_v23  ;;  %v66_v29 = vld [vmem:[%s448_s1 + $0x80] sm:$0xff] }
   0x8   :  { %v243_v28 = vpack.c.bf16 %v69_v26, %v67_v25  ;;  %v68_v30 = vld [vmem:[%s448_s1 + $0x90] sm:$0xff]  ;;  %v71_v31 = vld [vmem:[%s448_s1 + $0xa8] sm:$0xff]  ;;  %v73_v32 = vld [vmem:[%s448_s1 + $0xb8] sm:$0xff] }
   0x9   :  { %v245_v33 = vpack.c.bf16 %v68_v30, %v66_v29  ;;  %v247_v34 = vpack.c.bf16 %v73_v32, %v71_v31  ;;  %v70_v35 = vld [vmem:[%s448_s1 + $0xa0] sm:$0xff]  ;;  %v72_v36 = vld [vmem:[%s448_s1 + $0xb0] sm:$0xff]  ;;  %v75_v37 = vld [vmem:[%s448_s1 + $0xc8] sm:$0xff] }
   0xa   :  { %v77_v38 = vld [vmem:[%s448_s1 + $0xd8] sm:$0xff]  ;;  %v249_v39 = vpack.c.bf16 %v72_v36, %v70_v35  ;;  %v74_v41 = vld [vmem:[%s448_s1 + $0xc0] sm:$0xff]  ;;  %v76_v42 = vld [vmem:[%s448_s1 + $0xd0] sm:$0xff] }
   0xb   :  { %v251_v40 = vpack.c.bf16 %v77_v38, %v75_v37  ;;  %v79_v43 = vld [vmem:[%s448_s1 + $0xe8] sm:$0xff]  ;;  %v81_v44 = vld [vmem:[%s448_s1 + $0xf8] sm:$0xff]  ;;  %v253_v45 = vpack.c.bf16 %v76_v42, %v74_v41  ;;  %v78_v47 = vld [vmem:[%s448_s1 + $0xe0] sm:$0xff] }
   0xc   :  { %v255_v46 = vpack.c.bf16 %v81_v44, %v79_v43  ;;  %v80_v48 = vld [vmem:[%s448_s1 + $0xf0] sm:$0xff]  ;;  %v38_v50 = vld [vmem:[%s449_s0] sm:$0xff]  ;;  %v41_v52 = vld [vmem:[%s449_s0 + $0x18] sm:$0xff] }
   0xd   :  { %234 = vmatpush1.bf16.xpose.msra.mxu0 %v233_v13  ;;  %268 = vmatpush1.bf16.xpose.msra.mxu1 %v233_v13  ;;  %v257_v49 = vpack.c.bf16 %v80_v48, %v78_v47  ;;  %v44_v51 = vld [vmem:[%s449_s0 + $0x30] sm:$0xff]  ;;  %v47_v53 = vld [vmem:[%s449_s0 + $0x48] sm:$0xff]  ;;  %v46_v55 = vld [vmem:[%s449_s0 + $0x40] sm:$0xff] }
   0xe   :  { %236 = vmatprep.subr.bf16.mxu0 %v235_v14  ;;  %261 = vmatprep.subr.bf16.mxu1 %v235_v14  ;;  %v40_v54 = vld [vmem:[%s449_s0 + $0x10] sm:$0xff]  ;;  %v43_v56 = vld [vmem:[%s449_s0 + $0x28] sm:$0xff]  ;;  %v49_v57 = vld [vmem:[%s449_s0 + $0x58] sm:$0xff] }
   0xf   :  { %v42_v58 = vld [vmem:[%s449_s0 + $0x20] sm:$0xff]  ;;  %v48_v59 = vld [vmem:[%s449_s0 + $0x50] sm:$0xff] }
  0x10   :  { %v226_v60 = vld [vmem:[%s450_s2] ss:$0 sm:$0xff] }
  0x15   :  { %238 = vmatpush1.bf16.xpose.msra.mxu0 %v237_v21  ;;  %269 = vmatpush1.bf16.xpose.msra.mxu1 %v237_v21 }
  0x16   :  { %240 = vmatprep.subr.bf16.mxu0 %v239_v22  ;;  %262 = vmatprep.subr.bf16.mxu1 %v239_v22 }
  0x1d   :  { %242 = vmatpush1.bf16.xpose.msra.mxu0 %v241_v27  ;;  %270 = vmatpush1.bf16.xpose.msra.mxu1 %v241_v27 }
  0x1e   :  { %244 = vmatprep.subr.bf16.mxu0 %v243_v28  ;;  %263 = vmatprep.subr.bf16.mxu1 %v243_v28 }
  0x25   :  { %246 = vmatpush1.bf16.xpose.msra.mxu0 %v245_v33  ;;  %271 = vmatpush1.bf16.xpose.msra.mxu1 %v245_v33 }
  0x26   :  { %248 = vmatprep.subr.bf16.mxu0 %v247_v34  ;;  %264 = vmatprep.subr.bf16.mxu1 %v247_v34 }
  0x2d   :  { %250 = vmatpush1.bf16.xpose.msra.mxu0 %v249_v39  ;;  %272 = vmatpush1.bf16.xpose.msra.mxu1 %v249_v39 }
  0x2e   :  { %252 = vmatprep.subr.bf16.mxu0 %v251_v40  ;;  %265 = vmatprep.subr.bf16.mxu1 %v251_v40 }
  0x35   :  { %254 = vmatpush1.bf16.xpose.msra.mxu0 %v253_v45  ;;  %273 = vmatpush1.bf16.xpose.msra.mxu1 %v253_v45 }
  0x36   :  { %256 = vmatprep.subr.bf16.mxu0 %v255_v46  ;;  %266 = vmatprep.subr.bf16.mxu1 %v255_v46 }
  0x3d   :  { %258 = vmatpush1.bf16.xpose.msra.mxu0 %v257_v49  ;;  %274 = vmatpush1.bf16.xpose.msra.mxu1 %v257_v49 }
  0x44   :  { %147 = vmatmul.mubr.f32.vlgmr.msra.gmra.mrb[0].mxu0 %v38_v50  ;;  %162 = vmatmul.mubr.f32.vlgmr.msra.gmra.mrb[0].mxu1 %v44_v51 }
  0x45   :  { %151 = vmatprep.mubr.f32.mxu0 %v41_v52  ;;  %166 = vmatprep.mubr.f32.mxu1 %v47_v53 }
  0x48   :  { %152 = vmatmul.mubr.f32.gmra.mrb[2].mxu0 %v40_v54  ;;  %167 = vmatmul.mubr.f32.gmra.mrb[2].mxu1 %v46_v55 }
  0x49   :  { %156 = vmatprep.mubr.f32.mxu0 %v43_v56  ;;  %171 = vmatprep.mubr.f32.mxu1 %v49_v57 }
  0x4c   :  { %157 = vmatmul.mubr.f32.gmra.mrb[4].mxu0 %v42_v58  ;;  %172 = vmatmul.mubr.f32.gmra.mrb[4].mxu1 %v48_v59 }
 0x117   :  { %v148_v61 = vpop.f32.mrb[0].mxu0  ;;  %v163_v62 = vpop.f32.mrb[0].mxu1 }
 0x118   :  { %v177_v63 = vadd.f32 %v226_v60, %v148_v61  ;;  %v180_v0 = vadd.f32 %v226_v60, %v163_v62  ;;  %v150_v1 = vpop.f32.mrb[1].mxu0  ;;  %v165_v2 = vpop.f32.mrb[1].mxu1 }
 0x11a   :  { %vm198_vm0 = vcmp.gt.f32.partialorder %v177_v63, 0.0  ;;  %v204_v3 = vmul.f32 0.2, %v177_v63  ;;  %vm201_vm1 = vcmp.gt.f32.partialorder %v180_v0, 0.0  ;;  %v207_v4 = vmul.f32 0.2, %v180_v0 }
 0x11b   :  { %v153_v5 = vpop.f32.mrb[2].mxu0  ;;  %v168_v6 = vpop.f32.mrb[2].mxu1 }
 0x11c   :  { %v210_v7 = vsel %vm198_vm0, %v177_v63, %v204_v3  ;;  %v213_v8 = vsel %vm201_vm1, %v180_v0, %v207_v4  ;;  %v178_v9 = vadd.f32 %v226_v60, %v153_v5  ;;  %v181_v10 = vadd.f32 %v226_v60, %v168_v6  ;;  %v155_v11 = vpop.f32.mrb[3].mxu0  ;;  %v170_v12 = vpop.f32.mrb[3].mxu1 }
 0x11d   :  { %216 = vst [vmem:[%s451_s3] sm:$0xff] %v210_v7  ;;  %219 = vst [vmem:[%s451_s3 + $0x18] sm:$0xff] %v213_v8 }
 0x11e   :  { %vm199_vm2 = vcmp.gt.f32.partialorder %v178_v9, 0.0  ;;  %v205_v13 = vmul.f32 0.2, %v178_v9  ;;  %vm202_vm3 = vcmp.gt.f32.partialorder %v181_v10, 0.0  ;;  %v208_v14 = vmul.f32 0.2, %v181_v10 }
 0x11f   :  { %v158_v15 = vpop.f32.mrb[4].mxu0  ;;  %v173_v16 = vpop.f32.mrb[4].mxu1 }
 0x120   :  { %v211_v17 = vsel %vm199_vm2, %v178_v9, %v205_v13  ;;  %v214_v18 = vsel %vm202_vm3, %v181_v10, %v208_v14  ;;  %v179_v19 = vadd.f32 %v226_v60, %v158_v15  ;;  %v182_v20 = vadd.f32 %v226_v60, %v173_v16  ;;  %v160_v21 = vpop.f32.mrb[5].mxu0  ;;  %v175_v22 = vpop.f32.mrb[5].mxu1 }
 0x121   :  { %217 = vst [vmem:[%s451_s3 + $0x8] sm:$0xff] %v211_v17  ;;  %220 = vst [vmem:[%s451_s3 + $0x20] sm:$0xff] %v214_v18 }
 0x122   :  { %vm200_vm4 = vcmp.gt.f32.partialorder %v179_v19, 0.0  ;;  %v206_v23 = vmul.f32 0.2, %v179_v19  ;;  %vm203_vm5 = vcmp.gt.f32.partialorder %v182_v20, 0.0  ;;  %v209_v24 = vmul.f32 0.2, %v182_v20 }
 0x124   :  { %v212_v25 = vsel %vm200_vm4, %v179_v19, %v206_v23  ;;  %v215_v26 = vsel %vm203_vm5, %v182_v20, %v209_v24 }
 0x125   :  { %218 = vst [vmem:[%s451_s3 + $0x10] sm:$0xff] %v212_v25  ;;  %221 = vst [vmem:[%s451_s3 + $0x28] sm:$0xff] %v215_v26 }

// kernel: _lambda_.30
= control target key start
LH: loop header
LB: loop body
LE: loop exit
PB: predicated region body
PF: predicated region fallthrough
CT: control target
= control target key end

     0   :  { %s405_s1 = inlined_call_operand.vmem [shape: f32[128,128], index: 1, kind: input, shape index: {}]   ;;  %s406_s0 = inlined_call_operand.vmem [shape: f32[48,128], index: 0, kind: input, shape index: {}]   ;;  %s407_s2 = inlined_call_operand.vmem [shape: f32[1,128], index: 2, kind: input, shape index: {}]   ;;  %s408_s3 = inlined_call_operand.vmem [shape: f32[48,128], index: 3, kind: output, shape index: {}]  }
   0x1   :  { %v44_v0 = vld [vmem:[%s405_s1] sm:$0xff]  ;;  %v45_v1 = vld [vmem:[%s405_s1 + $0x8] sm:$0xff]  ;;  %v46_v2 = vld [vmem:[%s405_s1 + $0x10] sm:$0xff] }
   0x2   :  { %v250_v3 = vpack.c.bf16 %v45_v1, %v44_v0  ;;  %v47_v4 = vld [vmem:[%s405_s1 + $0x18] sm:$0xff]  ;;  %v40_v6 = vld [vmem:[%s406_s0 + $0x10] sm:$0xff]  ;;  %v48_v7 = vld [vmem:[%s405_s1 + $0x20] sm:$0xff] }
   0x3   :  { %v254_v5 = vpack.c.bf16 %v47_v4, %v46_v2  ;;  %v49_v8 = vld [vmem:[%s405_s1 + $0x28] sm:$0xff]  ;;  %244 = vmatprep.mubr.f32.mxu1 %v40_v6  ;;  %v38_v9 = vld [vmem:[%s406_s0] sm:$0xff]  ;;  %v50_v11 = vld [vmem:[%s405_s1 + $0x30] sm:$0xff] }
   0x4   :  { %282 = vmatprep.subr.bf16.mxu1 %v250_v3  ;;  %251 = vmatprep.subr.bf16.mxu0 %v250_v3  ;;  %v258_v10 = vpack.c.bf16 %v49_v8, %v48_v7  ;;  %v51_v12 = vld [vmem:[%s405_s1 + $0x38] sm:$0xff]  ;;  %v52_v14 = vld [vmem:[%s405_s1 + $0x40] sm:$0xff]  ;;  %v53_v15 = vld [vmem:[%s405_s1 + $0x48] sm:$0xff] }
   0x5   :  { %290 = vmatpush3.bf16.xpose.msra.mxu1 %v250_v3  ;;  %253 = vmatpush3.bf16.xpose.msra.mxu0 %v250_v3  ;;  %v262_v13 = vpack.c.bf16 %v51_v12, %v50_v11  ;;  %v266_v16 = vpack.c.bf16 %v53_v15, %v52_v14  ;;  %v54_v17 = vld [vmem:[%s405_s1 + $0x50] sm:$0xff]  ;;  %v55_v18 = vld [vmem:[%s405_s1 + $0x58] sm:$0xff]  ;;  %v56_v20 = vld [vmem:[%s405_s1 + $0x60] sm:$0xff] }
   0x6   :  { %283 = vmatprep.subr.bf16.mxu1 %v254_v5  ;;  %255 = vmatprep.subr.bf16.mxu0 %v254_v5  ;;  %v270_v19 = vpack.c.bf16 %v55_v18, %v54_v17  ;;  %v57_v21 = vld [vmem:[%s405_s1 + $0x68] sm:$0xff]  ;;  %v58_v23 = vld [vmem:[%s405_s1 + $0x70] sm:$0xff]  ;;  %v59_v24 = vld [vmem:[%s405_s1 + $0x78] sm:$0xff] }
   0x7   :  { %241 = vmatprep.mubr.f32.mxu0 %v38_v9  ;;  %v274_v22 = vpack.c.bf16 %v57_v21, %v56_v20  ;;  %v278_v25 = vpack.c.bf16 %v59_v24, %v58_v23  ;;  %v41_v26 = vld [vmem:[%s406_s0 + $0x18] sm:$0xff]  ;;  %v39_v27 = vld [vmem:[%s406_s0 + $0x8] sm:$0xff]  ;;  %v42_v28 = vld [vmem:[%s406_s0 + $0x20] sm:$0xff] }
   0x8   :  { %v43_v29 = vld [vmem:[%s406_s0 + $0x28] sm:$0xff]  ;;  %v186_v30 = vld [vmem:[%s407_s2] ss:$0 sm:$0xff] }
   0xd   :  { %291 = vmatpush3.bf16.xpose.msra.mxu1 %v254_v5  ;;  %257 = vmatpush3.bf16.xpose.msra.mxu0 %v254_v5 }
   0xe   :  { %284 = vmatprep.subr.bf16.mxu1 %v258_v10  ;;  %259 = vmatprep.subr.bf16.mxu0 %v258_v10 }
  0x15   :  { %292 = vmatpush3.bf16.xpose.msra.mxu1 %v258_v10  ;;  %261 = vmatpush3.bf16.xpose.msra.mxu0 %v258_v10 }
  0x16   :  { %285 = vmatprep.subr.bf16.mxu1 %v262_v13  ;;  %263 = vmatprep.subr.bf16.mxu0 %v262_v13 }
  0x1d   :  { %293 = vmatpush3.bf16.xpose.msra.mxu1 %v262_v13  ;;  %265 = vmatpush3.bf16.xpose.msra.mxu0 %v262_v13 }
  0x1e   :  { %286 = vmatprep.subr.bf16.mxu1 %v266_v16  ;;  %267 = vmatprep.subr.bf16.mxu0 %v266_v16 }
  0x25   :  { %294 = vmatpush3.bf16.xpose.msra.mxu1 %v266_v16  ;;  %269 = vmatpush3.bf16.xpose.msra.mxu0 %v266_v16 }
  0x26   :  { %287 = vmatprep.subr.bf16.mxu1 %v270_v19  ;;  %271 = vmatprep.subr.bf16.mxu0 %v270_v19 }
  0x2d   :  { %295 = vmatpush3.bf16.xpose.msra.mxu1 %v270_v19  ;;  %273 = vmatpush3.bf16.xpose.msra.mxu0 %v270_v19 }
  0x2e   :  { %288 = vmatprep.subr.bf16.mxu1 %v274_v22  ;;  %275 = vmatprep.subr.bf16.mxu0 %v274_v22 }
  0x35   :  { %296 = vmatpush3.bf16.xpose.msra.mxu1 %v274_v22  ;;  %277 = vmatpush3.bf16.xpose.msra.mxu0 %v274_v22 }
  0x36   :  { %289 = vmatprep.subr.bf16.mxu1 %v278_v25  ;;  %279 = vmatprep.subr.bf16.mxu0 %v278_v25 }
  0x3d   :  { %297 = vmatpush3.bf16.xpose.msra.mxu1 %v278_v25  ;;  %281 = vmatpush3.bf16.xpose.msra.mxu0 %v278_v25 }
  0x44   :  { %245 = vmatmul.mubr.f32.vlgmr.msra.gmra.mrb[0].mxu1 %v41_v26  ;;  %242 = vmatmul.mubr.f32.vlgmr.msra.gmra.mrb[0].mxu0 %v39_v27 }
  0x45   :  { %247 = vmatprep.mubr.f32.mxu1 %v42_v28 }
  0x48   :  { %248 = vmatmul.mubr.f32.gmra.mrb[2].mxu1 %v43_v29 }
 0x117   :  { %v246_v31 = vpop.f32.mrb[0].mxu1  ;;  %v243_v32 = vpop.f32.mrb[0].mxu0 }
 0x118   :  { %v158_v33 = vadd.f32 %v246_v31, %v186_v30  ;;  %v136_v34 = vpop.f32.mrb[1].mxu1  ;;  %v156_v35 = vadd.f32 %v243_v32, %v186_v30  ;;  %v126_v36 = vpop.f32.mrb[1].mxu0 }
 0x119   :  { %v157_v37 = vadd.f32 %v186_v30, %v136_v34  ;;  %v155_v38 = vadd.f32 %v186_v30, %v126_v36 }
 0x11a   :  { %179 = vst [vmem:[%s408_s3 + $0x18] sm:$0xff] %v158_v33  ;;  %177 = vst [vmem:[%s408_s3 + $0x8] sm:$0xff] %v156_v35 }
 0x11b   :  { %178 = vst [vmem:[%s408_s3 + $0x10] sm:$0xff] %v157_v37  ;;  %176 = vst [vmem:[%s408_s3] sm:$0xff] %v155_v38  ;;  %v249_v39 = vpop.f32.mrb[2].mxu1 }
 0x11c   :  { %v160_v40 = vadd.f32 %v249_v39, %v186_v30  ;;  %v146_v41 = vpop.f32.mrb[3].mxu1 }
 0x11d   :  { %v159_v42 = vadd.f32 %v186_v30, %v146_v41 }
 0x11e   :  { %181 = vst [vmem:[%s408_s3 + $0x28] sm:$0xff] %v160_v40 }
 0x11f   :  { %180 = vst [vmem:[%s408_s3 + $0x20] sm:$0xff] %v159_v42 }

// kernel: _lambda_.34
= control target key start
LH: loop header
LB: loop body
LE: loop exit
PB: predicated region body
PF: predicated region fallthrough
CT: control target
= control target key end

     0   :  { %s867_s12 = smov 0   ;;  %s869_s13 = smov 0   ;;  %s1080_s0 = inlined_call_operand.vmem [shape: f32[48,512], index: 0, kind: input, shape index: {}]   ;;  %s1081_s1 = inlined_call_operand.vmem [shape: f32[128,512], index: 1, kind: input, shape index: {}]   ;;  %s1082_s2 = inlined_call_operand.vmem [shape: f32[1,128], index: 2, kind: input, shape index: {}]   ;;  %s1083_s3 = inlined_call_operand.vmem [shape: f32[48,128], index: 3, kind: output, shape index: {}]  }
   0x1   :  { %s871_s14 = smov 0   ;;  %s873_s15 = smov 0  }
   0x2   :  { %s875_s16 = smov 0  }
   0x3 LB: > { %s25_s17 = sadd.s32 1, %s841_s15  ;;  %p48_p1 = scmp.ne.s32.totalorder %s833_s13, %s829_s12  ;;  %s845_s16 = sphi %s875_s16, %s13_s16   ;;  %s841_s15 = sphi %s873_s15, %s1088_s15   ;;  %s837_s14 = sphi %s871_s14, %s1087_s14   ;;  %s833_s13 = sphi %s869_s13, %s1086_s13   ;;  %s829_s12 = sphi %s867_s12, %s1085_s12  }
   0x4   : > { %p26_p0 = scmp.ge.s32.totalorder %s25_s17, 2  ;;  %p49_p2 = scmp.eq.s32.totalorder %s845_s16, 0 }
   0x5   : > { %s41_s20 = sadd.s32 1, %s833_s13  ;;  %p700_p5 = scmp.ge.s32.totalorder %s845_s16, 2 }
   0x6   : > { %s1090_s17 = smov (%p26_p0, %s25_s17), 0  ;;  %p898_p3 = por %p49_p2, %p48_p1 }
   0x7   : > { %s37_s19 = ssub.s32 %s841_s15, %s1090_s17  ;;  %162 = sbr.rel (%p700_p5) target bundleno = 44 (0x2c), region = 20 }
   0x8   : > { %p39_p4 = scmp.eq.s32.totalorder %s37_s19, 0 }
   0xa   : > { %s906_s21 = scalar_select %p39_p4, %s833_s13, %s41_s20  }
   0xe   : > { %165 = sbr.rel (!%p898_p3) target bundleno = 24 (0x18), region = 24  ;;  %s167_s22 = sand.u32 (%p898_p3), 1, %s833_s13  }
   0xf   : > { %s715_s23 = sshll.u32 (%p898_p3), %s841_s15, 4  ;;  %s765_s24 = smul.u32 (%p898_p3), 96, %s167_s22 }
  0x10   : > { %s175_s27 = scalar_lea.vmem (%p898_p3), %s1080_s0, %s715_s23 }
  0x11   : > { %v188_v0 = vld [vmem:[%s175_s27] sm:$0xff] (%p898_p3)  ;;  %v190_v1 = vld [vmem:[%s175_s27 + $0x8] sm:$0xff] (%p898_p3)  ;;  %s169_s28 = scalar_lea.vmem (%p898_p3), [#allocation3], %s765_s24 }
  0x12   : > { %v192_v2 = vld [vmem:[%s175_s27 + $0x20] sm:$0xff] (%p898_p3)  ;;  %v194_v3 = vld [vmem:[%s175_s27 + $0x28] sm:$0xff] (%p898_p3)  ;;  %189 = vst [vmem:[%s169_s28] sm:$0xff] (%p898_p3), %v188_v0  ;;  %191 = vst [vmem:[%s169_s28 + $0x8] sm:$0xff] (%p898_p3), %v190_v1 }
  0x13   : > { %v196_v4 = vld [vmem:[%s175_s27 + $0x40] sm:$0xff] (%p898_p3)  ;;  %v198_v5 = vld [vmem:[%s175_s27 + $0x48] sm:$0xff] (%p898_p3)  ;;  %193 = vst [vmem:[%s169_s28 + $0x10] sm:$0xff] (%p898_p3), %v192_v2  ;;  %195 = vst [vmem:[%s169_s28 + $0x18] sm:$0xff] (%p898_p3), %v194_v3 }
  0x14   : > { %197 = vst [vmem:[%s169_s28 + $0x20] sm:$0xff] (%p898_p3), %v196_v4  ;;  %199 = vst [vmem:[%s169_s28 + $0x28] sm:$0xff] (%p898_p3), %v198_v5  ;;  %v200_v6 = vld [vmem:[%s175_s27 + $0x60] sm:$0xff] (%p898_p3)  ;;  %v202_v7 = vld [vmem:[%s175_s27 + $0x68] sm:$0xff] (%p898_p3) }
  0x15   : > { %v204_v8 = vld [vmem:[%s175_s27 + $0x80] sm:$0xff]  ;;  %201 = vst [vmem:[%s169_s28 + $0x30] sm:$0xff] %v200_v6  ;;  %203 = vst [vmem:[%s169_s28 + $0x38] sm:$0xff] %v202_v7  ;;  %v206_v9 = vld [vmem:[%s175_s27 + $0x88] sm:$0xff] }
  0x16   : > { %205 = vst [vmem:[%s169_s28 + $0x40] sm:$0xff] %v204_v8  ;;  %v208_v10 = vld [vmem:[%s175_s27 + $0xa0] sm:$0xff]  ;;  %v210_v11 = vld [vmem:[%s175_s27 + $0xa8] sm:$0xff]  ;;  %207 = vst [vmem:[%s169_s28 + $0x48] sm:$0xff] %v206_v9 }
  0x17   : > { %209 = vst [vmem:[%s169_s28 + $0x50] sm:$0xff] %v208_v10  ;;  %211 = vst [vmem:[%s169_s28 + $0x58] sm:$0xff] %v210_v11 }
  0x18 PF: > { %217 = sbr.rel (!%p898_p3) target bundleno = 44 (0x2c), region = 47  ;;  %s219_s29 = sand.u32 (%p898_p3), 1, %s833_s13  }
  0x19   : > { %s716_s30 = sshll.u32 (%p898_p3), %s841_s15, 4  ;;  %s703_s4 = sshll.u32 (%p898_p3), %s219_s29, 8 }
  0x1a   : > { %s923_s7 = scalar_lea.vmem (%p898_p3), %s1081_s1, %s716_s30  ;;  %s928_s8 = scalar_lea.vmem (%p898_p3), [#allocation4], %s703_s4 }
  0x1b   : > { %v240_v12 = vld [vmem:[%s923_s7] sm:$0xff] (%p898_p3)  ;;  %v242_v13 = vld [vmem:[%s923_s7 + $0x8] sm:$0xff] (%p898_p3) }
  0x1c   : > { %v244_v14 = vld [vmem:[%s923_s7 + $0x20] sm:$0xff] (%p898_p3)  ;;  %241 = vst [vmem:[%s928_s8] sm:$0xff] (%p898_p3), %v240_v12  ;;  %243 = vst [vmem:[%s928_s8 + $0x8] sm:$0xff] (%p898_p3), %v242_v13  ;;  %v246_v15 = vld [vmem:[%s923_s7 + $0x28] sm:$0xff] (%p898_p3) }
  0x1d   : > { %245 = vst [vmem:[%s928_s8 + $0x10] sm:$0xff] (%p898_p3), %v244_v14  ;;  %v248_v16 = vld [vmem:[%s923_s7 + $0x40] sm:$0xff] (%p898_p3)  ;;  %v250_v17 = vld [vmem:[%s923_s7 + $0x48] sm:$0xff] (%p898_p3)  ;;  %247 = vst [vmem:[%s928_s8 + $0x18] sm:$0xff] (%p898_p3), %v246_v15 }
  0x1e   : > { %249 = vst [vmem:[%s928_s8 + $0x20] sm:$0xff] (%p898_p3), %v248_v16  ;;  %251 = vst [vmem:[%s928_s8 + $0x28] sm:$0xff] (%p898_p3), %v250_v17  ;;  %v252_v18 = vld [vmem:[%s923_s7 + $0x60] sm:$0xff] (%p898_p3)  ;;  %v254_v19 = vld [vmem:[%s923_s7 + $0x68] sm:$0xff] (%p898_p3) }
  0x1f   : > { %v256_v20 = vld [vmem:[%s923_s7 + $0x80] sm:$0xff]  ;;  %253 = vst [vmem:[%s928_s8 + $0x30] sm:$0xff] %v252_v18  ;;  %255 = vst [vmem:[%s928_s8 + $0x38] sm:$0xff] %v254_v19  ;;  %v258_v21 = vld [vmem:[%s923_s7 + $0x88] sm:$0xff] }
  0x20   : > { %257 = vst [vmem:[%s928_s8 + $0x40] sm:$0xff] %v256_v20  ;;  %v260_v22 = vld [vmem:[%s923_s7 + $0xa0] sm:$0xff]  ;;  %v262_v23 = vld [vmem:[%s923_s7 + $0xa8] sm:$0xff]  ;;  %259 = vst [vmem:[%s928_s8 + $0x48] sm:$0xff] %v258_v21 }
  0x21   : > { %261 = vst [vmem:[%s928_s8 + $0x50] sm:$0xff] %v260_v22  ;;  %263 = vst [vmem:[%s928_s8 + $0x58] sm:$0xff] %v262_v23  ;;  %v264_v24 = vld [vmem:[%s923_s7 + $0xc0] sm:$0xff]  ;;  %v266_v25 = vld [vmem:[%s923_s7 + $0xc8] sm:$0xff] }
  0x22   : > { %v268_v26 = vld [vmem:[%s923_s7 + $0xe0] sm:$0xff]  ;;  %265 = vst [vmem:[%s928_s8 + $0x60] sm:$0xff] %v264_v24  ;;  %267 = vst [vmem:[%s928_s8 + $0x68] sm:$0xff] %v266_v25  ;;  %v270_v27 = vld [vmem:[%s923_s7 + $0xe8] sm:$0xff] }
  0x23   : > { %269 = vst [vmem:[%s928_s8 + $0x70] sm:$0xff] %v268_v26  ;;  %v272_v28 = vld [vmem:[%s923_s7 + $0x100] sm:$0xff]  ;;  %v274_v29 = vld [vmem:[%s923_s7 + $0x108] sm:$0xff]  ;;  %271 = vst [vmem:[%s928_s8 + $0x78] sm:$0xff] %v270_v27 }
  0x24   : > { %273 = vst [vmem:[%s928_s8 + $0x80] sm:$0xff] %v272_v28  ;;  %275 = vst [vmem:[%s928_s8 + $0x88] sm:$0xff] %v274_v29  ;;  %v276_v30 = vld [vmem:[%s923_s7 + $0x120] sm:$0xff]  ;;  %v278_v31 = vld [vmem:[%s923_s7 + $0x128] sm:$0xff] }
  0x25   : > { %v280_v32 = vld [vmem:[%s923_s7 + $0x140] sm:$0xff]  ;;  %277 = vst [vmem:[%s928_s8 + $0x90] sm:$0xff] %v276_v30  ;;  %279 = vst [vmem:[%s928_s8 + $0x98] sm:$0xff] %v278_v31  ;;  %v282_v33 = vld [vmem:[%s923_s7 + $0x148] sm:$0xff] }
  0x26   : > { %281 = vst [vmem:[%s928_s8 + $0xa0] sm:$0xff] %v280_v32  ;;  %v284_v34 = vld [vmem:[%s923_s7 + $0x160] sm:$0xff]  ;;  %v286_v35 = vld [vmem:[%s923_s7 + $0x168] sm:$0xff]  ;;  %283 = vst [vmem:[%s928_s8 + $0xa8] sm:$0xff] %v282_v33 }
  0x27   : > { %285 = vst [vmem:[%s928_s8 + $0xb0] sm:$0xff] %v284_v34  ;;  %287 = vst [vmem:[%s928_s8 + $0xb8] sm:$0xff] %v286_v35  ;;  %v288_v36 = vld [vmem:[%s923_s7 + $0x180] sm:$0xff]  ;;  %v290_v37 = vld [vmem:[%s923_s7 + $0x188] sm:$0xff] }
  0x28   : > { %v292_v38 = vld [vmem:[%s923_s7 + $0x1a0] sm:$0xff]  ;;  %289 = vst [vmem:[%s928_s8 + $0xc0] sm:$0xff] %v288_v36  ;;  %291 = vst [vmem:[%s928_s8 + $0xc8] sm:$0xff] %v290_v37  ;;  %v294_v39 = vld [vmem:[%s923_s7 + $0x1a8] sm:$0xff] }
  0x29   : > { %293 = vst [vmem:[%s928_s8 + $0xd0] sm:$0xff] %v292_v38  ;;  %v296_v40 = vld [vmem:[%s923_s7 + $0x1c0] sm:$0xff]  ;;  %v298_v41 = vld [vmem:[%s923_s7 + $0x1c8] sm:$0xff]  ;;  %295 = vst [vmem:[%s928_s8 + $0xd8] sm:$0xff] %v294_v39 }
  0x2a   : > { %297 = vst [vmem:[%s928_s8 + $0xe0] sm:$0xff] %v296_v40  ;;  %299 = vst [vmem:[%s928_s8 + $0xe8] sm:$0xff] %v298_v41  ;;  %v300_v42 = vld [vmem:[%s923_s7 + $0x1e0] sm:$0xff]  ;;  %v302_v43 = vld [vmem:[%s923_s7 + $0x1e8] sm:$0xff] }
  0x2b   : > { %301 = vst [vmem:[%s928_s8 + $0xf0] sm:$0xff] %v300_v42  ;;  %303 = vst [vmem:[%s928_s8 + $0xf8] sm:$0xff] %v302_v43 }
  0x2c PF: > { %p706_p6 = scmp.ge.s32.totalorder %s845_s16, 1  ;;  %p308_p7 = scmp.lt.s32.totalorder %s845_s16, 3 }
  0x2e   : > { %p309_p8 = pnand %p706_p6, %p308_p7 }
  0x2f   : > { %s315_s9 = sand.u32 (!%p309_p8), 1, %s829_s12   ;;  %p708_p9 = scmp.ne.s32.totalorder (!%p309_p8), %s837_s14, 0 }
  0x30   : > { %312 = sbr.rel (%p309_p8) target bundleno = 363 (0x16b), region = 70  ;;  %s707_s11 = sshll.u32 (!%p309_p8), %s315_s9, 8 }
  0x31   : > { %s766_s10 = smul.u32 (!%p309_p8), 96, %s315_s9  ;;  %s996_s19 = scalar_lea.vmem (!%p309_p8), [#allocation4], %s707_s11 }
  0x33   : > { %s994_s18 = scalar_lea.vmem (!%p309_p8), [#allocation3], %s766_s10 }
  0x37   : > { %374 = sbr.rel (%p708_p9) target bundleno = 62 (0x3e), region = 82  ;;  %v709_v44 = vld [vmem:[%s1082_s2] ss:$0 sm:$0xff] (!%p708_p9) }
  0x38   : > { %383 = vst [vmem:[#allocation2] sm:$0xff] (!%p708_p9), %v709_v44  ;;  %384 = vst [vmem:[#allocation2 + $0x8] sm:$0xff] (!%p708_p9), %v709_v44 }
  0x39   : > { %385 = vst [vmem:[#allocation2 + $0x10] sm:$0xff] (!%p708_p9), %v709_v44  ;;  %386 = vst [vmem:[#allocation2 + $0x18] sm:$0xff] (!%p708_p9), %v709_v44 }
  0x3a   : > { %387 = vst [vmem:[#allocation2 + $0x20] sm:$0xff] (!%p708_p9), %v709_v44  ;;  %388 = vst [vmem:[#allocation2 + $0x28] sm:$0xff] (!%p708_p9), %v709_v44 }
  0x3e PF: > { %v408_v45 = vld [vmem:[%s996_s19 + $0x8] sm:$0xff]  ;;  %v410_v46 = vld [vmem:[%s996_s19 + $0x18] sm:$0xff]  ;;  %v407_v47 = vld [vmem:[%s996_s19] sm:$0xff]  ;;  %p710_p10 = scmp.ne.s32.totalorder %s837_s14, 1 }
  0x3f   : > { %v717_v48 = vpack.c.bf16 %v410_v46, %v408_v45  ;;  %v409_v49 = vld [vmem:[%s996_s19 + $0x10] sm:$0xff]  ;;  %v412_v50 = vld [vmem:[%s996_s19 + $0x28] sm:$0xff]  ;;  %v414_v51 = vld [vmem:[%s996_s19 + $0x38] sm:$0xff] }
  0x40   : > { %v719_v52 = vpack.c.bf16 %v409_v49, %v407_v47  ;;  %v721_v53 = vpack.c.bf16 %v414_v51, %v412_v50  ;;  %v411_v54 = vld [vmem:[%s996_s19 + $0x20] sm:$0xff]  ;;  %v413_v55 = vld [vmem:[%s996_s19 + $0x30] sm:$0xff]  ;;  %v416_v56 = vld [vmem:[%s996_s19 + $0x48] sm:$0xff] }
  0x41   : > { %718 = vmatprep.subr.bf16.mxu0 %v717_v48  ;;  %749 = vmatprep.subr.bf16.mxu1 %v717_v48  ;;  %v418_v57 = vld [vmem:[%s996_s19 + $0x58] sm:$0xff]  ;;  %v723_v58 = vpack.c.bf16 %v413_v55, %v411_v54  ;;  %v396_v60 = vld [vmem:[%s994_s18 + $0x8] sm:$0xff]  ;;  %v415_v62 = vld [vmem:[%s996_s19 + $0x40] sm:$0xff] }
  0x42   : > { %720 = vmatpush1.bf16.xpose.msra.mxu0 %v719_v52  ;;  %757 = vmatpush1.bf16.xpose.msra.mxu1 %v719_v52  ;;  %v725_v59 = vpack.c.bf16 %v418_v57, %v416_v56  ;;  %v402_v61 = vld [vmem:[%s994_s18 + $0x38] sm:$0xff]  ;;  %v417_v63 = vld [vmem:[%s996_s19 + $0x50] sm:$0xff]  ;;  %v420_v0 = vld [vmem:[%s996_s19 + $0x68] sm:$0xff] }
  0x43   : > { %722 = vmatprep.subr.bf16.mxu0 %v721_v53  ;;  %750 = vmatprep.subr.bf16.mxu1 %v721_v53  ;;  %v422_v1 = vld [vmem:[%s996_s19 + $0x78] sm:$0xff]  ;;  %v727_v2 = vpack.c.bf16 %v417_v63, %v415_v62  ;;  %v419_v4 = vld [vmem:[%s996_s19 + $0x60] sm:$0xff]  ;;  %v421_v5 = vld [vmem:[%s996_s19 + $0x70] sm:$0xff] }
  0x44   : > { %503 = vmatprep.mubr.f32.mxu0 %v396_v60  ;;  %518 = vmatprep.mubr.f32.mxu1 %v402_v61  ;;  %v729_v3 = vpack.c.bf16 %v422_v1, %v420_v0  ;;  %v424_v6 = vld [vmem:[%s996_s19 + $0x88] sm:$0xff]  ;;  %v426_v7 = vld [vmem:[%s996_s19 + $0x98] sm:$0xff]  ;;  %v731_v8 = vpack.c.bf16 %v421_v5, %v419_v4  ;;  %v423_v10 = vld [vmem:[%s996_s19 + $0x80] sm:$0xff] }
  0x45   : > { %v733_v9 = vpack.c.bf16 %v426_v7, %v424_v6  ;;  %v425_v11 = vld [vmem:[%s996_s19 + $0x90] sm:$0xff]  ;;  %v428_v12 = vld [vmem:[%s996_s19 + $0xa8] sm:$0xff]  ;;  %v430_v13 = vld [vmem:[%s996_s19 + $0xb8] sm:$0xff] }
  0x46   : > { %v735_v14 = vpack.c.bf16 %v425_v11, %v423_v10  ;;  %v737_v15 = vpack.c.bf16 %v430_v13, %v428_v12  ;;  %v427_v16 = vld [vmem:[%s996_s19 + $0xa0] sm:$0xff]  ;;  %v429_v17 = vld [vmem:[%s996_s19 + $0xb0] sm:$0xff]  ;;  %v432_v18 = vld [vmem:[%s996_s19 + $0xc8] sm:$0xff] }
  0x47   : > { %v434_v19 = vld [vmem:[%s996_s19 + $0xd8] sm:$0xff]  ;;  %v739_v20 = vpack.c.bf16 %v429_v17, %v427_v16  ;;  %v431_v22 = vld [vmem:[%s996_s19 + $0xc0] sm:$0xff]  ;;  %v433_v23 = vld [vmem:[%s996_s19 + $0xd0] sm:$0xff] }
  0x48   : > { %v741_v21 = vpack.c.bf16 %v434_v19, %v432_v18  ;;  %v436_v24 = vld [vmem:[%s996_s19 + $0xe8] sm:$0xff]  ;;  %v438_v25 = vld [vmem:[%s996_s19 + $0xf8] sm:$0xff]  ;;  %v743_v26 = vpack.c.bf16 %v433_v23, %v431_v22  ;;  %v435_v28 = vld [vmem:[%s996_s19 + $0xe0] sm:$0xff] }
  0x49   : > { %v745_v27 = vpack.c.bf16 %v438_v25, %v436_v24  ;;  %v437_v29 = vld [vmem:[%s996_s19 + $0xf0] sm:$0xff]  ;;  %v395_v31 = vld [vmem:[%s994_s18] sm:$0xff]  ;;  %v398_v33 = vld [vmem:[%s994_s18 + $0x18] sm:$0xff] }
  0x4a   : > { %724 = vmatpush1.bf16.xpose.msra.mxu0 %v723_v58  ;;  %758 = vmatpush1.bf16.xpose.msra.mxu1 %v723_v58  ;;  %v747_v30 = vpack.c.bf16 %v437_v29, %v435_v28  ;;  %v401_v32 = vld [vmem:[%s994_s18 + $0x30] sm:$0xff]  ;;  %v404_v34 = vld [vmem:[%s994_s18 + $0x48] sm:$0xff]  ;;  %v403_v36 = vld [vmem:[%s994_s18 + $0x40] sm:$0xff] }
  0x4b   : > { %726 = vmatprep.subr.bf16.mxu0 %v725_v59  ;;  %751 = vmatprep.subr.bf16.mxu1 %v725_v59  ;;  %v397_v35 = vld [vmem:[%s994_s18 + $0x10] sm:$0xff]  ;;  %v400_v37 = vld [vmem:[%s994_s18 + $0x28] sm:$0xff]  ;;  %v406_v38 = vld [vmem:[%s994_s18 + $0x58] sm:$0xff] }
  0x4c   : > { %v399_v39 = vld [vmem:[%s994_s18 + $0x20] sm:$0xff]  ;;  %v405_v40 = vld [vmem:[%s994_s18 + $0x50] sm:$0xff]  ;;  %v392_v42 = vld [vmem:[#allocation2 + $0x18] sm:$0xff] }
  0x4d   : > { %v389_v41 = vld [vmem:[#allocation2] sm:$0xff]  ;;  %v390_v49 = vld [vmem:[#allocation2 + $0x8] sm:$0xff]  ;;  %v391_v57 = vld [vmem:[#allocation2 + $0x10] sm:$0xff] }
  0x4e   : > { %v393_v50 = vld [vmem:[#allocation2 + $0x20] sm:$0xff]  ;;  %v394_v58 = vld [vmem:[#allocation2 + $0x28] sm:$0xff] }
  0x52   : > { %728 = vmatpush1.bf16.xpose.msra.mxu0 %v727_v2  ;;  %759 = vmatpush1.bf16.xpose.msra.mxu1 %v727_v2 }
  0x53   : > { %730 = vmatprep.subr.bf16.mxu0 %v729_v3  ;;  %752 = vmatprep.subr.bf16.mxu1 %v729_v3 }
  0x5a   : > { %732 = vmatpush1.bf16.xpose.msra.mxu0 %v731_v8  ;;  %760 = vmatpush1.bf16.xpose.msra.mxu1 %v731_v8 }
  0x5b   : > { %734 = vmatprep.subr.bf16.mxu0 %v733_v9  ;;  %753 = vmatprep.subr.bf16.mxu1 %v733_v9 }
  0x62   : > { %736 = vmatpush1.bf16.xpose.msra.mxu0 %v735_v14  ;;  %761 = vmatpush1.bf16.xpose.msra.mxu1 %v735_v14 }
  0x63   : > { %738 = vmatprep.subr.bf16.mxu0 %v737_v15  ;;  %754 = vmatprep.subr.bf16.mxu1 %v737_v15 }
  0x6a   : > { %740 = vmatpush1.bf16.xpose.msra.mxu0 %v739_v20  ;;  %762 = vmatpush1.bf16.xpose.msra.mxu1 %v739_v20 }
  0x6b   : > { %742 = vmatprep.subr.bf16.mxu0 %v741_v21  ;;  %755 = vmatprep.subr.bf16.mxu1 %v741_v21 }
  0x72   : > { %744 = vmatpush1.bf16.xpose.msra.mxu0 %v743_v26  ;;  %763 = vmatpush1.bf16.xpose.msra.mxu1 %v743_v26 }
  0x73   : > { %746 = vmatprep.subr.bf16.mxu0 %v745_v27  ;;  %756 = vmatprep.subr.bf16.mxu1 %v745_v27 }
  0x7a   : > { %748 = vmatpush1.bf16.xpose.msra.mxu0 %v747_v30  ;;  %764 = vmatpush1.bf16.xpose.msra.mxu1 %v747_v30 }
  0x81   : > { %504 = vmatmul.mubr.f32.vlgmr.msra.gmra.mrb[0].mxu0 %v395_v31  ;;  %519 = vmatmul.mubr.f32.vlgmr.msra.gmra.mrb[0].mxu1 %v401_v32 }
  0x82   : > { %508 = vmatprep.mubr.f32.mxu0 %v398_v33  ;;  %523 = vmatprep.mubr.f32.mxu1 %v404_v34 }
  0x85   : > { %509 = vmatmul.mubr.f32.gmra.mrb[2].mxu0 %v397_v35  ;;  %524 = vmatmul.mubr.f32.gmra.mrb[2].mxu1 %v403_v36 }
  0x86   : > { %513 = vmatprep.mubr.f32.mxu0 %v400_v37  ;;  %528 = vmatprep.mubr.f32.mxu1 %v406_v38 }
  0x89   : > { %514 = vmatmul.mubr.f32.gmra.mrb[4].mxu0 %v399_v39  ;;  %529 = vmatmul.mubr.f32.gmra.mrb[4].mxu1 %v405_v40 }
 0x154   : > { %v505_v43 = vpop.f32.mrb[0].mxu0  ;;  %v520_v44 = vpop.f32.mrb[0].mxu1 }
 0x155   : > { %v534_v45 = vadd.f32 %v505_v43, %v389_v41  ;;  %v537_v46 = vadd.f32 %v520_v44, %v392_v42  ;;  %v507_v47 = vpop.f32.mrb[1].mxu0  ;;  %v522_v48 = vpop.f32.mrb[1].mxu1 }
 0x157   : > { %540 = vst [vmem:[#allocation2] sm:$0xff] %v534_v45  ;;  %543 = vst [vmem:[#allocation2 + $0x18] sm:$0xff] %v537_v46 }
 0x158   : > { %v510_v51 = vpop.f32.mrb[2].mxu0  ;;  %v525_v52 = vpop.f32.mrb[2].mxu1 }
 0x159   : > { %v535_v53 = vadd.f32 %v510_v51, %v390_v49  ;;  %v538_v54 = vadd.f32 %v525_v52, %v393_v50  ;;  %v512_v55 = vpop.f32.mrb[3].mxu0  ;;  %v527_v56 = vpop.f32.mrb[3].mxu1  ;;  %549 = sbr.rel (%p710_p10) target bundleno = 363 (0x16b), region = 86 }
 0x15b   : > { %541 = vst [vmem:[#allocation2 + $0x8] sm:$0xff] %v535_v53  ;;  %544 = vst [vmem:[#allocation2 + $0x20] sm:$0xff] %v538_v54 }
 0x15c   : > { %v515_v59 = vpop.f32.mrb[4].mxu0  ;;  %v530_v60 = vpop.f32.mrb[4].mxu1 }
 0x15d   : > { %v536_v61 = vadd.f32 %v515_v59, %v391_v57  ;;  %v539_v62 = vadd.f32 %v530_v60, %v394_v58  ;;  %v517_v63 = vpop.f32.mrb[5].mxu0  ;;  %v532_v0 = vpop.f32.mrb[5].mxu1 }
 0x15e   : > { %v550_v1 = vld [vmem:[#allocation2] sm:$0xff] (!%p710_p10)  ;;  %v553_v7 = vld [vmem:[#allocation2 + $0x18] sm:$0xff] (!%p710_p10) }
 0x15f   : > { %542 = vst [vmem:[#allocation2 + $0x10] sm:$0xff] %v536_v61  ;;  %545 = vst [vmem:[#allocation2 + $0x28] sm:$0xff] %v539_v62  ;;  %vm556_vm0 = vcmp.gt.f32.partialorder (!%p710_p10), %v550_v1, 0.0  ;;  %v562_v4 = vmul.f32 (!%p710_p10), 0.2, %v550_v1  ;;  %vm559_vm3 = vcmp.gt.f32.partialorder (!%p710_p10), %v553_v7, 0.0 }
 0x160   : > { %v565_v12 = vmul.f32 0.2, %v553_v7 }
 0x161   : > { %v568_v10 = vsel %vm556_vm0, %v550_v1, %v562_v4 }
 0x162   : > { %v551_v2 = vld [vmem:[#allocation2 + $0x8] sm:$0xff]  ;;  %v554_v8 = vld [vmem:[#allocation2 + $0x20] sm:$0xff]  ;;  %574 = vst [vmem:[%s1083_s3] sm:$0xff] %v568_v10  ;;  %v571_v15 = vsel %vm559_vm3, %v553_v7, %v565_v12 }
 0x163   : > { %vm557_vm1 = vcmp.gt.f32.partialorder %v551_v2, 0.0  ;;  %v563_v5 = vmul.f32 0.2, %v551_v2  ;;  %vm560_vm4 = vcmp.gt.f32.partialorder %v554_v8, 0.0  ;;  %v566_v14 = vmul.f32 0.2, %v554_v8 }
 0x164   : > { %577 = vst [vmem:[%s1083_s3 + $0x18] sm:$0xff] %v571_v15 }
 0x165   : > { %v569_v11 = vsel %vm557_vm1, %v551_v2, %v563_v5  ;;  %v572_v17 = vsel %vm560_vm4, %v554_v8, %v566_v14 }
 0x166   : > { %v552_v3 = vld [vmem:[#allocation2 + $0x10] sm:$0xff]  ;;  %v555_v9 = vld [vmem:[#allocation2 + $0x28] sm:$0xff]  ;;  %575 = vst [vmem:[%s1083_s3 + $0x8] sm:$0xff] %v569_v11  ;;  %578 = vst [vmem:[%s1083_s3 + $0x20] sm:$0xff] %v572_v17 }
 0x167   : > { %vm558_vm2 = vcmp.gt.f32.partialorder %v552_v3, 0.0  ;;  %v564_v6 = vmul.f32 0.2, %v552_v3  ;;  %vm561_vm5 = vcmp.gt.f32.partialorder %v555_v9, 0.0  ;;  %v567_v16 = vmul.f32 0.2, %v555_v9 }
 0x169   : > { %v570_v13 = vsel %vm558_vm2, %v552_v3, %v564_v6  ;;  %v573_v18 = vsel %vm561_vm5, %v555_v9, %v567_v16 }
 0x16a   : > { %576 = vst [vmem:[%s1083_s3 + $0x10] sm:$0xff] %v570_v13  ;;  %579 = vst [vmem:[%s1083_s3 + $0x28] sm:$0xff] %v573_v18 }
 0x16b PF: > { %s13_s16 = sadd.s32 1, %s845_s16   ;;  %s1085_s12 = smov %s833_s13 }
 0x16c   : > { %p10_p11 = scmp.ge.s32.totalorder %s13_s16, 4   ;;  %s1086_s13 = smov %s906_s21 }
 0x16d   : > { %s1087_s14 = smov %s841_s15  ;;  %s1088_s15 = smov %s1090_s17 }
 0x16e   :  { %12 = sbr.rel (!%p10_p11) target bundleno = 3 (0x3), region = 132 }

// kernel: _lambda_.32
= control target key start
LH: loop header
LB: loop body
LE: loop exit
PB: predicated region body
PF: predicated region fallthrough
CT: control target
= control target key end

     0   :  { %s963_s15 = smov 0   ;;  %s965_s16 = smov 0   ;;  %s1194_s0 = inlined_call_operand.vmem [shape: f32[48,512], index: 0, kind: input, shape index: {}]   ;;  %s1195_s1 = inlined_call_operand.vmem [shape: f32[128,512], index: 1, kind: input, shape index: {}]   ;;  %s1196_s2 = inlined_call_operand.vmem [shape: f32[1,128], index: 2, kind: input, shape index: {}]   ;;  %s1197_s3 = inlined_call_operand.vmem [shape: f32[48,128], index: 3, kind: input, shape index: {}]   ;;  %s1198_s4 = inlined_call_operand.vmem [shape: f32[48,128], index: 4, kind: output, shape index: {}]  }
   0x1   :  { %s967_s17 = smov 0   ;;  %s969_s18 = smov 0  }
   0x2   :  { %s971_s19 = smov 0  }
   0x3 LB: > { %s26_s20 = sadd.s32 1, %s932_s18  ;;  %p49_p1 = scmp.ne.s32.totalorder %s924_s16, %s920_s15  ;;  %s936_s19 = sphi %s971_s19, %s14_s19   ;;  %s932_s18 = sphi %s969_s18, %s1203_s18   ;;  %s928_s17 = sphi %s967_s17, %s1202_s17   ;;  %s924_s16 = sphi %s965_s16, %s1201_s16   ;;  %s920_s15 = sphi %s963_s15, %s1200_s15  }
   0x4   : > { %p27_p0 = scmp.ge.s32.totalorder %s26_s20, 2  ;;  %p50_p2 = scmp.eq.s32.totalorder %s936_s19, 0 }
   0x5   : > { %s42_s23 = sadd.s32 1, %s924_s16  ;;  %p791_p5 = scmp.ge.s32.totalorder %s936_s19, 2 }
   0x6   : > { %s1205_s20 = smov (%p27_p0, %s26_s20), 0  ;;  %p994_p3 = por %p50_p2, %p49_p1 }
   0x7   : > { %s38_s22 = ssub.s32 %s932_s18, %s1205_s20  ;;  %203 = sbr.rel (%p791_p5) target bundleno = 44 (0x2c), region = 24 }
   0x8   : > { %p40_p4 = scmp.eq.s32.totalorder %s38_s22, 0 }
   0xa   : > { %s1002_s24 = scalar_select %p40_p4, %s924_s16, %s42_s23  }
   0xe   : > { %206 = sbr.rel (!%p994_p3) target bundleno = 24 (0x18), region = 28  ;;  %s208_s25 = sand.u32 (%p994_p3), 1, %s924_s16  }
   0xf   : > { %s806_s26 = sshll.u32 (%p994_p3), %s932_s18, 4  ;;  %s856_s27 = smul.u32 (%p994_p3), 96, %s208_s25 }
  0x10   : > { %s216_s30 = scalar_lea.vmem (%p994_p3), %s1194_s0, %s806_s26 }
  0x11   : > { %v229_v0 = vld [vmem:[%s216_s30] sm:$0xff] (%p994_p3)  ;;  %v231_v1 = vld [vmem:[%s216_s30 + $0x8] sm:$0xff] (%p994_p3)  ;;  %s210_s5 = scalar_lea.vmem (%p994_p3), [#allocation3], %s856_s27 }
  0x12   : > { %v233_v2 = vld [vmem:[%s216_s30 + $0x20] sm:$0xff] (%p994_p3)  ;;  %v235_v3 = vld [vmem:[%s216_s30 + $0x28] sm:$0xff] (%p994_p3)  ;;  %230 = vst [vmem:[%s210_s5] sm:$0xff] (%p994_p3), %v229_v0  ;;  %232 = vst [vmem:[%s210_s5 + $0x8] sm:$0xff] (%p994_p3), %v231_v1 }
  0x13   : > { %v237_v4 = vld [vmem:[%s216_s30 + $0x40] sm:$0xff] (%p994_p3)  ;;  %v239_v5 = vld [vmem:[%s216_s30 + $0x48] sm:$0xff] (%p994_p3)  ;;  %234 = vst [vmem:[%s210_s5 + $0x10] sm:$0xff] (%p994_p3), %v233_v2  ;;  %236 = vst [vmem:[%s210_s5 + $0x18] sm:$0xff] (%p994_p3), %v235_v3 }
  0x14   : > { %238 = vst [vmem:[%s210_s5 + $0x20] sm:$0xff] (%p994_p3), %v237_v4  ;;  %240 = vst [vmem:[%s210_s5 + $0x28] sm:$0xff] (%p994_p3), %v239_v5  ;;  %v241_v6 = vld [vmem:[%s216_s30 + $0x60] sm:$0xff] (%p994_p3)  ;;  %v243_v7 = vld [vmem:[%s216_s30 + $0x68] sm:$0xff] (%p994_p3) }
  0x15   : > { %v245_v8 = vld [vmem:[%s216_s30 + $0x80] sm:$0xff]  ;;  %242 = vst [vmem:[%s210_s5 + $0x30] sm:$0xff] %v241_v6  ;;  %244 = vst [vmem:[%s210_s5 + $0x38] sm:$0xff] %v243_v7  ;;  %v247_v9 = vld [vmem:[%s216_s30 + $0x88] sm:$0xff] }
  0x16   : > { %246 = vst [vmem:[%s210_s5 + $0x40] sm:$0xff] %v245_v8  ;;  %v249_v10 = vld [vmem:[%s216_s30 + $0xa0] sm:$0xff]  ;;  %v251_v11 = vld [vmem:[%s216_s30 + $0xa8] sm:$0xff]  ;;  %248 = vst [vmem:[%s210_s5 + $0x48] sm:$0xff] %v247_v9 }
  0x17   : > { %250 = vst [vmem:[%s210_s5 + $0x50] sm:$0xff] %v249_v10  ;;  %252 = vst [vmem:[%s210_s5 + $0x58] sm:$0xff] %v251_v11 }
  0x18 PF: > { %258 = sbr.rel (!%p994_p3) target bundleno = 44 (0x2c), region = 51  ;;  %s260_s6 = sand.u32 (%p994_p3), 1, %s924_s16  }
  0x19   : > { %s807_s7 = sshll.u32 (%p994_p3), %s932_s18, 4  ;;  %s794_s8 = sshll.u32 (%p994_p3), %s260_s6, 8 }
  0x1a   : > { %s1019_s11 = scalar_lea.vmem (%p994_p3), %s1195_s1, %s807_s7  ;;  %s1024_s12 = scalar_lea.vmem (%p994_p3), [#allocation4], %s794_s8 }
  0x1b   : > { %v281_v12 = vld [vmem:[%s1019_s11] sm:$0xff] (%p994_p3)  ;;  %v283_v13 = vld [vmem:[%s1019_s11 + $0x8] sm:$0xff] (%p994_p3) }
  0x1c   : > { %v285_v14 = vld [vmem:[%s1019_s11 + $0x20] sm:$0xff] (%p994_p3)  ;;  %282 = vst [vmem:[%s1024_s12] sm:$0xff] (%p994_p3), %v281_v12  ;;  %284 = vst [vmem:[%s1024_s12 + $0x8] sm:$0xff] (%p994_p3), %v283_v13  ;;  %v287_v15 = vld [vmem:[%s1019_s11 + $0x28] sm:$0xff] (%p994_p3) }
  0x1d   : > { %286 = vst [vmem:[%s1024_s12 + $0x10] sm:$0xff] (%p994_p3), %v285_v14  ;;  %v289_v16 = vld [vmem:[%s1019_s11 + $0x40] sm:$0xff] (%p994_p3)  ;;  %v291_v17 = vld [vmem:[%s1019_s11 + $0x48] sm:$0xff] (%p994_p3)  ;;  %288 = vst [vmem:[%s1024_s12 + $0x18] sm:$0xff] (%p994_p3), %v287_v15 }
  0x1e   : > { %290 = vst [vmem:[%s1024_s12 + $0x20] sm:$0xff] (%p994_p3), %v289_v16  ;;  %292 = vst [vmem:[%s1024_s12 + $0x28] sm:$0xff] (%p994_p3), %v291_v17  ;;  %v293_v18 = vld [vmem:[%s1019_s11 + $0x60] sm:$0xff] (%p994_p3)  ;;  %v295_v19 = vld [vmem:[%s1019_s11 + $0x68] sm:$0xff] (%p994_p3) }
  0x1f   : > { %v297_v20 = vld [vmem:[%s1019_s11 + $0x80] sm:$0xff]  ;;  %294 = vst [vmem:[%s1024_s12 + $0x30] sm:$0xff] %v293_v18  ;;  %296 = vst [vmem:[%s1024_s12 + $0x38] sm:$0xff] %v295_v19  ;;  %v299_v21 = vld [vmem:[%s1019_s11 + $0x88] sm:$0xff] }
  0x20   : > { %298 = vst [vmem:[%s1024_s12 + $0x40] sm:$0xff] %v297_v20  ;;  %v301_v22 = vld [vmem:[%s1019_s11 + $0xa0] sm:$0xff]  ;;  %v303_v23 = vld [vmem:[%s1019_s11 + $0xa8] sm:$0xff]  ;;  %300 = vst [vmem:[%s1024_s12 + $0x48] sm:$0xff] %v299_v21 }
  0x21   : > { %302 = vst [vmem:[%s1024_s12 + $0x50] sm:$0xff] %v301_v22  ;;  %304 = vst [vmem:[%s1024_s12 + $0x58] sm:$0xff] %v303_v23  ;;  %v305_v24 = vld [vmem:[%s1019_s11 + $0xc0] sm:$0xff]  ;;  %v307_v25 = vld [vmem:[%s1019_s11 + $0xc8] sm:$0xff] }
  0x22   : > { %v309_v26 = vld [vmem:[%s1019_s11 + $0xe0] sm:$0xff]  ;;  %306 = vst [vmem:[%s1024_s12 + $0x60] sm:$0xff] %v305_v24  ;;  %308 = vst [vmem:[%s1024_s12 + $0x68] sm:$0xff] %v307_v25  ;;  %v311_v27 = vld [vmem:[%s1019_s11 + $0xe8] sm:$0xff] }
  0x23   : > { %310 = vst [vmem:[%s1024_s12 + $0x70] sm:$0xff] %v309_v26  ;;  %v313_v28 = vld [vmem:[%s1019_s11 + $0x100] sm:$0xff]  ;;  %v315_v29 = vld [vmem:[%s1019_s11 + $0x108] sm:$0xff]  ;;  %312 = vst [vmem:[%s1024_s12 + $0x78] sm:$0xff] %v311_v27 }
  0x24   : > { %314 = vst [vmem:[%s1024_s12 + $0x80] sm:$0xff] %v313_v28  ;;  %316 = vst [vmem:[%s1024_s12 + $0x88] sm:$0xff] %v315_v29  ;;  %v317_v30 = vld [vmem:[%s1019_s11 + $0x120] sm:$0xff]  ;;  %v319_v31 = vld [vmem:[%s1019_s11 + $0x128] sm:$0xff] }
  0x25   : > { %v321_v32 = vld [vmem:[%s1019_s11 + $0x140] sm:$0xff]  ;;  %318 = vst [vmem:[%s1024_s12 + $0x90] sm:$0xff] %v317_v30  ;;  %320 = vst [vmem:[%s1024_s12 + $0x98] sm:$0xff] %v319_v31  ;;  %v323_v33 = vld [vmem:[%s1019_s11 + $0x148] sm:$0xff] }
  0x26   : > { %322 = vst [vmem:[%s1024_s12 + $0xa0] sm:$0xff] %v321_v32  ;;  %v325_v34 = vld [vmem:[%s1019_s11 + $0x160] sm:$0xff]  ;;  %v327_v35 = vld [vmem:[%s1019_s11 + $0x168] sm:$0xff]  ;;  %324 = vst [vmem:[%s1024_s12 + $0xa8] sm:$0xff] %v323_v33 }
  0x27   : > { %326 = vst [vmem:[%s1024_s12 + $0xb0] sm:$0xff] %v325_v34  ;;  %328 = vst [vmem:[%s1024_s12 + $0xb8] sm:$0xff] %v327_v35  ;;  %v329_v36 = vld [vmem:[%s1019_s11 + $0x180] sm:$0xff]  ;;  %v331_v37 = vld [vmem:[%s1019_s11 + $0x188] sm:$0xff] }
  0x28   : > { %v333_v38 = vld [vmem:[%s1019_s11 + $0x1a0] sm:$0xff]  ;;  %330 = vst [vmem:[%s1024_s12 + $0xc0] sm:$0xff] %v329_v36  ;;  %332 = vst [vmem:[%s1024_s12 + $0xc8] sm:$0xff] %v331_v37  ;;  %v335_v39 = vld [vmem:[%s1019_s11 + $0x1a8] sm:$0xff] }
  0x29   : > { %334 = vst [vmem:[%s1024_s12 + $0xd0] sm:$0xff] %v333_v38  ;;  %v337_v40 = vld [vmem:[%s1019_s11 + $0x1c0] sm:$0xff]  ;;  %v339_v41 = vld [vmem:[%s1019_s11 + $0x1c8] sm:$0xff]  ;;  %336 = vst [vmem:[%s1024_s12 + $0xd8] sm:$0xff] %v335_v39 }
  0x2a   : > { %338 = vst [vmem:[%s1024_s12 + $0xe0] sm:$0xff] %v337_v40  ;;  %340 = vst [vmem:[%s1024_s12 + $0xe8] sm:$0xff] %v339_v41  ;;  %v341_v42 = vld [vmem:[%s1019_s11 + $0x1e0] sm:$0xff]  ;;  %v343_v43 = vld [vmem:[%s1019_s11 + $0x1e8] sm:$0xff] }
  0x2b   : > { %342 = vst [vmem:[%s1024_s12 + $0xf0] sm:$0xff] %v341_v42  ;;  %344 = vst [vmem:[%s1024_s12 + $0xf8] sm:$0xff] %v343_v43 }
  0x2c PF: > { %p797_p6 = scmp.ge.s32.totalorder %s936_s19, 1  ;;  %p349_p7 = scmp.lt.s32.totalorder %s936_s19, 3 }
  0x2e   : > { %p350_p8 = pnand %p797_p6, %p349_p7 }
  0x2f   : > { %s356_s13 = sand.u32 (!%p350_p8), 1, %s920_s15   ;;  %p799_p9 = scmp.ne.s32.totalorder (!%p350_p8), %s928_s17, 0 }
  0x30   : > { %353 = sbr.rel (%p350_p8) target bundleno = 363 (0x16b), region = 74  ;;  %s798_s21 = sshll.u32 (!%p350_p8), %s356_s13, 8 }
  0x31   : > { %s857_s14 = smul.u32 (!%p350_p8), 96, %s356_s13  ;;  %s1092_s23 = scalar_lea.vmem (!%p350_p8), [#allocation4], %s798_s21 }
  0x33   : > { %s1090_s22 = scalar_lea.vmem (!%p350_p8), [#allocation3], %s857_s14 }
  0x37   : > { %434 = sbr.rel (%p799_p9) target bundleno = 62 (0x3e), region = 86  ;;  %v800_v44 = vld [vmem:[%s1196_s2] ss:$0 sm:$0xff] (!%p799_p9)  ;;  %v444_v46 = vld [vmem:[%s1197_s3 + $0x8] sm:$0xff] (!%p799_p9)  ;;  %v445_v49 = vld [vmem:[%s1197_s3 + $0x10] sm:$0xff] (!%p799_p9) }
  0x38   : > { %v443_v45 = vld [vmem:[%s1197_s3] sm:$0xff] (!%p799_p9)  ;;  %v450_v48 = vadd.f32 (!%p799_p9), %v800_v44, %v444_v46  ;;  %v446_v50 = vld [vmem:[%s1197_s3 + $0x18] sm:$0xff] (!%p799_p9)  ;;  %v451_v52 = vadd.f32 (!%p799_p9), %v800_v44, %v445_v49  ;;  %v448_v55 = vld [vmem:[%s1197_s3 + $0x28] sm:$0xff] (!%p799_p9) }
  0x39   : > { %v449_v47 = vadd.f32 (!%p799_p9), %v800_v44, %v443_v45  ;;  %v447_v51 = vld [vmem:[%s1197_s3 + $0x20] sm:$0xff] (!%p799_p9)  ;;  %v452_v53 = vadd.f32 (!%p799_p9), %v800_v44, %v446_v50  ;;  %v454_v56 = vadd.f32 (!%p799_p9), %v800_v44, %v448_v55 }
  0x3a   : > { %v453_v54 = vadd.f32 (!%p799_p9), %v800_v44, %v447_v51  ;;  %456 = vst [vmem:[#allocation2 + $0x8] sm:$0xff] (!%p799_p9), %v450_v48  ;;  %457 = vst [vmem:[#allocation2 + $0x10] sm:$0xff] (!%p799_p9), %v451_v52 }
  0x3b   : > { %455 = vst [vmem:[#allocation2] sm:$0xff] (!%p799_p9), %v449_v47  ;;  %458 = vst [vmem:[#allocation2 + $0x18] sm:$0xff] (!%p799_p9), %v452_v53 }
  0x3c   : > { %459 = vst [vmem:[#allocation2 + $0x20] sm:$0xff] (!%p799_p9), %v453_v54  ;;  %460 = vst [vmem:[#allocation2 + $0x28] sm:$0xff] (!%p799_p9), %v454_v56 }
  0x3e PF: > { %v480_v57 = vld [vmem:[%s1092_s23 + $0x8] sm:$0xff]  ;;  %v482_v58 = vld [vmem:[%s1092_s23 + $0x18] sm:$0xff]  ;;  %v479_v59 = vld [vmem:[%s1092_s23] sm:$0xff]  ;;  %p801_p10 = scmp.ne.s32.totalorder %s928_s17, 1 }
  0x3f   : > { %v808_v60 = vpack.c.bf16 %v482_v58, %v480_v57  ;;  %v481_v61 = vld [vmem:[%s1092_s23 + $0x10] sm:$0xff]  ;;  %v484_v62 = vld [vmem:[%s1092_s23 + $0x28] sm:$0xff]  ;;  %v486_v63 = vld [vmem:[%s1092_s23 + $0x38] sm:$0xff] }
  0x40   : > { %v810_v0 = vpack.c.bf16 %v481_v61, %v479_v59  ;;  %v812_v1 = vpack.c.bf16 %v486_v63, %v484_v62  ;;  %v483_v2 = vld [vmem:[%s1092_s23 + $0x20] sm:$0xff]  ;;  %v485_v3 = vld [vmem:[%s1092_s23 + $0x30] sm:$0xff]  ;;  %v488_v4 = vld [vmem:[%s1092_s23 + $0x48] sm:$0xff] }
  0x41   : > { %809 = vmatprep.subr.bf16.mxu0 %v808_v60  ;;  %840 = vmatprep.subr.bf16.mxu1 %v808_v60  ;;  %v490_v5 = vld [vmem:[%s1092_s23 + $0x58] sm:$0xff]  ;;  %v814_v6 = vpack.c.bf16 %v485_v3, %v483_v2  ;;  %v468_v8 = vld [vmem:[%s1090_s22 + $0x8] sm:$0xff]  ;;  %v487_v10 = vld [vmem:[%s1092_s23 + $0x40] sm:$0xff] }
  0x42   : > { %811 = vmatpush1.bf16.xpose.msra.mxu0 %v810_v0  ;;  %848 = vmatpush1.bf16.xpose.msra.mxu1 %v810_v0  ;;  %v816_v7 = vpack.c.bf16 %v490_v5, %v488_v4  ;;  %v474_v9 = vld [vmem:[%s1090_s22 + $0x38] sm:$0xff]  ;;  %v489_v11 = vld [vmem:[%s1092_s23 + $0x50] sm:$0xff]  ;;  %v492_v12 = vld [vmem:[%s1092_s23 + $0x68] sm:$0xff] }
  0x43   : > { %813 = vmatprep.subr.bf16.mxu0 %v812_v1  ;;  %841 = vmatprep.subr.bf16.mxu1 %v812_v1  ;;  %v494_v13 = vld [vmem:[%s1092_s23 + $0x78] sm:$0xff]  ;;  %v818_v14 = vpack.c.bf16 %v489_v11, %v487_v10  ;;  %v491_v16 = vld [vmem:[%s1092_s23 + $0x60] sm:$0xff]  ;;  %v493_v17 = vld [vmem:[%s1092_s23 + $0x70] sm:$0xff] }
  0x44   : > { %575 = vmatprep.mubr.f32.mxu0 %v468_v8  ;;  %590 = vmatprep.mubr.f32.mxu1 %v474_v9  ;;  %v820_v15 = vpack.c.bf16 %v494_v13, %v492_v12  ;;  %v496_v18 = vld [vmem:[%s1092_s23 + $0x88] sm:$0xff]  ;;  %v498_v19 = vld [vmem:[%s1092_s23 + $0x98] sm:$0xff]  ;;  %v822_v20 = vpack.c.bf16 %v493_v17, %v491_v16  ;;  %v495_v22 = vld [vmem:[%s1092_s23 + $0x80] sm:$0xff] }
  0x45   : > { %v824_v21 = vpack.c.bf16 %v498_v19, %v496_v18  ;;  %v497_v23 = vld [vmem:[%s1092_s23 + $0x90] sm:$0xff]  ;;  %v500_v24 = vld [vmem:[%s1092_s23 + $0xa8] sm:$0xff]  ;;  %v502_v25 = vld [vmem:[%s1092_s23 + $0xb8] sm:$0xff] }
  0x46   : > { %v826_v26 = vpack.c.bf16 %v497_v23, %v495_v22  ;;  %v828_v27 = vpack.c.bf16 %v502_v25, %v500_v24  ;;  %v499_v28 = vld [vmem:[%s1092_s23 + $0xa0] sm:$0xff]  ;;  %v501_v29 = vld [vmem:[%s1092_s23 + $0xb0] sm:$0xff]  ;;  %v504_v30 = vld [vmem:[%s1092_s23 + $0xc8] sm:$0xff] }
  0x47   : > { %v506_v31 = vld [vmem:[%s1092_s23 + $0xd8] sm:$0xff]  ;;  %v830_v32 = vpack.c.bf16 %v501_v29, %v499_v28  ;;  %v503_v34 = vld [vmem:[%s1092_s23 + $0xc0] sm:$0xff]  ;;  %v505_v35 = vld [vmem:[%s1092_s23 + $0xd0] sm:$0xff] }
  0x48   : > { %v832_v33 = vpack.c.bf16 %v506_v31, %v504_v30  ;;  %v508_v36 = vld [vmem:[%s1092_s23 + $0xe8] sm:$0xff]  ;;  %v510_v37 = vld [vmem:[%s1092_s23 + $0xf8] sm:$0xff]  ;;  %v834_v38 = vpack.c.bf16 %v505_v35, %v503_v34  ;;  %v507_v40 = vld [vmem:[%s1092_s23 + $0xe0] sm:$0xff] }
  0x49   : > { %v836_v39 = vpack.c.bf16 %v510_v37, %v508_v36  ;;  %v509_v41 = vld [vmem:[%s1092_s23 + $0xf0] sm:$0xff]  ;;  %v467_v43 = vld [vmem:[%s1090_s22] sm:$0xff]  ;;  %v470_v45 = vld [vmem:[%s1090_s22 + $0x18] sm:$0xff] }
  0x4a   : > { %815 = vmatpush1.bf16.xpose.msra.mxu0 %v814_v6  ;;  %849 = vmatpush1.bf16.xpose.msra.mxu1 %v814_v6  ;;  %v838_v42 = vpack.c.bf16 %v509_v41, %v507_v40  ;;  %v473_v44 = vld [vmem:[%s1090_s22 + $0x30] sm:$0xff]  ;;  %v476_v46 = vld [vmem:[%s1090_s22 + $0x48] sm:$0xff]  ;;  %v475_v48 = vld [vmem:[%s1090_s22 + $0x40] sm:$0xff] }
  0x4b   : > { %817 = vmatprep.subr.bf16.mxu0 %v816_v7  ;;  %842 = vmatprep.subr.bf16.mxu1 %v816_v7  ;;  %v469_v47 = vld [vmem:[%s1090_s22 + $0x10] sm:$0xff]  ;;  %v472_v49 = vld [vmem:[%s1090_s22 + $0x28] sm:$0xff]  ;;  %v478_v50 = vld [vmem:[%s1090_s22 + $0x58] sm:$0xff] }
  0x4c   : > { %v471_v51 = vld [vmem:[%s1090_s22 + $0x20] sm:$0xff]  ;;  %v477_v52 = vld [vmem:[%s1090_s22 + $0x50] sm:$0xff]  ;;  %v464_v54 = vld [vmem:[#allocation2 + $0x18] sm:$0xff] }
  0x4d   : > { %v461_v53 = vld [vmem:[#allocation2] sm:$0xff]  ;;  %v462_v61 = vld [vmem:[#allocation2 + $0x8] sm:$0xff]  ;;  %v463_v5 = vld [vmem:[#allocation2 + $0x10] sm:$0xff] }
  0x4e   : > { %v465_v62 = vld [vmem:[#allocation2 + $0x20] sm:$0xff]  ;;  %v466_v6 = vld [vmem:[#allocation2 + $0x28] sm:$0xff] }
  0x52   : > { %819 = vmatpush1.bf16.xpose.msra.mxu0 %v818_v14  ;;  %850 = vmatpush1.bf16.xpose.msra.mxu1 %v818_v14 }
  0x53   : > { %821 = vmatprep.subr.bf16.mxu0 %v820_v15  ;;  %843 = vmatprep.subr.bf16.mxu1 %v820_v15 }
  0x5a   : > { %823 = vmatpush1.bf16.xpose.msra.mxu0 %v822_v20  ;;  %851 = vmatpush1.bf16.xpose.msra.mxu1 %v822_v20 }
  0x5b   : > { %825 = vmatprep.subr.bf16.mxu0 %v824_v21  ;;  %844 = vmatprep.subr.bf16.mxu1 %v824_v21 }
  0x62   : > { %827 = vmatpush1.bf16.xpose.msra.mxu0 %v826_v26  ;;  %852 = vmatpush1.bf16.xpose.msra.mxu1 %v826_v26 }
  0x63   : > { %829 = vmatprep.subr.bf16.mxu0 %v828_v27  ;;  %845 = vmatprep.subr.bf16.mxu1 %v828_v27 }
  0x6a   : > { %831 = vmatpush1.bf16.xpose.msra.mxu0 %v830_v32  ;;  %853 = vmatpush1.bf16.xpose.msra.mxu1 %v830_v32 }
  0x6b   : > { %833 = vmatprep.subr.bf16.mxu0 %v832_v33  ;;  %846 = vmatprep.subr.bf16.mxu1 %v832_v33 }
  0x72   : > { %835 = vmatpush1.bf16.xpose.msra.mxu0 %v834_v38  ;;  %854 = vmatpush1.bf16.xpose.msra.mxu1 %v834_v38 }
  0x73   : > { %837 = vmatprep.subr.bf16.mxu0 %v836_v39  ;;  %847 = vmatprep.subr.bf16.mxu1 %v836_v39 }
  0x7a   : > { %839 = vmatpush1.bf16.xpose.msra.mxu0 %v838_v42  ;;  %855 = vmatpush1.bf16.xpose.msra.mxu1 %v838_v42 }
  0x81   : > { %576 = vmatmul.mubr.f32.vlgmr.msra.gmra.mrb[0].mxu0 %v467_v43  ;;  %591 = vmatmul.mubr.f32.vlgmr.msra.gmra.mrb[0].mxu1 %v473_v44 }
  0x82   : > { %580 = vmatprep.mubr.f32.mxu0 %v470_v45  ;;  %595 = vmatprep.mubr.f32.mxu1 %v476_v46 }
  0x85   : > { %581 = vmatmul.mubr.f32.gmra.mrb[2].mxu0 %v469_v47  ;;  %596 = vmatmul.mubr.f32.gmra.mrb[2].mxu1 %v475_v48 }
  0x86   : > { %585 = vmatprep.mubr.f32.mxu0 %v472_v49  ;;  %600 = vmatprep.mubr.f32.mxu1 %v478_v50 }
  0x89   : > { %586 = vmatmul.mubr.f32.gmra.mrb[4].mxu0 %v471_v51  ;;  %601 = vmatmul.mubr.f32.gmra.mrb[4].mxu1 %v477_v52 }
 0x154   : > { %v577_v55 = vpop.f32.mrb[0].mxu0  ;;  %v592_v56 = vpop.f32.mrb[0].mxu1 }
 0x155   : > { %v606_v57 = vadd.f32 %v577_v55, %v461_v53  ;;  %v609_v58 = vadd.f32 %v592_v56, %v464_v54  ;;  %v579_v59 = vpop.f32.mrb[1].mxu0  ;;  %v594_v60 = vpop.f32.mrb[1].mxu1 }
 0x157   : > { %612 = vst [vmem:[#allocation2] sm:$0xff] %v606_v57  ;;  %615 = vst [vmem:[#allocation2 + $0x18] sm:$0xff] %v609_v58 }
 0x158   : > { %v582_v63 = vpop.f32.mrb[2].mxu0  ;;  %v597_v0 = vpop.f32.mrb[2].mxu1 }
 0x159   : > { %v607_v1 = vadd.f32 %v582_v63, %v462_v61  ;;  %v610_v2 = vadd.f32 %v597_v0, %v465_v62  ;;  %v584_v3 = vpop.f32.mrb[3].mxu0  ;;  %v599_v4 = vpop.f32.mrb[3].mxu1  ;;  %621 = sbr.rel (%p801_p10) target bundleno = 363 (0x16b), region = 90 }
 0x15b   : > { %613 = vst [vmem:[#allocation2 + $0x8] sm:$0xff] %v607_v1  ;;  %616 = vst [vmem:[#allocation2 + $0x20] sm:$0xff] %v610_v2 }
 0x15c   : > { %v587_v7 = vpop.f32.mrb[4].mxu0  ;;  %v602_v8 = vpop.f32.mrb[4].mxu1 }
 0x15d   : > { %v608_v9 = vadd.f32 %v587_v7, %v463_v5  ;;  %v611_v10 = vadd.f32 %v602_v8, %v466_v6  ;;  %v589_v11 = vpop.f32.mrb[5].mxu0  ;;  %v604_v12 = vpop.f32.mrb[5].mxu1 }
 0x15e   : > { %v622_v13 = vld [vmem:[#allocation2] sm:$0xff] (!%p801_p10)  ;;  %v625_v19 = vld [vmem:[#allocation2 + $0x18] sm:$0xff] (!%p801_p10) }
 0x15f   : > { %614 = vst [vmem:[#allocation2 + $0x10] sm:$0xff] %v608_v9  ;;  %617 = vst [vmem:[#allocation2 + $0x28] sm:$0xff] %v611_v10  ;;  %vm628_vm0 = vcmp.gt.f32.partialorder (!%p801_p10), %v622_v13, 0.0  ;;  %v634_v16 = vmul.f32 (!%p801_p10), 0.2, %v622_v13  ;;  %vm631_vm3 = vcmp.gt.f32.partialorder (!%p801_p10), %v625_v19, 0.0 }
 0x160   : > { %v637_v24 = vmul.f32 0.2, %v625_v19 }
 0x161   : > { %v640_v22 = vsel %vm628_vm0, %v622_v13, %v634_v16 }
 0x162   : > { %v623_v14 = vld [vmem:[#allocation2 + $0x8] sm:$0xff]  ;;  %v626_v20 = vld [vmem:[#allocation2 + $0x20] sm:$0xff]  ;;  %646 = vst [vmem:[%s1198_s4] sm:$0xff] %v640_v22  ;;  %v643_v27 = vsel %vm631_vm3, %v625_v19, %v637_v24 }
 0x163   : > { %vm629_vm1 = vcmp.gt.f32.partialorder %v623_v14, 0.0  ;;  %v635_v17 = vmul.f32 0.2, %v623_v14  ;;  %vm632_vm4 = vcmp.gt.f32.partialorder %v626_v20, 0.0  ;;  %v638_v26 = vmul.f32 0.2, %v626_v20 }
 0x164   : > { %649 = vst [vmem:[%s1198_s4 + $0x18] sm:$0xff] %v643_v27 }
 0x165   : > { %v641_v23 = vsel %vm629_vm1, %v623_v14, %v635_v17  ;;  %v644_v29 = vsel %vm632_vm4, %v626_v20, %v638_v26 }
 0x166   : > { %v624_v15 = vld [vmem:[#allocation2 + $0x10] sm:$0xff]  ;;  %v627_v21 = vld [vmem:[#allocation2 + $0x28] sm:$0xff]  ;;  %647 = vst [vmem:[%s1198_s4 + $0x8] sm:$0xff] %v641_v23  ;;  %650 = vst [vmem:[%s1198_s4 + $0x20] sm:$0xff] %v644_v29 }
 0x167   : > { %vm630_vm2 = vcmp.gt.f32.partialorder %v624_v15, 0.0  ;;  %v636_v18 = vmul.f32 0.2, %v624_v15  ;;  %vm633_vm5 = vcmp.gt.f32.partialorder %v627_v21, 0.0  ;;  %v639_v28 = vmul.f32 0.2, %v627_v21 }
 0x169   : > { %v642_v25 = vsel %vm630_vm2, %v624_v15, %v636_v18  ;;  %v645_v30 = vsel %vm633_vm5, %v627_v21, %v639_v28 }
 0x16a   : > { %648 = vst [vmem:[%s1198_s4 + $0x10] sm:$0xff] %v642_v25  ;;  %651 = vst [vmem:[%s1198_s4 + $0x28] sm:$0xff] %v645_v30 }
 0x16b PF: > { %s14_s19 = sadd.s32 1, %s936_s19   ;;  %s1200_s15 = smov %s924_s16 }
 0x16c   : > { %p11_p11 = scmp.ge.s32.totalorder %s14_s19, 4   ;;  %s1201_s16 = smov %s1002_s24 }
 0x16d   : > { %s1202_s17 = smov %s932_s18  ;;  %s1203_s18 = smov %s1205_s20 }
 0x16e   :  { %13 = sbr.rel (!%p11_p11) target bundleno = 3 (0x3), region = 139 }

// kernel: _lambda_.37
= control target key start
LH: loop header
LB: loop body
LE: loop exit
PB: predicated region body
PF: predicated region fallthrough
CT: control target
= control target key end

     0   :  { %s307_s1 = inlined_call_operand.vmem [shape: f32[128,128], index: 1, kind: input, shape index: {}]   ;;  %s308_s0 = inlined_call_operand.vmem [shape: f32[16,128], index: 0, kind: input, shape index: {}]   ;;  %s309_s2 = inlined_call_operand.vmem [shape: f32[1,128], index: 2, kind: input, shape index: {}]   ;;  %s310_s3 = inlined_call_operand.vmem [shape: f32[16,128], index: 3, kind: output, shape index: {}]  }
   0x1   :  { %v32_v0 = vld [vmem:[%s307_s1] sm:$0xff]  ;;  %v33_v1 = vld [vmem:[%s307_s1 + $0x8] sm:$0xff]  ;;  %v34_v2 = vld [vmem:[%s307_s1 + $0x10] sm:$0xff] }
   0x2   :  { %v192_v3 = vpack.c.bf16 %v33_v1, %v32_v0  ;;  %v35_v4 = vld [vmem:[%s307_s1 + $0x18] sm:$0xff]  ;;  %v30_v6 = vld [vmem:[%s308_s0] sm:$0xff]  ;;  %v37_v8 = vld [vmem:[%s307_s1 + $0x28] sm:$0xff] }
   0x3   :  { %v196_v5 = vpack.c.bf16 %v35_v4, %v34_v2  ;;  %v36_v7 = vld [vmem:[%s307_s1 + $0x20] sm:$0xff]  ;;  %189 = vmatprep.mubr.f32.mxu0 %v30_v6  ;;  %v38_v10 = vld [vmem:[%s307_s1 + $0x30] sm:$0xff]  ;;  %v39_v11 = vld [vmem:[%s307_s1 + $0x38] sm:$0xff] }
   0x4   :  { %193 = vmatprep.subr.bf16.mxu0 %v192_v3  ;;  %v200_v9 = vpack.c.bf16 %v37_v8, %v36_v7  ;;  %v204_v12 = vpack.c.bf16 %v39_v11, %v38_v10  ;;  %v40_v13 = vld [vmem:[%s307_s1 + $0x40] sm:$0xff]  ;;  %v41_v14 = vld [vmem:[%s307_s1 + $0x48] sm:$0xff]  ;;  %v42_v16 = vld [vmem:[%s307_s1 + $0x50] sm:$0xff] }
   0x5   :  { %195 = vmatpush3.bf16.xpose.msra.mxu0 %v192_v3  ;;  %v208_v15 = vpack.c.bf16 %v41_v14, %v40_v13  ;;  %v43_v17 = vld [vmem:[%s307_s1 + $0x58] sm:$0xff]  ;;  %v44_v19 = vld [vmem:[%s307_s1 + $0x60] sm:$0xff]  ;;  %v45_v20 = vld [vmem:[%s307_s1 + $0x68] sm:$0xff] }
   0x6   :  { %197 = vmatprep.subr.bf16.mxu0 %v196_v5  ;;  %v212_v18 = vpack.c.bf16 %v43_v17, %v42_v16  ;;  %v216_v21 = vpack.c.bf16 %v45_v20, %v44_v19  ;;  %v46_v22 = vld [vmem:[%s307_s1 + $0x70] sm:$0xff]  ;;  %v47_v23 = vld [vmem:[%s307_s1 + $0x78] sm:$0xff]  ;;  %v31_v25 = vld [vmem:[%s308_s0 + $0x8] sm:$0xff] }
   0x7   :  { %v220_v24 = vpack.c.bf16 %v47_v23, %v46_v22  ;;  %v138_v26 = vld [vmem:[%s309_s2] ss:$0 sm:$0xff] }
   0xd   :  { %199 = vmatpush3.bf16.xpose.msra.mxu0 %v196_v5 }
   0xe   :  { %201 = vmatprep.subr.bf16.mxu0 %v200_v9 }
  0x15   :  { %203 = vmatpush3.bf16.xpose.msra.mxu0 %v200_v9 }
  0x16   :  { %205 = vmatprep.subr.bf16.mxu0 %v204_v12 }
  0x1d   :  { %207 = vmatpush3.bf16.xpose.msra.mxu0 %v204_v12 }
  0x1e   :  { %209 = vmatprep.subr.bf16.mxu0 %v208_v15 }
  0x25   :  { %211 = vmatpush3.bf16.xpose.msra.mxu0 %v208_v15 }
  0x26   :  { %213 = vmatprep.subr.bf16.mxu0 %v212_v18 }
  0x2d   :  { %215 = vmatpush3.bf16.xpose.msra.mxu0 %v212_v18 }
  0x2e   :  { %217 = vmatprep.subr.bf16.mxu0 %v216_v21 }
  0x35   :  { %219 = vmatpush3.bf16.xpose.msra.mxu0 %v216_v21 }
  0x36   :  { %221 = vmatprep.subr.bf16.mxu0 %v220_v24 }
  0x3d   :  { %223 = vmatpush3.bf16.xpose.msra.mxu0 %v220_v24 }
  0x44   :  { %190 = vmatmul.mubr.f32.vlgmr.msra.gmra.mrb[0].mxu0 %v31_v25 }
 0x117   :  { %v191_v27 = vpop.f32.mrb[0].mxu0 }
 0x118   :  { %v124_v28 = vadd.f32 %v191_v27, %v138_v26  ;;  %v114_v29 = vpop.f32.mrb[1].mxu0 }
 0x119   :  { %v123_v30 = vadd.f32 %v138_v26, %v114_v29 }
 0x11a   :  { %133 = vst [vmem:[%s310_s3 + $0x8] sm:$0xff] %v124_v28 }
 0x11b   :  { %132 = vst [vmem:[%s310_s3] sm:$0xff] %v123_v30 }

// kernel: _lambda_.27
= control target key start
LH: loop header
LB: loop body
LE: loop exit
PB: predicated region body
PF: predicated region fallthrough
CT: control target
= control target key end

     0   :  { %vm41_vm0 = vcmask 15360   ;;  %v617_v0 = vmov 0.0|0.0   ;;  %vm618_vm2 = vmmov 0   ;;  %v619_v4 = vmov 0.0   ;;  %s808_s1 = inlined_call_operand.vmem [shape: f32[32,2], index: 1, kind: input, shape index: {}]   ;;  %s809_s3 = inlined_call_operand.vmem [shape: f32[32,32], index: 3, kind: input, shape index: {}]   ;;  %s810_s0 = inlined_call_operand.vmem [shape: f32[2,2], index: 0, kind: input, shape index: {}]   ;;  %s811_s6 = inlined_call_operand.vmem [shape: f32[64,2], index: 6, kind: input, shape index: {}]   ;;  %s812_s2 = inlined_call_operand.vmem [shape: f32[1,32], index: 2, kind: input, shape index: {}]   ;;  %s813_s5 = inlined_call_operand.vmem [shape: f32[64,32], index: 5, kind: input, shape index: {}]   ;;  %s814_s4 = inlined_call_operand.vmem [shape: f32[1,32], index: 4, kind: input, shape index: {}]   ;;  %s815_s7 = inlined_call_operand.vmem [shape: f32[1,64], index: 7, kind: input, shape index: {}]   ;;  %s816_s8 = inlined_call_operand.vmem [shape: f32[2,64], index: 8, kind: output, shape index: {}]  }
   0x1   :  { %566 = vmatprep.subr.bf16.mxu0 %v617_v0  ;;  %v30_v1 = vld [vmem:[%s808_s1] sm:$0xff]  ;;  %v31_v2 = vld [vmem:[%s808_s1 + $0x8] sm:$0xff]  ;;  %vm674_vm1 = vmpackc.low %vm41_vm0, %vm41_vm0  ;;  %514 = vmatprep.mubr.msk.f32.mxu0 %vm618_vm2, %v619_v4  ;;  %vm139_vm3 = vcmask 261120   ;;  %vm441_vm5 = vcmask 517120  }
   0x2   :  { %v567_v5 = vpack.c.bf16 %v31_v2, %v30_v1  ;;  %574 = vmatprep.subr.bf16.mxu1 %v617_v0  ;;  %525 = vmatprep.mubr.msk.f32.mxu1 %vm618_vm2, %v619_v4  ;;  %v128_v6 = vld [vmem:[%s809_s3] sm:$0xff]  ;;  %v129_v7 = vld [vmem:[%s809_s3 + $0x8] sm:$0xff]  ;;  %vm689_vm4 = vmpackc.low %vm139_vm3, %vm139_vm3 }
   0x3   :  { %v575_v9 = vpack.c.bf16 %v129_v7, %v128_v6  ;;  %v32_v10 = vld [vmem:[%s808_s1 + $0x10] sm:$0xff]  ;;  %v33_v11 = vld [vmem:[%s808_s1 + $0x18] sm:$0xff]  ;;  %v29_v16 = vld [vmem:[%s810_s0] sm:$0x3] }
   0x4   :  { %569 = vmatpush3.bf16.xpose.msk.msra.mxu0 %vm674_vm1, %v567_v5  ;;  %v130_v12 = vld [vmem:[%s809_s3 + $0x10] sm:$0xff]  ;;  %v131_v13 = vld [vmem:[%s809_s3 + $0x18] sm:$0xff]  ;;  %v571_v14 = vpack.c.bf16 %v33_v11, %v32_v10  ;;  %v234_v17 = vld [vmem:[%s811_s6] sm:$0xff] }
   0x5   :  { %570 = vmatprep.subr.bf16.mxu0 %v617_v0  ;;  %577 = vmatpush3.bf16.xpose.msk.msra.mxu1 %vm689_vm4, %v575_v9  ;;  %v579_v15 = vpack.c.bf16 %v131_v13, %v130_v12  ;;  %v235_v18 = vld [vmem:[%s811_s6 + $0x8] sm:$0xff]  ;;  %v236_v20 = vld [vmem:[%s811_s6 + $0x10] sm:$0xff]  ;;  %v237_v21 = vld [vmem:[%s811_s6 + $0x18] sm:$0xff] }
   0x6   :  { %578 = vmatprep.subr.bf16.mxu1 %v617_v0  ;;  %v583_v19 = vpack.c.bf16 %v235_v18, %v234_v17  ;;  %v587_v22 = vpack.c.bf16 %v237_v21, %v236_v20  ;;  %v238_v23 = vld [vmem:[%s811_s6 + $0x20] sm:$0xff]  ;;  %v239_v24 = vld [vmem:[%s811_s6 + $0x28] sm:$0xff]  ;;  %v240_v26 = vld [vmem:[%s811_s6 + $0x30] sm:$0xff] }
   0x7   :  { %v591_v25 = vpack.c.bf16 %v239_v24, %v238_v23  ;;  %v241_v27 = vld [vmem:[%s811_s6 + $0x38] sm:$0xff]  ;;  %v447_v29 = vld [vmem:[%s812_s2] ss:$0 sm:$0xff]  ;;  %v227_v31 = vld [vmem:[%s813_s5 + $0x8] sm:$0xff] }
   0x8   :  { %v595_v28 = vpack.c.bf16 %v241_v27, %v240_v26  ;;  %v226_v30 = vld [vmem:[%s813_s5] sm:$0xff]  ;;  %v228_v37 = vld [vmem:[%s813_s5 + $0x10] sm:$0xff]  ;;  %v229_v38 = vld [vmem:[%s813_s5 + $0x18] sm:$0xff] }
   0x9   :  { %v599_v35 = vpack.c.bf16 %v227_v31, %v226_v30  ;;  %v603_v39 = vpack.c.bf16 %v229_v38, %v228_v37  ;;  %v230_v40 = vld [vmem:[%s813_s5 + $0x20] sm:$0xff]  ;;  %v231_v41 = vld [vmem:[%s813_s5 + $0x28] sm:$0xff]  ;;  %v232_v43 = vld [vmem:[%s813_s5 + $0x30] sm:$0xff] }
   0xa   :  { %v607_v42 = vpack.c.bf16 %v231_v41, %v230_v40  ;;  %v233_v44 = vld [vmem:[%s813_s5 + $0x38] sm:$0xff]  ;;  %v453_v48 = vld [vmem:[%s814_s4] ss:$0 sm:$0xff] }
   0xb   :  { %v611_v45 = vpack.c.bf16 %v233_v44, %v232_v43  ;;  %v477_v54 = vld [vmem:[%s815_s7] ss:$0 sm:$0xff] }
   0xc   :  { %573 = vmatpush3.bf16.xpose.msk.msra.mxu0 %vm674_vm1, %v571_v14 }
   0xd   :  { %582 = vmatprep.subr.bf16.mxu0 %v617_v0  ;;  %581 = vmatpush3.bf16.xpose.msk.msra.mxu1 %vm689_vm4, %v579_v15 }
   0xe   :  { %598 = vmatprep.subr.bf16.mxu1 %v617_v0 }
  0x13   :  { %515 = vmatmul.mubr.msk.f32.vlgmr.msra.gmra.mrb[0].mxu0 %vm41_vm0, %v29_v16 }
  0x14   :  { %544 = vmatprep.mubr.msk.f32.mxu0 %vm618_vm2, %v619_v4  ;;  %585 = vmatpush3.bf16.xpose.msk.msra.mxu0 %vm674_vm1, %v583_v19 }
  0x15   :  { %586 = vmatprep.subr.bf16.mxu0 %v617_v0 }
  0x1c   :  { %589 = vmatpush3.bf16.xpose.msk.msra.mxu0 %vm674_vm1, %v587_v22 }
  0x1d   :  { %590 = vmatprep.subr.bf16.mxu0 %v617_v0 }
  0x24   :  { %593 = vmatpush3.bf16.xpose.msk.msra.mxu0 %vm674_vm1, %v591_v25 }
  0x25   :  { %594 = vmatprep.subr.bf16.mxu0 %v617_v0 }
  0x2c   :  { %597 = vmatpush3.bf16.xpose.msk.msra.mxu0 %vm674_vm1, %v595_v28 }
  0x33   :  { %545 = vmatmul.mubr.msk.f32.vlgmr.msra.gmra.mrb[2].mxu0 %vm41_vm0, %v29_v16 }
  0xe6   :  { %v123_v32 = vpop.f32.mrb[0].mxu0 }
  0xe7   :  { %v124_v33 = vadd.f32 %v447_v29, %v123_v32  ;;  %v516_v34 = vpop.f32.mrb[1].mxu0 }
  0xe9   :  { %v127_v36 = vmax.f32 %v124_v33, 0.0 }
  0xeb   :  { %526 = vmatmul.mubr.msk.f32.vlgmr.msra.gmra.mrb[0].mxu1 %vm139_vm3, %v127_v36 }
  0xec   :  { %601 = vmatpush3.bf16.xpose.msk.msra.mxu1 %vm689_vm4, %v599_v35  ;;  %563 = vmatprep.mubr.msk.f32.mxu1 %vm618_vm2, %v619_v4 }
  0xed   :  { %602 = vmatprep.subr.bf16.mxu1 %v617_v0 }
  0xf4   :  { %605 = vmatpush3.bf16.xpose.msk.msra.mxu1 %vm689_vm4, %v603_v39 }
  0xf5   :  { %606 = vmatprep.subr.bf16.mxu1 %v617_v0 }
  0xfc   :  { %609 = vmatpush3.bf16.xpose.msk.msra.mxu1 %vm689_vm4, %v607_v42 }
  0xfd   :  { %610 = vmatprep.subr.bf16.mxu1 %v617_v0 }
 0x104   :  { %613 = vmatpush3.bf16.xpose.msk.msra.mxu1 %vm689_vm4, %v611_v45 }
 0x106   :  { %v332_v46 = vpop.f32.mrb[2].mxu0 }
 0x107   :  { %v546_v47 = vpop.f32.mrb[3].mxu0 }
 0x1be   :  { %v221_v49 = vpop.f32.mrb[0].mxu1 }
 0x1bf   :  { %v222_v50 = vadd.f32 %v453_v48, %v221_v49  ;;  %v527_v51 = vpop.f32.mrb[1].mxu1 }
 0x1c1   :  { %v225_v52 = vmax.f32 %v222_v50, 0.0 }
 0x1c3   :  { %564 = vmatmul.mubr.msk.f32.vlgmr.msra.gmra.mrb[2].mxu1 %vm139_vm3, %v225_v52 }
 0x296   :  { %v429_v53 = vpop.f32.mrb[2].mxu1 }
 0x297   :  { %v430_v55 = vadd.f32 %v429_v53, %v332_v46  ;;  %v565_v56 = vpop.f32.mrb[3].mxu1 }
 0x299   :  { %v440_v57 = vadd.f32 %v477_v54, %v430_v55 }
 0x29b   :  { %442 = vst.msk [vmem:[%s816_s8] sm:$0x3] %vm441_vm5, %v440_v57 }

// kernel: _lambda_.38
= control target key start
LH: loop header
LB: loop body
LE: loop exit
PB: predicated region body
PF: predicated region fallthrough
CT: control target
= control target key end

     0   :  { %vm23_vm0 = vcmask 523264   ;;  %s359_s0 = inlined_call_operand.vmem [shape: f32[72,64], index: 0, kind: input, shape index: {}]   ;;  %s360_s1 = inlined_call_operand.vmem [shape: f32[1,64], index: 1, kind: input, shape index: {}]   ;;  %s361_s2 = inlined_call_operand.vmem [shape: f32[1,64], index: 2, kind: input, shape index: {}]   ;;  %s362_s3 = inlined_call_operand.vmem [shape: f32[72,64], index: 3, kind: output, shape index: {}]  }
   0x1   :  { %v14_v0 = vld [vmem:[%s359_s0] sm:$0xff]  ;;  %v16_v1 = vld [vmem:[%s359_s0 + $0x10] sm:$0xff]  ;;  %v15_v2 = vld [vmem:[%s359_s0 + $0x8] sm:$0xff] }
   0x2   :  { %v24_v3 = vsel %vm23_vm0, %v14_v0, 0.0  ;;  %v30_v4 = vsel %vm23_vm0, %v16_v1, 0.0  ;;  %v17_v5 = vld [vmem:[%s359_s0 + $0x18] sm:$0xff]  ;;  %v27_v6 = vsel %vm23_vm0, %v15_v2, 0.0  ;;  %v18_v8 = vld [vmem:[%s359_s0 + $0x20] sm:$0xff]  ;;  %v19_v9 = vld [vmem:[%s359_s0 + $0x28] sm:$0xff] }
   0x3   :  { %25 = vadd.xlane.f32.xlu0 %v24_v3  ;;  %31 = vadd.xlane.f32.xlu1 %v30_v4  ;;  %v33_v7 = vsel %vm23_vm0, %v17_v5, 0.0  ;;  %v36_v10 = vsel %vm23_vm0, %v18_v8, 0.0  ;;  %v39_v11 = vsel %vm23_vm0, %v19_v9, 0.0  ;;  %v20_v12 = vld [vmem:[%s359_s0 + $0x30] sm:$0xff]  ;;  %v21_v13 = vld [vmem:[%s359_s0 + $0x38] sm:$0xff]  ;;  %v22_v16 = vld [vmem:[%s359_s0 + $0x40] sm:$0xff] }
   0x4   :  { %v42_v14 = vsel %vm23_vm0, %v20_v12, 0.0  ;;  %v45_v15 = vsel %vm23_vm0, %v21_v13, 0.0  ;;  %v48_v17 = vsel %vm23_vm0, %v22_v16, 0.0 }
   0x7   :  { %28 = vadd.xlane.f32.xlu0 %v27_v6  ;;  %34 = vadd.xlane.f32.xlu1 %v33_v7 }
   0xb   :  { %37 = vadd.xlane.f32.xlu0 %v36_v10  ;;  %40 = vadd.xlane.f32.xlu1 %v39_v11 }
   0xf   :  { %43 = vadd.xlane.f32.xlu0 %v42_v14  ;;  %46 = vadd.xlane.f32.xlu1 %v45_v15 }
  0x13   :  { %49 = vadd.xlane.f32.xlu0 %v48_v17 }
  0x90   :  { %v26_v18 = vpop.xlane.xlu0 %25  ;;  %v32_v19 = vpop.xlane.xlu1 %31 }
  0x91   :  { %v52_v20 = vmul.f32 0.015625, %v26_v18  ;;  %v54_v21 = vmul.f32 0.015625, %v32_v19  ;;  %v187_v19 = vld [vmem:[%s360_s1] ss:$0 sm:$0xff] }
  0x93   :  { %v263_v22 = vsub.f32 %v14_v0, %v52_v20  ;;  %v265_v23 = vsub.f32 %v16_v1, %v54_v21 }
  0x94   :  { %v29_v24 = vpop.xlane.xlu0 %28  ;;  %v35_v25 = vpop.xlane.xlu1 %34 }
  0x95   :  { %v53_v26 = vmul.f32 0.015625, %v29_v24  ;;  %v55_v27 = vmul.f32 0.015625, %v35_v25  ;;  %v70_v28 = vmul.f32 %v263_v22, %v263_v22  ;;  %v72_v29 = vmul.f32 %v265_v23, %v265_v23 }
  0x97   :  { %v271_v30 = vsub.f32 %v15_v2, %v53_v26  ;;  %v273_v31 = vsub.f32 %v17_v5, %v55_v27  ;;  %v79_v32 = vsel %vm23_vm0, %v70_v28, 0.0  ;;  %v85_v35 = vsel %vm23_vm0, %v72_v29, 0.0  ;;  %v188_v27 = vld [vmem:[%s361_s2] ss:$0 sm:$0xff] }
  0x98   :  { %80 = vadd.xlane.f32.xlu1 %v79_v32  ;;  %v38_v33 = vpop.xlane.xlu0 %37  ;;  %v41_v34 = vpop.xlane.xlu1 %40 }
  0x99   :  { %v56_v36 = vmul.f32 0.015625, %v38_v33  ;;  %v57_v37 = vmul.f32 0.015625, %v41_v34  ;;  %v71_v38 = vmul.f32 %v271_v30, %v271_v30  ;;  %v73_v39 = vmul.f32 %v273_v31, %v273_v31 }
  0x9b   :  { %v281_v40 = vsub.f32 %v18_v8, %v56_v36  ;;  %v283_v41 = vsub.f32 %v19_v9, %v57_v37  ;;  %v82_v42 = vsel %vm23_vm0, %v71_v38, 0.0  ;;  %v88_v45 = vsel %vm23_vm0, %v73_v39, 0.0 }
  0x9c   :  { %86 = vadd.xlane.f32.xlu1 %v85_v35  ;;  %83 = vadd.xlane.f32.xlu0 %v82_v42  ;;  %v44_v43 = vpop.xlane.xlu0 %43  ;;  %v47_v44 = vpop.xlane.xlu1 %46 }
  0x9d   :  { %v58_v46 = vmul.f32 0.015625, %v44_v43  ;;  %v59_v47 = vmul.f32 0.015625, %v47_v44  ;;  %v74_v48 = vmul.f32 %v281_v40, %v281_v40  ;;  %v75_v49 = vmul.f32 %v283_v41, %v283_v41 }
  0x9f   :  { %v291_v50 = vsub.f32 %v20_v12, %v58_v46  ;;  %v293_v51 = vsub.f32 %v21_v13, %v59_v47  ;;  %v91_v52 = vsel %vm23_vm0, %v74_v48, 0.0  ;;  %v94_v55 = vsel %vm23_vm0, %v75_v49, 0.0 }
  0xa0   :  { %89 = vadd.xlane.f32.xlu0 %v88_v45  ;;  %92 = vadd.xlane.f32.xlu1 %v91_v52  ;;  %v50_v53 = vpop.xlane.xlu0 %49 }
  0xa1   :  { %v60_v54 = vmul.f32 0.015625, %v50_v53  ;;  %v76_v56 = vmul.f32 %v291_v50, %v291_v50  ;;  %v77_v57 = vmul.f32 %v293_v51, %v293_v51 }
  0xa3   :  { %v301_v58 = vsub.f32 %v22_v16, %v60_v54  ;;  %v97_v59 = vsel %vm23_vm0, %v76_v56, 0.0  ;;  %v100_v60 = vsel %vm23_vm0, %v77_v57, 0.0 }
  0xa4   :  { %95 = vadd.xlane.f32.xlu0 %v94_v55  ;;  %98 = vadd.xlane.f32.xlu1 %v97_v59 }
  0xa5   :  { %v78_v61 = vmul.f32 %v301_v58, %v301_v58 }
  0xa7   :  { %v103_v62 = vsel %vm23_vm0, %v78_v61, 0.0 }
  0xa8   :  { %101 = vadd.xlane.f32.xlu0 %v100_v60  ;;  %104 = vadd.xlane.f32.xlu1 %v103_v62 }
 0x125   :  { %v81_v63 = vpop.xlane.xlu1 %80 }
 0x126   :  { %v106_v0 = vmul.f32 0.015625, %v81_v63 }
 0x128   :  { %v115_v1 = vadd.f32 1e-05, %v106_v0 }
 0x129   :  { %v87_v2 = vpop.xlane.xlu1 %86  ;;  %v84_v3 = vpop.xlane.xlu0 %83 }
 0x12a   :  { %189 = vrsqrt.f32 %v115_v1  ;;  %v108_v4 = vmul.f32 0.015625, %v87_v2  ;;  %v107_v5 = vmul.f32 0.015625, %v84_v3 }
 0x12c   :  { %v117_v6 = vadd.f32 1e-05, %v108_v4  ;;  %v116_v7 = vadd.f32 1e-05, %v107_v5 }
 0x12d   :  { %v93_v8 = vpop.xlane.xlu1 %92  ;;  %v90_v9 = vpop.xlane.xlu0 %89 }
 0x12e   :  { %191 = vrsqrt.f32 %v117_v6  ;;  %v110_v10 = vmul.f32 0.015625, %v93_v8  ;;  %v109_v11 = vmul.f32 0.015625, %v90_v9 }
 0x12f   :  { %193 = vrsqrt.f32 %v116_v7 }
 0x130   :  { %v119_v12 = vadd.f32 1e-05, %v110_v10  ;;  %v118_v13 = vadd.f32 1e-05, %v109_v11 }
 0x131   :  { %v99_v14 = vpop.xlane.xlu1 %98  ;;  %v96_v15 = vpop.xlane.xlu0 %95 }
 0x132   :  { %195 = vrsqrt.f32 %v119_v12  ;;  %v112_v16 = vmul.f32 0.015625, %v99_v14  ;;  %v111_v17 = vmul.f32 0.015625, %v96_v15 }
 0x133   :  { %197 = vrsqrt.f32 %v118_v13 }
 0x134   :  { %v190_v18 = vpop.eup %189  ;;  %v121_v20 = vadd.f32 1e-05, %v112_v16  ;;  %v120_v21 = vadd.f32 1e-05, %v111_v17 }
 0x135   :  { %v133_v24 = vmul.f32 %v190_v18, %v263_v22  ;;  %v105_v25 = vpop.xlane.xlu1 %104  ;;  %v102_v26 = vpop.xlane.xlu0 %101 }
 0x136   :  { %199 = vrsqrt.f32 %v121_v20  ;;  %v114_v28 = vmul.f32 0.015625, %v105_v25  ;;  %v113_v29 = vmul.f32 0.015625, %v102_v26 }
 0x137   :  { %v149_v32 = vmul.f32 %v187_v19, %v133_v24  ;;  %201 = vrsqrt.f32 %v120_v21 }
 0x138   :  { %v192_v33 = vpop.eup %191  ;;  %v123_v34 = vadd.f32 1e-05, %v114_v28  ;;  %v122_v35 = vadd.f32 1e-05, %v113_v29 }
 0x139   :  { %v194_v36 = vpop.eup %193  ;;  %v165_v37 = vadd.f32 %v188_v27, %v149_v32  ;;  %v135_v38 = vmul.f32 %v192_v33, %v265_v23 }
 0x13a   :  { %v134_v22 = vmul.f32 %v194_v36, %v271_v30  ;;  %203 = vrsqrt.f32 %v123_v34 }
 0x13b   :  { %174 = vst.msk [vmem:[%s362_s3] sm:$0xff] %vm23_vm0, %v165_v37  ;;  %v151_v39 = vmul.f32 %v187_v19, %v135_v38  ;;  %205 = vrsqrt.f32 %v122_v35 }
 0x13c   :  { %v196_v42 = vpop.eup %195  ;;  %v150_v43 = vmul.f32 %v187_v19, %v134_v22 }
 0x13d   :  { %v198_v44 = vpop.eup %197  ;;  %v167_v45 = vadd.f32 %v188_v27, %v151_v39  ;;  %v137_v46 = vmul.f32 %v196_v42, %v281_v40 }
 0x13e   :  { %v166_v47 = vadd.f32 %v188_v27, %v150_v43  ;;  %v136_v48 = vmul.f32 %v198_v44, %v273_v31 }
 0x13f   :  { %176 = vst.msk [vmem:[%s362_s3 + $0x10] sm:$0xff] %vm23_vm0, %v167_v45  ;;  %v153_v23 = vmul.f32 %v187_v19, %v137_v46 }
 0x140   :  { %v200_v30 = vpop.eup %199  ;;  %175 = vst.msk [vmem:[%s362_s3 + $0x8] sm:$0xff] %vm23_vm0, %v166_v47  ;;  %v152_v49 = vmul.f32 %v187_v19, %v136_v48 }
 0x141   :  { %v202_v52 = vpop.eup %201  ;;  %v169_v53 = vadd.f32 %v188_v27, %v153_v23  ;;  %v139_v40 = vmul.f32 %v200_v30, %v291_v50 }
 0x142   :  { %v168_v54 = vadd.f32 %v188_v27, %v152_v49  ;;  %v138_v31 = vmul.f32 %v202_v52, %v283_v41 }
 0x143   :  { %178 = vst.msk [vmem:[%s362_s3 + $0x20] sm:$0xff] %vm23_vm0, %v169_v53  ;;  %v155_v55 = vmul.f32 %v187_v19, %v139_v40 }
 0x144   :  { %v204_v56 = vpop.eup %203  ;;  %177 = vst.msk [vmem:[%s362_s3 + $0x18] sm:$0xff] %vm23_vm0, %v168_v54  ;;  %v154_v57 = vmul.f32 %v187_v19, %v138_v31 }
 0x145   :  { %v206_v59 = vpop.eup %205  ;;  %v171_v60 = vadd.f32 %v188_v27, %v155_v55  ;;  %v141_v50 = vmul.f32 %v204_v56, %v301_v58 }
 0x146   :  { %v170_v61 = vadd.f32 %v188_v27, %v154_v57  ;;  %v140_v41 = vmul.f32 %v206_v59, %v293_v51 }
 0x147   :  { %180 = vst.msk [vmem:[%s362_s3 + $0x30] sm:$0xff] %vm23_vm0, %v171_v60  ;;  %v157_v62 = vmul.f32 %v187_v19, %v141_v50 }
 0x148   :  { %179 = vst.msk [vmem:[%s362_s3 + $0x28] sm:$0xff] %vm23_vm0, %v170_v61  ;;  %v156_v63 = vmul.f32 %v187_v19, %v140_v41 }
 0x149   :  { %v173_v0 = vadd.f32 %v188_v27, %v157_v62 }
 0x14a   :  { %v172_v1 = vadd.f32 %v188_v27, %v156_v63 }
 0x14b   :  { %182 = vst.msk [vmem:[%s362_s3 + $0x40] sm:$0xff] %vm23_vm0, %v173_v0 }
 0x14c   :  { %181 = vst.msk [vmem:[%s362_s3 + $0x38] sm:$0xff] %vm23_vm0, %v172_v1 }

// kernel: _lambda_.39
= control target key start
LH: loop header
LB: loop body
LE: loop exit
PB: predicated region body
PF: predicated region fallthrough
CT: control target
= control target key end

     0   :  { %s914_s12 = smov 0   ;;  %s916_s13 = smov 0   ;;  %s1114_s0 = inlined_call_operand.vmem [shape: f32[72,128], index: 0, kind: input, shape index: {}]   ;;  %s1115_s1 = inlined_call_operand.vmem [shape: f32[1536,128], index: 1, kind: input, shape index: {}]   ;;  %s1116_s2 = inlined_call_operand.vmem [shape: f32[1,1536], index: 2, kind: input, shape index: {}]   ;;  %s1117_s3 = inlined_call_operand.vmem [shape: f32[72,1536], index: 3, kind: output, shape index: {}]  }
   0x1   :  { %s918_s14 = smov 0   ;;  %s920_s15 = smov 0  }
   0x2   :  { %s922_s16 = smov 0  }
   0x3 LB: > { %s701_s17 = sadd.s32 4294967295, %s892_s16   ;;  %s28_s18 = sadd.s32 1, %s888_s15  ;;  %s892_s16 = sphi %s922_s16, %s13_s16   ;;  %s888_s15 = sphi %s920_s15, %s1122_s15   ;;  %s884_s14 = sphi %s918_s14, %s1121_s14   ;;  %s880_s13 = sphi %s916_s13, %s1120_s13   ;;  %s876_s12 = sphi %s914_s12, %s1119_s12  }
   0x4   : > { %p30_p0 = scmp.ge.s32.totalorder %s28_s18, 6  ;;  %s123_s19 = sadd.s32 1, %s880_s13 }
   0x5   : > { %p133_p1 = scmp.ne.s32.totalorder %s880_s13, %s876_s12  ;;  %p134_p2 = scmp.eq.s32.totalorder %s701_s17, 5 }
   0x6   : > { %s1124_s18 = smov (%p30_p0, %s28_s18), 0  ;;  %p706_p4 = scmp.ge.s32.totalorder %s892_s16, 1 }
   0x7   : > { %p946_p3 = por %p134_p2, %p133_p1  ;;  %s119_s21 = ssub.s32 %s888_s15, %s1124_s18 }
   0x8   : > { %p190_p5 = scmp.lt.s32.totalorder %s892_s16, 7  ;;  %p121_p6 = scmp.eq.s32.totalorder %s119_s21, 0 }
   0xa   : > { %p191_p7 = pnand %p706_p4, %p190_p5 }
   0xb   : > { %s955_s22 = scalar_select %p121_p6, %s880_s13, %s123_s19  }
   0xc   : > { %194 = sbr.rel (%p191_p7) target bundleno = 329 (0x149), region = 32  ;;  %s707_s23 = sshll.u32 (!%p191_p7), %s884_s14, 5  ;;  %v961_v0 = vld [vmem:[%s1114_s0] sm:$0xff] (!%p191_p7)  ;;  %v966_v1 = vld [vmem:[%s1114_s0 + $0x28] sm:$0xff] (!%p191_p7)  ;;  %v313_v51 = vld [vmem:[%s1114_s0 + $0x30] sm:$0xff] (!%p191_p7)  ;;  %v259_v57 = vlaneseq (!%p191_p7) }
   0xd   : > { %p238_p8 = scmp.lt.s32.totalorder (!%p191_p7), %s707_s23, 191  ;;  %747 = vmatprep.mubr.f32.mxu0 (!%p191_p7), %v961_v0  ;;  %757 = vmatprep.mubr.f32.mxu1 (!%p191_p7), %v966_v1  ;;  %v308_v50 = vld [vmem:[%s1114_s0 + $0x8] sm:$0xff] (!%p191_p7)  ;;  %v309_v52 = vld [vmem:[%s1114_s0 + $0x10] sm:$0xff] (!%p191_p7)  ;;  %v314_v53 = vld [vmem:[%s1114_s0 + $0x38] sm:$0xff] (!%p191_p7)  ;;  %s709_s27 = sshll.u32 (!%p191_p7), %s884_s14, 1 }
   0xe   : > { %v310_v54 = vld [vmem:[%s1114_s0 + $0x18] sm:$0xff] (!%p191_p7)  ;;  %v315_v55 = vld [vmem:[%s1114_s0 + $0x40] sm:$0xff] (!%p191_p7)  ;;  %p247_p9 = scmp.lt.s32.totalorder (!%p191_p7), %s709_s27, 11  ;;  %v260_v58 = vshrl.u32 (!%p191_p7), %v259_v57, 7 }
   0xf   : > { %v311_v56 = vld [vmem:[%s1114_s0 + $0x20] sm:$0xff] (!%p191_p7) }
  0x10   : > { %v261_v59 = vsub.s32 (!%p191_p7), 0, %v260_v58  ;;  %v265_v61 = vsub.s32 (!%p191_p7), 1, %v260_v58 }
  0x13   : > { %s1126_s23 = smov (!%p238_p8, %s707_s23), 191  ;;  %s1128_s27 = smov (!%p247_p9, %s709_s27), 11 }
  0x14   : > { %s708_s28 = sshll.u32 %s1126_s23, 3  ;;  %s249_s30 = scalar_lea.vmem %s1116_s2, %s1128_s27 }
  0x15   : > { %s973_s4 = scalar_lea.vmem %s1115_s1, %s708_s28  ;;  %v257_v60 = vld [vmem:[%s249_s30] sm:$0x3] }
  0x16   : > { %v332_v2 = vld [vmem:[%s973_s4 + $0x80] sm:$0xff]  ;;  %v333_v3 = vld [vmem:[%s973_s4 + $0x88] sm:$0xff]  ;;  %v334_v7 = vld [vmem:[%s973_s4 + $0x90] sm:$0xff]  ;;  %v262_v62 = vrot.slane %v257_v60, %v261_v59  ;;  %v266_v63 = vrot.slane %v257_v60, %v265_v61 }
  0x17   : > { %v316_v4 = vld [vmem:[%s973_s4] sm:$0xff]  ;;  %v765_v5 = vpack.c.bf16 %v333_v3, %v332_v2  ;;  %v317_v6 = vld [vmem:[%s973_s4 + $0x8] sm:$0xff]  ;;  %v335_v8 = vld [vmem:[%s973_s4 + $0x98] sm:$0xff] }
  0x18   : > { %v767_v9 = vpack.c.bf16 %v317_v6, %v316_v4  ;;  %v769_v10 = vpack.c.bf16 %v335_v8, %v334_v7  ;;  %v318_v11 = vld [vmem:[%s973_s4 + $0x10] sm:$0xff]  ;;  %v319_v12 = vld [vmem:[%s973_s4 + $0x18] sm:$0xff]  ;;  %v336_v13 = vld [vmem:[%s973_s4 + $0xa0] sm:$0xff] }
  0x19   : > { %766 = vmatprep.subr.bf16.mxu0 %v765_v5  ;;  %797 = vmatprep.subr.bf16.mxu1 %v765_v5  ;;  %v337_v14 = vld [vmem:[%s973_s4 + $0xa8] sm:$0xff]  ;;  %v771_v15 = vpack.c.bf16 %v319_v12, %v318_v11  ;;  %v320_v17 = vld [vmem:[%s973_s4 + $0x20] sm:$0xff]  ;;  %v338_v19 = vld [vmem:[%s973_s4 + $0xb0] sm:$0xff] }
  0x1a   : > { %768 = vmatpush3.bf16.xpose.msra.mxu0 %v767_v9  ;;  %805 = vmatpush3.bf16.xpose.msra.mxu1 %v767_v9  ;;  %v773_v16 = vpack.c.bf16 %v337_v14, %v336_v13  ;;  %v321_v18 = vld [vmem:[%s973_s4 + $0x28] sm:$0xff]  ;;  %v339_v20 = vld [vmem:[%s973_s4 + $0xb8] sm:$0xff]  ;;  %v322_v23 = vld [vmem:[%s973_s4 + $0x30] sm:$0xff] }
  0x1b   : > { %770 = vmatprep.subr.bf16.mxu0 %v769_v10  ;;  %798 = vmatprep.subr.bf16.mxu1 %v769_v10  ;;  %v775_v21 = vpack.c.bf16 %v321_v18, %v320_v17  ;;  %v777_v22 = vpack.c.bf16 %v339_v20, %v338_v19  ;;  %v323_v24 = vld [vmem:[%s973_s4 + $0x38] sm:$0xff]  ;;  %v340_v25 = vld [vmem:[%s973_s4 + $0xc0] sm:$0xff]  ;;  %v341_v26 = vld [vmem:[%s973_s4 + $0xc8] sm:$0xff] }
  0x1c   : > { %v779_v27 = vpack.c.bf16 %v323_v24, %v322_v23  ;;  %v781_v28 = vpack.c.bf16 %v341_v26, %v340_v25  ;;  %v324_v29 = vld [vmem:[%s973_s4 + $0x40] sm:$0xff]  ;;  %v325_v30 = vld [vmem:[%s973_s4 + $0x48] sm:$0xff]  ;;  %v342_v31 = vld [vmem:[%s973_s4 + $0xd0] sm:$0xff] }
  0x1d   : > { %v343_v32 = vld [vmem:[%s973_s4 + $0xd8] sm:$0xff]  ;;  %v783_v33 = vpack.c.bf16 %v325_v30, %v324_v29  ;;  %v326_v35 = vld [vmem:[%s973_s4 + $0x50] sm:$0xff]  ;;  %v344_v37 = vld [vmem:[%s973_s4 + $0xe0] sm:$0xff] }
  0x1e   : > { %v785_v34 = vpack.c.bf16 %v343_v32, %v342_v31  ;;  %v327_v36 = vld [vmem:[%s973_s4 + $0x58] sm:$0xff]  ;;  %v345_v38 = vld [vmem:[%s973_s4 + $0xe8] sm:$0xff]  ;;  %v328_v41 = vld [vmem:[%s973_s4 + $0x60] sm:$0xff] }
  0x1f   : > { %v787_v39 = vpack.c.bf16 %v327_v36, %v326_v35  ;;  %v789_v40 = vpack.c.bf16 %v345_v38, %v344_v37  ;;  %v329_v42 = vld [vmem:[%s973_s4 + $0x68] sm:$0xff]  ;;  %v346_v43 = vld [vmem:[%s973_s4 + $0xf0] sm:$0xff]  ;;  %v347_v44 = vld [vmem:[%s973_s4 + $0xf8] sm:$0xff] }
  0x20   : > { %v791_v45 = vpack.c.bf16 %v329_v42, %v328_v41  ;;  %v793_v46 = vpack.c.bf16 %v347_v44, %v346_v43  ;;  %v330_v47 = vld [vmem:[%s973_s4 + $0x70] sm:$0xff]  ;;  %v331_v48 = vld [vmem:[%s973_s4 + $0x78] sm:$0xff]  ;;  %s225_s4 = sand.u32 1, %s876_s12   ;;  %s714_s12 = sshll.u32 (%p946_p3), %s884_s14, 4 }
  0x21   : > { %v795_v49 = vpack.c.bf16 %v331_v48, %v330_v47  ;;  %s813_s5 = smul.u32 144, %s225_s4  ;;  %s1064_s9 = scalar_lea.vmem (%p946_p3), %s1117_s3, %s714_s12 }
  0x22   : > { %772 = vmatpush3.bf16.xpose.msra.mxu0 %v771_v15  ;;  %806 = vmatpush3.bf16.xpose.msra.mxu1 %v771_v15 }
  0x23   : > { %774 = vmatprep.subr.bf16.mxu0 %v773_v16  ;;  %799 = vmatprep.subr.bf16.mxu1 %v773_v16  ;;  %s1035_s6 = scalar_lea.vmem [#allocation3], %s813_s5 }
  0x2a   : > { %776 = vmatpush3.bf16.xpose.msra.mxu0 %v775_v21  ;;  %807 = vmatpush3.bf16.xpose.msra.mxu1 %v775_v21 }
  0x2b   : > { %778 = vmatprep.subr.bf16.mxu0 %v777_v22  ;;  %800 = vmatprep.subr.bf16.mxu1 %v777_v22 }
  0x32   : > { %780 = vmatpush3.bf16.xpose.msra.mxu0 %v779_v27  ;;  %808 = vmatpush3.bf16.xpose.msra.mxu1 %v779_v27 }
  0x33   : > { %782 = vmatprep.subr.bf16.mxu0 %v781_v28  ;;  %801 = vmatprep.subr.bf16.mxu1 %v781_v28 }
  0x3a   : > { %784 = vmatpush3.bf16.xpose.msra.mxu0 %v783_v33  ;;  %809 = vmatpush3.bf16.xpose.msra.mxu1 %v783_v33 }
  0x3b   : > { %786 = vmatprep.subr.bf16.mxu0 %v785_v34  ;;  %802 = vmatprep.subr.bf16.mxu1 %v785_v34 }
  0x42   : > { %788 = vmatpush3.bf16.xpose.msra.mxu0 %v787_v39  ;;  %810 = vmatpush3.bf16.xpose.msra.mxu1 %v787_v39 }
  0x43   : > { %790 = vmatprep.subr.bf16.mxu0 %v789_v40  ;;  %803 = vmatprep.subr.bf16.mxu1 %v789_v40 }
  0x4a   : > { %792 = vmatpush3.bf16.xpose.msra.mxu0 %v791_v45  ;;  %811 = vmatpush3.bf16.xpose.msra.mxu1 %v791_v45 }
  0x4b   : > { %794 = vmatprep.subr.bf16.mxu0 %v793_v46  ;;  %804 = vmatprep.subr.bf16.mxu1 %v793_v46 }
  0x52   : > { %796 = vmatpush3.bf16.xpose.msra.mxu0 %v795_v49  ;;  %812 = vmatpush3.bf16.xpose.msra.mxu1 %v795_v49 }
  0x59   : > { %748 = vmatmul.mubr.f32.vlgmr.msra.gmra.mrb[0].mxu0 %v961_v0  ;;  %758 = vmatmul.mubr.f32.vlgmr.msra.gmra.mrb[0].mxu1 %v966_v1 }
  0x5a   : > { %749 = vmatprep.mubr.f32.mxu0 %v308_v50  ;;  %759 = vmatprep.mubr.f32.mxu1 %v313_v51 }
  0x5d   : > { %750 = vmatmul.mubr.f32.gmra.mrb[2].mxu0 %v308_v50  ;;  %760 = vmatmul.mubr.f32.gmra.mrb[2].mxu1 %v313_v51 }
  0x5e   : > { %751 = vmatprep.mubr.f32.mxu0 %v309_v52  ;;  %761 = vmatprep.mubr.f32.mxu1 %v314_v53 }
  0x61   : > { %752 = vmatmul.mubr.f32.gmra.mrb[4].mxu0 %v309_v52  ;;  %762 = vmatmul.mubr.f32.gmra.mrb[4].mxu1 %v314_v53 }
  0x62   : > { %753 = vmatprep.mubr.f32.mxu0 %v310_v54  ;;  %763 = vmatprep.mubr.f32.mxu1 %v315_v55 }
  0x65   : > { %754 = vmatmul.mubr.f32.gmra.mrb[6].mxu0 %v310_v54  ;;  %764 = vmatmul.mubr.f32.gmra.mrb[6].mxu1 %v315_v55 }
  0x66   : > { %755 = vmatprep.mubr.f32.mxu0 %v311_v56 }
  0x69   : > { %756 = vmatmul.mubr.f32.gmra.mrb[8].mxu0 %v311_v56 }
 0x12c   : > { %v414_v0 = vpop.f32.mrb[0].mxu0  ;;  %v444_v1 = vpop.f32.mrb[0].mxu1 }
 0x12d   : > { %v467_v2 = vadd.f32 %v414_v0, %v262_v62  ;;  %v416_v3 = vpop.f32.mrb[1].mxu0  ;;  %v477_v4 = vadd.f32 %v444_v1, %v262_v62  ;;  %v446_v5 = vpop.f32.mrb[1].mxu1 }
 0x12e   : > { %v468_v6 = vadd.f32 %v416_v3, %v266_v63  ;;  %v478_v7 = vadd.f32 %v446_v5, %v266_v63 }
 0x12f   : > { %524 = vst [vmem:[%s1035_s6] sm:$0xff] %v467_v2  ;;  %534 = vst [vmem:[%s1035_s6 + $0x50] sm:$0xff] %v477_v4 }
 0x130   : > { %525 = vst [vmem:[%s1035_s6 + $0x8] sm:$0xff] %v468_v6  ;;  %v420_v8 = vpop.f32.mrb[2].mxu0  ;;  %535 = vst [vmem:[%s1035_s6 + $0x58] sm:$0xff] %v478_v7  ;;  %v450_v9 = vpop.f32.mrb[2].mxu1 }
 0x131   : > { %v469_v10 = vadd.f32 %v420_v8, %v262_v62  ;;  %v422_v11 = vpop.f32.mrb[3].mxu0  ;;  %v479_v12 = vadd.f32 %v450_v9, %v262_v62  ;;  %v452_v13 = vpop.f32.mrb[3].mxu1 }
 0x132   : > { %v470_v14 = vadd.f32 %v422_v11, %v266_v63  ;;  %v480_v15 = vadd.f32 %v452_v13, %v266_v63 }
 0x133   : > { %526 = vst [vmem:[%s1035_s6 + $0x10] sm:$0xff] %v469_v10  ;;  %536 = vst [vmem:[%s1035_s6 + $0x60] sm:$0xff] %v479_v12 }
 0x134   : > { %527 = vst [vmem:[%s1035_s6 + $0x18] sm:$0xff] %v470_v14  ;;  %v426_v16 = vpop.f32.mrb[4].mxu0  ;;  %537 = vst [vmem:[%s1035_s6 + $0x68] sm:$0xff] %v480_v15  ;;  %v456_v17 = vpop.f32.mrb[4].mxu1 }
 0x135   : > { %v471_v18 = vadd.f32 %v426_v16, %v262_v62  ;;  %v428_v19 = vpop.f32.mrb[5].mxu0  ;;  %v481_v20 = vadd.f32 %v456_v17, %v262_v62  ;;  %v458_v21 = vpop.f32.mrb[5].mxu1 }
 0x136   : > { %v472_v22 = vadd.f32 %v428_v19, %v266_v63  ;;  %v482_v23 = vadd.f32 %v458_v21, %v266_v63  ;;  %v567_v36 = vld [vmem:[%s1035_s6] sm:$0xff] (%p946_p3)  ;;  %v587_v46 = vld [vmem:[%s1035_s6 + $0x50] sm:$0xff] (%p946_p3) }
 0x137   : > { %528 = vst [vmem:[%s1035_s6 + $0x20] sm:$0xff] %v471_v18  ;;  %538 = vst [vmem:[%s1035_s6 + $0x70] sm:$0xff] %v481_v20  ;;  %v569_v37 = vld [vmem:[%s1035_s6 + $0x8] sm:$0xff] (%p946_p3)  ;;  %v589_v47 = vld [vmem:[%s1035_s6 + $0x58] sm:$0xff] (%p946_p3) }
 0x138   : > { %529 = vst [vmem:[%s1035_s6 + $0x28] sm:$0xff] %v472_v22  ;;  %v432_v24 = vpop.f32.mrb[6].mxu0  ;;  %539 = vst [vmem:[%s1035_s6 + $0x78] sm:$0xff] %v482_v23  ;;  %v462_v25 = vpop.f32.mrb[6].mxu1 }
 0x139   : > { %v473_v26 = vadd.f32 %v432_v24, %v262_v62  ;;  %v434_v27 = vpop.f32.mrb[7].mxu0  ;;  %v483_v28 = vadd.f32 %v462_v25, %v262_v62  ;;  %v464_v29 = vpop.f32.mrb[7].mxu1  ;;  %568 = vst [vmem:[%s1064_s9] sm:$0xff] (%p946_p3), %v567_v36  ;;  %570 = vst [vmem:[%s1064_s9 + $0x8] sm:$0xff] (%p946_p3), %v569_v37 }
 0x13a   : > { %v474_v30 = vadd.f32 %v434_v27, %v266_v63  ;;  %v484_v31 = vadd.f32 %v464_v29, %v266_v63  ;;  %548 = sbr.rel (!%p946_p3) target bundleno = 329 (0x149), region = 44  ;;  %v571_v38 = vld [vmem:[%s1035_s6 + $0x10] sm:$0xff] (%p946_p3)  ;;  %588 = vst [vmem:[%s1064_s9 + $0x1e0] sm:$0xff] (%p946_p3), %v587_v46  ;;  %590 = vst [vmem:[%s1064_s9 + $0x1e8] sm:$0xff] (%p946_p3), %v589_v47  ;;  %v591_v48 = vld [vmem:[%s1035_s6 + $0x60] sm:$0xff] (%p946_p3) }
 0x13b   : > { %530 = vst [vmem:[%s1035_s6 + $0x30] sm:$0xff] %v473_v26  ;;  %540 = vst [vmem:[%s1035_s6 + $0x80] sm:$0xff] %v483_v28  ;;  %v573_v39 = vld [vmem:[%s1035_s6 + $0x18] sm:$0xff] (%p946_p3)  ;;  %v593_v49 = vld [vmem:[%s1035_s6 + $0x68] sm:$0xff] (%p946_p3) }
 0x13c   : > { %531 = vst [vmem:[%s1035_s6 + $0x38] sm:$0xff] %v474_v30  ;;  %v438_v32 = vpop.f32.mrb[8].mxu0  ;;  %541 = vst [vmem:[%s1035_s6 + $0x88] sm:$0xff] %v484_v31 }
 0x13d   : > { %v475_v33 = vadd.f32 %v438_v32, %v262_v62  ;;  %v440_v34 = vpop.f32.mrb[9].mxu0  ;;  %572 = vst [vmem:[%s1064_s9 + $0x60] sm:$0xff] (%p946_p3), %v571_v38  ;;  %574 = vst [vmem:[%s1064_s9 + $0x68] sm:$0xff] (%p946_p3), %v573_v39 }
 0x13e   : > { %v476_v35 = vadd.f32 %v440_v34, %v266_v63  ;;  %v575_v40 = vld [vmem:[%s1035_s6 + $0x20] sm:$0xff] (%p946_p3)  ;;  %v595_v50 = vld [vmem:[%s1035_s6 + $0x70] sm:$0xff] (%p946_p3)  ;;  %592 = vst [vmem:[%s1064_s9 + $0x240] sm:$0xff] (%p946_p3), %v591_v48  ;;  %594 = vst [vmem:[%s1064_s9 + $0x248] sm:$0xff] (%p946_p3), %v593_v49 }
 0x13f   : > { %532 = vst [vmem:[%s1035_s6 + $0x40] sm:$0xff] %v475_v33  ;;  %v577_v41 = vld [vmem:[%s1035_s6 + $0x28] sm:$0xff] (%p946_p3)  ;;  %576 = vst [vmem:[%s1064_s9 + $0xc0] sm:$0xff] (%p946_p3), %v575_v40  ;;  %v597_v51 = vld [vmem:[%s1035_s6 + $0x78] sm:$0xff] (%p946_p3) }
 0x140   : > { %533 = vst [vmem:[%s1035_s6 + $0x48] sm:$0xff] %v476_v35  ;;  %578 = vst [vmem:[%s1064_s9 + $0xc8] sm:$0xff] (%p946_p3), %v577_v41 }
 0x141   : > { %596 = vst [vmem:[%s1064_s9 + $0x2a0] sm:$0xff] %v595_v50  ;;  %598 = vst [vmem:[%s1064_s9 + $0x2a8] sm:$0xff] %v597_v51 }
 0x142   : > { %v579_v42 = vld [vmem:[%s1035_s6 + $0x30] sm:$0xff]  ;;  %v599_v52 = vld [vmem:[%s1035_s6 + $0x80] sm:$0xff] }
 0x143   : > { %v581_v43 = vld [vmem:[%s1035_s6 + $0x38] sm:$0xff]  ;;  %580 = vst [vmem:[%s1064_s9 + $0x120] sm:$0xff] %v579_v42  ;;  %v601_v53 = vld [vmem:[%s1035_s6 + $0x88] sm:$0xff]  ;;  %600 = vst [vmem:[%s1064_s9 + $0x300] sm:$0xff] %v599_v52 }
 0x144   : > { %582 = vst [vmem:[%s1064_s9 + $0x128] sm:$0xff] %v581_v43  ;;  %602 = vst [vmem:[%s1064_s9 + $0x308] sm:$0xff] %v601_v53 }
 0x146   : > { %v583_v44 = vld [vmem:[%s1035_s6 + $0x40] sm:$0xff] }
 0x147   : > { %584 = vst [vmem:[%s1064_s9 + $0x180] sm:$0xff] %v583_v44  ;;  %v585_v45 = vld [vmem:[%s1035_s6 + $0x48] sm:$0xff] }
 0x148   : > { %586 = vst [vmem:[%s1064_s9 + $0x188] sm:$0xff] %v585_v45 }
 0x149 PF: > { %s13_s16 = sadd.s32 1, %s892_s16   ;;  %s1119_s12 = smov %s880_s13 }
 0x14a   : > { %p10_p10 = scmp.ge.s32.totalorder %s13_s16, 8   ;;  %s1120_s13 = smov %s955_s22 }
 0x14b   : > { %s1121_s14 = smov %s888_s15  ;;  %s1122_s15 = smov %s1124_s18 }
 0x14c   :  { %12 = sbr.rel (!%p10_p10) target bundleno = 3 (0x3), region = 99 }

// kernel: _lambda_.40
= control target key start
LH: loop header
LB: loop body
LE: loop exit
PB: predicated region body
PF: predicated region fallthrough
CT: control target
= control target key end

     0   :  { %s777_s12 = smov 0   ;;  %s859_s0 = inlined_call_operand.vmem [shape: f32[16,33,64], index: 0, kind: input, shape index: {}]   ;;  %s860_s1 = inlined_call_operand.vmem [shape: f32[16,33,64], index: 1, kind: input, shape index: {}]   ;;  %s861_s2 = inlined_call_operand.vmem [shape: f32[16,33,64], index: 2, kind: input, shape index: {}]   ;;  %s862_s3 = inlined_call_operand.vmem [shape: f32[16,33,64], index: 3, kind: output, shape index: {}]  }
   0x1 LB: > { %s603_s13 = sadd.s32 4294967295, %s752_s12   ;;  %p607_p0 = scmp.ge.s32.totalorder %s752_s12, 1  ;;  %s752_s12 = sphi %s777_s12, %s13_s12  }
   0x2   : > { %p157_p1 = scmp.lt.s32.totalorder %s752_s12, 17 }
   0x4   : > { %p158_p2 = pnand %p607_p0, %p157_p1 }
   0x5   : > { %p191_p3 = scmp.lt.s32.totalorder (!%p158_p2), %s603_s13, 15  ;;  %v754_v0 = vmov (!%p158_p2), 0.0|0.0   ;;  %vm755_vm0 = vmmov (!%p158_p2), 0   ;;  %v756_v1 = vmov (!%p158_p2), 0.0   ;;  %vm226_vm1 = vcmask (!%p158_p2), 523264  }
   0x6   : > { %161 = sbr.rel (%p158_p2) target bundleno = 642 (0x282), region = 32  ;;  %700 = vmatprep.subr.bf16.mxu0 (!%p158_p2), %v754_v0  ;;  %660 = vmatprep.mubr.msk.f32.mxu0 (!%p158_p2), %vm755_vm0, %v756_v1  ;;  %vm702_vm2 = vmpackc.low (!%p158_p2), %vm226_vm1, %vm226_vm1  ;;  %vm352_vm3 = vcmask (!%p158_p2), 269312   ;;  %vm365_vm4 = vcmask (!%p158_p2), 262144   ;;  %vm414_vm5 = vcmask (!%p158_p2), 1040384   ;;  %vm522_vm6 = vcmask (!%p158_p2), 516096  }
   0x7   : > { %708 = vmatprep.subr.bf16.mxu1 (!%p158_p2), %v754_v0  ;;  %685 = vmatprep.mubr.msk.f32.mxu1 (!%p158_p2), %vm755_vm0, %v756_v1 }
   0xd   : > { %s864_s13 = smov (!%p191_p3, %s603_s13), 15 }
   0xe   : > { %s791_s14 = smul.u32 40, %s864_s13 }
  0x10   : > { %s200_s17 = scalar_lea.vmem %s860_s1, %s791_s14  ;;  %s195_s20 = scalar_lea.vmem %s859_s0, %s791_s14 }
  0x11   : > { %v216_v2 = vld [vmem:[%s200_s17] sm:$0xff]  ;;  %v217_v3 = vld [vmem:[%s200_s17 + $0x8] sm:$0xff]  ;;  %v218_v5 = vld [vmem:[%s200_s17 + $0x10] sm:$0xff]  ;;  %s205_s23 = scalar_lea.vmem %s861_s2, %s791_s14  ;;  %s210_s26 = scalar_lea.vmem %s862_s3, %s791_s14 }
  0x12   : > { %v701_v4 = vpack.c.bf16 %v217_v3, %v216_v2  ;;  %v219_v6 = vld [vmem:[%s200_s17 + $0x18] sm:$0xff]  ;;  %v220_v8 = vld [vmem:[%s200_s17 + $0x20] sm:$0x1]  ;;  %v212_v10 = vld [vmem:[%s195_s20 + $0x8] sm:$0xff] }
  0x13   : > { %v705_v7 = vpack.c.bf16 %v219_v6, %v218_v5  ;;  %v211_v9 = vld [vmem:[%s195_s20] sm:$0xff]  ;;  %v213_v11 = vld [vmem:[%s195_s20 + $0x10] sm:$0xff]  ;;  %v214_v12 = vld [vmem:[%s195_s20 + $0x18] sm:$0xff] }
  0x14   : > { %703 = vmatpush3.bf16.xpose.msk.msra.mxu0 %vm702_vm2, %v701_v4  ;;  %v215_v13 = vld [vmem:[%s195_s20 + $0x20] sm:$0x1]  ;;  %v222_v35 = vld [vmem:[%s205_s23 + $0x8] sm:$0xff]  ;;  %v223_v37 = vld [vmem:[%s205_s23 + $0x10] sm:$0xff] }
  0x15   : > { %704 = vmatprep.subr.bf16.mxu0 %v754_v0  ;;  %v221_v34 = vld [vmem:[%s205_s23] sm:$0xff]  ;;  %v224_v38 = vld [vmem:[%s205_s23 + $0x18] sm:$0xff] }
  0x16   : > { %v709_v36 = vpack.c.bf16 %v222_v35, %v221_v34  ;;  %v712_v39 = vpack.c.bf16 %v224_v38, %v223_v37  ;;  %v225_v40 = vld [vmem:[%s205_s23 + $0x20] sm:$0x1] }
  0x18   : > { %710 = vmatpush3.bf16.msra.mxu1 %v709_v36 }
  0x19   : > { %711 = vmatprep.subr.bf16.mxu1 %v754_v0 }
  0x1c   : > { %707 = vmatpush3.bf16.xpose.msk.msra.mxu0 %vm702_vm2, %v705_v7  ;;  %713 = vmatpush3.bf16.msra.mxu1 %v712_v39 }
  0x1d   : > { %658 = vmatprep.subr.mxu0 %v756_v1  ;;  %683 = vmatprep.subr.mxu1 %v756_v1 }
  0x20   : > { %684 = vmatpush3.msk.msra.mxu1 %vm414_vm5, %v225_v40 }
  0x24   : > { %659 = vmatpush3.xpose.msk.msra.mxu0 %vm226_vm1, %v220_v8 }
  0x27   : > { %661 = vmatmul.mubr.msk.f32.vlgmr.msra.gmra.mrb[0].mxu0 %vm226_vm1, %v211_v9 }
  0x28   : > { %663 = vmatprep.mubr.msk.f32.mxu0 %vm755_vm0, %v756_v1 }
  0x2b   : > { %664 = vmatmul.mubr.msk.f32.gmra.mrb[2].mxu0 %vm226_vm1, %v212_v10 }
  0x2c   : > { %666 = vmatprep.mubr.msk.f32.mxu0 %vm755_vm0, %v756_v1 }
  0x2f   : > { %667 = vmatmul.mubr.msk.f32.gmra.mrb[4].mxu0 %vm226_vm1, %v213_v11 }
  0x30   : > { %669 = vmatprep.mubr.msk.f32.mxu0 %vm755_vm0, %v756_v1 }
  0x33   : > { %670 = vmatmul.mubr.msk.f32.gmra.mrb[6].mxu0 %vm226_vm1, %v214_v12 }
  0x34   : > { %672 = vmatprep.mubr.msk.f32.mxu0 %vm755_vm0, %v756_v1 }
  0x37   : > { %673 = vmatmul.mubr.msk.f32.gmra.mrb[8].mxu0 %vm226_vm1, %v215_v13 }
  0xfa   : > { %v323_v14 = vpop.f32.mrb[0].mxu0 }
  0xfb   : > { %v347_v15 = vmul.f32 0.125, %v323_v14  ;;  %v662_v16 = vpop.f32.mrb[1].mxu0 }
  0xfd   : > { %v353_v17 = vsel %vm352_vm3, %v347_v15, -inf }
  0xfe   : > { %354 = vmax.xlane.f32.xlu0 %v353_v17  ;;  %v328_v18 = vpop.f32.mrb[2].mxu0 }
  0xff   : > { %v348_v19 = vmul.f32 0.125, %v328_v18  ;;  %v665_v20 = vpop.f32.mrb[3].mxu0 }
 0x101   : > { %v356_v21 = vsel %vm352_vm3, %v348_v19, -inf }
 0x102   : > { %357 = vmax.xlane.f32.xlu0 %v356_v21  ;;  %v333_v22 = vpop.f32.mrb[4].mxu0 }
 0x103   : > { %v349_v23 = vmul.f32 0.125, %v333_v22  ;;  %v668_v24 = vpop.f32.mrb[5].mxu0 }
 0x105   : > { %v359_v25 = vsel %vm352_vm3, %v349_v23, -inf }
 0x106   : > { %360 = vmax.xlane.f32.xlu1 %v359_v25  ;;  %v338_v26 = vpop.f32.mrb[6].mxu0 }
 0x107   : > { %v350_v27 = vmul.f32 0.125, %v338_v26  ;;  %v671_v28 = vpop.f32.mrb[7].mxu0 }
 0x109   : > { %v362_v29 = vsel %vm352_vm3, %v350_v27, -inf }
 0x10a   : > { %363 = vmax.xlane.f32.xlu1 %v362_v29  ;;  %v343_v30 = vpop.f32.mrb[8].mxu0 }
 0x10b   : > { %v351_v31 = vmul.f32 0.125, %v343_v30  ;;  %v674_v32 = vpop.f32.mrb[9].mxu0 }
 0x10d   : > { %v366_v33 = vsel %vm365_vm4, %v351_v31, -inf }
 0x10e   : > { %367 = vmax.xlane.f32.xlu0 %v366_v33 }
 0x18b   : > { %v355_v41 = vpop.xlane.xlu0 %354 }
 0x18c   : > { %v369_v42 = vsub.f32 %v347_v15, %v355_v41 }
 0x18e   : > { %v374_v43 = vmul.f32 1.442695, %v369_v42 }
 0x18f   : > { %v358_v44 = vpop.xlane.xlu0 %357 }
 0x190   : > { %726 = vpow2.f32 %v374_v43  ;;  %v370_v45 = vsub.f32 %v348_v19, %v358_v44 }
 0x192   : > { %v376_v46 = vmul.f32 1.442695, %v370_v45 }
 0x193   : > { %v361_v47 = vpop.xlane.xlu1 %360 }
 0x194   : > { %728 = vpow2.f32 %v376_v46  ;;  %v371_v48 = vsub.f32 %v349_v23, %v361_v47 }
 0x196   : > { %v378_v49 = vmul.f32 1.442695, %v371_v48 }
 0x197   : > { %v364_v50 = vpop.xlane.xlu1 %363 }
 0x198   : > { %730 = vpow2.f32 %v378_v49  ;;  %v372_v51 = vsub.f32 %v350_v27, %v364_v50 }
 0x19a   : > { %v727_v52 = vpop.eup %726  ;;  %v380_v53 = vmul.f32 1.442695, %v372_v51 }
 0x19b   : > { %686 = vmatmul.mubr.msk.f32.vlgmr.msra.gmra.mrb[0].mxu1 %vm352_vm3, %v727_v52  ;;  %v368_v54 = vpop.xlane.xlu0 %367  ;;  %v384_v55 = vsel %vm352_vm3, %v727_v52, 0.0 }
 0x19c   : > { %732 = vpow2.f32 %v380_v53  ;;  %v373_v56 = vsub.f32 %v351_v31, %v368_v54  ;;  %385 = vadd.xlane.f32.xlu1 %v384_v55  ;;  %688 = vmatprep.mubr.msk.f32.mxu1 %vm755_vm0, %v756_v1 }
 0x19e   : > { %v729_v57 = vpop.eup %728  ;;  %v382_v58 = vmul.f32 1.442695, %v373_v56 }
 0x19f   : > { %689 = vmatmul.mubr.msk.f32.gmra.mrb[2].mxu1 %vm352_vm3, %v729_v57  ;;  %v387_v59 = vsel %vm352_vm3, %v729_v57, 0.0 }
 0x1a0   : > { %734 = vpow2.f32 %v382_v58  ;;  %388 = vadd.xlane.f32.xlu0 %v387_v59  ;;  %691 = vmatprep.mubr.msk.f32.mxu1 %vm755_vm0, %v756_v1 }
 0x1a2   : > { %v731_v60 = vpop.eup %730 }
 0x1a3   : > { %692 = vmatmul.mubr.msk.f32.gmra.mrb[4].mxu1 %vm352_vm3, %v731_v60  ;;  %v390_v61 = vsel %vm352_vm3, %v731_v60, 0.0 }
 0x1a4   : > { %391 = vadd.xlane.f32.xlu1 %v390_v61  ;;  %694 = vmatprep.mubr.msk.f32.mxu1 %vm755_vm0, %v756_v1 }
 0x1a6   : > { %v733_v62 = vpop.eup %732 }
 0x1a7   : > { %695 = vmatmul.mubr.msk.f32.gmra.mrb[6].mxu1 %vm352_vm3, %v733_v62  ;;  %v393_v63 = vsel %vm352_vm3, %v733_v62, 0.0 }
 0x1a8   : > { %394 = vadd.xlane.f32.xlu0 %v393_v63  ;;  %697 = vmatprep.mubr.msk.f32.mxu1 %vm755_vm0, %v756_v1 }
 0x1aa   : > { %v735_v0 = vpop.eup %734 }
 0x1ab   : > { %698 = vmatmul.mubr.msk.f32.gmra.mrb[8].mxu1 %vm352_vm3, %v735_v0  ;;  %v396_v2 = vsel %vm365_vm4, %v735_v0, 0.0 }
 0x1ac   : > { %397 = vadd.xlane.f32.xlu1 %v396_v2 }
 0x229   : > { %v386_v3 = vpop.xlane.xlu1 %385 }
 0x22a   : > { %736 = vrcp.f32 %v386_v3 }
 0x22d   : > { %v389_v4 = vpop.xlane.xlu0 %388 }
 0x22e   : > { %738 = vrcp.f32 %v389_v4 }
 0x231   : > { %v392_v5 = vpop.xlane.xlu1 %391 }
 0x232   : > { %740 = vrcp.f32 %v392_v5 }
 0x234   : > { %v737_v7 = vpop.eup %736 }
 0x235   : > { %v395_v6 = vpop.xlane.xlu0 %394 }
 0x236   : > { %742 = vrcp.f32 %v395_v6 }
 0x238   : > { %v739_v11 = vpop.eup %738 }
 0x239   : > { %v398_v10 = vpop.xlane.xlu1 %397 }
 0x23a   : > { %744 = vrcp.f32 %v398_v10 }
 0x23c   : > { %v741_v15 = vpop.eup %740 }
 0x240   : > { %v743_v19 = vpop.eup %742 }
 0x244   : > { %v745_v23 = vpop.eup %744 }
 0x26e   : > { %v484_v8 = vpop.f32.mrb[0].mxu1 }
 0x26f   : > { %v509_v1 = vmul.f32 %v737_v7, %v484_v8  ;;  %v687_v9 = vpop.f32.mrb[1].mxu1 }
 0x271   : > { %518 = vst.msk [vmem:[%s210_s26] sm:$0xff] %vm226_vm1, %v509_v1 }
 0x272   : > { %v489_v12 = vpop.f32.mrb[2].mxu1 }
 0x273   : > { %v511_v13 = vmul.f32 %v739_v11, %v489_v12  ;;  %v690_v14 = vpop.f32.mrb[3].mxu1 }
 0x275   : > { %519 = vst.msk [vmem:[%s210_s26 + $0x8] sm:$0xff] %vm226_vm1, %v511_v13 }
 0x276   : > { %v494_v16 = vpop.f32.mrb[4].mxu1 }
 0x277   : > { %v513_v17 = vmul.f32 %v741_v15, %v494_v16  ;;  %v693_v18 = vpop.f32.mrb[5].mxu1 }
 0x279   : > { %520 = vst.msk [vmem:[%s210_s26 + $0x10] sm:$0xff] %vm226_vm1, %v513_v17 }
 0x27a   : > { %v499_v20 = vpop.f32.mrb[6].mxu1 }
 0x27b   : > { %v515_v21 = vmul.f32 %v743_v19, %v499_v20  ;;  %v696_v22 = vpop.f32.mrb[7].mxu1 }
 0x27d   : > { %521 = vst.msk [vmem:[%s210_s26 + $0x18] sm:$0xff] %vm226_vm1, %v515_v21 }
 0x27e   : > { %v504_v24 = vpop.f32.mrb[8].mxu1 }
 0x27f   : > { %v517_v25 = vmul.f32 %v745_v23, %v504_v24  ;;  %v699_v26 = vpop.f32.mrb[9].mxu1 }
 0x281   : > { %523 = vst.msk [vmem:[%s210_s26 + $0x20] sm:$0x1] %vm522_vm6, %v517_v25 }
 0x282 PF: > { %s13_s12 = sadd.s32 1, %s752_s12  }
 0x283   : > { %p10_p4 = scmp.ge.s32.totalorder %s13_s12, 18  }
 0x285   :  { %12 = sbr.rel (!%p10_p4) target bundleno = 1 (0x1), region = 68 }

// kernel: _lambda_.41
= control target key start
LH: loop header
LB: loop body
LE: loop exit
PB: predicated region body
PF: predicated region fallthrough
CT: control target
= control target key end

     0   :  { %s1002_s15 = smov 0   ;;  %s1004_s16 = smov 0   ;;  %s1277_s0 = inlined_call_operand.vmem [shape: f32[72,512], index: 0, kind: input, shape index: {}]   ;;  %s1278_s1 = inlined_call_operand.vmem [shape: f32[128,512], index: 1, kind: input, shape index: {}]   ;;  %s1279_s2 = inlined_call_operand.vmem [shape: f32[1,128], index: 2, kind: input, shape index: {}]   ;;  %s1280_s3 = inlined_call_operand.vmem [shape: f32[72,128], index: 3, kind: input, shape index: {}]   ;;  %s1281_s4 = inlined_call_operand.vmem [shape: f32[72,128], index: 4, kind: output, shape index: {}]  }
   0x1   :  { %s1006_s17 = smov 0   ;;  %s1008_s18 = smov 0  }
   0x2   :  { %s1010_s19 = smov 0  }
   0x3 LB: > { %s26_s20 = sadd.s32 1, %s971_s18  ;;  %p49_p1 = scmp.ne.s32.totalorder %s963_s16, %s959_s15  ;;  %s975_s19 = sphi %s1010_s19, %s14_s19   ;;  %s971_s18 = sphi %s1008_s18, %s1286_s18   ;;  %s967_s17 = sphi %s1006_s17, %s1285_s17   ;;  %s963_s16 = sphi %s1004_s16, %s1284_s16   ;;  %s959_s15 = sphi %s1002_s15, %s1283_s15  }
   0x4   : > { %p27_p0 = scmp.ge.s32.totalorder %s26_s20, 2  ;;  %p50_p2 = scmp.eq.s32.totalorder %s975_s19, 0 }
   0x5   : > { %s42_s23 = sadd.s32 1, %s963_s16  ;;  %p830_p5 = scmp.ge.s32.totalorder %s975_s19, 2 }
   0x6   : > { %s1288_s20 = smov (%p27_p0, %s26_s20), 0  ;;  %p1033_p3 = por %p50_p2, %p49_p1 }
   0x7   : > { %s38_s22 = ssub.s32 %s971_s18, %s1288_s20  ;;  %203 = sbr.rel (%p830_p5) target bundleno = 47 (0x2f), region = 24 }
   0x8   : > { %p40_p4 = scmp.eq.s32.totalorder %s38_s22, 0 }
   0xa   : > { %s1041_s24 = scalar_select %p40_p4, %s963_s16, %s42_s23  }
   0xe   : > { %206 = sbr.rel (!%p1033_p3) target bundleno = 27 (0x1b), region = 28  ;;  %s208_s25 = sand.u32 (%p1033_p3), 1, %s963_s16  }
   0xf   : > { %s845_s26 = sshll.u32 (%p1033_p3), %s971_s18, 4  ;;  %s895_s27 = smul.u32 (%p1033_p3), 144, %s208_s25 }
  0x10   : > { %s1051_s30 = scalar_lea.vmem (%p1033_p3), %s1277_s0, %s845_s26 }
  0x11   : > { %v229_v0 = vld [vmem:[%s1051_s30] sm:$0xff] (%p1033_p3)  ;;  %v231_v1 = vld [vmem:[%s1051_s30 + $0x8] sm:$0xff] (%p1033_p3)  ;;  %s210_s5 = scalar_lea.vmem (%p1033_p3), [#allocation3], %s895_s27 }
  0x12   : > { %v233_v2 = vld [vmem:[%s1051_s30 + $0x20] sm:$0xff] (%p1033_p3)  ;;  %v235_v3 = vld [vmem:[%s1051_s30 + $0x28] sm:$0xff] (%p1033_p3)  ;;  %230 = vst [vmem:[%s210_s5] sm:$0xff] (%p1033_p3), %v229_v0  ;;  %232 = vst [vmem:[%s210_s5 + $0x8] sm:$0xff] (%p1033_p3), %v231_v1 }
  0x13   : > { %v237_v4 = vld [vmem:[%s1051_s30 + $0x40] sm:$0xff] (%p1033_p3)  ;;  %v239_v5 = vld [vmem:[%s1051_s30 + $0x48] sm:$0xff] (%p1033_p3)  ;;  %234 = vst [vmem:[%s210_s5 + $0x10] sm:$0xff] (%p1033_p3), %v233_v2  ;;  %236 = vst [vmem:[%s210_s5 + $0x18] sm:$0xff] (%p1033_p3), %v235_v3 }
  0x14   : > { %238 = vst [vmem:[%s210_s5 + $0x20] sm:$0xff] (%p1033_p3), %v237_v4  ;;  %240 = vst [vmem:[%s210_s5 + $0x28] sm:$0xff] (%p1033_p3), %v239_v5  ;;  %v241_v6 = vld [vmem:[%s1051_s30 + $0x60] sm:$0xff] (%p1033_p3)  ;;  %v243_v7 = vld [vmem:[%s1051_s30 + $0x68] sm:$0xff] (%p1033_p3) }
  0x15   : > { %v245_v8 = vld [vmem:[%s1051_s30 + $0x80] sm:$0xff]  ;;  %242 = vst [vmem:[%s210_s5 + $0x30] sm:$0xff] %v241_v6  ;;  %244 = vst [vmem:[%s210_s5 + $0x38] sm:$0xff] %v243_v7  ;;  %v247_v9 = vld [vmem:[%s1051_s30 + $0x88] sm:$0xff] }
  0x16   : > { %246 = vst [vmem:[%s210_s5 + $0x40] sm:$0xff] %v245_v8  ;;  %v249_v10 = vld [vmem:[%s1051_s30 + $0xa0] sm:$0xff]  ;;  %v251_v11 = vld [vmem:[%s1051_s30 + $0xa8] sm:$0xff]  ;;  %248 = vst [vmem:[%s210_s5 + $0x48] sm:$0xff] %v247_v9 }
  0x17   : > { %250 = vst [vmem:[%s210_s5 + $0x50] sm:$0xff] %v249_v10  ;;  %252 = vst [vmem:[%s210_s5 + $0x58] sm:$0xff] %v251_v11  ;;  %v253_v12 = vld [vmem:[%s1051_s30 + $0xc0] sm:$0xff]  ;;  %v255_v13 = vld [vmem:[%s1051_s30 + $0xc8] sm:$0xff] }
  0x18   : > { %v257_v14 = vld [vmem:[%s1051_s30 + $0xe0] sm:$0xff]  ;;  %254 = vst [vmem:[%s210_s5 + $0x60] sm:$0xff] %v253_v12  ;;  %256 = vst [vmem:[%s210_s5 + $0x68] sm:$0xff] %v255_v13  ;;  %v259_v15 = vld [vmem:[%s1051_s30 + $0xe8] sm:$0xff] }
  0x19   : > { %258 = vst [vmem:[%s210_s5 + $0x70] sm:$0xff] %v257_v14  ;;  %v261_v16 = vld [vmem:[%s1051_s30 + $0x100] sm:$0xff]  ;;  %v263_v17 = vld [vmem:[%s1051_s30 + $0x108] sm:$0xff]  ;;  %260 = vst [vmem:[%s210_s5 + $0x78] sm:$0xff] %v259_v15 }
  0x1a   : > { %262 = vst [vmem:[%s210_s5 + $0x80] sm:$0xff] %v261_v16  ;;  %264 = vst [vmem:[%s210_s5 + $0x88] sm:$0xff] %v263_v17 }
  0x1b PF: > { %270 = sbr.rel (!%p1033_p3) target bundleno = 47 (0x2f), region = 51  ;;  %s272_s6 = sand.u32 (%p1033_p3), 1, %s963_s16  }
  0x1c   : > { %s846_s7 = sshll.u32 (%p1033_p3), %s971_s18, 4  ;;  %s833_s8 = sshll.u32 (%p1033_p3), %s272_s6, 8 }
  0x1d   : > { %s1078_s11 = scalar_lea.vmem (%p1033_p3), %s1278_s1, %s846_s7  ;;  %s1083_s12 = scalar_lea.vmem (%p1033_p3), [#allocation4], %s833_s8 }
  0x1e   : > { %v293_v18 = vld [vmem:[%s1078_s11] sm:$0xff] (%p1033_p3)  ;;  %v295_v19 = vld [vmem:[%s1078_s11 + $0x8] sm:$0xff] (%p1033_p3) }
  0x1f   : > { %v297_v20 = vld [vmem:[%s1078_s11 + $0x20] sm:$0xff] (%p1033_p3)  ;;  %294 = vst [vmem:[%s1083_s12] sm:$0xff] (%p1033_p3), %v293_v18  ;;  %296 = vst [vmem:[%s1083_s12 + $0x8] sm:$0xff] (%p1033_p3), %v295_v19  ;;  %v299_v21 = vld [vmem:[%s1078_s11 + $0x28] sm:$0xff] (%p1033_p3) }
  0x20   : > { %298 = vst [vmem:[%s1083_s12 + $0x10] sm:$0xff] (%p1033_p3), %v297_v20  ;;  %v301_v22 = vld [vmem:[%s1078_s11 + $0x40] sm:$0xff] (%p1033_p3)  ;;  %v303_v23 = vld [vmem:[%s1078_s11 + $0x48] sm:$0xff] (%p1033_p3)  ;;  %300 = vst [vmem:[%s1083_s12 + $0x18] sm:$0xff] (%p1033_p3), %v299_v21 }
  0x21   : > { %302 = vst [vmem:[%s1083_s12 + $0x20] sm:$0xff] (%p1033_p3), %v301_v22  ;;  %304 = vst [vmem:[%s1083_s12 + $0x28] sm:$0xff] (%p1033_p3), %v303_v23  ;;  %v305_v24 = vld [vmem:[%s1078_s11 + $0x60] sm:$0xff] (%p1033_p3)  ;;  %v307_v25 = vld [vmem:[%s1078_s11 + $0x68] sm:$0xff] (%p1033_p3) }
  0x22   : > { %v309_v26 = vld [vmem:[%s1078_s11 + $0x80] sm:$0xff]  ;;  %306 = vst [vmem:[%s1083_s12 + $0x30] sm:$0xff] %v305_v24  ;;  %308 = vst [vmem:[%s1083_s12 + $0x38] sm:$0xff] %v307_v25  ;;  %v311_v27 = vld [vmem:[%s1078_s11 + $0x88] sm:$0xff] }
  0x23   : > { %310 = vst [vmem:[%s1083_s12 + $0x40] sm:$0xff] %v309_v26  ;;  %v313_v28 = vld [vmem:[%s1078_s11 + $0xa0] sm:$0xff]  ;;  %v315_v29 = vld [vmem:[%s1078_s11 + $0xa8] sm:$0xff]  ;;  %312 = vst [vmem:[%s1083_s12 + $0x48] sm:$0xff] %v311_v27 }
  0x24   : > { %314 = vst [vmem:[%s1083_s12 + $0x50] sm:$0xff] %v313_v28  ;;  %316 = vst [vmem:[%s1083_s12 + $0x58] sm:$0xff] %v315_v29  ;;  %v317_v30 = vld [vmem:[%s1078_s11 + $0xc0] sm:$0xff]  ;;  %v319_v31 = vld [vmem:[%s1078_s11 + $0xc8] sm:$0xff] }
  0x25   : > { %v321_v32 = vld [vmem:[%s1078_s11 + $0xe0] sm:$0xff]  ;;  %318 = vst [vmem:[%s1083_s12 + $0x60] sm:$0xff] %v317_v30  ;;  %320 = vst [vmem:[%s1083_s12 + $0x68] sm:$0xff] %v319_v31  ;;  %v323_v33 = vld [vmem:[%s1078_s11 + $0xe8] sm:$0xff] }
  0x26   : > { %322 = vst [vmem:[%s1083_s12 + $0x70] sm:$0xff] %v321_v32  ;;  %v325_v34 = vld [vmem:[%s1078_s11 + $0x100] sm:$0xff]  ;;  %v327_v35 = vld [vmem:[%s1078_s11 + $0x108] sm:$0xff]  ;;  %324 = vst [vmem:[%s1083_s12 + $0x78] sm:$0xff] %v323_v33 }
  0x27   : > { %326 = vst [vmem:[%s1083_s12 + $0x80] sm:$0xff] %v325_v34  ;;  %328 = vst [vmem:[%s1083_s12 + $0x88] sm:$0xff] %v327_v35  ;;  %v329_v36 = vld [vmem:[%s1078_s11 + $0x120] sm:$0xff]  ;;  %v331_v37 = vld [vmem:[%s1078_s11 + $0x128] sm:$0xff] }
  0x28   : > { %v333_v38 = vld [vmem:[%s1078_s11 + $0x140] sm:$0xff]  ;;  %330 = vst [vmem:[%s1083_s12 + $0x90] sm:$0xff] %v329_v36  ;;  %332 = vst [vmem:[%s1083_s12 + $0x98] sm:$0xff] %v331_v37  ;;  %v335_v39 = vld [vmem:[%s1078_s11 + $0x148] sm:$0xff] }
  0x29   : > { %334 = vst [vmem:[%s1083_s12 + $0xa0] sm:$0xff] %v333_v38  ;;  %v337_v40 = vld [vmem:[%s1078_s11 + $0x160] sm:$0xff]  ;;  %v339_v41 = vld [vmem:[%s1078_s11 + $0x168] sm:$0xff]  ;;  %336 = vst [vmem:[%s1083_s12 + $0xa8] sm:$0xff] %v335_v39 }
  0x2a   : > { %338 = vst [vmem:[%s1083_s12 + $0xb0] sm:$0xff] %v337_v40  ;;  %340 = vst [vmem:[%s1083_s12 + $0xb8] sm:$0xff] %v339_v41  ;;  %v341_v42 = vld [vmem:[%s1078_s11 + $0x180] sm:$0xff]  ;;  %v343_v43 = vld [vmem:[%s1078_s11 + $0x188] sm:$0xff] }
  0x2b   : > { %v345_v44 = vld [vmem:[%s1078_s11 + $0x1a0] sm:$0xff]  ;;  %342 = vst [vmem:[%s1083_s12 + $0xc0] sm:$0xff] %v341_v42  ;;  %344 = vst [vmem:[%s1083_s12 + $0xc8] sm:$0xff] %v343_v43  ;;  %v347_v45 = vld [vmem:[%s1078_s11 + $0x1a8] sm:$0xff] }
  0x2c   : > { %346 = vst [vmem:[%s1083_s12 + $0xd0] sm:$0xff] %v345_v44  ;;  %v349_v46 = vld [vmem:[%s1078_s11 + $0x1c0] sm:$0xff]  ;;  %v351_v47 = vld [vmem:[%s1078_s11 + $0x1c8] sm:$0xff]  ;;  %348 = vst [vmem:[%s1083_s12 + $0xd8] sm:$0xff] %v347_v45 }
  0x2d   : > { %350 = vst [vmem:[%s1083_s12 + $0xe0] sm:$0xff] %v349_v46  ;;  %352 = vst [vmem:[%s1083_s12 + $0xe8] sm:$0xff] %v351_v47  ;;  %v353_v48 = vld [vmem:[%s1078_s11 + $0x1e0] sm:$0xff]  ;;  %v355_v49 = vld [vmem:[%s1078_s11 + $0x1e8] sm:$0xff] }
  0x2e   : > { %354 = vst [vmem:[%s1083_s12 + $0xf0] sm:$0xff] %v353_v48  ;;  %356 = vst [vmem:[%s1083_s12 + $0xf8] sm:$0xff] %v355_v49 }
  0x2f PF: > { %p836_p6 = scmp.ge.s32.totalorder %s975_s19, 1  ;;  %p361_p7 = scmp.lt.s32.totalorder %s975_s19, 3 }
  0x31   : > { %p362_p8 = pnand %p836_p6, %p361_p7 }
  0x32   : > { %s368_s13 = sand.u32 (!%p362_p8), 1, %s959_s15   ;;  %p838_p9 = scmp.ne.s32.totalorder (!%p362_p8), %s967_s17, 0 }
  0x33   : > { %365 = sbr.rel (%p362_p8) target bundleno = 372 (0x174), region = 74  ;;  %s837_s21 = sshll.u32 (!%p362_p8), %s368_s13, 8 }
  0x34   : > { %s896_s14 = smul.u32 (!%p362_p8), 144, %s368_s13  ;;  %s1151_s23 = scalar_lea.vmem (!%p362_p8), [#allocation4], %s837_s21 }
  0x36   : > { %s1149_s22 = scalar_lea.vmem (!%p362_p8), [#allocation3], %s896_s14 }
  0x3a   : > { %446 = sbr.rel (%p838_p9) target bundleno = 66 (0x42), region = 86  ;;  %v839_v50 = vld [vmem:[%s1279_s2] ss:$0 sm:$0xff] (!%p838_p9)  ;;  %v456_v52 = vld [vmem:[%s1280_s3 + $0x8] sm:$0xff] (!%p838_p9)  ;;  %v457_v55 = vld [vmem:[%s1280_s3 + $0x10] sm:$0xff] (!%p838_p9) }
  0x3b   : > { %v455_v51 = vld [vmem:[%s1280_s3] sm:$0xff] (!%p838_p9)  ;;  %v465_v54 = vadd.f32 (!%p838_p9), %v839_v50, %v456_v52  ;;  %v458_v56 = vld [vmem:[%s1280_s3 + $0x18] sm:$0xff] (!%p838_p9)  ;;  %v466_v58 = vadd.f32 (!%p838_p9), %v839_v50, %v457_v55  ;;  %v460_v61 = vld [vmem:[%s1280_s3 + $0x28] sm:$0xff] (!%p838_p9) }
  0x3c   : > { %v464_v53 = vadd.f32 (!%p838_p9), %v839_v50, %v455_v51  ;;  %v459_v57 = vld [vmem:[%s1280_s3 + $0x20] sm:$0xff] (!%p838_p9)  ;;  %v467_v59 = vadd.f32 (!%p838_p9), %v839_v50, %v458_v56  ;;  %v461_v62 = vld [vmem:[%s1280_s3 + $0x30] sm:$0xff] (!%p838_p9)  ;;  %v462_v63 = vld [vmem:[%s1280_s3 + $0x38] sm:$0xff] (!%p838_p9)  ;;  %v469_v0 = vadd.f32 (!%p838_p9), %v839_v50, %v460_v61 }
  0x3d   : > { %v468_v60 = vadd.f32 (!%p838_p9), %v839_v50, %v459_v57  ;;  %474 = vst [vmem:[#allocation2 + $0x8] sm:$0xff] (!%p838_p9), %v465_v54  ;;  %v470_v1 = vadd.f32 (!%p838_p9), %v839_v50, %v461_v62  ;;  %v471_v2 = vadd.f32 (!%p838_p9), %v839_v50, %v462_v63  ;;  %v463_v3 = vld [vmem:[%s1280_s3 + $0x40] sm:$0xff] (!%p838_p9)  ;;  %475 = vst [vmem:[#allocation2 + $0x10] sm:$0xff] (!%p838_p9), %v466_v58 }
  0x3e   : > { %473 = vst [vmem:[#allocation2] sm:$0xff] (!%p838_p9), %v464_v53  ;;  %476 = vst [vmem:[#allocation2 + $0x18] sm:$0xff] (!%p838_p9), %v467_v59  ;;  %v472_v4 = vadd.f32 (!%p838_p9), %v839_v50, %v463_v3 }
  0x3f   : > { %477 = vst [vmem:[#allocation2 + $0x20] sm:$0xff] (!%p838_p9), %v468_v60  ;;  %478 = vst [vmem:[#allocation2 + $0x28] sm:$0xff] (!%p838_p9), %v469_v0 }
  0x40   : > { %479 = vst [vmem:[#allocation2 + $0x30] sm:$0xff] (!%p838_p9), %v470_v1  ;;  %480 = vst [vmem:[#allocation2 + $0x38] sm:$0xff] (!%p838_p9), %v471_v2 }
  0x41   : > { %481 = vst [vmem:[#allocation2 + $0x40] sm:$0xff] %v472_v4 }
  0x42 PF: > { %v510_v5 = vld [vmem:[%s1151_s23 + $0x8] sm:$0xff]  ;;  %v512_v6 = vld [vmem:[%s1151_s23 + $0x18] sm:$0xff]  ;;  %v509_v7 = vld [vmem:[%s1151_s23] sm:$0xff]  ;;  %p840_p10 = scmp.ne.s32.totalorder %s967_s17, 1 }
  0x43   : > { %v847_v8 = vpack.c.bf16 %v512_v6, %v510_v5  ;;  %v511_v9 = vld [vmem:[%s1151_s23 + $0x10] sm:$0xff]  ;;  %v514_v10 = vld [vmem:[%s1151_s23 + $0x28] sm:$0xff]  ;;  %v516_v11 = vld [vmem:[%s1151_s23 + $0x38] sm:$0xff] }
  0x44   : > { %v849_v12 = vpack.c.bf16 %v511_v9, %v509_v7  ;;  %v851_v13 = vpack.c.bf16 %v516_v11, %v514_v10  ;;  %v513_v14 = vld [vmem:[%s1151_s23 + $0x20] sm:$0xff]  ;;  %v515_v15 = vld [vmem:[%s1151_s23 + $0x30] sm:$0xff]  ;;  %v518_v16 = vld [vmem:[%s1151_s23 + $0x48] sm:$0xff] }
  0x45   : > { %848 = vmatprep.subr.bf16.mxu0 %v847_v8  ;;  %879 = vmatprep.subr.bf16.mxu1 %v847_v8  ;;  %v520_v17 = vld [vmem:[%s1151_s23 + $0x58] sm:$0xff]  ;;  %v853_v18 = vpack.c.bf16 %v515_v15, %v513_v14  ;;  %v517_v22 = vld [vmem:[%s1151_s23 + $0x40] sm:$0xff]  ;;  %v519_v23 = vld [vmem:[%s1151_s23 + $0x50] sm:$0xff] }
  0x46   : > { %850 = vmatpush1.bf16.xpose.msra.mxu0 %v849_v12  ;;  %887 = vmatpush1.bf16.xpose.msra.mxu1 %v849_v12  ;;  %v855_v19 = vpack.c.bf16 %v520_v17, %v518_v16  ;;  %v492_v20 = vld [vmem:[%s1149_s22 + $0x8] sm:$0xff]  ;;  %v502_v21 = vld [vmem:[%s1149_s22 + $0x58] sm:$0xff]  ;;  %v857_v26 = vpack.c.bf16 %v519_v23, %v517_v22  ;;  %v521_v28 = vld [vmem:[%s1151_s23 + $0x60] sm:$0xff] }
  0x47   : > { %852 = vmatprep.subr.bf16.mxu0 %v851_v13  ;;  %880 = vmatprep.subr.bf16.mxu1 %v851_v13  ;;  %v522_v24 = vld [vmem:[%s1151_s23 + $0x68] sm:$0xff]  ;;  %v524_v25 = vld [vmem:[%s1151_s23 + $0x78] sm:$0xff]  ;;  %v523_v29 = vld [vmem:[%s1151_s23 + $0x70] sm:$0xff] }
  0x48   : > { %605 = vmatprep.mubr.f32.mxu0 %v492_v20  ;;  %630 = vmatprep.mubr.f32.mxu1 %v502_v21  ;;  %v859_v27 = vpack.c.bf16 %v524_v25, %v522_v24  ;;  %v526_v30 = vld [vmem:[%s1151_s23 + $0x88] sm:$0xff]  ;;  %v528_v31 = vld [vmem:[%s1151_s23 + $0x98] sm:$0xff]  ;;  %v861_v32 = vpack.c.bf16 %v523_v29, %v521_v28  ;;  %v525_v34 = vld [vmem:[%s1151_s23 + $0x80] sm:$0xff] }
  0x49   : > { %v863_v33 = vpack.c.bf16 %v528_v31, %v526_v30  ;;  %v527_v35 = vld [vmem:[%s1151_s23 + $0x90] sm:$0xff]  ;;  %v530_v36 = vld [vmem:[%s1151_s23 + $0xa8] sm:$0xff]  ;;  %v532_v37 = vld [vmem:[%s1151_s23 + $0xb8] sm:$0xff] }
  0x4a   : > { %v865_v38 = vpack.c.bf16 %v527_v35, %v525_v34  ;;  %v867_v39 = vpack.c.bf16 %v532_v37, %v530_v36  ;;  %v529_v40 = vld [vmem:[%s1151_s23 + $0xa0] sm:$0xff]  ;;  %v531_v41 = vld [vmem:[%s1151_s23 + $0xb0] sm:$0xff]  ;;  %v534_v42 = vld [vmem:[%s1151_s23 + $0xc8] sm:$0xff] }
  0x4b   : > { %v536_v43 = vld [vmem:[%s1151_s23 + $0xd8] sm:$0xff]  ;;  %v869_v44 = vpack.c.bf16 %v531_v41, %v529_v40  ;;  %v533_v46 = vld [vmem:[%s1151_s23 + $0xc0] sm:$0xff]  ;;  %v535_v47 = vld [vmem:[%s1151_s23 + $0xd0] sm:$0xff] }
  0x4c   : > { %v871_v45 = vpack.c.bf16 %v536_v43, %v534_v42  ;;  %v538_v48 = vld [vmem:[%s1151_s23 + $0xe8] sm:$0xff]  ;;  %v540_v49 = vld [vmem:[%s1151_s23 + $0xf8] sm:$0xff]  ;;  %v873_v50 = vpack.c.bf16 %v535_v47, %v533_v46  ;;  %v537_v52 = vld [vmem:[%s1151_s23 + $0xe0] sm:$0xff] }
  0x4d   : > { %v875_v51 = vpack.c.bf16 %v540_v49, %v538_v48  ;;  %v539_v53 = vld [vmem:[%s1151_s23 + $0xf0] sm:$0xff]  ;;  %v494_v57 = vld [vmem:[%s1149_s22 + $0x18] sm:$0xff]  ;;  %v504_v58 = vld [vmem:[%s1149_s22 + $0x68] sm:$0xff] }
  0x4e   : > { %854 = vmatpush1.bf16.xpose.msra.mxu0 %v853_v18  ;;  %888 = vmatpush1.bf16.xpose.msra.mxu1 %v853_v18  ;;  %v877_v54 = vpack.c.bf16 %v539_v53, %v537_v52  ;;  %v491_v55 = vld [vmem:[%s1149_s22] sm:$0xff]  ;;  %v501_v56 = vld [vmem:[%s1149_s22 + $0x50] sm:$0xff]  ;;  %v496_v61 = vld [vmem:[%s1149_s22 + $0x28] sm:$0xff] }
  0x4f   : > { %856 = vmatprep.subr.bf16.mxu0 %v855_v19  ;;  %881 = vmatprep.subr.bf16.mxu1 %v855_v19  ;;  %v493_v59 = vld [vmem:[%s1149_s22 + $0x10] sm:$0xff]  ;;  %v503_v60 = vld [vmem:[%s1149_s22 + $0x60] sm:$0xff]  ;;  %v506_v62 = vld [vmem:[%s1149_s22 + $0x78] sm:$0xff] }
  0x50   : > { %v495_v63 = vld [vmem:[%s1149_s22 + $0x20] sm:$0xff]  ;;  %v505_v0 = vld [vmem:[%s1149_s22 + $0x70] sm:$0xff]  ;;  %v498_v1 = vld [vmem:[%s1149_s22 + $0x38] sm:$0xff] }
  0x51   : > { %v508_v2 = vld [vmem:[%s1149_s22 + $0x88] sm:$0xff]  ;;  %v497_v3 = vld [vmem:[%s1149_s22 + $0x30] sm:$0xff]  ;;  %v507_v4 = vld [vmem:[%s1149_s22 + $0x80] sm:$0xff] }
  0x52   : > { %v500_v5 = vld [vmem:[%s1149_s22 + $0x48] sm:$0xff]  ;;  %v499_v6 = vld [vmem:[%s1149_s22 + $0x40] sm:$0xff] }
  0x53   : > { %v482_v7 = vld [vmem:[#allocation2] sm:$0xff]  ;;  %v487_v8 = vld [vmem:[#allocation2 + $0x28] sm:$0xff]  ;;  %v488_v16 = vld [vmem:[#allocation2 + $0x30] sm:$0xff] }
  0x54   : > { %v483_v15 = vld [vmem:[#allocation2 + $0x8] sm:$0xff]  ;;  %v484_v23 = vld [vmem:[#allocation2 + $0x10] sm:$0xff]  ;;  %v489_v24 = vld [vmem:[#allocation2 + $0x38] sm:$0xff] }
  0x55   : > { %v485_v31 = vld [vmem:[#allocation2 + $0x18] sm:$0xff] }
  0x56   : > { %858 = vmatpush1.bf16.xpose.msra.mxu0 %v857_v26  ;;  %889 = vmatpush1.bf16.xpose.msra.mxu1 %v857_v26 }
  0x57   : > { %860 = vmatprep.subr.bf16.mxu0 %v859_v27  ;;  %882 = vmatprep.subr.bf16.mxu1 %v859_v27 }
  0x5e   : > { %862 = vmatpush1.bf16.xpose.msra.mxu0 %v861_v32  ;;  %890 = vmatpush1.bf16.xpose.msra.mxu1 %v861_v32  ;;  %v490_v32 = vld [vmem:[#allocation2 + $0x40] sm:$0xff] }
  0x5f   : > { %864 = vmatprep.subr.bf16.mxu0 %v863_v33  ;;  %883 = vmatprep.subr.bf16.mxu1 %v863_v33 }
  0x66   : > { %866 = vmatpush1.bf16.xpose.msra.mxu0 %v865_v38  ;;  %891 = vmatpush1.bf16.xpose.msra.mxu1 %v865_v38 }
  0x67   : > { %868 = vmatprep.subr.bf16.mxu0 %v867_v39  ;;  %884 = vmatprep.subr.bf16.mxu1 %v867_v39  ;;  %v486_v39 = vld [vmem:[#allocation2 + $0x20] sm:$0xff] }
  0x6e   : > { %870 = vmatpush1.bf16.xpose.msra.mxu0 %v869_v44  ;;  %892 = vmatpush1.bf16.xpose.msra.mxu1 %v869_v44 }
  0x6f   : > { %872 = vmatprep.subr.bf16.mxu0 %v871_v45  ;;  %885 = vmatprep.subr.bf16.mxu1 %v871_v45 }
  0x76   : > { %874 = vmatpush1.bf16.xpose.msra.mxu0 %v873_v50  ;;  %893 = vmatpush1.bf16.xpose.msra.mxu1 %v873_v50 }
  0x77   : > { %876 = vmatprep.subr.bf16.mxu0 %v875_v51  ;;  %886 = vmatprep.subr.bf16.mxu1 %v875_v51 }
  0x7e   : > { %878 = vmatpush1.bf16.xpose.msra.mxu0 %v877_v54  ;;  %894 = vmatpush1.bf16.xpose.msra.mxu1 %v877_v54 }
  0x85   : > { %606 = vmatmul.mubr.f32.vlgmr.msra.gmra.mrb[0].mxu0 %v491_v55  ;;  %631 = vmatmul.mubr.f32.vlgmr.msra.gmra.mrb[0].mxu1 %v501_v56 }
  0x86   : > { %610 = vmatprep.mubr.f32.mxu0 %v494_v57  ;;  %635 = vmatprep.mubr.f32.mxu1 %v504_v58 }
  0x89   : > { %611 = vmatmul.mubr.f32.gmra.mrb[2].mxu0 %v493_v59  ;;  %636 = vmatmul.mubr.f32.gmra.mrb[2].mxu1 %v503_v60 }
  0x8a   : > { %615 = vmatprep.mubr.f32.mxu0 %v496_v61  ;;  %640 = vmatprep.mubr.f32.mxu1 %v506_v62 }
  0x8d   : > { %616 = vmatmul.mubr.f32.gmra.mrb[4].mxu0 %v495_v63  ;;  %641 = vmatmul.mubr.f32.gmra.mrb[4].mxu1 %v505_v0 }
  0x8e   : > { %620 = vmatprep.mubr.f32.mxu0 %v498_v1  ;;  %645 = vmatprep.mubr.f32.mxu1 %v508_v2 }
  0x91   : > { %621 = vmatmul.mubr.f32.gmra.mrb[6].mxu0 %v497_v3  ;;  %646 = vmatmul.mubr.f32.gmra.mrb[6].mxu1 %v507_v4 }
  0x92   : > { %625 = vmatprep.mubr.f32.mxu0 %v500_v5 }
  0x95   : > { %626 = vmatmul.mubr.f32.gmra.mrb[8].mxu0 %v499_v6 }
 0x158   : > { %v607_v9 = vpop.f32.mrb[0].mxu0  ;;  %v632_v10 = vpop.f32.mrb[0].mxu1 }
 0x159   : > { %v651_v11 = vadd.f32 %v607_v9, %v482_v7  ;;  %v609_v12 = vpop.f32.mrb[1].mxu0  ;;  %v656_v13 = vadd.f32 %v632_v10, %v487_v8  ;;  %v634_v14 = vpop.f32.mrb[1].mxu1 }
 0x15b   : > { %660 = vst [vmem:[#allocation2] sm:$0xff] %v651_v11  ;;  %665 = vst [vmem:[#allocation2 + $0x28] sm:$0xff] %v656_v13 }
 0x15c   : > { %v612_v17 = vpop.f32.mrb[2].mxu0  ;;  %v637_v18 = vpop.f32.mrb[2].mxu1 }
 0x15d   : > { %v652_v19 = vadd.f32 %v612_v17, %v483_v15  ;;  %v614_v20 = vpop.f32.mrb[3].mxu0  ;;  %v657_v21 = vadd.f32 %v637_v18, %v488_v16  ;;  %v639_v22 = vpop.f32.mrb[3].mxu1 }
 0x15f   : > { %661 = vst [vmem:[#allocation2 + $0x8] sm:$0xff] %v652_v19  ;;  %666 = vst [vmem:[#allocation2 + $0x30] sm:$0xff] %v657_v21 }
 0x160   : > { %v617_v25 = vpop.f32.mrb[4].mxu0  ;;  %v642_v26 = vpop.f32.mrb[4].mxu1 }
 0x161   : > { %v653_v27 = vadd.f32 %v617_v25, %v484_v23  ;;  %v619_v28 = vpop.f32.mrb[5].mxu0  ;;  %v658_v29 = vadd.f32 %v642_v26, %v489_v24  ;;  %v644_v30 = vpop.f32.mrb[5].mxu1 }
 0x162   : > { %v673_v43 = vld [vmem:[#allocation2] sm:$0xff] (!%p840_p10)  ;;  %v678_v48 = vld [vmem:[#allocation2 + $0x28] sm:$0xff] (!%p840_p10) }
 0x163   : > { %662 = vst [vmem:[#allocation2 + $0x10] sm:$0xff] %v653_v27  ;;  %667 = vst [vmem:[#allocation2 + $0x38] sm:$0xff] %v658_v29 }
 0x164   : > { %v622_v33 = vpop.f32.mrb[6].mxu0  ;;  %v647_v34 = vpop.f32.mrb[6].mxu1  ;;  %682 = vst [vmem:[%s1281_s4] sm:$0xff] (!%p840_p10), %v673_v43  ;;  %687 = vst [vmem:[%s1281_s4 + $0x28] sm:$0xff] (!%p840_p10), %v678_v48 }
 0x165   : > { %v654_v35 = vadd.f32 %v622_v33, %v485_v31  ;;  %v624_v36 = vpop.f32.mrb[7].mxu0  ;;  %v659_v37 = vadd.f32 %v647_v34, %v490_v32  ;;  %v649_v38 = vpop.f32.mrb[7].mxu1  ;;  %672 = sbr.rel (%p840_p10) target bundleno = 372 (0x174), region = 90 }
 0x166   : > { %v674_v44 = vld [vmem:[#allocation2 + $0x8] sm:$0xff] (!%p840_p10)  ;;  %v679_v49 = vld [vmem:[#allocation2 + $0x30] sm:$0xff] (!%p840_p10) }
 0x167   : > { %663 = vst [vmem:[#allocation2 + $0x18] sm:$0xff] %v654_v35  ;;  %668 = vst [vmem:[#allocation2 + $0x40] sm:$0xff] %v659_v37 }
 0x168   : > { %v627_v40 = vpop.f32.mrb[8].mxu0  ;;  %683 = vst [vmem:[%s1281_s4 + $0x8] sm:$0xff] (!%p840_p10), %v674_v44  ;;  %688 = vst [vmem:[%s1281_s4 + $0x30] sm:$0xff] (!%p840_p10), %v679_v49 }
 0x169   : > { %v655_v41 = vadd.f32 %v627_v40, %v486_v39  ;;  %v629_v42 = vpop.f32.mrb[9].mxu0 }
 0x16a   : > { %v675_v45 = vld [vmem:[#allocation2 + $0x10] sm:$0xff] (!%p840_p10)  ;;  %v680_v50 = vld [vmem:[#allocation2 + $0x38] sm:$0xff] (!%p840_p10) }
 0x16b   : > { %664 = vst [vmem:[#allocation2 + $0x20] sm:$0xff] %v655_v41  ;;  %684 = vst [vmem:[%s1281_s4 + $0x10] sm:$0xff] (!%p840_p10), %v675_v45 }
 0x16c   : > { %689 = vst [vmem:[%s1281_s4 + $0x38] sm:$0xff] %v680_v50 }
 0x16e   : > { %v676_v46 = vld [vmem:[#allocation2 + $0x18] sm:$0xff]  ;;  %v681_v51 = vld [vmem:[#allocation2 + $0x40] sm:$0xff] }
 0x16f   : > { %685 = vst [vmem:[%s1281_s4 + $0x18] sm:$0xff] %v676_v46  ;;  %690 = vst [vmem:[%s1281_s4 + $0x40] sm:$0xff] %v681_v51 }
 0x172   : > { %v677_v47 = vld [vmem:[#allocation2 + $0x20] sm:$0xff] }
 0x173   : > { %686 = vst [vmem:[%s1281_s4 + $0x20] sm:$0xff] %v677_v47 }
 0x174 PF: > { %s14_s19 = sadd.s32 1, %s975_s19   ;;  %s1283_s15 = smov %s963_s16 }
 0x175   : > { %p11_p11 = scmp.ge.s32.totalorder %s14_s19, 4   ;;  %s1284_s16 = smov %s1041_s24 }
 0x176   : > { %s1285_s17 = smov %s971_s18  ;;  %s1286_s18 = smov %s1288_s20 }
 0x177   :  { %13 = sbr.rel (!%p11_p11) target bundleno = 3 (0x3), region = 139 }

// kernel: _lambda_.43
= control target key start
LH: loop header
LB: loop body
LE: loop exit
PB: predicated region body
PF: predicated region fallthrough
CT: control target
= control target key end

     0   :  { %v20_v57 = vlaneseq  ;;  %s965_s1 = inlined_call_operand.vmem [shape: f32[256,128], index: 1, kind: input, shape index: {}]   ;;  %s966_s0 = inlined_call_operand.vmem [shape: f32[72,128], index: 0, kind: input, shape index: {}]   ;;  %s967_s2 = inlined_call_operand.vmem [shape: f32[1,256], index: 2, kind: input, shape index: {}]   ;;  %s968_s3 = inlined_call_operand.vmem [shape: f32[72,256], index: 3, kind: output, shape index: {}]  }
   0x1   :  { %v93_v0 = vld [vmem:[%s965_s1 + $0x80] sm:$0xff]  ;;  %v94_v1 = vld [vmem:[%s965_s1 + $0x88] sm:$0xff]  ;;  %v95_v5 = vld [vmem:[%s965_s1 + $0x90] sm:$0xff] }
   0x2   :  { %v77_v2 = vld [vmem:[%s965_s1] sm:$0xff]  ;;  %v519_v3 = vpack.c.bf16 %v94_v1, %v93_v0  ;;  %v78_v4 = vld [vmem:[%s965_s1 + $0x8] sm:$0xff]  ;;  %v96_v6 = vld [vmem:[%s965_s1 + $0x98] sm:$0xff]  ;;  %v21_v58 = vshrl.u32 %v20_v57, 7 }
   0x3   :  { %v521_v7 = vpack.c.bf16 %v78_v4, %v77_v2  ;;  %v523_v8 = vpack.c.bf16 %v96_v6, %v95_v5  ;;  %v79_v9 = vld [vmem:[%s965_s1 + $0x10] sm:$0xff]  ;;  %v80_v10 = vld [vmem:[%s965_s1 + $0x18] sm:$0xff]  ;;  %v97_v11 = vld [vmem:[%s965_s1 + $0xa0] sm:$0xff] }
   0x4   :  { %520 = vmatprep.subr.bf16.mxu0 %v519_v3  ;;  %551 = vmatprep.subr.bf16.mxu1 %v519_v3  ;;  %v98_v12 = vld [vmem:[%s965_s1 + $0xa8] sm:$0xff]  ;;  %v525_v13 = vpack.c.bf16 %v80_v10, %v79_v9  ;;  %v656_v15 = vld [vmem:[%s966_s0] sm:$0xff]  ;;  %v99_v19 = vld [vmem:[%s965_s1 + $0xb0] sm:$0xff]  ;;  %v22_v59 = vsub.s32 0, %v21_v58  ;;  %v26_v61 = vsub.s32 1, %v21_v58 }
   0x5   :  { %522 = vmatpush3.bf16.xpose.msra.mxu0 %v521_v7  ;;  %559 = vmatpush3.bf16.xpose.msra.mxu1 %v521_v7  ;;  %v527_v14 = vpack.c.bf16 %v98_v12, %v97_v11  ;;  %v662_v16 = vld [vmem:[%s966_s0 + $0x28] sm:$0xff]  ;;  %v81_v17 = vld [vmem:[%s965_s1 + $0x20] sm:$0xff]  ;;  %v100_v20 = vld [vmem:[%s965_s1 + $0xb8] sm:$0xff] }
   0x6   :  { %524 = vmatprep.subr.bf16.mxu0 %v523_v8  ;;  %552 = vmatprep.subr.bf16.mxu1 %v523_v8  ;;  %v82_v18 = vld [vmem:[%s965_s1 + $0x28] sm:$0xff]  ;;  %v531_v22 = vpack.c.bf16 %v100_v20, %v99_v19  ;;  %v83_v23 = vld [vmem:[%s965_s1 + $0x30] sm:$0xff]  ;;  %v84_v24 = vld [vmem:[%s965_s1 + $0x38] sm:$0xff] }
   0x7   :  { %501 = vmatprep.mubr.f32.mxu0 %v656_v15  ;;  %511 = vmatprep.mubr.f32.mxu1 %v662_v16  ;;  %v529_v21 = vpack.c.bf16 %v82_v18, %v81_v17  ;;  %v101_v25 = vld [vmem:[%s965_s1 + $0xc0] sm:$0xff]  ;;  %v102_v26 = vld [vmem:[%s965_s1 + $0xc8] sm:$0xff]  ;;  %v533_v27 = vpack.c.bf16 %v84_v24, %v83_v23  ;;  %v103_v31 = vld [vmem:[%s965_s1 + $0xd0] sm:$0xff] }
   0x8   :  { %v535_v28 = vpack.c.bf16 %v102_v26, %v101_v25  ;;  %v85_v29 = vld [vmem:[%s965_s1 + $0x40] sm:$0xff]  ;;  %v86_v30 = vld [vmem:[%s965_s1 + $0x48] sm:$0xff]  ;;  %v104_v32 = vld [vmem:[%s965_s1 + $0xd8] sm:$0xff] }
   0x9   :  { %v537_v33 = vpack.c.bf16 %v86_v30, %v85_v29  ;;  %v539_v34 = vpack.c.bf16 %v104_v32, %v103_v31  ;;  %v87_v35 = vld [vmem:[%s965_s1 + $0x50] sm:$0xff]  ;;  %v88_v36 = vld [vmem:[%s965_s1 + $0x58] sm:$0xff]  ;;  %v105_v37 = vld [vmem:[%s965_s1 + $0xe0] sm:$0xff] }
   0xa   :  { %v106_v38 = vld [vmem:[%s965_s1 + $0xe8] sm:$0xff]  ;;  %v541_v39 = vpack.c.bf16 %v88_v36, %v87_v35  ;;  %v89_v41 = vld [vmem:[%s965_s1 + $0x60] sm:$0xff]  ;;  %v107_v43 = vld [vmem:[%s965_s1 + $0xf0] sm:$0xff] }
   0xb   :  { %v543_v40 = vpack.c.bf16 %v106_v38, %v105_v37  ;;  %v90_v42 = vld [vmem:[%s965_s1 + $0x68] sm:$0xff]  ;;  %v108_v44 = vld [vmem:[%s965_s1 + $0xf8] sm:$0xff]  ;;  %v91_v47 = vld [vmem:[%s965_s1 + $0x70] sm:$0xff] }
   0xc   :  { %v545_v45 = vpack.c.bf16 %v90_v42, %v89_v41  ;;  %v547_v46 = vpack.c.bf16 %v108_v44, %v107_v43  ;;  %v92_v48 = vld [vmem:[%s965_s1 + $0x78] sm:$0xff]  ;;  %v69_v50 = vld [vmem:[%s966_s0 + $0x8] sm:$0xff]  ;;  %v74_v51 = vld [vmem:[%s966_s0 + $0x30] sm:$0xff] }
   0xd   :  { %526 = vmatpush3.bf16.xpose.msra.mxu0 %v525_v13  ;;  %560 = vmatpush3.bf16.xpose.msra.mxu1 %v525_v13  ;;  %v549_v49 = vpack.c.bf16 %v92_v48, %v91_v47  ;;  %v70_v52 = vld [vmem:[%s966_s0 + $0x10] sm:$0xff]  ;;  %v75_v53 = vld [vmem:[%s966_s0 + $0x38] sm:$0xff]  ;;  %v76_v55 = vld [vmem:[%s966_s0 + $0x40] sm:$0xff] }
   0xe   :  { %528 = vmatprep.subr.bf16.mxu0 %v527_v14  ;;  %553 = vmatprep.subr.bf16.mxu1 %v527_v14  ;;  %v71_v54 = vld [vmem:[%s966_s0 + $0x18] sm:$0xff]  ;;  %v72_v56 = vld [vmem:[%s966_s0 + $0x20] sm:$0xff] }
   0xf   :  { %v18_v60 = vld [vmem:[%s967_s2] sm:$0x3] }
  0x10   :  { %v757_v62 = vrot.slane %v18_v60, %v22_v59  ;;  %v759_v63 = vrot.slane %v18_v60, %v26_v61 }
  0x15   :  { %530 = vmatpush3.bf16.xpose.msra.mxu0 %v529_v21  ;;  %561 = vmatpush3.bf16.xpose.msra.mxu1 %v529_v21 }
  0x16   :  { %532 = vmatprep.subr.bf16.mxu0 %v531_v22  ;;  %554 = vmatprep.subr.bf16.mxu1 %v531_v22 }
  0x1d   :  { %534 = vmatpush3.bf16.xpose.msra.mxu0 %v533_v27  ;;  %562 = vmatpush3.bf16.xpose.msra.mxu1 %v533_v27 }
  0x1e   :  { %536 = vmatprep.subr.bf16.mxu0 %v535_v28  ;;  %555 = vmatprep.subr.bf16.mxu1 %v535_v28 }
  0x25   :  { %538 = vmatpush3.bf16.xpose.msra.mxu0 %v537_v33  ;;  %563 = vmatpush3.bf16.xpose.msra.mxu1 %v537_v33 }
  0x26   :  { %540 = vmatprep.subr.bf16.mxu0 %v539_v34  ;;  %556 = vmatprep.subr.bf16.mxu1 %v539_v34 }
  0x2d   :  { %542 = vmatpush3.bf16.xpose.msra.mxu0 %v541_v39  ;;  %564 = vmatpush3.bf16.xpose.msra.mxu1 %v541_v39 }
  0x2e   :  { %544 = vmatprep.subr.bf16.mxu0 %v543_v40  ;;  %557 = vmatprep.subr.bf16.mxu1 %v543_v40 }
  0x35   :  { %546 = vmatpush3.bf16.xpose.msra.mxu0 %v545_v45  ;;  %565 = vmatpush3.bf16.xpose.msra.mxu1 %v545_v45 }
  0x36   :  { %548 = vmatprep.subr.bf16.mxu0 %v547_v46  ;;  %558 = vmatprep.subr.bf16.mxu1 %v547_v46 }
  0x3d   :  { %550 = vmatpush3.bf16.xpose.msra.mxu0 %v549_v49  ;;  %566 = vmatpush3.bf16.xpose.msra.mxu1 %v549_v49 }
  0x44   :  { %502 = vmatmul.mubr.f32.vlgmr.msra.gmra.mrb[0].mxu0 %v656_v15  ;;  %512 = vmatmul.mubr.f32.vlgmr.msra.gmra.mrb[0].mxu1 %v662_v16 }
  0x45   :  { %503 = vmatprep.mubr.f32.mxu0 %v69_v50  ;;  %513 = vmatprep.mubr.f32.mxu1 %v74_v51 }
  0x48   :  { %504 = vmatmul.mubr.f32.gmra.mrb[2].mxu0 %v69_v50  ;;  %514 = vmatmul.mubr.f32.gmra.mrb[2].mxu1 %v74_v51 }
  0x49   :  { %505 = vmatprep.mubr.f32.mxu0 %v70_v52  ;;  %515 = vmatprep.mubr.f32.mxu1 %v75_v53 }
  0x4c   :  { %506 = vmatmul.mubr.f32.gmra.mrb[4].mxu0 %v70_v52  ;;  %516 = vmatmul.mubr.f32.gmra.mrb[4].mxu1 %v75_v53 }
  0x4d   :  { %507 = vmatprep.mubr.f32.mxu0 %v71_v54  ;;  %517 = vmatprep.mubr.f32.mxu1 %v76_v55 }
  0x50   :  { %508 = vmatmul.mubr.f32.gmra.mrb[6].mxu0 %v71_v54  ;;  %518 = vmatmul.mubr.f32.gmra.mrb[6].mxu1 %v76_v55 }
  0x51   :  { %509 = vmatprep.mubr.f32.mxu0 %v72_v56 }
  0x54   :  { %510 = vmatmul.mubr.f32.gmra.mrb[8].mxu0 %v72_v56 }
 0x117   :  { %v175_v0 = vpop.f32.mrb[0].mxu0  ;;  %v205_v1 = vpop.f32.mrb[0].mxu1 }
 0x118   :  { %v762_v2 = vadd.f32 %v175_v0, %v757_v62  ;;  %v765_v3 = vadd.f32 %v205_v1, %v757_v62  ;;  %v177_v4 = vpop.f32.mrb[1].mxu0  ;;  %v207_v5 = vpop.f32.mrb[1].mxu1 }
 0x119   :  { %v768_v6 = vadd.f32 %v177_v4, %v759_v63  ;;  %v771_v7 = vadd.f32 %v207_v5, %v759_v63 }
 0x11a   :  { %v285_v8 = vmul.f32 %v762_v2, %v762_v2  ;;  %v295_v9 = vmul.f32 %v765_v3, %v765_v3 }
 0x11b   :  { %v286_v10 = vmul.f32 %v768_v6, %v768_v6  ;;  %v296_v11 = vmul.f32 %v771_v7, %v771_v7  ;;  %v181_v12 = vpop.f32.mrb[2].mxu0  ;;  %v211_v13 = vpop.f32.mrb[2].mxu1 }
 0x11c   :  { %v303_v14 = vmul.f32 %v285_v8, %v762_v2  ;;  %v313_v15 = vmul.f32 %v295_v9, %v765_v3  ;;  %v784_v16 = vadd.f32 %v181_v12, %v757_v62  ;;  %v787_v17 = vadd.f32 %v211_v13, %v757_v62  ;;  %v183_v18 = vpop.f32.mrb[3].mxu0  ;;  %v213_v19 = vpop.f32.mrb[3].mxu1 }
 0x11d   :  { %v304_v20 = vmul.f32 %v286_v10, %v768_v6  ;;  %v314_v21 = vmul.f32 %v296_v11, %v771_v7  ;;  %v792_v22 = vadd.f32 %v183_v18, %v759_v63  ;;  %v795_v23 = vadd.f32 %v213_v19, %v759_v63 }
 0x11e   :  { %v321_v24 = vmul.f32 0.044715, %v303_v14  ;;  %v331_v25 = vmul.f32 0.044715, %v313_v15  ;;  %v287_v26 = vmul.f32 %v784_v16, %v784_v16  ;;  %v297_v27 = vmul.f32 %v787_v17, %v787_v17 }
 0x11f   :  { %v322_v28 = vmul.f32 0.044715, %v304_v20  ;;  %v332_v29 = vmul.f32 0.044715, %v314_v21  ;;  %v288_v30 = vmul.f32 %v792_v22, %v792_v22  ;;  %v298_v31 = vmul.f32 %v795_v23, %v795_v23  ;;  %v187_v32 = vpop.f32.mrb[4].mxu0  ;;  %v217_v33 = vpop.f32.mrb[4].mxu1 }
 0x120   :  { %v339_v34 = vadd.f32 %v321_v24, %v762_v2  ;;  %v349_v35 = vadd.f32 %v331_v25, %v765_v3  ;;  %v305_v36 = vmul.f32 %v287_v26, %v784_v16  ;;  %v315_v37 = vmul.f32 %v297_v27, %v787_v17  ;;  %v189_v38 = vpop.f32.mrb[5].mxu0  ;;  %v219_v39 = vpop.f32.mrb[5].mxu1 }
 0x121   :  { %v340_v40 = vadd.f32 %v322_v28, %v768_v6  ;;  %v350_v41 = vadd.f32 %v332_v29, %v771_v7  ;;  %v306_v42 = vmul.f32 %v288_v30, %v792_v22  ;;  %v316_v43 = vmul.f32 %v298_v31, %v795_v23 }
 0x122   :  { %v357_v44 = vmul.f32 0.7978846, %v339_v34  ;;  %v367_v45 = vmul.f32 0.7978846, %v349_v35  ;;  %v323_v46 = vmul.f32 0.044715, %v305_v36  ;;  %v814_v47 = vadd.f32 %v187_v32, %v757_v62 }
 0x123   :  { %v358_v48 = vmul.f32 0.7978846, %v340_v40  ;;  %v368_v49 = vmul.f32 0.7978846, %v350_v41  ;;  %v333_v50 = vmul.f32 0.044715, %v315_v37  ;;  %v817_v51 = vadd.f32 %v217_v33, %v757_v62 }
 0x124   :  { %567 = vtanh.f32 %v357_v44  ;;  %v341_v52 = vadd.f32 %v323_v46, %v784_v16  ;;  %v324_v53 = vmul.f32 0.044715, %v306_v42  ;;  %v334_v54 = vmul.f32 0.044715, %v316_v43  ;;  %v193_v55 = vpop.f32.mrb[6].mxu0  ;;  %v223_v56 = vpop.f32.mrb[6].mxu1 }
 0x125   :  { %569 = vtanh.f32 %v367_v45  ;;  %v351_v57 = vadd.f32 %v333_v50, %v787_v17  ;;  %v289_v58 = vmul.f32 %v814_v47, %v814_v47  ;;  %v299_v59 = vmul.f32 %v817_v51, %v817_v51  ;;  %v195_v60 = vpop.f32.mrb[7].mxu0  ;;  %v225_v61 = vpop.f32.mrb[7].mxu1 }
 0x126   :  { %571 = vtanh.f32 %v358_v48  ;;  %v359_v0 = vmul.f32 0.7978846, %v341_v52  ;;  %v342_v1 = vadd.f32 %v324_v53, %v792_v22  ;;  %v352_v4 = vadd.f32 %v334_v54, %v795_v23 }
 0x127   :  { %573 = vtanh.f32 %v368_v49  ;;  %v369_v5 = vmul.f32 0.7978846, %v351_v57  ;;  %v307_v8 = vmul.f32 %v289_v58, %v814_v47  ;;  %v317_v9 = vmul.f32 %v299_v59, %v817_v51  ;;  %v829_v10 = vpop.f32.mrb[8].mxu0 }
 0x128   :  { %575 = vtanh.f32 %v359_v0  ;;  %v360_v11 = vmul.f32 0.7978846, %v342_v1  ;;  %v370_v12 = vmul.f32 0.7978846, %v352_v4  ;;  %v832_v13 = vadd.f32 %v189_v38, %v759_v63  ;;  %v834_v14 = vpop.f32.mrb[9].mxu0 }
 0x129   :  { %577 = vtanh.f32 %v369_v5  ;;  %v325_v15 = vmul.f32 0.044715, %v307_v8  ;;  %v335_v18 = vmul.f32 0.044715, %v317_v9  ;;  %v837_v19 = vadd.f32 %v219_v39, %v759_v63 }
 0x12a   :  { %579 = vtanh.f32 %v360_v11  ;;  %v290_v20 = vmul.f32 %v832_v13, %v832_v13  ;;  %v842_v21 = vadd.f32 %v193_v55, %v757_v62  ;;  %v845_v24 = vadd.f32 %v223_v56, %v757_v62 }
 0x12b   :  { %581 = vtanh.f32 %v370_v12  ;;  %v343_v25 = vadd.f32 %v325_v15, %v814_v47  ;;  %v353_v26 = vadd.f32 %v335_v18, %v817_v51  ;;  %v300_v27 = vmul.f32 %v837_v19, %v837_v19 }
 0x12c   :  { %v308_v28 = vmul.f32 %v290_v20, %v832_v13  ;;  %v291_v29 = vmul.f32 %v842_v21, %v842_v21  ;;  %v301_v30 = vmul.f32 %v845_v24, %v845_v24  ;;  %v857_v31 = vadd.f32 %v195_v60, %v759_v63 }
 0x12d   :  { %v361_v32 = vmul.f32 0.7978846, %v343_v25  ;;  %v371_v33 = vmul.f32 0.7978846, %v353_v26  ;;  %v318_v34 = vmul.f32 %v300_v27, %v837_v19  ;;  %v861_v35 = vadd.f32 %v225_v61, %v759_v63 }
 0x12e   :  { %v568_v36 = vpop.eup %567  ;;  %v326_v37 = vmul.f32 0.044715, %v308_v28  ;;  %v309_v38 = vmul.f32 %v291_v29, %v842_v21  ;;  %v319_v39 = vmul.f32 %v301_v30, %v845_v24  ;;  %v292_v40 = vmul.f32 %v857_v31, %v857_v31 }
 0x12f   :  { %v570_v41 = vpop.eup %569  ;;  %v393_v42 = vadd.f32 1.0, %v568_v36  ;;  %583 = vtanh.f32 %v361_v32  ;;  %v336_v43 = vmul.f32 0.044715, %v318_v34  ;;  %v302_v44 = vmul.f32 %v861_v35, %v861_v35 }
 0x130   :  { %v572_v45 = vpop.eup %571  ;;  %v403_v46 = vadd.f32 1.0, %v570_v41  ;;  %585 = vtanh.f32 %v371_v33  ;;  %v344_v48 = vadd.f32 %v326_v37, %v832_v13  ;;  %v327_v49 = vmul.f32 0.044715, %v309_v38 }
 0x131   :  { %v574_v50 = vpop.eup %573  ;;  %v411_v52 = vmul.f32 0.5, %v393_v42  ;;  %v394_v53 = vadd.f32 1.0, %v572_v45  ;;  %v354_v54 = vadd.f32 %v336_v43, %v837_v19  ;;  %v337_v55 = vmul.f32 0.044715, %v319_v39 }
 0x132   :  { %v576_v56 = vpop.eup %575  ;;  %v421_v57 = vmul.f32 0.5, %v403_v46  ;;  %v404_v58 = vadd.f32 1.0, %v574_v50  ;;  %v362_v59 = vmul.f32 0.7978846, %v344_v48  ;;  %v345_v60 = vadd.f32 %v327_v49, %v842_v21 }
 0x133   :  { %v578_v61 = vpop.eup %577  ;;  %v429_v0 = vmul.f32 %v411_v52, %v762_v2  ;;  %v412_v1 = vmul.f32 0.5, %v394_v53  ;;  %v395_v4 = vadd.f32 1.0, %v576_v56  ;;  %v372_v5 = vmul.f32 0.7978846, %v354_v54 }
 0x134   :  { %v580_v8 = vpop.eup %579  ;;  %v439_v9 = vmul.f32 %v421_v57, %v765_v3  ;;  %v422_v11 = vmul.f32 0.5, %v404_v58  ;;  %v405_v12 = vadd.f32 1.0, %v578_v61  ;;  %587 = vtanh.f32 %v362_v59 }
 0x135   :  { %v582_v15 = vpop.eup %581  ;;  %447 = vst [vmem:[%s968_s3] sm:$0xff] %v429_v0  ;;  %v430_v18 = vmul.f32 %v412_v1, %v768_v6  ;;  %v413_v20 = vmul.f32 0.5, %v395_v4  ;;  %v396_v25 = vadd.f32 1.0, %v580_v8  ;;  %589 = vtanh.f32 %v372_v5 }
 0x136   :  { %457 = vst [vmem:[%s968_s3 + $0x50] sm:$0xff] %v439_v9  ;;  %v440_v2 = vmul.f32 %v422_v11, %v771_v7  ;;  %v423_v3 = vmul.f32 0.5, %v405_v12  ;;  %v406_v26 = vadd.f32 1.0, %v582_v15  ;;  %v363_v27 = vmul.f32 0.7978846, %v345_v60 }
 0x137   :  { %448 = vst [vmem:[%s968_s3 + $0x8] sm:$0xff] %v430_v18  ;;  %v431_v28 = vmul.f32 %v413_v20, %v784_v16  ;;  %v414_v29 = vmul.f32 0.5, %v396_v25  ;;  %v355_v6 = vadd.f32 %v337_v55, %v845_v24  ;;  %v310_v30 = vmul.f32 %v292_v40, %v857_v31 }
 0x138   :  { %458 = vst [vmem:[%s968_s3 + $0x58] sm:$0xff] %v440_v2  ;;  %v441_v7 = vmul.f32 %v423_v3, %v787_v17  ;;  %v424_v32 = vmul.f32 0.5, %v406_v26  ;;  %591 = vtanh.f32 %v363_v27  ;;  %v320_v33 = vmul.f32 %v302_v44, %v861_v35 }
 0x139   :  { %v584_v34 = vpop.eup %583  ;;  %449 = vst [vmem:[%s968_s3 + $0x10] sm:$0xff] %v431_v28  ;;  %v432_v16 = vmul.f32 %v414_v29, %v792_v22  ;;  %v373_v36 = vmul.f32 0.7978846, %v355_v6  ;;  %v328_v37 = vmul.f32 0.044715, %v310_v30  ;;  %v899_v38 = vadd.f32 %v829_v10, %v757_v62 }
 0x13a   :  { %v586_v39 = vpop.eup %585  ;;  %459 = vst [vmem:[%s968_s3 + $0x60] sm:$0xff] %v441_v7  ;;  %v442_v17 = vmul.f32 %v424_v32, %v795_v23  ;;  %v397_v40 = vadd.f32 1.0, %v584_v34  ;;  %v338_v41 = vmul.f32 0.044715, %v320_v33  ;;  %v907_v42 = vadd.f32 %v834_v14, %v759_v63 }
 0x13b   :  { %450 = vst [vmem:[%s968_s3 + $0x18] sm:$0xff] %v432_v16  ;;  %v407_v22 = vadd.f32 1.0, %v586_v39  ;;  %593 = vtanh.f32 %v373_v36  ;;  %v346_v62 = vadd.f32 %v328_v37, %v857_v31  ;;  %v293_v10 = vmul.f32 %v899_v38, %v899_v38 }
 0x13c   :  { %460 = vst [vmem:[%s968_s3 + $0x68] sm:$0xff] %v442_v17  ;;  %v415_v23 = vmul.f32 0.5, %v397_v40  ;;  %v356_v43 = vadd.f32 %v338_v41, %v861_v35  ;;  %v294_v63 = vmul.f32 %v907_v42, %v907_v42 }
 0x13d   :  { %v425_v14 = vmul.f32 0.5, %v407_v22  ;;  %v364_v44 = vmul.f32 0.7978846, %v346_v62  ;;  %v311_v45 = vmul.f32 %v293_v10, %v899_v38 }
 0x13e   :  { %v588_v46 = vpop.eup %587  ;;  %v433_v48 = vmul.f32 %v415_v23, %v814_v47  ;;  %v374_v49 = vmul.f32 0.7978846, %v356_v43  ;;  %v312_v50 = vmul.f32 %v294_v63, %v907_v42 }
 0x13f   :  { %v590_v52 = vpop.eup %589  ;;  %v443_v53 = vmul.f32 %v425_v14, %v817_v51  ;;  %v398_v54 = vadd.f32 1.0, %v588_v46  ;;  %595 = vtanh.f32 %v364_v44  ;;  %v329_v55 = vmul.f32 0.044715, %v311_v45 }
 0x140   :  { %451 = vst [vmem:[%s968_s3 + $0x20] sm:$0xff] %v433_v48  ;;  %v408_v56 = vadd.f32 1.0, %v590_v52  ;;  %597 = vtanh.f32 %v374_v49  ;;  %v330_v57 = vmul.f32 0.044715, %v312_v50 }
 0x141   :  { %461 = vst [vmem:[%s968_s3 + $0x70] sm:$0xff] %v443_v53  ;;  %v416_v47 = vmul.f32 0.5, %v398_v54  ;;  %v347_v58 = vadd.f32 %v329_v55, %v899_v38 }
 0x142   :  { %v592_v59 = vpop.eup %591  ;;  %v426_v60 = vmul.f32 0.5, %v408_v56  ;;  %v348_v51 = vadd.f32 %v330_v57, %v907_v42 }
 0x143   :  { %v434_v61 = vmul.f32 %v416_v47, %v832_v13  ;;  %v399_v0 = vadd.f32 1.0, %v592_v59  ;;  %v365_v1 = vmul.f32 0.7978846, %v347_v58 }
 0x144   :  { %v444_v4 = vmul.f32 %v426_v60, %v837_v19  ;;  %v366_v5 = vmul.f32 0.7978846, %v348_v51 }
 0x145   :  { %v594_v8 = vpop.eup %593  ;;  %452 = vst [vmem:[%s968_s3 + $0x28] sm:$0xff] %v434_v61  ;;  %v417_v9 = vmul.f32 0.5, %v399_v0  ;;  %599 = vtanh.f32 %v365_v1 }
 0x146   :  { %462 = vst [vmem:[%s968_s3 + $0x78] sm:$0xff] %v444_v4  ;;  %v409_v11 = vadd.f32 1.0, %v594_v8  ;;  %601 = vtanh.f32 %v366_v5 }
 0x147   :  { %v435_v13 = vmul.f32 %v417_v9, %v842_v21 }
 0x148   :  { %v427_v12 = vmul.f32 0.5, %v409_v11 }
 0x149   :  { %v596_v15 = vpop.eup %595  ;;  %453 = vst [vmem:[%s968_s3 + $0x30] sm:$0xff] %v435_v13 }
 0x14a   :  { %v598_v19 = vpop.eup %597  ;;  %v445_v18 = vmul.f32 %v427_v12, %v845_v24  ;;  %v400_v20 = vadd.f32 1.0, %v596_v15 }
 0x14b   :  { %v410_v25 = vadd.f32 1.0, %v598_v19 }
 0x14c   :  { %463 = vst [vmem:[%s968_s3 + $0x80] sm:$0xff] %v445_v18  ;;  %v418_v2 = vmul.f32 0.5, %v400_v20 }
 0x14d   :  { %v428_v3 = vmul.f32 0.5, %v410_v25 }
 0x14e   :  { %v436_v26 = vmul.f32 %v418_v2, %v857_v31 }
 0x14f   :  { %v600_v21 = vpop.eup %599  ;;  %v446_v27 = vmul.f32 %v428_v3, %v861_v35 }
 0x150   :  { %v602_v28 = vpop.eup %601  ;;  %454 = vst [vmem:[%s968_s3 + $0x38] sm:$0xff] %v436_v26  ;;  %v401_v29 = vadd.f32 1.0, %v600_v21 }
 0x151   :  { %464 = vst [vmem:[%s968_s3 + $0x88] sm:$0xff] %v446_v27  ;;  %v402_v24 = vadd.f32 1.0, %v602_v28 }
 0x152   :  { %v419_v6 = vmul.f32 0.5, %v401_v29 }
 0x153   :  { %v420_v30 = vmul.f32 0.5, %v402_v24 }
 0x154   :  { %v437_v7 = vmul.f32 %v419_v6, %v899_v38 }
 0x155   :  { %v438_v31 = vmul.f32 %v420_v30, %v907_v42 }
 0x156   :  { %455 = vst [vmem:[%s968_s3 + $0x40] sm:$0xff] %v437_v7 }
 0x157   :  { %456 = vst [vmem:[%s968_s3 + $0x48] sm:$0xff] %v438_v31 }

// kernel: _lambda_.52
= control target key start
LH: loop header
LB: loop body
LE: loop exit
PB: predicated region body
PF: predicated region fallthrough
CT: control target
= control target key end

     0   :  { %v350_v0 = vmov 0.0|0.0   ;;  %vm351_vm0 = vmmov 0   ;;  %v352_v4 = vmov 0.0   ;;  %s496_s1 = inlined_call_operand.vmem [shape: f32[128,128], index: 1, kind: input, shape index: {}]   ;;  %s497_s0 = inlined_call_operand.vmem [shape: f32[72,128], index: 0, kind: input, shape index: {}]   ;;  %s498_s2 = inlined_call_operand.vmem [shape: f32[1,128], index: 2, kind: input, shape index: {}]   ;;  %s499_s3 = inlined_call_operand.vmem [shape: f32[72,128], index: 3, kind: output, shape index: {}]  }
   0x1   :  { %307 = vmatprep.subr.bf16.mxu0 %v350_v0  ;;  %v53_v1 = vld [vmem:[%s496_s1] sm:$0xff]  ;;  %v54_v2 = vld [vmem:[%s496_s1 + $0x8] sm:$0xff]  ;;  %331 = vmatprep.subr.bf16.mxu1 %v350_v0  ;;  %v55_v5 = vld [vmem:[%s496_s1 + $0x10] sm:$0xff] }
   0x2   :  { %v308_v3 = vpack.c.bf16 %v54_v2, %v53_v1  ;;  %280 = vmatprep.mubr.msk.f32.mxu0 %vm351_vm0, %v352_v4  ;;  %295 = vmatprep.mubr.msk.f32.mxu1 %vm351_vm0, %v352_v4  ;;  %v56_v6 = vld [vmem:[%s496_s1 + $0x18] sm:$0xff]  ;;  %v57_v8 = vld [vmem:[%s496_s1 + $0x20] sm:$0xff]  ;;  %v58_v9 = vld [vmem:[%s496_s1 + $0x28] sm:$0xff] }
   0x3   :  { %v311_v7 = vpack.c.bf16 %v56_v6, %v55_v5  ;;  %v314_v10 = vpack.c.bf16 %v58_v9, %v57_v8  ;;  %v59_v11 = vld [vmem:[%s496_s1 + $0x30] sm:$0xff]  ;;  %v60_v12 = vld [vmem:[%s496_s1 + $0x38] sm:$0xff]  ;;  %v61_v14 = vld [vmem:[%s496_s1 + $0x40] sm:$0xff] }
   0x4   :  { %309 = vmatpush3.bf16.xpose.msra.mxu0 %v308_v3  ;;  %339 = vmatpush3.bf16.xpose.msra.mxu1 %v308_v3  ;;  %v317_v13 = vpack.c.bf16 %v60_v12, %v59_v11  ;;  %v62_v15 = vld [vmem:[%s496_s1 + $0x48] sm:$0xff]  ;;  %v63_v17 = vld [vmem:[%s496_s1 + $0x50] sm:$0xff]  ;;  %v64_v18 = vld [vmem:[%s496_s1 + $0x58] sm:$0xff] }
   0x5   :  { %310 = vmatprep.subr.bf16.mxu0 %v350_v0  ;;  %332 = vmatprep.subr.bf16.mxu1 %v350_v0  ;;  %v320_v16 = vpack.c.bf16 %v62_v15, %v61_v14  ;;  %v323_v19 = vpack.c.bf16 %v64_v18, %v63_v17  ;;  %v65_v20 = vld [vmem:[%s496_s1 + $0x60] sm:$0xff]  ;;  %v66_v21 = vld [vmem:[%s496_s1 + $0x68] sm:$0xff]  ;;  %v67_v23 = vld [vmem:[%s496_s1 + $0x70] sm:$0xff] }
   0x6   :  { %v326_v22 = vpack.c.bf16 %v66_v21, %v65_v20  ;;  %v68_v24 = vld [vmem:[%s496_s1 + $0x78] sm:$0xff]  ;;  %v44_v26 = vld [vmem:[%s497_s0] sm:$0xff]  ;;  %v49_v27 = vld [vmem:[%s497_s0 + $0x28] sm:$0xff] }
   0x7   :  { %v329_v25 = vpack.c.bf16 %v68_v24, %v67_v23  ;;  %v45_v28 = vld [vmem:[%s497_s0 + $0x8] sm:$0xff]  ;;  %v50_v29 = vld [vmem:[%s497_s0 + $0x30] sm:$0xff]  ;;  %v51_v31 = vld [vmem:[%s497_s0 + $0x38] sm:$0xff] }
   0x8   :  { %v46_v30 = vld [vmem:[%s497_s0 + $0x10] sm:$0xff]  ;;  %v47_v32 = vld [vmem:[%s497_s0 + $0x18] sm:$0xff]  ;;  %v52_v33 = vld [vmem:[%s497_s0 + $0x40] sm:$0xff] }
   0x9   :  { %v48_v34 = vld [vmem:[%s497_s0 + $0x20] sm:$0xff] }
   0xa   :  { %v222_v35 = vld [vmem:[%s498_s2] ss:$0 sm:$0xff] }
   0xc   :  { %312 = vmatpush3.bf16.xpose.msra.mxu0 %v311_v7  ;;  %340 = vmatpush3.bf16.xpose.msra.mxu1 %v311_v7 }
   0xd   :  { %313 = vmatprep.subr.bf16.mxu0 %v350_v0  ;;  %333 = vmatprep.subr.bf16.mxu1 %v350_v0 }
  0x14   :  { %315 = vmatpush3.bf16.xpose.msra.mxu0 %v314_v10  ;;  %341 = vmatpush3.bf16.xpose.msra.mxu1 %v314_v10 }
  0x15   :  { %316 = vmatprep.subr.bf16.mxu0 %v350_v0  ;;  %334 = vmatprep.subr.bf16.mxu1 %v350_v0 }
  0x1c   :  { %318 = vmatpush3.bf16.xpose.msra.mxu0 %v317_v13  ;;  %342 = vmatpush3.bf16.xpose.msra.mxu1 %v317_v13 }
  0x1d   :  { %319 = vmatprep.subr.bf16.mxu0 %v350_v0  ;;  %335 = vmatprep.subr.bf16.mxu1 %v350_v0 }
  0x24   :  { %321 = vmatpush3.bf16.xpose.msra.mxu0 %v320_v16  ;;  %343 = vmatpush3.bf16.xpose.msra.mxu1 %v320_v16 }
  0x25   :  { %322 = vmatprep.subr.bf16.mxu0 %v350_v0  ;;  %336 = vmatprep.subr.bf16.mxu1 %v350_v0 }
  0x2c   :  { %324 = vmatpush3.bf16.xpose.msra.mxu0 %v323_v19  ;;  %344 = vmatpush3.bf16.xpose.msra.mxu1 %v323_v19 }
  0x2d   :  { %325 = vmatprep.subr.bf16.mxu0 %v350_v0  ;;  %337 = vmatprep.subr.bf16.mxu1 %v350_v0 }
  0x34   :  { %327 = vmatpush3.bf16.xpose.msra.mxu0 %v326_v22  ;;  %345 = vmatpush3.bf16.xpose.msra.mxu1 %v326_v22 }
  0x35   :  { %328 = vmatprep.subr.bf16.mxu0 %v350_v0  ;;  %338 = vmatprep.subr.bf16.mxu1 %v350_v0 }
  0x3c   :  { %330 = vmatpush3.bf16.xpose.msra.mxu0 %v329_v25  ;;  %346 = vmatpush3.bf16.xpose.msra.mxu1 %v329_v25 }
  0x43   :  { %281 = vmatmul.mubr.f32.vlgmr.msra.gmra.mrb[0].mxu0 %v44_v26  ;;  %296 = vmatmul.mubr.f32.vlgmr.msra.gmra.mrb[0].mxu1 %v49_v27 }
  0x44   :  { %283 = vmatprep.mubr.msk.f32.mxu0 %vm351_vm0, %v352_v4  ;;  %298 = vmatprep.mubr.msk.f32.mxu1 %vm351_vm0, %v352_v4 }
  0x47   :  { %284 = vmatmul.mubr.f32.gmra.mrb[2].mxu0 %v45_v28  ;;  %299 = vmatmul.mubr.f32.gmra.mrb[2].mxu1 %v50_v29 }
  0x48   :  { %286 = vmatprep.mubr.msk.f32.mxu0 %vm351_vm0, %v352_v4  ;;  %301 = vmatprep.mubr.msk.f32.mxu1 %vm351_vm0, %v352_v4 }
  0x4b   :  { %287 = vmatmul.mubr.f32.gmra.mrb[4].mxu0 %v46_v30  ;;  %302 = vmatmul.mubr.f32.gmra.mrb[4].mxu1 %v51_v31 }
  0x4c   :  { %289 = vmatprep.mubr.msk.f32.mxu0 %vm351_vm0, %v352_v4  ;;  %304 = vmatprep.mubr.msk.f32.mxu1 %vm351_vm0, %v352_v4 }
  0x4f   :  { %290 = vmatmul.mubr.f32.gmra.mrb[6].mxu0 %v47_v32  ;;  %305 = vmatmul.mubr.f32.gmra.mrb[6].mxu1 %v52_v33 }
  0x50   :  { %292 = vmatprep.mubr.msk.f32.mxu0 %vm351_vm0, %v352_v4 }
  0x53   :  { %293 = vmatmul.mubr.f32.gmra.mrb[8].mxu0 %v48_v34 }
 0x116   :  { %v135_v36 = vpop.f32.mrb[0].mxu0  ;;  %v160_v37 = vpop.f32.mrb[0].mxu1 }
 0x117   :  { %v179_v38 = vadd.f32 %v222_v35, %v135_v36  ;;  %v282_v39 = vpop.f32.mrb[1].mxu0  ;;  %v184_v40 = vadd.f32 %v222_v35, %v160_v37  ;;  %v297_v41 = vpop.f32.mrb[1].mxu1 }
 0x119   :  { %209 = vst [vmem:[%s499_s3] sm:$0xff] %v179_v38  ;;  %214 = vst [vmem:[%s499_s3 + $0x28] sm:$0xff] %v184_v40 }
 0x11a   :  { %v140_v42 = vpop.f32.mrb[2].mxu0  ;;  %v165_v43 = vpop.f32.mrb[2].mxu1 }
 0x11b   :  { %v180_v44 = vadd.f32 %v222_v35, %v140_v42  ;;  %v285_v45 = vpop.f32.mrb[3].mxu0  ;;  %v185_v46 = vadd.f32 %v222_v35, %v165_v43  ;;  %v300_v47 = vpop.f32.mrb[3].mxu1 }
 0x11d   :  { %210 = vst [vmem:[%s499_s3 + $0x8] sm:$0xff] %v180_v44  ;;  %215 = vst [vmem:[%s499_s3 + $0x30] sm:$0xff] %v185_v46 }
 0x11e   :  { %v145_v48 = vpop.f32.mrb[4].mxu0  ;;  %v170_v49 = vpop.f32.mrb[4].mxu1 }
 0x11f   :  { %v181_v50 = vadd.f32 %v222_v35, %v145_v48  ;;  %v288_v51 = vpop.f32.mrb[5].mxu0  ;;  %v186_v52 = vadd.f32 %v222_v35, %v170_v49  ;;  %v303_v53 = vpop.f32.mrb[5].mxu1 }
 0x121   :  { %211 = vst [vmem:[%s499_s3 + $0x10] sm:$0xff] %v181_v50  ;;  %216 = vst [vmem:[%s499_s3 + $0x38] sm:$0xff] %v186_v52 }
 0x122   :  { %v150_v54 = vpop.f32.mrb[6].mxu0  ;;  %v175_v55 = vpop.f32.mrb[6].mxu1 }
 0x123   :  { %v182_v56 = vadd.f32 %v222_v35, %v150_v54  ;;  %v291_v57 = vpop.f32.mrb[7].mxu0  ;;  %v187_v58 = vadd.f32 %v222_v35, %v175_v55  ;;  %v306_v59 = vpop.f32.mrb[7].mxu1 }
 0x125   :  { %212 = vst [vmem:[%s499_s3 + $0x18] sm:$0xff] %v182_v56  ;;  %217 = vst [vmem:[%s499_s3 + $0x40] sm:$0xff] %v187_v58 }
 0x126   :  { %v155_v60 = vpop.f32.mrb[8].mxu0 }
 0x127   :  { %v183_v61 = vadd.f32 %v222_v35, %v155_v60  ;;  %v294_v62 = vpop.f32.mrb[9].mxu0 }
 0x129   :  { %213 = vst [vmem:[%s499_s3 + $0x20] sm:$0xff] %v183_v61 }

// kernel: _lambda_.44
= control target key start
LH: loop header
LB: loop body
LE: loop exit
PB: predicated region body
PF: predicated region fallthrough
CT: control target
= control target key end

     0   :  { %s549_s1 = inlined_call_operand.vmem [shape: f32[128,256], index: 1, kind: input, shape index: {}]   ;;  %s550_s0 = inlined_call_operand.vmem [shape: f32[72,256], index: 0, kind: input, shape index: {}]   ;;  %s551_s2 = inlined_call_operand.vmem [shape: f32[1,128], index: 2, kind: input, shape index: {}]   ;;  %s552_s3 = inlined_call_operand.vmem [shape: f32[72,128], index: 3, kind: input, shape index: {}]   ;;  %s553_s4 = inlined_call_operand.vmem [shape: f32[72,128], index: 4, kind: output, shape index: {}]  }
   0x1   :  { %v84_v0 = vld [vmem:[%s549_s1 + $0x8] sm:$0xff]  ;;  %v86_v1 = vld [vmem:[%s549_s1 + $0x18] sm:$0xff]  ;;  %v83_v2 = vld [vmem:[%s549_s1] sm:$0xff] }
   0x2   :  { %v269_v3 = vpack.c.bf16 %v86_v1, %v84_v0  ;;  %v85_v4 = vld [vmem:[%s549_s1 + $0x10] sm:$0xff]  ;;  %v88_v5 = vld [vmem:[%s549_s1 + $0x28] sm:$0xff]  ;;  %v90_v6 = vld [vmem:[%s549_s1 + $0x38] sm:$0xff] }
   0x3   :  { %v271_v7 = vpack.c.bf16 %v85_v4, %v83_v2  ;;  %v273_v8 = vpack.c.bf16 %v90_v6, %v88_v5  ;;  %v87_v9 = vld [vmem:[%s549_s1 + $0x20] sm:$0xff]  ;;  %v89_v10 = vld [vmem:[%s549_s1 + $0x30] sm:$0xff]  ;;  %v92_v11 = vld [vmem:[%s549_s1 + $0x48] sm:$0xff] }
   0x4   :  { %270 = vmatprep.subr.bf16.mxu0 %v269_v3  ;;  %301 = vmatprep.subr.bf16.mxu1 %v269_v3  ;;  %v94_v12 = vld [vmem:[%s549_s1 + $0x58] sm:$0xff]  ;;  %v275_v13 = vpack.c.bf16 %v89_v10, %v87_v9  ;;  %v66_v15 = vld [vmem:[%s550_s0 + $0x8] sm:$0xff]  ;;  %v91_v17 = vld [vmem:[%s549_s1 + $0x40] sm:$0xff] }
   0x5   :  { %272 = vmatpush1.bf16.xpose.msra.mxu0 %v271_v7  ;;  %309 = vmatpush1.bf16.xpose.msra.mxu1 %v271_v7  ;;  %v277_v14 = vpack.c.bf16 %v94_v12, %v92_v11  ;;  %v76_v16 = vld [vmem:[%s550_s0 + $0x58] sm:$0xff]  ;;  %v93_v18 = vld [vmem:[%s549_s1 + $0x50] sm:$0xff]  ;;  %v96_v19 = vld [vmem:[%s549_s1 + $0x68] sm:$0xff] }
   0x6   :  { %274 = vmatprep.subr.bf16.mxu0 %v273_v8  ;;  %302 = vmatprep.subr.bf16.mxu1 %v273_v8  ;;  %v98_v20 = vld [vmem:[%s549_s1 + $0x78] sm:$0xff]  ;;  %v279_v21 = vpack.c.bf16 %v93_v18, %v91_v17  ;;  %v95_v23 = vld [vmem:[%s549_s1 + $0x60] sm:$0xff]  ;;  %v97_v24 = vld [vmem:[%s549_s1 + $0x70] sm:$0xff] }
   0x7   :  { %179 = vmatprep.mubr.f32.mxu0 %v66_v15  ;;  %204 = vmatprep.mubr.f32.mxu1 %v76_v16  ;;  %v281_v22 = vpack.c.bf16 %v98_v20, %v96_v19  ;;  %v100_v25 = vld [vmem:[%s549_s1 + $0x88] sm:$0xff]  ;;  %v102_v26 = vld [vmem:[%s549_s1 + $0x98] sm:$0xff]  ;;  %v283_v27 = vpack.c.bf16 %v97_v24, %v95_v23  ;;  %v99_v29 = vld [vmem:[%s549_s1 + $0x80] sm:$0xff] }
   0x8   :  { %v285_v28 = vpack.c.bf16 %v102_v26, %v100_v25  ;;  %v101_v30 = vld [vmem:[%s549_s1 + $0x90] sm:$0xff]  ;;  %v104_v31 = vld [vmem:[%s549_s1 + $0xa8] sm:$0xff]  ;;  %v106_v32 = vld [vmem:[%s549_s1 + $0xb8] sm:$0xff] }
   0x9   :  { %v287_v33 = vpack.c.bf16 %v101_v30, %v99_v29  ;;  %v289_v34 = vpack.c.bf16 %v106_v32, %v104_v31  ;;  %v103_v35 = vld [vmem:[%s549_s1 + $0xa0] sm:$0xff]  ;;  %v105_v36 = vld [vmem:[%s549_s1 + $0xb0] sm:$0xff]  ;;  %v108_v37 = vld [vmem:[%s549_s1 + $0xc8] sm:$0xff] }
   0xa   :  { %v110_v38 = vld [vmem:[%s549_s1 + $0xd8] sm:$0xff]  ;;  %v291_v39 = vpack.c.bf16 %v105_v36, %v103_v35  ;;  %v107_v41 = vld [vmem:[%s549_s1 + $0xc0] sm:$0xff]  ;;  %v109_v42 = vld [vmem:[%s549_s1 + $0xd0] sm:$0xff] }
   0xb   :  { %v293_v40 = vpack.c.bf16 %v110_v38, %v108_v37  ;;  %v112_v43 = vld [vmem:[%s549_s1 + $0xe8] sm:$0xff]  ;;  %v114_v44 = vld [vmem:[%s549_s1 + $0xf8] sm:$0xff]  ;;  %v295_v45 = vpack.c.bf16 %v109_v42, %v107_v41  ;;  %v111_v47 = vld [vmem:[%s549_s1 + $0xe0] sm:$0xff] }
   0xc   :  { %v297_v46 = vpack.c.bf16 %v114_v44, %v112_v43  ;;  %v113_v48 = vld [vmem:[%s549_s1 + $0xf0] sm:$0xff]  ;;  %v65_v50 = vld [vmem:[%s550_s0] sm:$0xff]  ;;  %v68_v52 = vld [vmem:[%s550_s0 + $0x18] sm:$0xff] }
   0xd   :  { %276 = vmatpush1.bf16.xpose.msra.mxu0 %v275_v13  ;;  %310 = vmatpush1.bf16.xpose.msra.mxu1 %v275_v13  ;;  %v299_v49 = vpack.c.bf16 %v113_v48, %v111_v47  ;;  %v75_v51 = vld [vmem:[%s550_s0 + $0x50] sm:$0xff]  ;;  %v78_v53 = vld [vmem:[%s550_s0 + $0x68] sm:$0xff]  ;;  %v77_v55 = vld [vmem:[%s550_s0 + $0x60] sm:$0xff] }
   0xe   :  { %278 = vmatprep.subr.bf16.mxu0 %v277_v14  ;;  %303 = vmatprep.subr.bf16.mxu1 %v277_v14  ;;  %v67_v54 = vld [vmem:[%s550_s0 + $0x10] sm:$0xff]  ;;  %v70_v56 = vld [vmem:[%s550_s0 + $0x28] sm:$0xff]  ;;  %v80_v57 = vld [vmem:[%s550_s0 + $0x78] sm:$0xff] }
   0xf   :  { %v69_v58 = vld [vmem:[%s550_s0 + $0x20] sm:$0xff]  ;;  %v79_v59 = vld [vmem:[%s550_s0 + $0x70] sm:$0xff]  ;;  %v72_v60 = vld [vmem:[%s550_s0 + $0x38] sm:$0xff] }
  0x10   :  { %v82_v61 = vld [vmem:[%s550_s0 + $0x88] sm:$0xff]  ;;  %v71_v62 = vld [vmem:[%s550_s0 + $0x30] sm:$0xff]  ;;  %v81_v63 = vld [vmem:[%s550_s0 + $0x80] sm:$0xff] }
  0x11   :  { %v74_v0 = vld [vmem:[%s550_s0 + $0x48] sm:$0xff]  ;;  %v73_v1 = vld [vmem:[%s550_s0 + $0x40] sm:$0xff]  ;;  %v35_v8 = vld [vmem:[%s552_s3 + $0x30] sm:$0xff] }
  0x12   :  { %v268_v2 = vld [vmem:[%s551_s2] ss:$0 sm:$0xff]  ;;  %v34_v4 = vld [vmem:[%s552_s3 + $0x28] sm:$0xff]  ;;  %v31_v17 = vld [vmem:[%s552_s3 + $0x10] sm:$0xff] }
  0x13   :  { %v29_v3 = vld [vmem:[%s552_s3] sm:$0xff]  ;;  %v43_v6 = vadd.f32 %v268_v2, %v34_v4  ;;  %v30_v7 = vld [vmem:[%s552_s3 + $0x8] sm:$0xff]  ;;  %v44_v16 = vadd.f32 %v268_v2, %v35_v8  ;;  %v36_v18 = vld [vmem:[%s552_s3 + $0x38] sm:$0xff]  ;;  %v40_v24 = vadd.f32 %v268_v2, %v31_v17 }
  0x14   :  { %v38_v5 = vadd.f32 %v268_v2, %v29_v3  ;;  %v39_v14 = vadd.f32 %v268_v2, %v30_v7  ;;  %v45_v26 = vadd.f32 %v268_v2, %v36_v18  ;;  %v33_v37 = vld [vmem:[%s552_s3 + $0x20] sm:$0xff] }
  0x15   :  { %280 = vmatpush1.bf16.xpose.msra.mxu0 %v279_v21  ;;  %311 = vmatpush1.bf16.xpose.msra.mxu1 %v279_v21  ;;  %v42_v43 = vadd.f32 %v268_v2, %v33_v37 }
  0x16   :  { %282 = vmatprep.subr.bf16.mxu0 %v281_v22  ;;  %304 = vmatprep.subr.bf16.mxu1 %v281_v22 }
  0x1d   :  { %284 = vmatpush1.bf16.xpose.msra.mxu0 %v283_v27  ;;  %312 = vmatpush1.bf16.xpose.msra.mxu1 %v283_v27  ;;  %v32_v27 = vld [vmem:[%s552_s3 + $0x18] sm:$0xff] }
  0x1e   :  { %286 = vmatprep.subr.bf16.mxu0 %v285_v28  ;;  %305 = vmatprep.subr.bf16.mxu1 %v285_v28  ;;  %v37_v28 = vld [vmem:[%s552_s3 + $0x40] sm:$0xff] }
  0x1f   :  { %v46_v36 = vadd.f32 %v268_v2, %v37_v28 }
  0x25   :  { %288 = vmatpush1.bf16.xpose.msra.mxu0 %v287_v33  ;;  %313 = vmatpush1.bf16.xpose.msra.mxu1 %v287_v33 }
  0x26   :  { %290 = vmatprep.subr.bf16.mxu0 %v289_v34  ;;  %306 = vmatprep.subr.bf16.mxu1 %v289_v34  ;;  %v41_v34 = vadd.f32 %v268_v2, %v32_v27 }
  0x2d   :  { %292 = vmatpush1.bf16.xpose.msra.mxu0 %v291_v39  ;;  %314 = vmatpush1.bf16.xpose.msra.mxu1 %v291_v39 }
  0x2e   :  { %294 = vmatprep.subr.bf16.mxu0 %v293_v40  ;;  %307 = vmatprep.subr.bf16.mxu1 %v293_v40 }
  0x35   :  { %296 = vmatpush1.bf16.xpose.msra.mxu0 %v295_v45  ;;  %315 = vmatpush1.bf16.xpose.msra.mxu1 %v295_v45 }
  0x36   :  { %298 = vmatprep.subr.bf16.mxu0 %v297_v46  ;;  %308 = vmatprep.subr.bf16.mxu1 %v297_v46 }
  0x3d   :  { %300 = vmatpush1.bf16.xpose.msra.mxu0 %v299_v49  ;;  %316 = vmatpush1.bf16.xpose.msra.mxu1 %v299_v49 }
  0x44   :  { %180 = vmatmul.mubr.f32.vlgmr.msra.gmra.mrb[0].mxu0 %v65_v50  ;;  %205 = vmatmul.mubr.f32.vlgmr.msra.gmra.mrb[0].mxu1 %v75_v51 }
  0x45   :  { %184 = vmatprep.mubr.f32.mxu0 %v68_v52  ;;  %209 = vmatprep.mubr.f32.mxu1 %v78_v53 }
  0x48   :  { %185 = vmatmul.mubr.f32.gmra.mrb[2].mxu0 %v67_v54  ;;  %210 = vmatmul.mubr.f32.gmra.mrb[2].mxu1 %v77_v55 }
  0x49   :  { %189 = vmatprep.mubr.f32.mxu0 %v70_v56  ;;  %214 = vmatprep.mubr.f32.mxu1 %v80_v57 }
  0x4c   :  { %190 = vmatmul.mubr.f32.gmra.mrb[4].mxu0 %v69_v58  ;;  %215 = vmatmul.mubr.f32.gmra.mrb[4].mxu1 %v79_v59 }
  0x4d   :  { %194 = vmatprep.mubr.f32.mxu0 %v72_v60  ;;  %219 = vmatprep.mubr.f32.mxu1 %v82_v61 }
  0x50   :  { %195 = vmatmul.mubr.f32.gmra.mrb[6].mxu0 %v71_v62  ;;  %220 = vmatmul.mubr.f32.gmra.mrb[6].mxu1 %v81_v63 }
  0x51   :  { %199 = vmatprep.mubr.f32.mxu0 %v74_v0 }
  0x54   :  { %200 = vmatmul.mubr.f32.gmra.mrb[8].mxu0 %v73_v1 }
 0x117   :  { %v181_v9 = vpop.f32.mrb[0].mxu0  ;;  %v206_v10 = vpop.f32.mrb[0].mxu1 }
 0x118   :  { %v225_v11 = vadd.f32 %v181_v9, %v38_v5  ;;  %v183_v12 = vpop.f32.mrb[1].mxu0  ;;  %v230_v13 = vadd.f32 %v206_v10, %v43_v6  ;;  %v208_v15 = vpop.f32.mrb[1].mxu1 }
 0x11a   :  { %255 = vst [vmem:[%s553_s4] sm:$0xff] %v225_v11  ;;  %260 = vst [vmem:[%s553_s4 + $0x28] sm:$0xff] %v230_v13 }
 0x11b   :  { %v186_v19 = vpop.f32.mrb[2].mxu0  ;;  %v211_v20 = vpop.f32.mrb[2].mxu1 }
 0x11c   :  { %v226_v21 = vadd.f32 %v186_v19, %v39_v14  ;;  %v188_v22 = vpop.f32.mrb[3].mxu0  ;;  %v231_v23 = vadd.f32 %v211_v20, %v44_v16  ;;  %v213_v25 = vpop.f32.mrb[3].mxu1 }
 0x11e   :  { %256 = vst [vmem:[%s553_s4 + $0x8] sm:$0xff] %v226_v21  ;;  %261 = vst [vmem:[%s553_s4 + $0x30] sm:$0xff] %v231_v23 }
 0x11f   :  { %v191_v29 = vpop.f32.mrb[4].mxu0  ;;  %v216_v30 = vpop.f32.mrb[4].mxu1 }
 0x120   :  { %v227_v31 = vadd.f32 %v191_v29, %v40_v24  ;;  %v193_v32 = vpop.f32.mrb[5].mxu0  ;;  %v232_v33 = vadd.f32 %v216_v30, %v45_v26  ;;  %v218_v35 = vpop.f32.mrb[5].mxu1 }
 0x122   :  { %257 = vst [vmem:[%s553_s4 + $0x10] sm:$0xff] %v227_v31  ;;  %262 = vst [vmem:[%s553_s4 + $0x38] sm:$0xff] %v232_v33 }
 0x123   :  { %v196_v38 = vpop.f32.mrb[6].mxu0  ;;  %v221_v39 = vpop.f32.mrb[6].mxu1 }
 0x124   :  { %v228_v40 = vadd.f32 %v196_v38, %v41_v34  ;;  %v198_v41 = vpop.f32.mrb[7].mxu0  ;;  %v233_v42 = vadd.f32 %v221_v39, %v46_v36  ;;  %v223_v44 = vpop.f32.mrb[7].mxu1 }
 0x126   :  { %258 = vst [vmem:[%s553_s4 + $0x18] sm:$0xff] %v228_v40  ;;  %263 = vst [vmem:[%s553_s4 + $0x40] sm:$0xff] %v233_v42 }
 0x127   :  { %v201_v45 = vpop.f32.mrb[8].mxu0 }
 0x128   :  { %v229_v46 = vadd.f32 %v201_v45, %v42_v43  ;;  %v203_v47 = vpop.f32.mrb[9].mxu0 }
 0x12a   :  { %259 = vst [vmem:[%s553_s4 + $0x20] sm:$0xff] %v229_v46 }

// kernel: _lambda_.53
= control target key start
LH: loop header
LB: loop body
LE: loop exit
PB: predicated region body
PF: predicated region fallthrough
CT: control target
= control target key end

     0   :  { %v206_v0 = vmov 0.0|0.0   ;;  %vm207_vm0 = vmmov 0   ;;  %v208_v3 = vmov 0.0   ;;  %s286_s1 = inlined_call_operand.vmem [shape: f32[128,128], index: 1, kind: input, shape index: {}]   ;;  %s287_s0 = inlined_call_operand.vmem [shape: f32[8,128], index: 0, kind: input, shape index: {}]   ;;  %s288_s2 = inlined_call_operand.vmem [shape: f32[1,128], index: 2, kind: input, shape index: {}]   ;;  %s289_s3 = inlined_call_operand.vmem [shape: f32[8,128], index: 3, kind: output, shape index: {}]  }
   0x1   :  { %179 = vmatprep.subr.bf16.mxu0 %v206_v0  ;;  %v29_v1 = vld [vmem:[%s286_s1] sm:$0xff]  ;;  %v30_v2 = vld [vmem:[%s286_s1 + $0x8] sm:$0xff]  ;;  %176 = vmatprep.mubr.msk.f32.mxu0 %vm207_vm0, %v208_v3  ;;  %v31_v5 = vld [vmem:[%s286_s1 + $0x10] sm:$0xff] }
   0x2   :  { %v180_v4 = vpack.c.bf16 %v30_v2, %v29_v1  ;;  %v32_v6 = vld [vmem:[%s286_s1 + $0x18] sm:$0xff]  ;;  %v33_v8 = vld [vmem:[%s286_s1 + $0x20] sm:$0xff]  ;;  %v34_v9 = vld [vmem:[%s286_s1 + $0x28] sm:$0xff] }
   0x3   :  { %v183_v7 = vpack.c.bf16 %v32_v6, %v31_v5  ;;  %v186_v10 = vpack.c.bf16 %v34_v9, %v33_v8  ;;  %v35_v11 = vld [vmem:[%s286_s1 + $0x30] sm:$0xff]  ;;  %v36_v12 = vld [vmem:[%s286_s1 + $0x38] sm:$0xff]  ;;  %v37_v14 = vld [vmem:[%s286_s1 + $0x40] sm:$0xff] }
   0x4   :  { %181 = vmatpush3.bf16.xpose.msra.mxu0 %v180_v4  ;;  %v189_v13 = vpack.c.bf16 %v36_v12, %v35_v11  ;;  %v38_v15 = vld [vmem:[%s286_s1 + $0x48] sm:$0xff]  ;;  %v39_v17 = vld [vmem:[%s286_s1 + $0x50] sm:$0xff]  ;;  %v40_v18 = vld [vmem:[%s286_s1 + $0x58] sm:$0xff] }
   0x5   :  { %182 = vmatprep.subr.bf16.mxu0 %v206_v0  ;;  %v192_v16 = vpack.c.bf16 %v38_v15, %v37_v14  ;;  %v195_v19 = vpack.c.bf16 %v40_v18, %v39_v17  ;;  %v41_v20 = vld [vmem:[%s286_s1 + $0x60] sm:$0xff]  ;;  %v42_v21 = vld [vmem:[%s286_s1 + $0x68] sm:$0xff]  ;;  %v43_v23 = vld [vmem:[%s286_s1 + $0x70] sm:$0xff] }
   0x6   :  { %v198_v22 = vpack.c.bf16 %v42_v21, %v41_v20  ;;  %v44_v24 = vld [vmem:[%s286_s1 + $0x78] sm:$0xff]  ;;  %v28_v26 = vld [vmem:[%s287_s0] sm:$0xff] }
   0x7   :  { %v201_v25 = vpack.c.bf16 %v44_v24, %v43_v23  ;;  %v126_v27 = vld [vmem:[%s288_s2] ss:$0 sm:$0xff] }
   0xc   :  { %184 = vmatpush3.bf16.xpose.msra.mxu0 %v183_v7 }
   0xd   :  { %185 = vmatprep.subr.bf16.mxu0 %v206_v0 }
  0x14   :  { %187 = vmatpush3.bf16.xpose.msra.mxu0 %v186_v10 }
  0x15   :  { %188 = vmatprep.subr.bf16.mxu0 %v206_v0 }
  0x1c   :  { %190 = vmatpush3.bf16.xpose.msra.mxu0 %v189_v13 }
  0x1d   :  { %191 = vmatprep.subr.bf16.mxu0 %v206_v0 }
  0x24   :  { %193 = vmatpush3.bf16.xpose.msra.mxu0 %v192_v16 }
  0x25   :  { %194 = vmatprep.subr.bf16.mxu0 %v206_v0 }
  0x2c   :  { %196 = vmatpush3.bf16.xpose.msra.mxu0 %v195_v19 }
  0x2d   :  { %197 = vmatprep.subr.bf16.mxu0 %v206_v0 }
  0x34   :  { %199 = vmatpush3.bf16.xpose.msra.mxu0 %v198_v22 }
  0x35   :  { %200 = vmatprep.subr.bf16.mxu0 %v206_v0 }
  0x3c   :  { %202 = vmatpush3.bf16.xpose.msra.mxu0 %v201_v25 }
  0x43   :  { %177 = vmatmul.mubr.f32.vlgmr.msra.gmra.mrb[0].mxu0 %v28_v26 }
 0x116   :  { %v111_v28 = vpop.f32.mrb[0].mxu0 }
 0x117   :  { %v115_v29 = vadd.f32 %v126_v27, %v111_v28  ;;  %v178_v30 = vpop.f32.mrb[1].mxu0 }
 0x119   :  { %121 = vst [vmem:[%s289_s3] sm:$0xff] %v115_v29 }

</bundles_post_ra>
